<compile_context>
chip_gen: v6e
topology: v6e:2x2x1
jax: 0.10.0
libtpu: 0.0.40
codegen_flags: <defaults>
</compile_context>

<pallas_src>
import jax
import jax.numpy as jnp
from jax.experimental import pallas as pl
from jax.experimental.pallas import tpu as pltpu

EPS = 1e-5
LANES = 128
HALO_W = 8   # sublane-aligned W halo for the stage-1 scratch


def _round_up(v, m):
    return ((v + m - 1) // m) * m


def _double_conv_kernel(x_ref, w1_ref, w2_ref, affine_ref, o_ref, h1_ref):
    """Fused (conv3x3 pad=1 -> train-mode BN -> ReLU) x 2.

    x_ref:      [N, H+2, W+2, Cin_p]          bf16 (halo 1, channel-padded)
    w1_ref:     [3, 3*Cin_p,  Cout_p]         bf16 (per-ky im2col, K = (kx, cin))
    w2_ref:     [3, 3*Cout_p, Cout_p]         bf16
    affine_ref: [4, Cout_p]                   f32  rows: gamma1, beta1, gamma2, beta2
    o_ref:      [N, H, W, Cout_p]             f32
    h1_ref:     [N, H+2, W+2*HALO_W, Cout_p]  bf16 VMEM scratch (stage-1 act.)
    """
    N, Hp, Wp2, _ = x_ref.shape
    H, W = Hp - 2, Wp2 - 2
    Cout_p = o_ref.shape[-1]
    M = N * H * W
    inv_m = 1.0 / M

    def conv3x3(src, w_ref, col0):
        # src: [N, H+2, *, C] bf16; taps live at columns col0+dx, dx = 0..2.
        # One dx-concat (3x the activation, not 9x), then 3 accumulating MXU
        # matmuls (one per ky) with K = 3*C and f32 accumulation.
        p = jnp.concatenate(
            [src[:, :, col0 + dx:col0 + dx + W, :] for dx in range(3)],
            axis=-1)                                        # [N, H+2, W, 3C] bf16
        acc = jnp.dot(p[:, 0:H].reshape(M, -1), w_ref[0],
                      preferred_element_type=jnp.float32)
        for ky in (1, 2):                                   # ky slice: free view
            acc = acc + jnp.dot(p[:, ky:ky + H].reshape(M, -1), w_ref[ky],
                                preferred_element_type=jnp.float32)
        return acc                                          # [M, Cout_p] f32

    def bn_relu(acc, gamma, beta):
        # Train-mode BatchNorm (biased variance), two-pass f32 stats, + ReLU.
        mean = jnp.sum(acc, axis=0, keepdims=True) * inv_m
        cen = acc - mean
        var = jnp.sum(cen * cen, axis=0, keepdims=True) * inv_m
        scale = gamma * jax.lax.rsqrt(var + EPS)            # rsqrt -> EUP slot
        return jnp.maximum(cen * scale + beta, 0.0)

    # ---------------- stage 1 ----------------
    acc1 = conv3x3(x_ref[...], w1_ref, col0=0)
    a1 = bn_relu(acc1, affine_ref[0:1, :], affine_ref[1:2, :])

    # Hand off through a bf16 VMEM scratch with an 8-wide (sublane-aligned)
    # W halo.  Only the halo strips are zeroed; the interior store at column
    # offset 8 is a full-width unmasked store.
    zc = jnp.zeros((N, Hp, HALO_W, Cout_p), h1_ref.dtype)
    h1_ref[:, :, 0:HALO_W, :] = zc                          # left strip
    h1_ref[:, :, W + HALO_W:, :] = zc                       # right strip
    zr = jnp.zeros((N, 1, W, Cout_p), h1_ref.dtype)
    h1_ref[:, 0:1, HALO_W:W + HALO_W, :] = zr               # top halo row
    h1_ref[:, H + 1:H + 2, HALO_W:W + HALO_W, :] = zr       # bottom halo row
    h1_ref[:, 1:H + 1, HALO_W:W + HALO_W, :] = (
        a1.reshape(N, H, W, Cout_p).astype(h1_ref.dtype))   # interior (aligned)

    # ---------------- stage 2 ----------------
    acc2 = conv3x3(h1_ref[...], w2_ref, col0=HALO_W - 1)
    y = bn_relu(acc2, affine_ref[2:3, :], affine_ref[3:4, :])
    o_ref[...] = y.reshape(N, H, W, Cout_p).astype(o_ref.dtype)


def double_conv(x_nchw, params):
    """Pallas equivalent of torch double_conv. x_nchw: [N, Cin, H, W] f32 (NCHW)."""
    (w1, b1, g1, be1), (w2, b2, g2, be2) = params
    # Conv biases are exactly cancelled by train-mode BN mean subtraction.
    del b1, b2

    N, Cin, H, W = x_nchw.shape
    Cout = w1.shape[-1]
    Cin_p = _round_up(Cin, LANES)
    Cout_p = _round_up(Cout, LANES)

    # NCHW -> NHWC bf16, spatial halo pad (1 px) + channel pad to lane width.
    x = jnp.transpose(x_nchw, (0, 2, 3, 1)).astype(jnp.bfloat16)
    x = jnp.pad(x, ((0, 0), (1, 1), (1, 1), (0, Cin_p - Cin)))

    # Weights [3,3,Cin,Cout] (ky,kx,cin,cout) -> per-ky im2col layout
    # [3, 3*C_p, Cout_p] with K ordered (kx, cin), matching the kernel's
    # dx-concatenated patches.  bf16 for the MXU.
    w1p = jnp.pad(w1, ((0, 0), (0, 0), (0, Cin_p - Cin), (0, Cout_p - Cout)))
    w1p = w1p.reshape(3, 3 * Cin_p, Cout_p).astype(jnp.bfloat16)
    w2p = jnp.pad(w2, ((0, 0), (0, 0), (0, Cout_p - Cout), (0, Cout_p - Cout)))
    w2p = w2p.reshape(3, 3 * Cout_p, Cout_p).astype(jnp.bfloat16)

    # Stacked per-channel affine params; zero-padded gammas/betas keep the
    # padded channels exactly 0 after BN + ReLU.
    def pad_c(v):
        return jnp.pad(v.astype(jnp.float32), (0, Cout_p - Cout))
    affine = jnp.stack([pad_c(g1), pad_c(be1), pad_c(g2), pad_c(be2)], axis=0)

    M = N * H * W
    flops = 2 * M * 9 * (Cin_p + Cout_p) * Cout_p
    bytes_accessed = (x.size * 2 + w1p.size * 2 + w2p.size * 2 +
                      affine.size * 4 + M * Cout_p * 4)

    # Live VMEM footprint estimate (demo shapes: a few MiB); clamp to the v7x
    # physical 64 MiB.  Production shapes need the tiling TODO above.
    vmem_est = (
        2 * x.size * 2 + 2 * (w1p.size + w2p.size) * 2 + 2 * affine.size * 4 +
        N * (H + 2) * (W + 2 * HALO_W) * Cout_p * 2 +        # h1 scratch
        N * (H + 2) * W * 3 * max(Cin_p, Cout_p) * 2 +       # im2col concat
        3 * M * Cout_p * 4 +                                 # acc / centered
        2 * M * Cout_p * 4)                                  # output block
    vmem_limit = int(min(max(2 * vmem_est, 16 * 1024 * 1024),
                         64 * 1024 * 1024))

    out = pl.pallas_call(
        _double_conv_kernel,
        out_shape=jax.ShapeDtypeStruct((N, H, W, Cout_p), jnp.float32),
        grid=(1,),
        in_specs=[
            pl.BlockSpec((N, H + 2, W + 2, Cin_p), lambda i: (0, 0, 0, 0)),
            pl.BlockSpec((3, 3 * Cin_p, Cout_p), lambda i: (0, 0, 0)),
            pl.BlockSpec((3, 3 * Cout_p, Cout_p), lambda i: (0, 0, 0)),
            pl.BlockSpec((4, Cout_p), lambda i: (0, 0)),
        ],
        out_specs=pl.BlockSpec((N, H, W, Cout_p), lambda i: (0, 0, 0, 0)),
        scratch_shapes=[
            pltpu.VMEM((N, H + 2, W + 2 * HALO_W, Cout_p), jnp.bfloat16)],
        compiler_params=pltpu.CompilerParams(
            dimension_semantics=("arbitrary",),
            vmem_limit_bytes=vmem_limit),
        cost_estimate=pl.CostEstimate(
            flops=flops, transcendentals=2 * Cout_p,
            bytes_accessed=bytes_accessed),
    )(x, w1p, w2p, affine)

    out = out[..., :Cout]                        # drop lane padding
    return jnp.transpose(out, (0, 3, 1, 2))      # NHWC -> NCHW (module returns NCHW f32)


def init_params(key, in_ch, out_ch):
    """Deterministic parameter init matching the torch module's shapes."""
    ks = jax.random.split(key, 6)
    # Conv weights created in torch layout [out, in, 3, 3] then moved to
    # kernel layout [3, 3, in, out] (HWIO).
    w1_t = 0.1 * jax.random.normal(ks[0], (out_ch, in_ch, 3, 3), jnp.float32)
    w2_t = 0.1 * jax.random.normal(ks[1], (out_ch, out_ch, 3, 3), jnp.float32)
    w1 = jnp.transpose(w1_t, (2, 3, 1, 0))
    w2 = jnp.transpose(w2_t, (2, 3, 1, 0))
    b1 = 0.1 * jax.random.normal(ks[2], (out_ch,), jnp.float32)
    b2 = 0.1 * jax.random.normal(ks[3], (out_ch,), jnp.float32)
    g1 = 1.0 + 0.1 * jax.random.normal(ks[4], (out_ch,), jnp.float32)
    g2 = 1.0 + 0.1 * jax.random.normal(ks[5], (out_ch,), jnp.float32)
    be1 = jnp.zeros((out_ch,), jnp.float32)
    be2 = jnp.zeros((out_ch,), jnp.float32)
    return (w1, b1, g1, be1), (w2, b2, g2, be2)


def _reference(x_nchw, params):
    """Pure-JAX reference (conv -> train-mode BN -> ReLU) x2, NCHW."""
    x = x_nchw
    for (w, b, g, be) in params:
        y = jax.lax.conv_general_dilated(
            x, w, window_strides=(1, 1), padding=((1, 1), (1, 1)),
            dimension_numbers=("NCHW", "HWIO", "NCHW"),
            precision=jax.lax.Precision.HIGHEST)
        y = y + b[None, :, None, None]
        mean = jnp.mean(y, axis=(0, 2, 3), keepdims=True)
        var = jnp.mean((y - mean) ** 2, axis=(0, 2, 3), keepdims=True)
        y = (y - mean) * jax.lax.rsqrt(var + EPS)
        y = y * g[None, :, None, None] + be[None, :, None, None]
        x = jnp.maximum(y, 0.0)
    return x


if __name__ == "__main__":
    key = jax.random.PRNGKey(0)
    k_x, k_p = jax.random.split(key)

    N, in_ch, out_ch, H, W = 2, 4, 8, 16, 16
    x = jax.random.normal(k_x, (N, in_ch, H, W), jnp.float32)
    params = init_params(k_p, in_ch, out_ch)

    out = jax.block_until_ready(double_conv(x, params))
    assert out.shape == (N, out_ch, H, W), out.shape

    ref = jax.block_until_ready(_reference(x, params))
    assert jnp.allclose(out, ref, atol=2e-2, rtol=2e-2), \
        float(jnp.max(jnp.abs(out - ref)))

    print("KERNEL_OK")
</pallas_src>

<mosaic_0001>
module attributes {stable_mosaic.version = 11 : i64} {
  func.func @_double_conv_kernel(%arg0: i32, %arg1: memref<2x18x18x128xbf16, #tpu.memory_space<vmem>>, %arg2: memref<3x384x128xbf16, #tpu.memory_space<vmem>>, %arg3: memref<3x384x128xbf16, #tpu.memory_space<vmem>>, %arg4: memref<4x128xf32, #tpu.memory_space<vmem>>, %arg5: memref<2x16x16x128xf32, #tpu.memory_space<vmem>>, %arg6: memref<2x18x32x128xbf16, #tpu.memory_space<vmem>>) attributes {dimension_semantics = [#tpu.dimension_semantics<arbitrary>], iteration_bounds = array<i64: 1>, scalar_prefetch = 0 : i64, scratch_operands = 1 : i64, tpu.core_type = #tpu.core_type<tc>, window_params = [{pipeline_mode = #tpu.pipeline_mode<synchronous>, transform_indices = @transform_0, window_bounds = array<i64: 2, 18, 18, 128>}, {pipeline_mode = #tpu.pipeline_mode<synchronous>, transform_indices = @transform_1, window_bounds = array<i64: 3, 384, 128>}, {pipeline_mode = #tpu.pipeline_mode<synchronous>, transform_indices = @transform_2, window_bounds = array<i64: 3, 384, 128>}, {pipeline_mode = #tpu.pipeline_mode<synchronous>, transform_indices = @transform_3, window_bounds = array<i64: 4, 128>}, {pipeline_mode = #tpu.pipeline_mode<synchronous>, transform_indices = @transform_4, window_bounds = array<i64: 2, 16, 16, 128>}]} {
    %c0 = arith.constant 0 : index
    %c0_0 = arith.constant 0 : index
    %c0_1 = arith.constant 0 : index
    %c0_2 = arith.constant 0 : index
    %0 = vector.load %arg1[%c0, %c0_0, %c0_1, %c0_2] : memref<2x18x18x128xbf16, #tpu.memory_space<vmem>>, vector<2x18x18x128xbf16>
    %1 = vector.extract_strided_slice %0 {offsets = [0, 0, 0, 0], sizes = [2, 18, 16, 128], strides = [1, 1, 1, 1]} : vector<2x18x18x128xbf16> to vector<2x18x16x128xbf16>
    %2 = vector.extract_strided_slice %0 {offsets = [0, 0, 1, 0], sizes = [2, 18, 16, 128], strides = [1, 1, 1, 1]} : vector<2x18x18x128xbf16> to vector<2x18x16x128xbf16>
    %3 = vector.extract_strided_slice %0 {offsets = [0, 0, 2, 0], sizes = [2, 18, 16, 128], strides = [1, 1, 1, 1]} : vector<2x18x18x128xbf16> to vector<2x18x16x128xbf16>
    %4 = tpu.concatenate %1, %2, %3 in 3 : vector<2x18x16x128xbf16>, vector<2x18x16x128xbf16>, vector<2x18x16x128xbf16> -> vector<2x18x16x384xbf16>
    %5 = vector.extract_strided_slice %4 {offsets = [0, 0, 0, 0], sizes = [2, 16, 16, 384], strides = [1, 1, 1, 1]} : vector<2x18x16x384xbf16> to vector<2x16x16x384xbf16>
    %6 = vector.shape_cast %5 : vector<2x16x16x384xbf16> to vector<512x384xbf16>
    %c0_3 = arith.constant 0 : index
    %c0_4 = arith.constant 0 : index
    %c0_5 = arith.constant 0 : index
    %7 = vector.load %arg2[%c0_3, %c0_4, %c0_5] : memref<3x384x128xbf16, #tpu.memory_space<vmem>>, vector<1x384x128xbf16>
    %8 = vector.shape_cast %7 : vector<1x384x128xbf16> to vector<384x128xbf16>
    %cst = arith.constant dense<0.000000e+00> : vector<512x128xf32>
    %9 = tpu.matmul %6, %8, %cst {dimension_numbers = #tpu.dot_dimension_numbers<[1], [0], [0], [1], [0, 0, 1, 1], [], []>} : vector<512x384xbf16>, vector<384x128xbf16>, vector<512x128xf32> -> vector<512x128xf32>
    %10 = vector.extract_strided_slice %4 {offsets = [0, 1, 0, 0], sizes = [2, 16, 16, 384], strides = [1, 1, 1, 1]} : vector<2x18x16x384xbf16> to vector<2x16x16x384xbf16>
    %11 = vector.shape_cast %10 : vector<2x16x16x384xbf16> to vector<512x384xbf16>
    %c1 = arith.constant 1 : index
    %c0_6 = arith.constant 0 : index
    %c0_7 = arith.constant 0 : index
    %12 = vector.load %arg2[%c1, %c0_6, %c0_7] : memref<3x384x128xbf16, #tpu.memory_space<vmem>>, vector<1x384x128xbf16>
    %13 = vector.shape_cast %12 : vector<1x384x128xbf16> to vector<384x128xbf16>
    %cst_8 = arith.constant dense<0.000000e+00> : vector<512x128xf32>
    %14 = tpu.matmul %11, %13, %cst_8 {dimension_numbers = #tpu.dot_dimension_numbers<[1], [0], [0], [1], [0, 0, 1, 1], [], []>} : vector<512x384xbf16>, vector<384x128xbf16>, vector<512x128xf32> -> vector<512x128xf32>
    %15 = arith.addf %9, %14 : vector<512x128xf32>
    %16 = vector.extract_strided_slice %4 {offsets = [0, 2, 0, 0], sizes = [2, 16, 16, 384], strides = [1, 1, 1, 1]} : vector<2x18x16x384xbf16> to vector<2x16x16x384xbf16>
    %17 = vector.shape_cast %16 : vector<2x16x16x384xbf16> to vector<512x384xbf16>
    %c2 = arith.constant 2 : index
    %c0_9 = arith.constant 0 : index
    %c0_10 = arith.constant 0 : index
    %18 = vector.load %arg2[%c2, %c0_9, %c0_10] : memref<3x384x128xbf16, #tpu.memory_space<vmem>>, vector<1x384x128xbf16>
    %19 = vector.shape_cast %18 : vector<1x384x128xbf16> to vector<384x128xbf16>
    %cst_11 = arith.constant dense<0.000000e+00> : vector<512x128xf32>
    %20 = tpu.matmul %17, %19, %cst_11 {dimension_numbers = #tpu.dot_dimension_numbers<[1], [0], [0], [1], [0, 0, 1, 1], [], []>} : vector<512x384xbf16>, vector<384x128xbf16>, vector<512x128xf32> -> vector<512x128xf32>
    %21 = arith.addf %15, %20 : vector<512x128xf32>
    %c0_12 = arith.constant 0 : index
    %c0_13 = arith.constant 0 : index
    %22 = vector.load %arg4[%c0_12, %c0_13] : memref<4x128xf32, #tpu.memory_space<vmem>>, vector<1x128xf32>
    %c1_14 = arith.constant 1 : index
    %c0_15 = arith.constant 0 : index
    %23 = vector.load %arg4[%c1_14, %c0_15] : memref<4x128xf32, #tpu.memory_space<vmem>>, vector<1x128xf32>
    %cst_16 = arith.constant dense<0.000000e+00> : vector<128xf32>
    %24 = vector.multi_reduction <add>, %21, %cst_16 [0] : vector<512x128xf32> to vector<128xf32>
    %25 = vector.shape_cast %24 : vector<128xf32> to vector<1x128xf32>
    %cst_17 = arith.constant 0.001953125 : f32
    %26 = vector.broadcast %cst_17 : f32 to vector<1x128xf32>
    %27 = arith.mulf %25, %26 : vector<1x128xf32>
    %28 = vector.broadcast %27 : vector<1x128xf32> to vector<512x128xf32>
    %29 = arith.subf %21, %28 : vector<512x128xf32>
    %30 = arith.mulf %29, %29 : vector<512x128xf32>
    %cst_18 = arith.constant dense<0.000000e+00> : vector<128xf32>
    %31 = vector.multi_reduction <add>, %30, %cst_18 [0] : vector<512x128xf32> to vector<128xf32>
    %32 = vector.shape_cast %31 : vector<128xf32> to vector<1x128xf32>
    %cst_19 = arith.constant 0.001953125 : f32
    %33 = vector.broadcast %cst_19 : f32 to vector<1x128xf32>
    %34 = arith.mulf %32, %33 : vector<1x128xf32>
    %cst_20 = arith.constant 9.99999974E-6 : f32
    %35 = vector.broadcast %cst_20 : f32 to vector<1x128xf32>
    %36 = arith.addf %34, %35 : vector<1x128xf32>
    %37 = math.rsqrt %36 : vector<1x128xf32>
    %38 = arith.mulf %22, %37 : vector<1x128xf32>
    %39 = vector.broadcast %38 : vector<1x128xf32> to vector<512x128xf32>
    %40 = arith.mulf %29, %39 : vector<512x128xf32>
    %41 = vector.broadcast %23 : vector<1x128xf32> to vector<512x128xf32>
    %42 = arith.addf %40, %41 : vector<512x128xf32>
    %cst_21 = arith.constant 0.000000e+00 : f32
    %43 = vector.broadcast %cst_21 : f32 to vector<512x128xf32>
    %44 = arith.maximumf %42, %43 : vector<512x128xf32>
    %cst_22 = arith.constant 0.000000e+00 : bf16
    %45 = vector.broadcast %cst_22 : bf16 to vector<2x18x8x128xbf16>
    %c0_23 = arith.constant 0 : index
    %c0_24 = arith.constant 0 : index
    %c0_25 = arith.constant 0 : index
    %c0_26 = arith.constant 0 : index
    %46 = vector.load %arg6[%c0_23, %c0_24, %c0_25, %c0_26] : memref<2x18x32x128xbf16, #tpu.memory_space<vmem>>, vector<2x18x8x128xbf16>
    tpu.vector_store %arg6[%c0_23, %c0_24, %c0_25, %c0_26], %45 {strides = array<i32>} : memref<2x18x32x128xbf16, #tpu.memory_space<vmem>>, vector<2x18x8x128xbf16>,
    %c0_27 = arith.constant 0 : index
    %c0_28 = arith.constant 0 : index
    %c24 = arith.constant 24 : index
    %c0_29 = arith.constant 0 : index
    %47 = vector.load %arg6[%c0_27, %c0_28, %c24, %c0_29] : memref<2x18x32x128xbf16, #tpu.memory_space<vmem>>, vector<2x18x8x128xbf16>
    tpu.vector_store %arg6[%c0_27, %c0_28, %c24, %c0_29], %45 {strides = array<i32>} : memref<2x18x32x128xbf16, #tpu.memory_space<vmem>>, vector<2x18x8x128xbf16>,
    %cst_30 = arith.constant 0.000000e+00 : bf16
    %48 = vector.broadcast %cst_30 : bf16 to vector<2x1x16x128xbf16>
    %c0_31 = arith.constant 0 : index
    %c0_32 = arith.constant 0 : index
    %c8 = arith.constant 8 : index
    %c0_33 = arith.constant 0 : index
    %49 = vector.load %arg6[%c0_31, %c0_32, %c8, %c0_33] : memref<2x18x32x128xbf16, #tpu.memory_space<vmem>>, vector<2x1x16x128xbf16>
    tpu.vector_store %arg6[%c0_31, %c0_32, %c8, %c0_33], %48 {strides = array<i32>} : memref<2x18x32x128xbf16, #tpu.memory_space<vmem>>, vector<2x1x16x128xbf16>,
    %c0_34 = arith.constant 0 : index
    %c17 = arith.constant 17 : index
    %c8_35 = arith.constant 8 : index
    %c0_36 = arith.constant 0 : index
    %50 = vector.load %arg6[%c0_34, %c17, %c8_35, %c0_36] : memref<2x18x32x128xbf16, #tpu.memory_space<vmem>>, vector<2x1x16x128xbf16>
    tpu.vector_store %arg6[%c0_34, %c17, %c8_35, %c0_36], %48 {strides = array<i32>} : memref<2x18x32x128xbf16, #tpu.memory_space<vmem>>, vector<2x1x16x128xbf16>,
    %51 = vector.shape_cast %44 : vector<512x128xf32> to vector<2x16x16x128xf32>
    %52 = arith.truncf %51 : vector<2x16x16x128xf32> to vector<2x16x16x128xbf16>
    %c0_37 = arith.constant 0 : index
    %c1_38 = arith.constant 1 : index
    %c8_39 = arith.constant 8 : index
    %c0_40 = arith.constant 0 : index
    %53 = vector.load %arg6[%c0_37, %c1_38, %c8_39, %c0_40] : memref<2x18x32x128xbf16, #tpu.memory_space<vmem>>, vector<2x16x16x128xbf16>
    tpu.vector_store %arg6[%c0_37, %c1_38, %c8_39, %c0_40], %52 {strides = array<i32>} : memref<2x18x32x128xbf16, #tpu.memory_space<vmem>>, vector<2x16x16x128xbf16>,
    %c0_41 = arith.constant 0 : index
    %c0_42 = arith.constant 0 : index
    %c0_43 = arith.constant 0 : index
    %c0_44 = arith.constant 0 : index
    %54 = vector.load %arg6[%c0_41, %c0_42, %c0_43, %c0_44] : memref<2x18x32x128xbf16, #tpu.memory_space<vmem>>, vector<2x18x32x128xbf16>
    %55 = vector.extract_strided_slice %54 {offsets = [0, 0, 7, 0], sizes = [2, 18, 16, 128], strides = [1, 1, 1, 1]} : vector<2x18x32x128xbf16> to vector<2x18x16x128xbf16>
    %56 = vector.extract_strided_slice %54 {offsets = [0, 0, 8, 0], sizes = [2, 18, 16, 128], strides = [1, 1, 1, 1]} : vector<2x18x32x128xbf16> to vector<2x18x16x128xbf16>
    %57 = vector.extract_strided_slice %54 {offsets = [0, 0, 9, 0], sizes = [2, 18, 16, 128], strides = [1, 1, 1, 1]} : vector<2x18x32x128xbf16> to vector<2x18x16x128xbf16>
    %58 = tpu.concatenate %55, %56, %57 in 3 : vector<2x18x16x128xbf16>, vector<2x18x16x128xbf16>, vector<2x18x16x128xbf16> -> vector<2x18x16x384xbf16>
    %59 = vector.extract_strided_slice %58 {offsets = [0, 0, 0, 0], sizes = [2, 16, 16, 384], strides = [1, 1, 1, 1]} : vector<2x18x16x384xbf16> to vector<2x16x16x384xbf16>
    %60 = vector.shape_cast %59 : vector<2x16x16x384xbf16> to vector<512x384xbf16>
    %c0_45 = arith.constant 0 : index
    %c0_46 = arith.constant 0 : index
    %c0_47 = arith.constant 0 : index
    %61 = vector.load %arg3[%c0_45, %c0_46, %c0_47] : memref<3x384x128xbf16, #tpu.memory_space<vmem>>, vector<1x384x128xbf16>
    %62 = vector.shape_cast %61 : vector<1x384x128xbf16> to vector<384x128xbf16>
    %cst_48 = arith.constant dense<0.000000e+00> : vector<512x128xf32>
    %63 = tpu.matmul %60, %62, %cst_48 {dimension_numbers = #tpu.dot_dimension_numbers<[1], [0], [0], [1], [0, 0, 1, 1], [], []>} : vector<512x384xbf16>, vector<384x128xbf16>, vector<512x128xf32> -> vector<512x128xf32>
    %64 = vector.extract_strided_slice %58 {offsets = [0, 1, 0, 0], sizes = [2, 16, 16, 384], strides = [1, 1, 1, 1]} : vector<2x18x16x384xbf16> to vector<2x16x16x384xbf16>
    %65 = vector.shape_cast %64 : vector<2x16x16x384xbf16> to vector<512x384xbf16>
    %c1_49 = arith.constant 1 : index
    %c0_50 = arith.constant 0 : index
    %c0_51 = arith.constant 0 : index
    %66 = vector.load %arg3[%c1_49, %c0_50, %c0_51] : memref<3x384x128xbf16, #tpu.memory_space<vmem>>, vector<1x384x128xbf16>
    %67 = vector.shape_cast %66 : vector<1x384x128xbf16> to vector<384x128xbf16>
    %cst_52 = arith.constant dense<0.000000e+00> : vector<512x128xf32>
    %68 = tpu.matmul %65, %67, %cst_52 {dimension_numbers = #tpu.dot_dimension_numbers<[1], [0], [0], [1], [0, 0, 1, 1], [], []>} : vector<512x384xbf16>, vector<384x128xbf16>, vector<512x128xf32> -> vector<512x128xf32>
    %69 = arith.addf %63, %68 : vector<512x128xf32>
    %70 = vector.extract_strided_slice %58 {offsets = [0, 2, 0, 0], sizes = [2, 16, 16, 384], strides = [1, 1, 1, 1]} : vector<2x18x16x384xbf16> to vector<2x16x16x384xbf16>
    %71 = vector.shape_cast %70 : vector<2x16x16x384xbf16> to vector<512x384xbf16>
    %c2_53 = arith.constant 2 : index
    %c0_54 = arith.constant 0 : index
    %c0_55 = arith.constant 0 : index
    %72 = vector.load %arg3[%c2_53, %c0_54, %c0_55] : memref<3x384x128xbf16, #tpu.memory_space<vmem>>, vector<1x384x128xbf16>
    %73 = vector.shape_cast %72 : vector<1x384x128xbf16> to vector<384x128xbf16>
    %cst_56 = arith.constant dense<0.000000e+00> : vector<512x128xf32>
    %74 = tpu.matmul %71, %73, %cst_56 {dimension_numbers = #tpu.dot_dimension_numbers<[1], [0], [0], [1], [0, 0, 1, 1], [], []>} : vector<512x384xbf16>, vector<384x128xbf16>, vector<512x128xf32> -> vector<512x128xf32>
    %75 = arith.addf %69, %74 : vector<512x128xf32>
    %c2_57 = arith.constant 2 : index
    %c0_58 = arith.constant 0 : index
    %76 = vector.load %arg4[%c2_57, %c0_58] : memref<4x128xf32, #tpu.memory_space<vmem>>, vector<1x128xf32>
    %c3 = arith.constant 3 : index
    %c0_59 = arith.constant 0 : index
    %77 = vector.load %arg4[%c3, %c0_59] : memref<4x128xf32, #tpu.memory_space<vmem>>, vector<1x128xf32>
    %cst_60 = arith.constant dense<0.000000e+00> : vector<128xf32>
    %78 = vector.multi_reduction <add>, %75, %cst_60 [0] : vector<512x128xf32> to vector<128xf32>
    %79 = vector.shape_cast %78 : vector<128xf32> to vector<1x128xf32>
    %cst_61 = arith.constant 0.001953125 : f32
    %80 = vector.broadcast %cst_61 : f32 to vector<1x128xf32>
    %81 = arith.mulf %79, %80 : vector<1x128xf32>
    %82 = vector.broadcast %81 : vector<1x128xf32> to vector<512x128xf32>
    %83 = arith.subf %75, %82 : vector<512x128xf32>
    %84 = arith.mulf %83, %83 : vector<512x128xf32>
    %cst_62 = arith.constant dense<0.000000e+00> : vector<128xf32>
    %85 = vector.multi_reduction <add>, %84, %cst_62 [0] : vector<512x128xf32> to vector<128xf32>
    %86 = vector.shape_cast %85 : vector<128xf32> to vector<1x128xf32>
    %cst_63 = arith.constant 0.001953125 : f32
    %87 = vector.broadcast %cst_63 : f32 to vector<1x128xf32>
    %88 = arith.mulf %86, %87 : vector<1x128xf32>
    %cst_64 = arith.constant 9.99999974E-6 : f32
    %89 = vector.broadcast %cst_64 : f32 to vector<1x128xf32>
    %90 = arith.addf %88, %89 : vector<1x128xf32>
    %91 = math.rsqrt %90 : vector<1x128xf32>
    %92 = arith.mulf %76, %91 : vector<1x128xf32>
    %93 = vector.broadcast %92 : vector<1x128xf32> to vector<512x128xf32>
    %94 = arith.mulf %83, %93 : vector<512x128xf32>
    %95 = vector.broadcast %77 : vector<1x128xf32> to vector<512x128xf32>
    %96 = arith.addf %94, %95 : vector<512x128xf32>
    %cst_65 = arith.constant 0.000000e+00 : f32
    %97 = vector.broadcast %cst_65 : f32 to vector<512x128xf32>
    %98 = arith.maximumf %96, %97 : vector<512x128xf32>
    %99 = vector.shape_cast %98 : vector<512x128xf32> to vector<2x16x16x128xf32>
    %c0_66 = arith.constant 0 : index
    %c0_67 = arith.constant 0 : index
    %c0_68 = arith.constant 0 : index
    %c0_69 = arith.constant 0 : index
    %100 = vector.load %arg5[%c0_66, %c0_67, %c0_68, %c0_69] : memref<2x16x16x128xf32, #tpu.memory_space<vmem>>, vector<2x16x16x128xf32>
    tpu.vector_store %arg5[%c0_66, %c0_67, %c0_68, %c0_69], %99 {strides = array<i32>} : memref<2x16x16x128xf32, #tpu.memory_space<vmem>>, vector<2x16x16x128xf32>,
    return
  }
  func.func @transform_0(%arg0: i32) -> (i32, i32, i32, i32) {
    %c0_i32 = arith.constant 0 : i32
    %c0_i32_0 = arith.constant 0 : i32
    %c0_i32_1 = arith.constant 0 : i32
    %c0_i32_2 = arith.constant 0 : i32
    %c0_i32_3 = arith.constant 0 : i32
    return %c0_i32, %c0_i32_0, %c0_i32_1, %c0_i32_2 : i32, i32, i32, i32
  }
  func.func @transform_1(%arg0: i32) -> (i32, i32, i32) {
    %c0_i32 = arith.constant 0 : i32
    %c0_i32_0 = arith.constant 0 : i32
    %c0_i32_1 = arith.constant 0 : i32
    %c0_i32_2 = arith.constant 0 : i32
    return %c0_i32, %c0_i32_0, %c0_i32_1 : i32, i32, i32
  }
  func.func @transform_2(%arg0: i32) -> (i32, i32, i32) {
    %c0_i32 = arith.constant 0 : i32
    %c0_i32_0 = arith.constant 0 : i32
    %c0_i32_1 = arith.constant 0 : i32
    %c0_i32_2 = arith.constant 0 : i32
    return %c0_i32, %c0_i32_0, %c0_i32_1 : i32, i32, i32
  }
  func.func @transform_3(%arg0: i32) -> (i32, i32) {
    %c0_i32 = arith.constant 0 : i32
    %c0_i32_0 = arith.constant 0 : i32
    %c0_i32_1 = arith.constant 0 : i32
    return %c0_i32, %c0_i32_0 : i32, i32
  }
  func.func @transform_4(%arg0: i32) -> (i32, i32, i32, i32) {
    %c0_i32 = arith.constant 0 : i32
    %c0_i32_0 = arith.constant 0 : i32
    %c0_i32_1 = arith.constant 0 : i32
    %c0_i32_2 = arith.constant 0 : i32
    %c0_i32_3 = arith.constant 0 : i32
    return %c0_i32, %c0_i32_0, %c0_i32_1, %c0_i32_2 : i32, i32, i32, i32
  }
}

</mosaic_0001>

<bundles_post_ra>
// kernel: tpu_custom_call.1
= control target key start
LH: loop header
LB: loop body
LE: loop exit
PB: predicated region body
PF: predicated region fallthrough
CT: control target
= control target key end

     0   :  { %9 = vsyncpa [#allocation4], 0  ;;  %s18211_s0 = inlined_call_operand.vmem [shape: bf16[2,18,18,128], index: 0, kind: input, shape index: {}]   ;;  %s18212_s1 = inlined_call_operand.vmem [shape: bf16[3,384,128], index: 1, kind: input, shape index: {}]   ;;  %s18213_s2 = inlined_call_operand.hbm [shape: bf16[3,384,128], index: 2, kind: input, shape index: {}]   ;;  %s18214_s3 = inlined_call_operand.vmem [shape: f32[4,128], index: 3, kind: input, shape index: {}]   ;;  %s18215_s4 = inlined_call_operand.hbm [shape: f32[2,16,16,128], index: 4, kind: output, shape index: {}]  }
   0x1   :  { %10 = vsyncpa [#allocation5], 0  ;;  %s11717_s15 = smov [#allocation3]  }
   0x2   :  { %s20_s16 = sshll.u32 %s11717_s15, 4  ;;  %s21_s16 = int_to_ptr.vmem [resolvable:$true] %s20_s16 }
   0x3   :  { %s11681_s17 = scalar_lea.vmem %s21_s16, 9216  ;;  %p11686_p1 = scmp.lt.s32.totalorder %s21_s16, %s21_s16 }
   0x4   :  { %p11682_p0 = scmp.ne.s32.totalorder %s21_s16, %s11681_s17  ;;  %p11687_p2 = scmp.lt.s32.totalorder %s11681_s17, %s11681_s17 }
   0x6   :  { %p11688_p3 = por %p11687_p2, %p11686_p1 }
   0x8   :  { %p11689_p4 = pnand %p11688_p3, %p11682_p0 }
   0xa   :  { %11692 = shalt.err (!%p11689_p4)
}
   0xb   :  { %s11718_s18 = smov 64   ;;  %s11719_s19 = smov 4  }
   0xc   :  { %26 = dma.hbm_to_vmem [thread:$0]  %s18213_s2, 9216, %s21_s16, [#allocation4], %s11718_s18, %s11718_s18, %s11719_s19  }
   0xd   :  { %11713 = dma.done.wait [#allocation4], 9216  }
   0xe   :  { %11714 = vsyncadd [#allocation4], 4294958080  ;;  %v18217_v0 = vmov 0   ;;  %v11203_v1 = vld [vmem:[%s18212_s1 + $0xf8] sm:$0xff]   ;;  %v11205_v3 = vld [vmem:[%s18212_s1 + $0xf0] sm:$0xff]   ;;  %vm934_vm0 = vcmask 1046528  }
   0xf   :  { %1320 = vmatprep.subr.bf16.mxu0 %v18217_v0  ;;  %3928 = vst [vmem:[#allocation2] sm:$0xf] %v18217_v0  ;;  %3929 = vst [vmem:[#allocation2 + $0x10] sm:$0xf] %v18217_v0  ;;  %v11204_v2 = vld [vmem:[%s18212_s1 + $0x178] sm:$0xff]   ;;  %v11206_v4 = vld [vmem:[%s18212_s1 + $0x170] sm:$0xff]  }
  0x10   :  { %3930 = vst [vmem:[#allocation2 + $0x20] sm:$0xf] %v18217_v0  ;;  %3931 = vst [vmem:[#allocation2 + $0x30] sm:$0xf] %v18217_v0  ;;  %1321 = vmatpush1.bf16.msra.mxu0 %v11203_v1  ;;  %10716 = vmatprep.subr.bf16.mxu1 %v11204_v2  ;;  %v11208_v5 = vld [vmem:[%s18212_s1 + $0x168] sm:$0xff]   ;;  %v11210_v7 = vld [vmem:[%s18212_s1 + $0x160] sm:$0xff]  }
  0x11   :  { %3932 = vst [vmem:[#allocation2 + $0x40] sm:$0xf] %v18217_v0  ;;  %3933 = vst [vmem:[#allocation2 + $0x50] sm:$0xf] %v18217_v0  ;;  %1322 = vmatprep.subr.bf16.mxu0 %v18217_v0  ;;  %10717 = vmatpush3.bf16.msra.mxu1 %v11204_v2  ;;  %v11207_v6 = vld [vmem:[%s18212_s1 + $0xe8] sm:$0xff]   ;;  %v11209_v8 = vld [vmem:[%s18212_s1 + $0xe0] sm:$0xff]  }
  0x12   :  { %3934 = vst [vmem:[#allocation2 + $0x60] sm:$0xf] %v18217_v0  ;;  %3935 = vst [vmem:[#allocation2 + $0x70] sm:$0xf] %v18217_v0  ;;  %10718 = vmatprep.subr.bf16.mxu1 %v11206_v4  ;;  %v11212_v9 = vld [vmem:[%s18212_s1 + $0x158] sm:$0xff]   ;;  %v11214_v11 = vld [vmem:[%s18212_s1 + $0x150] sm:$0xff]  }
  0x13   :  { %3936 = vst [vmem:[#allocation2 + $0x80] sm:$0xf] %v18217_v0  ;;  %3937 = vst [vmem:[#allocation2 + $0x90] sm:$0xf] %v18217_v0  ;;  %v11211_v10 = vld [vmem:[%s18212_s1 + $0xd8] sm:$0xff]   ;;  %v11873_v12 = vld [vmem:[%s18211_s0 + $0xc] sm:$0xff]  }
  0x14   :  { %3938 = vst [vmem:[#allocation2 + $0xa0] sm:$0xf] %v18217_v0  ;;  %3939 = vst [vmem:[#allocation2 + $0xb0] sm:$0xf] %v18217_v0  ;;  %1323 = vmatpush1.bf16.msra.mxu0 %v11205_v3  ;;  %v11213_v14 = vld [vmem:[%s18212_s1 + $0xd0] sm:$0xff]   ;;  %v938_v15 = vrot.slane %v11873_v12, 1 }
  0x15   :  { %3940 = vst [vmem:[#allocation2 + $0xc0] sm:$0xf] %v18217_v0  ;;  %3941 = vst [vmem:[#allocation2 + $0xd0] sm:$0xf] %v18217_v0  ;;  %1324 = vmatprep.subr.bf16.mxu0 %v18217_v0  ;;  %10719 = vmatpush3.bf16.msra.mxu1 %v11206_v4  ;;  %v11216_v17 = vld [vmem:[%s18212_s1 + $0x148] sm:$0xff]   ;;  %v11218_v21 = vld [vmem:[%s18212_s1 + $0x140] sm:$0xff]  }
  0x16   :  { %3942 = vst [vmem:[#allocation2 + $0xe0] sm:$0xf] %v18217_v0  ;;  %3943 = vst [vmem:[#allocation2 + $0xf0] sm:$0xf] %v18217_v0  ;;  %10720 = vmatprep.subr.bf16.mxu1 %v11208_v5  ;;  %v11215_v19 = vld [vmem:[%s18212_s1 + $0xc8] sm:$0xff]   ;;  %v11908_v22 = vld [vmem:[%s18211_s0 + $0x18] sm:$0xff]  }
  0x17   :  { %3944 = vst [vmem:[#allocation2 + $0x100] sm:$0xf] %v18217_v0  ;;  %3945 = vst [vmem:[#allocation2 + $0x110] sm:$0xf] %v18217_v0  ;;  %v11918_v24 = vld [vmem:[%s18211_s0 + $0x24] sm:$0xff]   ;;  %v11221_v26 = vld [vmem:[%s18212_s1 + $0x138] sm:$0xff]  }
  0x18   :  { %3946 = vst [vmem:[#allocation2 + $0x120] sm:$0xf] %v18217_v0  ;;  %3947 = vst [vmem:[#allocation2 + $0x130] sm:$0xf] %v18217_v0  ;;  %1325 = vmatpush1.bf16.msra.mxu0 %v11207_v6  ;;  %v11217_v25 = vld [vmem:[%s18212_s1 + $0xc0] sm:$0xff]   ;;  %v941_v27 = vrot.slane %v11908_v22, 1 }
  0x19   :  { %3948 = vst [vmem:[#allocation2 + $0x140] sm:$0xf] %v18217_v0  ;;  %3949 = vst [vmem:[#allocation2 + $0x150] sm:$0xf] %v18217_v0  ;;  %1326 = vmatprep.subr.bf16.mxu0 %v18217_v0  ;;  %10721 = vmatpush3.bf16.msra.mxu1 %v11208_v5  ;;  %v944_v29 = vrot.slane %v11918_v24, 1  ;;  %v11224_v32 = vld [vmem:[%s18212_s1 + $0x38] sm:$0xff]  }
  0x1a   :  { %3950 = vst [vmem:[#allocation2 + $0x160] sm:$0xf] %v18217_v0  ;;  %3951 = vst [vmem:[#allocation2 + $0x170] sm:$0xf] %v18217_v0  ;;  %10722 = vmatprep.subr.bf16.mxu1 %v11210_v7  ;;  %v11951_v35 = vld [vmem:[%s18211_s0 + $0x30] sm:$0xff]   ;;  %v11960_v37 = vld [vmem:[%s18211_s0 + $0x3c] sm:$0xff]  }
  0x1b   :  { %3952 = vst [vmem:[#allocation2 + $0x180] sm:$0xf] %v18217_v0  ;;  %3953 = vst [vmem:[#allocation2 + $0x190] sm:$0xf] %v18217_v0  ;;  %v11225_v38 = vld [vmem:[%s18212_s1 + $0x130] sm:$0xff]   ;;  %v481_v39 = vshll.u32 %v11873_v12, 16 }
  0x1c   :  { %3954 = vst [vmem:[#allocation2 + $0x1a0] sm:$0xf] %v18217_v0  ;;  %3955 = vst [vmem:[#allocation2 + $0x1b0] sm:$0xf] %v18217_v0  ;;  %1327 = vmatpush1.bf16.msra.mxu0 %v11209_v8  ;;  %v11231_v40 = vld [vmem:[%s18212_s1 + $0x30] sm:$0xff]   ;;  %v947_v41 = vrot.slane %v11951_v35, 1 }
  0x1d   :  { %3956 = vst [vmem:[#allocation2 + $0x1c0] sm:$0xf] %v18217_v0  ;;  %3957 = vst [vmem:[#allocation2 + $0x1d0] sm:$0xf] %v18217_v0  ;;  %1328 = vmatprep.subr.bf16.mxu0 %v18217_v0  ;;  %10723 = vmatpush3.bf16.msra.mxu1 %v11210_v7  ;;  %vm465_vm1 = vsmask.f32 7424 }
  0x1e   :  { %3958 = vst [vmem:[#allocation2 + $0x1e0] sm:$0xf] %v18217_v0  ;;  %3959 = vst [vmem:[#allocation2 + $0x1f0] sm:$0xf] %v18217_v0  ;;  %10724 = vmatprep.subr.bf16.mxu1 %v11212_v9  ;;  %v11228_v43 = vld [vmem:[%s18212_s1 + $0x128] sm:$0xff]   ;;  %v950_v44 = vrot.slane %v11960_v37, 1 }
  0x1f   :  { %3960 = vst [vmem:[#allocation2 + $0x200] sm:$0xf] %v18217_v0  ;;  %3961 = vst [vmem:[#allocation2 + $0x210] sm:$0xf] %v18217_v0  ;;  %v479_v46 = vshrl.u32 %v11873_v12, 16  ;;  %v11984_v47 = vld [vmem:[%s18211_s0 + $0x48] sm:$0xff]  }
  0x20   :  { %3962 = vst [vmem:[#allocation2 + $0x220] sm:$0xf] %v18217_v0  ;;  %3963 = vst [vmem:[#allocation2 + $0x230] sm:$0xf] %v18217_v0  ;;  %1329 = vmatpush1.bf16.msra.mxu0 %v11211_v10  ;;  %v483_v49 = vrot.slane %v481_v39, 1  ;;  %v11238_v50 = vld [vmem:[%s18212_s1 + $0x28] sm:$0xff]  }
  0x21   :  { %3964 = vst [vmem:[#allocation2 + $0xc] sm:$0xf] %v18217_v0  ;;  %3965 = vst [vmem:[#allocation2 + $0x1c] sm:$0xf] %v18217_v0  ;;  %1330 = vmatprep.subr.bf16.mxu0 %v18217_v0  ;;  %10725 = vmatpush3.bf16.msra.mxu1 %v11212_v9  ;;  %v12001_v52 = vld [vmem:[%s18211_s0 + $0x54] sm:$0xff]   ;;  %v11232_v55 = vld [vmem:[%s18212_s1 + $0x120] sm:$0xff]  }
  0x22   :  { %3966 = vst [vmem:[#allocation2 + $0x2c] sm:$0xf] %v18217_v0  ;;  %3967 = vst [vmem:[#allocation2 + $0x3c] sm:$0xf] %v18217_v0  ;;  %10726 = vmatprep.subr.bf16.mxu1 %v11214_v11  ;;  %v953_v56 = vrot.slane %v11984_v47, 1  ;;  %v484_v57 = vor.u32 %v483_v49, %v479_v46  ;;  %v956_v60 = vrot.slane %v12001_v52, 1 }
  0x23   :  { %3968 = vst [vmem:[#allocation2 + $0x4c] sm:$0xf] %v18217_v0  ;;  %3969 = vst [vmem:[#allocation2 + $0x5c] sm:$0xf] %v18217_v0  ;;  %v11245_v62 = vld [vmem:[%s18212_s1 + $0x20] sm:$0xff]   ;;  %v11235_v1 = vld [vmem:[%s18212_s1 + $0x118] sm:$0xff]  }
  0x24   :  { %3970 = vst [vmem:[#allocation2 + $0x6c] sm:$0xf] %v18217_v0  ;;  %3971 = vst [vmem:[#allocation2 + $0x7c] sm:$0xf] %v18217_v0  ;;  %1331 = vmatpush1.bf16.msra.mxu0 %v11213_v14  ;;  %v12042_v4 = vld [vmem:[%s18211_s0 + $0x60] sm:$0xff]   ;;  %v11251_v7 = vld [vmem:[%s18212_s1 + $0x18] sm:$0xff]  }
  0x25   :  { %3972 = vst [vmem:[#allocation2 + $0x8c] sm:$0xf] %v18217_v0  ;;  %3973 = vst [vmem:[#allocation2 + $0x9c] sm:$0xf] %v18217_v0  ;;  %1332 = vmatprep.subr.bf16.mxu0 %v18217_v0  ;;  %10727 = vmatpush3.bf16.msra.mxu1 %v11214_v11  ;;  %v12062_v9 = vld [vmem:[%s18211_s0 + $0x6c] sm:$0xff]   ;;  %v493_v11 = vshll.u32 %v11908_v22, 16 }
  0x26   :  { %3974 = vst [vmem:[#allocation2 + $0xac] sm:$0xf] %v18217_v0  ;;  %3975 = vst [vmem:[#allocation2 + $0xbc] sm:$0xf] %v18217_v0  ;;  %10728 = vmatprep.subr.bf16.mxu1 %v11216_v17  ;;  %v11239_v10 = vld [vmem:[%s18212_s1 + $0x110] sm:$0xff]   ;;  %v11246_v39 = vld [vmem:[%s18212_s1 + $0x100] sm:$0xff]  }
  0x27   :  { %3976 = vst [vmem:[#allocation2 + $0xcc] sm:$0xf] %v18217_v0  ;;  %3977 = vst [vmem:[#allocation2 + $0xdc] sm:$0xf] %v18217_v0  ;;  %v503_v49 = vshrl.u32 %v11918_v24, 16  ;;  %vm5194_vm2 = vcmask 1042432  }
  0x28   :  { %3978 = vst [vmem:[#allocation2 + $0xec] sm:$0xf] %v18217_v0  ;;  %3979 = vst [vmem:[#allocation2 + $0xfc] sm:$0xf] %v18217_v0  ;;  %1333 = vmatpush1.bf16.msra.mxu0 %v11215_v19  ;;  %v11256_v19 = vld [vmem:[%s18212_s1 + $0x10] sm:$0xff]  }
  0x29   :  { %3980 = vst [vmem:[#allocation2 + $0x10c] sm:$0xf] %v18217_v0  ;;  %3981 = vst [vmem:[#allocation2 + $0x11c] sm:$0xf] %v18217_v0  ;;  %1334 = vmatprep.subr.bf16.mxu0 %v18217_v0  ;;  %10729 = vmatpush3.bf16.msra.mxu1 %v11216_v17  ;;  %vm5303_vm3 = vsmask.f32 4352 }
  0x2a   :  { %3982 = vst [vmem:[#allocation2 + $0x12c] sm:$0xf] %v18217_v0  ;;  %3983 = vst [vmem:[#allocation2 + $0x13c] sm:$0xf] %v18217_v0  ;;  %10730 = vmatprep.subr.bf16.mxu1 %v11218_v21 }
  0x2b   :  { %3984 = vst [vmem:[#allocation2 + $0x14c] sm:$0xf] %v18217_v0  ;;  %3985 = vst [vmem:[#allocation2 + $0x15c] sm:$0xf] %v18217_v0 }
  0x2c   :  { %3986 = vst [vmem:[#allocation2 + $0x16c] sm:$0xf] %v18217_v0  ;;  %3987 = vst [vmem:[#allocation2 + $0x17c] sm:$0xf] %v18217_v0  ;;  %1335 = vmatpush1.bf16.msra.mxu0 %v11217_v25 }
  0x2d   :  { %3988 = vst [vmem:[#allocation2 + $0x18c] sm:$0xf] %v18217_v0  ;;  %3989 = vst [vmem:[#allocation2 + $0x19c] sm:$0xf] %v18217_v0  ;;  %1336 = vmatprep.subr.bf16.mxu0 %v18217_v0  ;;  %10731 = vmatpush3.bf16.msra.mxu1 %v11218_v21  ;;  %v12086_v21 = vld [vmem:[%s18211_s0 + $0x78] sm:$0xff]  }
  0x2e   :  { %3990 = vst [vmem:[#allocation2 + $0x1ac] sm:$0xf] %v18217_v0  ;;  %3991 = vst [vmem:[#allocation2 + $0x1bc] sm:$0xf] %v18217_v0  ;;  %2042 = vmatprep.subr.bf16.mxu1 %v18217_v0 }
  0x2f   :  { %3992 = vst [vmem:[#allocation2 + $0x1cc] sm:$0xf] %v18217_v0  ;;  %3993 = vst [vmem:[#allocation2 + $0x1dc] sm:$0xf] %v18217_v0 }
  0x30   :  { %3994 = vst [vmem:[#allocation2 + $0x1ec] sm:$0xf] %v18217_v0  ;;  %3995 = vst [vmem:[#allocation2 + $0x1fc] sm:$0xf] %v18217_v0  ;;  %1337 = vmatpush2.bf16.msra.mxu0 %v11221_v26  ;;  %v491_v26 = vshrl.u32 %v11908_v22, 16 }
  0x31   :  { %3996 = vst [vmem:[#allocation2 + $0x20c] sm:$0xf] %v18217_v0  ;;  %3997 = vst [vmem:[#allocation2 + $0x21c] sm:$0xf] %v18217_v0  ;;  %1338 = vmatprep.subr.bf16.mxu0 %v18217_v0 }
  0x32   :  { %3998 = vst [vmem:[#allocation2 + $0x22c] sm:$0xf] %v18217_v0  ;;  %3999 = vst [vmem:[#allocation2 + $0x23c] sm:$0xf] %v18217_v0 }
  0x33   :  { %4000 = vst [vmem:[#allocation2 + $0x4] sm:$0xf] %v18217_v0  ;;  %4001 = vst [vmem:[#allocation2 + $0x8] sm:$0xf] %v18217_v0 }
  0x34   :  { %4002 = vst [vmem:[#allocation2 + $0x124] sm:$0xf] %v18217_v0  ;;  %4003 = vst [vmem:[#allocation2 + $0x128] sm:$0xf] %v18217_v0  ;;  %1339 = vmatpush2.bf16.msra.mxu0 %v11225_v38  ;;  %v12108_v38 = vld [vmem:[%s18211_s0 + $0x84] sm:$0xff]  }
  0x35   :  { %4005 = vst [vmem:[#allocation2 + $0x114] sm:$0xf] %v18217_v0  ;;  %4006 = vst [vmem:[#allocation2 + $0x118] sm:$0xf] %v18217_v0  ;;  %1340 = vmatprep.subr.bf16.mxu0 %v18217_v0 }
  0x36   :  { %4007 = vst [vmem:[#allocation2 + $0x234] sm:$0xf] %v18217_v0  ;;  %4008 = vst [vmem:[#allocation2 + $0x238] sm:$0xf] %v18217_v0 }
  0x37   :  { %v11878_v13 = vld [vmem:[%s18211_s0 + $0x14] ss:$0 sps:$4 sm:$0x11]   ;;  %v11899_v20 = vld [vmem:[%s18211_s0 + $0x20] ss:$0 sps:$4 sm:$0x11]  }
  0x38   :  { %v939_v16 = vrot.slane %v11878_v13, 1  ;;  %v11913_v23 = vld [vmem:[%s18211_s0 + $0x2c] ss:$0 sps:$4 sm:$0x11]   ;;  %v942_v28 = vrot.slane %v11899_v20, 1  ;;  %1341 = vmatpush2.bf16.msra.mxu0 %v11228_v43  ;;  %v486_v58 = vshll.u32 %v11878_v13, 16 }
  0x39   :  { %v945_v30 = vrot.slane %v11913_v23, 1  ;;  %v11934_v31 = vld [vmem:[%s18211_s0 + $0x38] ss:$0 sps:$4 sm:$0x11]   ;;  %1342 = vmatprep.subr.bf16.mxu0 %v18217_v0  ;;  %v959_v13 = vrot.slane %v12042_v4, 1  ;;  %v965_v43 = vrot.slane %v12086_v21, 1 }
  0x3a   :  { %v11890_v18 = vsel %vm934_vm0, %v938_v15, %v939_v16  ;;  %v11943_v33 = vld [vmem:[%s18211_s0 + $0x44] ss:$0 sps:$4 sm:$0x11]   ;;  %v11946_v34 = vsel %vm934_vm0, %v941_v27, %v942_v28  ;;  %v948_v42 = vrot.slane %v11934_v31, 1  ;;  %v488_v63 = vrot.slane %v486_v58, 1  ;;  %v11242_v15 = vld [vmem:[%s18212_s1 + $0x108] sm:$0xff]  }
  0x3b   :  { %10732 = vmatprep.mubr.bf16.mxu1 %v11890_v18  ;;  %v11955_v36 = vsel %vm934_vm0, %v944_v29, %v945_v30  ;;  %v951_v45 = vrot.slane %v11943_v33, 1  ;;  %v11989_v48 = vld [vmem:[%s18211_s0 + $0x50] ss:$0 sps:$4 sm:$0x11]   ;;  %v962_v16 = vrot.slane %v12062_v9, 1  ;;  %v495_v27 = vrot.slane %v493_v11, 1 }
  0x3c   :  { %10733 = vmatmul.mubr.bf16.vlgmr.msra.gmra.mxu1 %v11946_v34  ;;  %v11996_v51 = vsel %vm934_vm0, %v947_v41, %v948_v42  ;;  %v12006_v53 = vld [vmem:[%s18211_s0 + $0x5c] ss:$0 sps:$4 sm:$0x11]   ;;  %v954_v59 = vrot.slane %v11989_v48, 1  ;;  %1343 = vmatpush2.bf16.msra.mxu0 %v11232_v55  ;;  %v12036_v3 = vsel %vm465_vm1, %v484_v57, %v488_v63  ;;  %v498_v28 = vshll.u32 %v11899_v20, 16  ;;  %v11261_v30 = vld [vmem:[%s18212_s1 + $0x8] sm:$0xff]  }
  0x3d   :  { %2043 = vmatpush1.bf16.msra.mxu1 %v11224_v32  ;;  %10736 = vmatprep.mubr.bf16.mxu1 %v11955_v36  ;;  %v12009_v54 = vsel %vm934_vm0, %v950_v44, %v951_v45  ;;  %v957_v61 = vrot.slane %v12006_v53, 1  ;;  %v12033_v2 = vld [vmem:[%s18211_s0 + $0x68] ss:$0 sps:$4 sm:$0x11]   ;;  %v505_v42 = vshll.u32 %v11918_v24, 16  ;;  %v968_v45 = vrot.slane %v12108_v38, 1 }
  0x3e   :  { %2044 = vmatprep.subr.bf16.mxu1 %v18217_v0  ;;  %1344 = vmatprep.subr.bf16.mxu0 %v18217_v0  ;;  %v12048_v5 = vld [vmem:[%s18211_s0 + $0x74] ss:$0 sps:$4 sm:$0x11]   ;;  %v12051_v6 = vsel %vm934_vm0, %v953_v56, %v954_v59  ;;  %v960_v14 = vrot.slane %v12033_v2, 1  ;;  %v500_v41 = vrot.slane %v498_v28, 1  ;;  %v510_v57 = vshll.u32 %v11913_v23, 16 }
  0x3f   :  { %1352 = vmatprep.mubr.bf16.mxu0 %v12036_v3  ;;  %v12057_v8 = vsel %vm934_vm0, %v956_v60, %v957_v61  ;;  %v963_v17 = vrot.slane %v12048_v5, 1  ;;  %v12092_v25 = vld [vmem:[%s18211_s0 + $0x80] ss:$0 sps:$4 sm:$0x11]   ;;  %v507_v56 = vrot.slane %v505_v42, 1  ;;  %v12152_v61 = vld [vmem:[%s18211_s0 + $0x90] sm:$0xff]  }
  0x40   :  { %18575 = vst [vmem:[#allocation9_spill] sm:$0xff] %v12057_v8  ;;  %1345 = vmatpush2.bf16.msra.mxu0 %v11235_v1  ;;  %v12097_v29 = vsel %vm934_vm0, %v959_v13, %v960_v14  ;;  %v12113_v20 = vld [vmem:[%s18211_s0 + $0x8c] ss:$0 sps:$4 sm:$0x11]   ;;  %v966_v44 = vrot.slane %v12092_v25, 1  ;;  %v11266_v59 = vld [vmem:[%s18212_s1] sm:$0xff]  }
  0x41   :  { %2045 = vmatpush1.bf16.msra.mxu1 %v11231_v40  ;;  %1346 = vmatprep.subr.bf16.mxu0 %v18217_v0  ;;  %18576 = vst [vmem:[#allocation10_spill] sm:$0xff] %v12097_v29  ;;  %v12103_v32 = vsel %vm934_vm0, %v962_v16, %v963_v17  ;;  %v496_v40 = vor.u32 %v495_v27, %v491_v26  ;;  %v969_v46 = vrot.slane %v12113_v20, 1  ;;  %v12141_v58 = vld [vmem:[%s18211_s0 + $0xa4] ss:$0 sps:$4 sm:$0x11]   ;;  %v512_v1 = vrot.slane %v510_v57, 1 }
  0x42   :  { %2046 = vmatprep.subr.bf16.mxu1 %v18217_v0  ;;  %18577 = vst [vmem:[#allocation11_spill] sm:$0xff] %v12103_v32  ;;  %v12147_v60 = vsel %vm934_vm0, %v965_v43, %v966_v44  ;;  %v508_v63 = vor.u32 %v507_v56, %v503_v49  ;;  %v975_v13 = vrot.slane %v12141_v58, 1  ;;  %v12175_v14 = vld [vmem:[%s18211_s0 + $0xa8] sm:$0xff]   ;;  %v11271_v16 = vld [vmem:[%s18212_s1 + $0x78] sm:$0xff]   ;;  %v522_v26 = vshll.u32 %v11934_v31, 16 }
  0x43   :  { %v12135_v55 = vsel %vm465_vm1, %v496_v40, %v500_v41  ;;  %18579 = vst [vmem:[#allocation13_spill] sm:$0xff] %v12147_v60  ;;  %v12156_v23 = vsel %vm934_vm0, %v968_v45, %v969_v46  ;;  %v12188_v27 = vld [vmem:[%s18211_s0 + $0xb4] sm:$0xff]   ;;  %v529_v41 = vshll.u32 %v11960_v37, 16  ;;  %v12223_v49 = vld [vmem:[%s18211_s0 + $0xc8] ss:$0 sps:$4 sm:$0x11]  }
  0x44   :  { %10737 = vmatmul.mubr.bf16.gmra.mxu1 %v11996_v51  ;;  %1347 = vmatpush2.bf16.msra.mxu0 %v11239_v10  ;;  %18578 = vst [vmem:[#allocation12_spill] sm:$0xff] %v12135_v55  ;;  %18580 = vst [vmem:[#allocation14_spill] sm:$0xff] %v12156_v23  ;;  %v12182_v17 = vsel %vm465_vm1, %v508_v63, %v512_v1  ;;  %v11276_v40 = vld [vmem:[%s18212_s1 + $0x70] sm:$0xff]   ;;  %v524_v43 = vrot.slane %v522_v26, 1  ;;  %v980_v45 = vrot.slane %v12188_v27, 1  ;;  %v527_v56 = vshrl.u32 %v11960_v37, 16 }
  0x45   :  { %10740 = vmatprep.mubr.bf16.mxu1 %v12009_v54  ;;  %2047 = vmatpush1.bf16.msra.mxu1 %v11238_v50  ;;  %v12132_v50 = vld [vmem:[%s18211_s0 + $0x98] ss:$0 sps:$4 sm:$0x11]   ;;  %18581 = vst [vmem:[#allocation15_spill] sm:$0xff] %v12182_v17  ;;  %v531_v57 = vrot.slane %v529_v41, 1 }
  0x46   :  { %2048 = vmatprep.subr.bf16.mxu1 %v18217_v0  ;;  %1348 = vmatprep.subr.bf16.mxu0 %v18217_v0  ;;  %v972_v10 = vrot.slane %v12132_v50, 1  ;;  %v12267_v41 = vld [vmem:[%s18211_s0 + $0xf8] ss:$0 sps:$4 sm:$0x11]  }
  0x48   :  { %1349 = vmatpush2.bf16.msra.mxu0 %v11242_v15  ;;  %v515_v15 = vshrl.u32 %v11951_v35, 16 }
  0x49   :  { %2049 = vmatpush1.bf16.msra.mxu1 %v11245_v62  ;;  %1350 = vmatprep.subr.bf16.mxu0 %v18217_v0  ;;  %v12161_v62 = vld [vmem:[%s18211_s0 + $0x9c] sm:$0xff]  }
  0x4a   :  { %2050 = vmatprep.subr.bf16.mxu1 %v18217_v0  ;;  %v974_v11 = vrot.slane %v12161_v62, 1 }
  0x4c   :  { %10741 = vmatmul.mubr.bf16.gmra.mxu1 %v12051_v6  ;;  %1351 = vmatpush2.bf16.msra.mxu0 %v11246_v39  ;;  %v12201_v39 = vld [vmem:[%s18211_s0 + $0xbc] ss:$0 sps:$4 sm:$0x11]   ;;  %v12205_v31 = vsel %vm934_vm0, %v974_v11, %v975_v13  ;;  %v12253_v11 = vld [vmem:[%s18211_s0 + $0xe4] sm:$0xff]   ;;  %v532_v13 = vor.u32 %v531_v57, %v527_v56  ;;  %v12283_v56 = vld [vmem:[%s18211_s0 + $0xf0] sm:$0xff]  }
  0x4d   :  { %10744 = vmatprep.mubr.bf16.mxu1 %v12057_v8  ;;  %2051 = vmatpush1.bf16.msra.mxu1 %v11251_v7  ;;  %v517_v7 = vshll.u32 %v11951_v35, 16  ;;  %18583 = vst [vmem:[#allocation17_spill] sm:$0xff] %v12205_v31  ;;  %v981_v46 = vrot.slane %v12201_v39, 1  ;;  %v992_v26 = vrot.slane %v12253_v11, 1 }
  0x4e   :  { %2052 = vmatprep.subr.bf16.mxu1 %v18217_v0 }
  0x4f   :  { %1353 = vmatmul.mubr.bf16.vlgmr.msra.gmra.mxu0 %v11873_v12  ;;  %v971_v12 = vrot.slane %v12152_v61, 1 }
  0x50   :  { %1360 = vmatprep.mubr.bf16.mxu0 %v12135_v55 }
  0x51   :  { %2053 = vmatpush1.bf16.msra.mxu1 %v11256_v19  ;;  %v519_v19 = vrot.slane %v517_v7, 1  ;;  %v12191_v28 = vsel %vm934_vm0, %v971_v12, %v972_v10  ;;  %v12236_v7 = vld [vmem:[%s18211_s0 + $0xc0] sm:$0xff]   ;;  %v12241_v12 = vld [vmem:[%s18211_s0 + $0xec] ss:$0 sps:$4 sm:$0x11]   ;;  %v12248_v10 = vsel %vm934_vm0, %v980_v45, %v981_v46 }
  0x52   :  { %2054 = vmatprep.subr.bf16.mxu1 %v18217_v0  ;;  %18582 = vst [vmem:[#allocation16_spill] sm:$0xff] %v12191_v28  ;;  %18586 = vst [vmem:[#allocation20_spill] sm:$0xff] %v12248_v10  ;;  %v11286_v45 = vld [vmem:[%s18212_s1 + $0x60] sm:$0xff]  }
  0x53   :  { %v520_v42 = vor.u32 %v519_v19, %v515_v15  ;;  %v984_v19 = vrot.slane %v12223_v49, 1 }
  0x54   :  { %10745 = vmatmul.mubr.bf16.gmra.mxu1 %v12097_v29 }
  0x55   :  { %10748 = vmatprep.mubr.bf16.mxu1 %v12103_v32  ;;  %2055 = vmatpush1.bf16.msra.mxu1 %v11261_v30  ;;  %v12196_v30 = vld [vmem:[%s18211_s0 + $0xb0] ss:$0 sps:$4 sm:$0x11]   ;;  %v12228_v63 = vsel %vm465_vm1, %v520_v42, %v524_v43  ;;  %v539_v43 = vshrl.u32 %v11984_v47, 16  ;;  %v589_v32 = vshll.u32 %v12086_v21, 16 }
  0x56   :  { %2056 = vmatprep.subr.bf16.mxu1 %v18217_v0  ;;  %v978_v44 = vrot.slane %v12196_v30, 1  ;;  %18584 = vst [vmem:[#allocation18_spill] sm:$0xff] %v12228_v63 }
  0x57   :  { %1361 = vmatmul.mubr.bf16.gmra.mxu0 %v11908_v22  ;;  %v977_v22 = vrot.slane %v12175_v14, 1 }
  0x58   :  { %1368 = vmatprep.mubr.bf16.mxu0 %v12182_v17 }
  0x59   :  { %2057 = vmatpush1.bf16.msra.mxu1 %v11266_v59  ;;  %v534_v59 = vshll.u32 %v11943_v33, 16  ;;  %v12231_v1 = vsel %vm934_vm0, %v977_v22, %v978_v44  ;;  %v11281_v33 = vld [vmem:[%s18212_s1 + $0x68] sm:$0xff]   ;;  %v546_v44 = vshll.u32 %v11989_v48, 16  ;;  %v12292_v48 = vld [vmem:[%s18211_s0 + $0xfc] sm:$0xff]  }
  0x5a   :  { %2058 = vmatprep.subr.bf16.mxu1 %v18217_v0  ;;  %18585 = vst [vmem:[#allocation19_spill] sm:$0xff] %v12231_v1 }
  0x5b   :  { %v536_v15 = vrot.slane %v534_v59, 1  ;;  %v12297_v59 = vld [vmem:[%s18211_s0 + $0x104] ss:$0 sps:$4 sm:$0x11]  }
  0x5c   :  { %10749 = vmatmul.mubr.bf16.gmra.mxu1 %v12147_v60 }
  0x5d   :  { %10752 = vmatprep.mubr.bf16.mxu1 %v12156_v23  ;;  %2059 = vmatpush2.bf16.msra.mxu1 %v11271_v16  ;;  %v541_v16 = vshll.u32 %v11984_v47, 16  ;;  %v12270_v42 = vsel %vm465_vm1, %v532_v13, %v536_v15  ;;  %v548_v13 = vrot.slane %v546_v44, 1  ;;  %v553_v15 = vshll.u32 %v12001_v52, 16  ;;  %v11285_v23 = vld [vmem:[%s18211_s0 + $0x140] ss:$0 sps:$4 sm:$0x11]  }
  0x5e   :  { %2060 = vmatprep.subr.bf16.mxu1 %v18217_v0  ;;  %18587 = vst [vmem:[#allocation21_spill] sm:$0xff] %v12270_v42  ;;  %v551_v44 = vshrl.u32 %v12001_v52, 16  ;;  %v1014_v29 = vrot.slane %v11285_v23, 1  ;;  %v591_v23 = vrot.slane %v589_v32, 1 }
  0x5f   :  { %1369 = vmatmul.mubr.bf16.gmra.mxu0 %v11918_v24  ;;  %v983_v24 = vrot.slane %v12236_v7, 1  ;;  %v543_v22 = vrot.slane %v541_v16, 1  ;;  %v995_v16 = vrot.slane %v12283_v56, 1  ;;  %v11293_v32 = vld [vmem:[%s18211_s0 + $0x164] ss:$0 sps:$4 sm:$0x11]  }
  0x60   :  { %1376 = vmatprep.mubr.bf16.mxu0 %v12228_v63 }
  0x61   :  { %2061 = vmatpush2.bf16.msra.mxu1 %v11276_v40  ;;  %v993_v40 = vrot.slane %v12241_v12, 1  ;;  %v12278_v46 = vsel %vm934_vm0, %v983_v24, %v984_v19  ;;  %v996_v24 = vrot.slane %v12267_v41, 1  ;;  %v998_v19 = vrot.slane %v12292_v48, 1 }
  0x62   :  { %2062 = vmatprep.subr.bf16.mxu1 %v18217_v0  ;;  %18588 = vst [vmem:[#allocation22_spill] sm:$0xff] %v12278_v46 }
  0x63   :  { %v12287_v57 = vsel %vm934_vm0, %v992_v26, %v993_v40  ;;  %v999_v26 = vrot.slane %v12297_v59, 1  ;;  %v12314_v40 = vld [vmem:[%s18211_s0 + $0x108] sm:$0xff]  }
  0x64   :  { %10753 = vmatmul.mubr.bf16.gmra.mxu1 %v12191_v28  ;;  %18589 = vst [vmem:[#allocation23_spill] sm:$0xff] %v12287_v57  ;;  %v11283_v28 = vld [vmem:[%s18211_s0 + $0x134] ss:$0 sps:$4 sm:$0x11]  }
  0x65   :  { %10756 = vmatprep.mubr.bf16.mxu1 %v12205_v31  ;;  %2063 = vmatpush2.bf16.msra.mxu1 %v11281_v33  ;;  %v544_v33 = vor.u32 %v543_v22, %v539_v43  ;;  %v12323_v22 = vld [vmem:[%s18211_s0 + $0x110] ss:$0 sps:$4 sm:$0x11]  }
  0x66   :  { %2064 = vmatprep.subr.bf16.mxu1 %v18217_v0 }
  0x67   :  { %1377 = vmatmul.mubr.bf16.gmra.mxu0 %v11951_v35  ;;  %v11291_v35 = vld [vmem:[%s18212_s1 + $0x58] sm:$0xff]   ;;  %v12318_v43 = vsel %vm465_vm1, %v544_v33, %v548_v13 }
  0x68   :  { %1384 = vmatprep.mubr.bf16.mxu0 %v12270_v42  ;;  %18590 = vst [vmem:[#allocation24_spill] sm:$0xff] %v12318_v43  ;;  %v12337_v33 = vld [vmem:[%s18211_s0 + $0x114] sm:$0xff]   ;;  %v12342_v13 = vld [vmem:[%s18211_s0 + $0x11c] ss:$0 sps:$4 sm:$0x11]  }
  0x69   :  { %2065 = vmatpush2.bf16.msra.mxu1 %v11286_v45  ;;  %v555_v45 = vrot.slane %v553_v15, 1 }
  0x6a   :  { %2066 = vmatprep.subr.bf16.mxu1 %v18217_v0 }
  0x6c   :  { %10757 = vmatmul.mubr.bf16.gmra.mxu1 %v12231_v1  ;;  %v12374_v1 = vld [vmem:[%s18211_s0 + $0x12c] sm:$0xff]  }
  0x6d   :  { %10760 = vmatprep.mubr.bf16.mxu1 %v12248_v10  ;;  %2067 = vmatpush2.bf16.msra.mxu1 %v11291_v35  ;;  %v558_v35 = vshll.u32 %v12006_v53, 16  ;;  %v11296_v53 = vld [vmem:[%s18212_s1 + $0x50] sm:$0xff]   ;;  %v18593_v10 = vmov 0  }
  0x6e   :  { %2068 = vmatprep.subr.bf16.mxu1 %v18217_v0  ;;  %v12332_v0 = vsel %vm934_vm0, %v998_v19, %v999_v26  ;;  %v1002_v19 = vrot.slane %v12323_v22, 1  ;;  %v1004_v26 = vrot.slane %v12337_v33, 1 }
  0x6f   :  { %1385 = vmatmul.mubr.bf16.gmra.mxu0 %v11960_v37  ;;  %18592 = vst [vmem:[#allocation26_spill] sm:$0xff] %v12332_v0  ;;  %v556_v37 = vor.u32 %v555_v45, %v551_v44  ;;  %v560_v15 = vrot.slane %v558_v35, 1  ;;  %v12359_v44 = vld [vmem:[%s18211_s0 + $0x120] sm:$0xff]   ;;  %v12364_v45 = vld [vmem:[%s18211_s0 + $0x128] ss:$0 sps:$4 sm:$0x11]  }
  0x70   :  { %1392 = vmatprep.mubr.bf16.mxu0 %v12318_v43 }
  0x71   :  { %2069 = vmatpush2.bf16.msra.mxu1 %v11296_v53  ;;  %v12367_v35 = vsel %vm465_vm1, %v556_v37, %v560_v15  ;;  %v563_v53 = vshrl.u32 %v12042_v4, 16  ;;  %v11301_v37 = vld [vmem:[%s18212_s1 + $0x48] sm:$0xff]   ;;  %v577_v15 = vshll.u32 %v12062_v9, 16 }
  0x72   :  { %2070 = vmatprep.subr.bf16.mxu1 %v18593_v10  ;;  %18594 = vst [vmem:[#allocation27_spill] sm:$0xff] %v12367_v35 }
  0x74   :  { %10761 = vmatmul.mubr.bf16.gmra.mxu1 %v12278_v46  ;;  %v12328_v46 = vsel %vm934_vm0, %v995_v16, %v996_v24  ;;  %v565_v16 = vshll.u32 %v12042_v4, 16  ;;  %v1001_v24 = vrot.slane %v12314_v40, 1 }
  0x75   :  { %10764 = vmatprep.mubr.bf16.mxu1 %v12287_v57  ;;  %18591 = vst [vmem:[#allocation25_spill] sm:$0xff] %v12328_v46  ;;  %v1005_v57 = vrot.slane %v12342_v13, 1  ;;  %2071 = vmatpush2.bf16.msra.mxu1 %v11301_v37  ;;  %v11307_v37 = vld [vmem:[%s18212_s1 + $0xb8] sm:$0xff]  }
  0x76   :  { %v12377_v31 = vsel %vm934_vm0, %v1001_v24, %v1002_v19  ;;  %2072 = vmatprep.subr.bf16.mxu1 %v18593_v10  ;;  %v11306_v19 = vld [vmem:[%s18212_s1 + $0x40] sm:$0xff]   ;;  %10796 = vmatprep.subr.bf16.mxu0 %v11307_v37 }
  0x77   :  { %18595 = vst [vmem:[#allocation28_spill] sm:$0xff] %v12377_v31  ;;  %1393 = vmatmul.mubr.bf16.gmra.mxu0 %v11984_v47  ;;  %v1007_v47 = vrot.slane %v12359_v44, 1 }
  0x78   :  { %1400 = vmatprep.mubr.bf16.mxu0 %v12367_v35  ;;  %10797 = vmatpush3.bf16.msra.mxu0 %v11307_v37 }
  0x79   :  { %2073 = vmatpush2.bf16.msra.mxu1 %v11306_v19 }
  0x7a   :  { %2813 = vmatprep.subr.bf16.mxu1 %v18593_v10 }
  0x7c   :  { %10765 = vmatmul.mubr.bf16.gmra.mxu1 %v12328_v46  ;;  %v570_v46 = vshll.u32 %v12033_v2, 16  ;;  %v12387_v2 = vsel %vm934_vm0, %v1004_v26, %v1005_v57  ;;  %v1008_v57 = vrot.slane %v12364_v45, 1  ;;  %v1010_v26 = vrot.slane %v12374_v1, 1 }
  0x7d   :  { %10768 = vmatprep.mubr.bf16.mxu1 %v12332_v0  ;;  %v567_v0 = vrot.slane %v565_v16, 1  ;;  %18596 = vst [vmem:[#allocation29_spill] sm:$0xff] %v12387_v2 }
  0x7e   :  { %v572_v24 = vrot.slane %v570_v46, 1  ;;  %v575_v46 = vshrl.u32 %v12062_v9, 16 }
  0x7f   :  { %v568_v16 = vor.u32 %v567_v0, %v563_v53  ;;  %v1011_v0 = vrot.slane %v11283_v28, 1  ;;  %v579_v53 = vrot.slane %v577_v15, 1  ;;  %v11287_v28 = vld [vmem:[%s18211_s0 + $0x144] sm:$0xff]   ;;  %v12422_v15 = vsel %vm934_vm0, %v1007_v47, %v1008_v57  ;;  %1401 = vmatmul.mubr.bf16.gmra.mxu0 %v12001_v52  ;;  %v11290_v52 = vld [vmem:[%s18211_s0 + $0x158] ss:$0 sps:$4 sm:$0x11]  }
  0x80   :  { %18598 = vst [vmem:[#allocation31_spill] sm:$0xff] %v12422_v15  ;;  %v1016_v8 = vrot.slane %v11287_v28, 1  ;;  %v11312_v57 = vld [vmem:[%s18212_s1 + $0xb0] sm:$0xff]  }
  0x81   :  { %v12412_v60 = vsel %vm465_vm1, %v568_v16, %v572_v24  ;;  %v12426_v19 = vsel %vm934_vm0, %v1010_v26, %v1011_v0  ;;  %v580_v16 = vor.u32 %v579_v53, %v575_v46  ;;  %v594_v0 = vshll.u32 %v12092_v25, 16  ;;  %10798 = vmatprep.subr.bf16.mxu0 %v11312_v57  ;;  %v11292_v53 = vld [vmem:[%s18211_s0 + $0x15c] sm:$0xff]   ;;  %v11315_v25 = vld [vmem:[%s18212_s1 + $0xa8] sm:$0xff]  }
  0x82   :  { %18597 = vst [vmem:[#allocation30_spill] sm:$0xff] %v12412_v60  ;;  %18599 = vst [vmem:[#allocation32_spill] sm:$0xff] %v12426_v19  ;;  %1408 = vmatprep.mubr.bf16.mxu0 %v12412_v60  ;;  %10799 = vmatpush3.bf16.msra.mxu0 %v11312_v57  ;;  %v11294_v57 = vld [vmem:[%s18211_s0 + $0x168] sm:$0xff]  }
  0x83   :  { %10800 = vmatprep.subr.bf16.mxu0 %v11315_v25 }
  0x84   :  { %10769 = vmatmul.mubr.bf16.gmra.mxu1 %v12377_v31  ;;  %v582_v31 = vshll.u32 %v12048_v5, 16  ;;  %v11288_v5 = vld [vmem:[%s18211_s0 + $0x14c] ss:$0 sps:$4 sm:$0x11]  }
  0x85   :  { %10772 = vmatprep.mubr.bf16.mxu1 %v12387_v2  ;;  %v11284_v2 = vld [vmem:[%s18211_s0 + $0x138] sm:$0xff]   ;;  %v1017_v47 = vrot.slane %v11288_v5, 1  ;;  %v601_v5 = vshll.u32 %v12108_v38, 16 }
  0x86   :  { %v584_v24 = vrot.slane %v582_v31, 1  ;;  %v1013_v37 = vrot.slane %v11284_v2, 1  ;;  %v11289_v31 = vld [vmem:[%s18211_s0 + $0x150] sm:$0xff]   ;;  %v587_v2 = vshrl.u32 %v12086_v21, 16  ;;  %10801 = vmatpush3.bf16.msra.mxu0 %v11315_v25  ;;  %v1025_v25 = vrot.slane %v11294_v57, 1 }
  0x87   :  { %1409 = vmatmul.mubr.bf16.gmra.mxu0 %v12042_v4  ;;  %v12454_v28 = vsel %vm934_vm0, %v1016_v8, %v1017_v47  ;;  %v1022_v8 = vrot.slane %v11292_v53, 1  ;;  %v1023_v47 = vrot.slane %v11293_v32, 1  ;;  %v11318_v53 = vld [vmem:[%s18212_s1 + $0xa0] sm:$0xff]  }
  0x88   :  { %v12442_v26 = vsel %vm465_vm1, %v580_v16, %v584_v24  ;;  %v12447_v46 = vsel %vm934_vm0, %v1013_v37, %v1014_v29  ;;  %18602 = vst [vmem:[#allocation35_spill] sm:$0xff] %v12454_v28  ;;  %v1019_v29 = vrot.slane %v11289_v31, 1  ;;  %v1020_v16 = vrot.slane %v11290_v52, 1  ;;  %v11295_v37 = vld [vmem:[%s18211_s0 + $0x170] ss:$0 sps:$4 sm:$0x11]   ;;  %10802 = vmatprep.subr.bf16.mxu0 %v11318_v53 }
  0x89   :  { %18600 = vst [vmem:[#allocation33_spill] sm:$0xff] %v12442_v26  ;;  %18601 = vst [vmem:[#allocation34_spill] sm:$0xff] %v12447_v46  ;;  %1416 = vmatprep.mubr.bf16.mxu0 %v12442_v26  ;;  %v592_v4 = vor.u32 %v591_v23, %v587_v2  ;;  %v596_v24 = vrot.slane %v594_v0, 1  ;;  %v599_v31 = vshrl.u32 %v12108_v38, 16  ;;  %v606_v52 = vshll.u32 %v12113_v20, 16  ;;  %v11297_v2 = vld [vmem:[%s18211_s0 + $0x174] sm:$0xff]  }
  0x8a   :  { %v11298_v0 = vld [vmem:[%s18211_s0 + $0x17c] ss:$0 sps:$4 sm:$0x11]   ;;  %v12487_v32 = vsel %vm934_vm0, %v1019_v29, %v1020_v16  ;;  %v12491_v20 = vsel %vm934_vm0, %v1022_v8, %v1023_v47  ;;  %10803 = vmatpush3.bf16.msra.mxu0 %v11318_v53  ;;  %v11299_v29 = vld [vmem:[%s18211_s0 + $0x180] sm:$0xff]   ;;  %v618_v8 = vshll.u32 %v12132_v50, 16  ;;  %v625_v53 = vshll.u32 %v12161_v62, 16 }
  0x8b   :  { %v12478_v23 = vsel %vm465_vm1, %v592_v4, %v596_v24  ;;  %18604 = vst [vmem:[#allocation37_spill] sm:$0xff] %v12487_v32  ;;  %18605 = vst [vmem:[#allocation38_spill] sm:$0xff] %v12491_v20  ;;  %v608_v4 = vrot.slane %v606_v52, 1  ;;  %v11300_v16 = vld [vmem:[%s18211_s0 + $0x188] ss:$0 sps:$4 sm:$0x11]  }
  0x8c   :  { %10773 = vmatmul.mubr.bf16.gmra.mxu1 %v12422_v15  ;;  %18603 = vst [vmem:[#allocation36_spill] sm:$0xff] %v12478_v23  ;;  %v12513_v47 = vld [vmem:[%s18211_s0] sm:$0xff]   ;;  %v611_v52 = vshrl.u32 %v12152_v61, 16  ;;  %v11599_v15 = vld [vmem:[%s18211_s0 + $0x17c] ss:$0 sps:$4 sm:$0x11]  }
  0x8d   :  { %10776 = vmatprep.mubr.bf16.mxu1 %v12426_v19  ;;  %v1029_v19 = vrot.slane %v11298_v0, 1  ;;  %v1032_v0 = vrot.slane %v11300_v16, 1  ;;  %v627_v16 = vrot.slane %v625_v53, 1  ;;  %v637_v53 = vshll.u32 %v12175_v14, 16 }
  0x8f   :  { %1417 = vmatmul.mubr.bf16.gmra.mxu0 %v12062_v9  ;;  %v613_v9 = vshll.u32 %v12152_v61, 16 }
  0x90   :  { %1424 = vmatprep.mubr.bf16.mxu0 %v12478_v23 }
  0x91   :  { %v615_v50 = vrot.slane %v613_v9, 1  ;;  %v623_v9 = vshrl.u32 %v12161_v62, 16 }
  0x94   :  { %10777 = vmatmul.mubr.bf16.gmra.mxu1 %v12447_v46  ;;  %v603_v46 = vrot.slane %v601_v5, 1  ;;  %v1026_v5 = vrot.slane %v11295_v37, 1  ;;  %v11303_v37 = vld [vmem:[%s18211_s0 + $0x194] ss:$0 sps:$4 sm:$0x11]  }
  0x95   :  { %10780 = vmatprep.mubr.bf16.mxu1 %v12454_v28  ;;  %v1028_v28 = vrot.slane %v11297_v2, 1 }
  0x96   :  { %v604_v24 = vor.u32 %v603_v46, %v599_v31  ;;  %v11302_v46 = vld [vmem:[%s18211_s0 + $0x18c] sm:$0xff]   ;;  %v1031_v31 = vrot.slane %v11299_v29, 1  ;;  %v12520_v2 = vsel %vm934_vm0, %v1025_v25, %v1026_v5  ;;  %v1035_v29 = vrot.slane %v11303_v37, 1 }
  0x97   :  { %18607 = vst [vmem:[#allocation40_spill] sm:$0xff] %v12520_v2  ;;  %1425 = vmatmul.mubr.bf16.gmra.mxu0 %v12086_v21  ;;  %v469_v25 = vshll.u32 %v12513_v47, 16  ;;  %v616_v5 = vor.u32 %v615_v50, %v611_v52  ;;  %v630_v21 = vshll.u32 %v12141_v58, 16 }
  0x98   :  { %v12516_v57 = vsel %vm465_vm1, %v604_v24, %v608_v4  ;;  %v620_v4 = vrot.slane %v618_v8, 1  ;;  %v1034_v24 = vrot.slane %v11302_v46, 1  ;;  %v11305_v8 = vld [vmem:[%s18211_s0 + $0x1a0] ss:$0 sps:$4 sm:$0x11]   ;;  %v12547_v50 = vsel %vm934_vm0, %v1031_v31, %v1032_v0 }
  0x99   :  { %18606 = vst [vmem:[#allocation39_spill] sm:$0xff] %v12516_v57  ;;  %1432 = vmatprep.mubr.bf16.mxu0 %v12516_v57  ;;  %v471_v46 = vrot.slane %v469_v25, 1  ;;  %18610 = vst [vmem:[#allocation43_spill] sm:$0xff] %v12547_v50  ;;  %v632_v25 = vrot.slane %v630_v21, 1  ;;  %v635_v31 = vshrl.u32 %v12175_v14, 16  ;;  %v654_v21 = vshll.u32 %v12201_v39, 16 }
  0x9a   :  { %v12544_v52 = vsel %vm465_vm1, %v616_v5, %v620_v4  ;;  %v12551_v58 = vsel %vm934_vm0, %v1034_v24, %v1035_v29  ;;  %v1038_v4 = vrot.slane %v11305_v8, 1  ;;  %v642_v24 = vshll.u32 %v12196_v30, 16  ;;  %v11321_v39 = vld [vmem:[%s18212_s1 + $0x98] sm:$0xff]  }
  0x9b   :  { %18609 = vst [vmem:[#allocation42_spill] sm:$0xff] %v12544_v52  ;;  %18611 = vst [vmem:[#allocation44_spill] sm:$0xff] %v12551_v58  ;;  %v659_v8 = vshrl.u32 %v12236_v7, 16  ;;  %10804 = vmatprep.subr.bf16.mxu0 %v11321_v39 }
  0x9c   :  { %10781 = vmatmul.mubr.bf16.gmra.mxu1 %v12487_v32  ;;  %v12528_v32 = vsel %vm934_vm0, %v1028_v28, %v1029_v19  ;;  %v467_v19 = vshrl.u32 %v12513_v47, 16  ;;  %v11304_v28 = vld [vmem:[%s18211_s0 + $0x198] sm:$0xff]   ;;  %v644_v30 = vrot.slane %v642_v24, 1  ;;  %10805 = vmatpush3.bf16.msra.mxu0 %v11321_v39  ;;  %v738_v39 = vshll.u32 %v12323_v22, 16 }
  0x9d   :  { %10784 = vmatprep.mubr.bf16.mxu1 %v12491_v20  ;;  %v11309_v20 = vld [vmem:[%s18211_s0 + $0x8] ss:$0 sps:$4 sm:$0x11]   ;;  %18608 = vst [vmem:[#allocation41_spill] sm:$0xff] %v12528_v32  ;;  %v750_v22 = vshll.u32 %v12342_v13, 16  ;;  %v757_v13 = vshll.u32 %v12359_v44, 16 }
  0x9e   :  { %v474_v37 = vshll.u32 %v11309_v20, 16  ;;  %v1037_v20 = vrot.slane %v11304_v28, 1  ;;  %v472_v0 = vor.u32 %v471_v46, %v467_v19  ;;  %v647_v28 = vshrl.u32 %v12188_v27, 16 }
  0x9f   :  { %1433 = vmatmul.mubr.bf16.gmra.mxu0 %v12108_v38  ;;  %v639_v38 = vrot.slane %v637_v53, 1  ;;  %v656_v46 = vrot.slane %v654_v21, 1  ;;  %v11310_v53 = vld [vmem:[%s18212_s1 + $0x1b8] sm:$0xff]   ;;  %v721_v21 = vshll.u32 %v12292_v48, 16 }
  0xa0   :  { %1440 = vmatprep.mubr.bf16.mxu0 %v12544_v52  ;;  %v476_v5 = vrot.slane %v474_v37, 1  ;;  %v666_v37 = vshll.u32 %v12223_v49, 16  ;;  %v11311_v49 = vld [vmem:[%s18212_s1 + $0x1b0] sm:$0xff]  }
  0xa1   :  { %v640_v19 = vor.u32 %v639_v38, %v635_v31  ;;  %v702_v31 = vshll.u32 %v12241_v12, 16  ;;  %v709_v38 = vshll.u32 %v12283_v56, 16 }
  0xa3   :  { %v704_v12 = vrot.slane %v702_v31, 1  ;;  %v11317_v31 = vld [vmem:[%s18212_s1 + $0x190] sm:$0xff]  }
  0xa4   :  { %10785 = vmatmul.mubr.bf16.gmra.mxu1 %v12520_v2  ;;  %v12563_v2 = vsel %vm934_vm0, %v1037_v20, %v1038_v4  ;;  %v697_v20 = vshll.u32 %v12253_v11, 16  ;;  %v12584_v4 = vsel %vm465_vm1, %v640_v19, %v644_v30  ;;  %v711_v19 = vrot.slane %v709_v38, 1 }
  0xa5   :  { %10788 = vmatprep.mubr.bf16.mxu1 %v12528_v32  ;;  %v628_v32 = vor.u32 %v627_v16, %v623_v9  ;;  %18613 = vst [vmem:[#allocation46_spill] sm:$0xff] %v12563_v2  ;;  %v477_v9 = vsel %vm465_vm1, %v472_v0, %v476_v5  ;;  %v649_v16 = vshll.u32 %v12188_v27, 16  ;;  %18614 = vst [vmem:[#allocation47_spill] sm:$0xff] %v12584_v4  ;;  %v668_v0 = vrot.slane %v666_v37, 1 }
  0xa6   :  { %v699_v24 = vrot.slane %v697_v20, 1  ;;  %v726_v30 = vshll.u32 %v12297_v59, 16  ;;  %v11567_v59 = vld [vmem:[%s18211_s0 + $0xc] sm:$0xff]   ;;  %v733_v37 = vshll.u32 %v12314_v40, 16  ;;  %v745_v20 = vshll.u32 %v12337_v33, 16 }
  0xa7   :  { %v12560_v29 = vsel %vm465_vm1, %v628_v32, %v632_v25  ;;  %1441 = vmatmul.mubr.bf16.gmra.mxu0 %v12152_v61  ;;  %v661_v32 = vshll.u32 %v12236_v7, 16  ;;  %v651_v61 = vrot.slane %v649_v16, 1  ;;  %v695_v25 = vshrl.u32 %v12253_v11, 16 }
  0xa8   :  { %18612 = vst [vmem:[#allocation45_spill] sm:$0xff] %v12560_v29  ;;  %1448 = vmatprep.mubr.bf16.mxu0 %v12560_v29  ;;  %v719_v16 = vshrl.u32 %v12292_v48, 16  ;;  %v735_v38 = vrot.slane %v733_v37, 1  ;;  %v11328_v37 = vld [vmem:[%s18212_s1 + $0x80] sm:$0xff]  }
  0xa9   :  { %v663_v5 = vrot.slane %v661_v32, 1  ;;  %v652_v11 = vor.u32 %v651_v61, %v647_v28  ;;  %v731_v28 = vshrl.u32 %v12314_v40, 16  ;;  %v11573_v48 = vld [vmem:[%s18211_s0 + $0x3c] sm:$0xff]   ;;  %v11575_v40 = vld [vmem:[%s18211_s0 + $0x48] sm:$0xff]  }
  0xab   :  { %v12605_v32 = vsel %vm465_vm1, %v652_v11, %v656_v46  ;;  %v664_v61 = vor.u32 %v663_v5, %v659_v8  ;;  %v12618_v46 = vrot.slane %v726_v30, 1  ;;  %v11316_v8 = vld [vmem:[%s18212_s1 + $0x198] sm:$0xff]   ;;  %v740_v11 = vrot.slane %v738_v39, 1 }
  0xac   :  { %10789 = vmatmul.mubr.bf16.gmra.mxu1 %v12547_v50  ;;  %18615 = vst [vmem:[#allocation48_spill] sm:$0xff] %v12605_v32  ;;  %v12658_v30 = vrot.slane %v757_v13, 1  ;;  %v767_v39 = vshrl.u32 %v12374_v1, 16 }
  0xad   :  { %10792 = vmatprep.mubr.bf16.mxu1 %v12551_v58  ;;  %v12629_v5 = vsel %vm465_vm1, %v664_v61, %v668_v0  ;;  %v700_v0 = vor.u32 %v699_v24, %v695_v25  ;;  %v11319_v25 = vld [vmem:[%s18212_s1 + $0x188] sm:$0xff]  }
  0xae   :  { %18616 = vst [vmem:[#allocation49_spill] sm:$0xff] %v12629_v5  ;;  %v12917_v58 = vld [vmem:[%s18211_s0 + $0x168] sm:$0xff]  }
  0xaf   :  { %1449 = vmatmul.mubr.bf16.gmra.mxu0 %v12161_v62  ;;  %v714_v62 = vshll.u32 %v12267_v41, 16  ;;  %v11314_v41 = vld [vmem:[%s18212_s1 + $0x1a0] sm:$0xff]   ;;  %v12656_v24 = vsel %vm465_vm1, %v700_v0, %v704_v12 }
  0xb0   :  { %1456 = vmatprep.mubr.bf16.mxu0 %v12584_v4  ;;  %v11569_v12 = vld [vmem:[%s18211_s0 + $0x24] sm:$0xff]  }
  0xb1   :  { %v11330_v0 = vld [vmem:[%s18212_s1 + $0x1e0] sm:$0xff]  }
  0xb4   :  { %10793 = vmatmul.mubr.bf16.gmra.mxu1 %v12563_v2 }
  0xb5   :  { %2074 = vmatprep.mubr.bf16.mxu1 %v477_v9  ;;  %v707_v9 = vshrl.u32 %v12283_v56, 16 }
  0xb7   :  { %1457 = vmatmul.mubr.bf16.gmra.mxu0 %v12175_v14  ;;  %v723_v14 = vrot.slane %v721_v21, 1  ;;  %v11326_v21 = vld [vmem:[%s18212_s1 + $0x90] sm:$0xff]   ;;  %v712_v61 = vor.u32 %v711_v19, %v707_v9 }
  0xb8   :  { %1464 = vmatprep.mubr.bf16.mxu0 %v12605_v32  ;;  %10806 = vmatprep.subr.bf16.mxu0 %v11326_v21  ;;  %v11571_v9 = vld [vmem:[%s18211_s0 + $0x30] sm:$0xff]  }
  0xb9   :  { %10807 = vmatpush3.bf16.msra.mxu0 %v11326_v21  ;;  %v724_v19 = vor.u32 %v723_v14, %v719_v16  ;;  %v736_v16 = vor.u32 %v735_v38, %v731_v28  ;;  %v11578_v21 = vld [vmem:[%s18211_s0 + $0x134] ss:$0 sps:$4 sm:$0x11]  }
  0xbb   :  { %v12729_v14 = vsel %vm465_vm1, %v736_v16, %v740_v11  ;;  %v11584_v16 = vld [vmem:[%s18211_s0 + $0x6c] sm:$0xff]  }
  0xbc   :  { %2075 = vmatmul.mubr.bf16.vlgmr.msra.gmra.mxu1 %v12513_v47  ;;  %v11313_v47 = vld [vmem:[%s18212_s1 + $0x1a8] sm:$0xff]   ;;  %18619 = vst [vmem:[#allocation52_spill] sm:$0xff] %v12729_v14 }
  0xbd   :  { %2814 = vmatpush1.bf16.msra.mxu1 %v11310_v53  ;;  %2082 = vmatprep.mubr.bf16.mxu1 %v12036_v3  ;;  %v716_v3 = vrot.slane %v714_v62, 1  ;;  %v743_v53 = vshrl.u32 %v12337_v33, 16  ;;  %v755_v62 = vshrl.u32 %v12359_v44, 16  ;;  %v12756_v33 = vld [vmem:[%s18211_s0 + $0x108] sm:$0xff]  }
  0xbe   :  { %2815 = vmatprep.subr.bf16.mxu1 %v18593_v10 }
  0xbf   :  { %1465 = vmatmul.mubr.bf16.gmra.mxu0 %v12188_v27  ;;  %v12642_v27 = vrot.slane %v745_v20, 1  ;;  %v11324_v20 = vld [vmem:[%s18212_s1 + $0x1f8] sm:$0xff]   ;;  %v12685_v56 = vsel %vm465_vm1, %v712_v61, %v716_v3  ;;  %v769_v3 = vshll.u32 %v12374_v1, 16  ;;  %v12716_v1 = vld [vmem:[%s18211_s0 + $0xf0] sm:$0xff]   ;;  %v760_v11 = vor.u32 %v12658_v30, %v755_v62  ;;  %v11580_v62 = vld [vmem:[%s18211_s0 + $0x60] sm:$0xff]  }
  0xc0   :  { %1472 = vmatprep.mubr.bf16.mxu0 %v12629_v5  ;;  %18617 = vst [vmem:[#allocation50_spill] sm:$0xff] %v12685_v56  ;;  %v11331_v61 = vld [vmem:[%s18212_s1 + $0x1d8] sm:$0xff]  }
  0xc1   :  { %2816 = vmatpush1.bf16.msra.mxu1 %v11311_v49  ;;  %v11568_v49 = vld [vmem:[%s18211_s0 + $0x18] sm:$0xff]   ;;  %v748_v28 = vor.u32 %v12642_v27, %v743_v53  ;;  %v771_v13 = vrot.slane %v769_v3, 1 }
  0xc2   :  { %2817 = vmatprep.subr.bf16.mxu1 %v18593_v10  ;;  %v11577_v53 = vld [vmem:[%s18211_s0 + $0x54] sm:$0xff]  }
  0xc3   :  { %v772_v30 = vor.u32 %v771_v13, %v767_v39 }
  0xc4   :  { %2083 = vmatmul.mubr.bf16.gmra.mxu1 %v11567_v59  ;;  %v11320_v59 = vld [vmem:[%s18212_s1 + $0x180] sm:$0xff]  }
  0xc5   :  { %2090 = vmatprep.mubr.bf16.mxu1 %v12135_v55  ;;  %2818 = vmatpush1.bf16.msra.mxu1 %v11313_v47  ;;  %v12650_v47 = vrot.slane %v750_v22, 1  ;;  %v11329_v22 = vld [vmem:[%s18212_s1 + $0x1e8] sm:$0xff]   ;;  %v12971_v55 = vld [vmem:[%s18211_s0 + $0xe0] ss:$0 sps:$4 sm:$0x11]  }
  0xc6   :  { %2819 = vmatprep.subr.bf16.mxu1 %v18593_v10  ;;  %18634 = vst [vmem:[#allocation67_spill] sm:$0xff] %v12971_v55 }
  0xc7   :  { %1473 = vmatmul.mubr.bf16.gmra.mxu0 %v12236_v7  ;;  %v762_v7 = vshll.u32 %v12364_v45, 16  ;;  %v12690_v45 = vld [vmem:[%s18211_s0 + $0xe4] sm:$0xff]   ;;  %v12751_v38 = vsel %vm465_vm1, %v748_v28, %v12650_v47  ;;  %v774_v47 = vshll.u32 %v11578_v21, 16 }
  0xc8   :  { %1480 = vmatprep.mubr.bf16.mxu0 %v12656_v24  ;;  %18620 = vst [vmem:[#allocation53_spill] sm:$0xff] %v12751_v38 }
  0xc9   :  { %2820 = vmatpush1.bf16.msra.mxu1 %v11314_v41  ;;  %v11327_v41 = vld [vmem:[%s18212_s1 + $0x88] sm:$0xff]  }
  0xca   :  { %2821 = vmatprep.subr.bf16.mxu1 %v18593_v10  ;;  %10808 = vmatprep.subr.bf16.mxu0 %v11327_v41 }
  0xcb   :  { %10809 = vmatpush3.bf16.msra.mxu0 %v11327_v41  ;;  %v776_v41 = vrot.slane %v774_v47, 1 }
  0xcc   :  { %2091 = vmatmul.mubr.bf16.gmra.mxu1 %v11568_v49  ;;  %10810 = vmatprep.subr.bf16.mxu0 %v11328_v37  ;;  %v764_v49 = vrot.slane %v762_v7, 1 }
  0xcd   :  { %2098 = vmatprep.mubr.bf16.mxu1 %v12182_v17  ;;  %2822 = vmatpush1.bf16.msra.mxu1 %v11316_v8  ;;  %v11325_v8 = vld [vmem:[%s18212_s1 + $0x1f0] sm:$0xff]   ;;  %v12800_v39 = vsel %vm465_vm1, %v772_v30, %v776_v41 }
  0xce   :  { %2823 = vmatprep.subr.bf16.mxu1 %v18593_v10  ;;  %v12768_v27 = vsel %vm465_vm1, %v760_v11, %v764_v49  ;;  %18622 = vst [vmem:[#allocation55_spill] sm:$0xff] %v12800_v39  ;;  %v12824_v49 = vld [vmem:[%s18211_s0 + $0x144] sm:$0xff]  }
  0xcf   :  { %10811 = vmatpush3.bf16.msra.mxu0 %v11328_v37  ;;  %18621 = vst [vmem:[#allocation54_spill] sm:$0xff] %v12768_v27  ;;  %v791_v21 = vshrl.u32 %v12824_v49, 16 }
  0xd0   :  { %1481 = vmatmul.mubr.bf16.gmra.mxu0 %v12690_v45 }
  0xd1   :  { %2824 = vmatpush1.bf16.msra.mxu1 %v11317_v31  ;;  %1488 = vmatprep.mubr.bf16.mxu0 %v12685_v56  ;;  %v12711_v31 = vsel %vm465_vm1, %v724_v19, %v12618_v46  ;;  %v12734_v46 = vld [vmem:[%s18211_s0 + $0xfc] sm:$0xff]  }
  0xd2   :  { %2825 = vmatprep.subr.bf16.mxu1 %v18593_v10  ;;  %18618 = vst [vmem:[#allocation51_spill] sm:$0xff] %v12711_v31  ;;  %v11582_v19 = vld [vmem:[%s18211_s0 + $0x140] ss:$0 sps:$4 sm:$0x11]  }
  0xd3   :  { %v786_v3 = vshll.u32 %v11582_v19, 16 }
  0xd4   :  { %2099 = vmatmul.mubr.bf16.gmra.mxu1 %v11569_v12 }
  0xd5   :  { %2106 = vmatprep.mubr.bf16.mxu1 %v12228_v63  ;;  %2826 = vmatpush1.bf16.msra.mxu1 %v11319_v25  ;;  %v12776_v25 = vld [vmem:[%s18211_s0 + $0x114] sm:$0xff]   ;;  %v788_v28 = vrot.slane %v786_v3, 1  ;;  %v11596_v63 = vld [vmem:[%s18211_s0 + $0x170] ss:$0 sps:$4 sm:$0x11]  }
  0xd6   :  { %2827 = vmatprep.subr.bf16.mxu1 %v18593_v10  ;;  %v12856_v3 = vld [vmem:[%s18211_s0 + $0x150] sm:$0xff]  }
  0xd7   :  { %18624 = vst [vmem:[#allocation57_spill] sm:$0xff] %v12856_v3 }
  0xd8   :  { %1489 = vmatmul.mubr.bf16.gmra.mxu0 %v12716_v1 }
  0xd9   :  { %2828 = vmatpush1.bf16.msra.mxu1 %v11320_v59  ;;  %1496 = vmatprep.mubr.bf16.mxu0 %v12711_v31  ;;  %v12788_v59 = vld [vmem:[%s18211_s0 + $0x138] sm:$0xff]  }
  0xda   :  { %2829 = vmatprep.subr.bf16.mxu1 %v18593_v10  ;;  %v781_v12 = vshll.u32 %v12788_v59, 16 }
  0xdc   :  { %2107 = vmatmul.mubr.bf16.gmra.mxu1 %v11571_v9  ;;  %v783_v9 = vrot.slane %v781_v12, 1  ;;  %v12844_v12 = vld [vmem:[%s18211_s0 + $0x12c] sm:$0xff]  }
  0xdd   :  { %2114 = vmatprep.mubr.bf16.mxu1 %v12270_v42  ;;  %2830 = vmatpush2.bf16.msra.mxu1 %v11324_v20  ;;  %v779_v20 = vshrl.u32 %v12788_v59, 16 }
  0xde   :  { %2831 = vmatprep.subr.bf16.mxu1 %v18593_v10 }
  0xe0   :  { %1497 = vmatmul.mubr.bf16.gmra.mxu0 %v12734_v46 }
  0xe1   :  { %2832 = vmatpush2.bf16.msra.mxu1 %v11325_v8  ;;  %1504 = vmatprep.mubr.bf16.mxu0 %v12729_v14 }
  0xe2   :  { %2833 = vmatprep.subr.bf16.mxu1 %v18593_v10 }
  0xe4   :  { %2115 = vmatmul.mubr.bf16.gmra.mxu1 %v11573_v48 }
  0xe5   :  { %2122 = vmatprep.mubr.bf16.mxu1 %v12318_v43  ;;  %2834 = vmatpush2.bf16.msra.mxu1 %v11329_v22  ;;  %v12812_v22 = vld [vmem:[%s18211_s0 + $0x120] sm:$0xff]  }
  0xe6   :  { %2835 = vmatprep.subr.bf16.mxu1 %v18593_v10 }
  0xe8   :  { %1505 = vmatmul.mubr.bf16.gmra.mxu0 %v12756_v33 }
  0xe9   :  { %2836 = vmatpush2.bf16.msra.mxu1 %v11330_v0  ;;  %1512 = vmatprep.mubr.bf16.mxu0 %v12751_v38  ;;  %v793_v0 = vshll.u32 %v12824_v49, 16 }
  0xea   :  { %2837 = vmatprep.subr.bf16.mxu1 %v18593_v10 }
  0xeb   :  { %v795_v47 = vrot.slane %v793_v0, 1 }
  0xec   :  { %2123 = vmatmul.mubr.bf16.gmra.mxu1 %v11575_v40  ;;  %v784_v40 = vor.u32 %v783_v9, %v779_v20  ;;  %v11588_v20 = vld [vmem:[%s18211_s0 + $0x78] sm:$0xff]  }
  0xed   :  { %2130 = vmatprep.mubr.bf16.mxu1 %v12367_v35  ;;  %2838 = vmatpush2.bf16.msra.mxu1 %v11331_v61  ;;  %v796_v9 = vor.u32 %v795_v47, %v791_v21  ;;  %v803_v47 = vshrl.u32 %v12856_v3, 16 }
  0xee   :  { %2839 = vmatprep.subr.bf16.mxu1 %v18593_v10  ;;  %v12833_v13 = vsel %vm465_vm1, %v784_v40, %v788_v28  ;;  %v11332_v40 = vld [vmem:[%s18212_s1 + $0x1d0] sm:$0xff]  }
  0xef   :  { %18623 = vst [vmem:[#allocation56_spill] sm:$0xff] %v12833_v13 }
  0xf0   :  { %1513 = vmatmul.mubr.bf16.gmra.mxu0 %v12776_v25 }
  0xf1   :  { %1520 = vmatprep.mubr.bf16.mxu0 %v12768_v27  ;;  %2840 = vmatpush2.bf16.msra.mxu1 %v11332_v40 }
  0xf2   :  { %2841 = vmatprep.subr.bf16.mxu1 %v18593_v10 }
  0xf4   :  { %2131 = vmatmul.mubr.bf16.gmra.mxu1 %v11577_v53 }
  0xf5   :  { %2138 = vmatprep.mubr.bf16.mxu1 %v12412_v60 }
  0xf8   :  { %1521 = vmatmul.mubr.bf16.gmra.mxu0 %v12812_v22 }
  0xf9   :  { %1528 = vmatprep.mubr.bf16.mxu0 %v12800_v39 }
  0xfc   :  { %v12780_v44 = vpop.f32.mrf.mxu1  ;;  %2139 = vmatmul.mubr.bf16.gmra.mxu1 %v11580_v62  ;;  %v11586_v62 = vld [vmem:[%s18211_s0 + $0x14c] ss:$0 sps:$4 sm:$0x11]  }
  0xfd   :  { %2146 = vmatprep.mubr.bf16.mxu1 %v12442_v26  ;;  %v798_v30 = vshll.u32 %v11586_v62, 16 }
  0xfe   :  { %v12795_v7 = vpop.f32.mrf.mxu1 }
  0xff   :  { %v800_v19 = vrot.slane %v798_v30, 1  ;;  %v11590_v30 = vld [vmem:[%s18211_s0 + $0x158] ss:$0 sps:$4 sm:$0x11]  }
 0x100   :  { %v12797_v37 = vpop.f32.mrf.mxu1  ;;  %1529 = vmatmul.mubr.bf16.gmra.mxu0 %v12844_v12 }
 0x101   :  { %1536 = vmatprep.mubr.bf16.mxu0 %v12833_v13  ;;  %v12868_v21 = vsel %vm465_vm1, %v796_v9, %v800_v19  ;;  %v11591_v9 = vld [vmem:[%s18211_s0 + $0x84] sm:$0xff]  }
 0x102   :  { %v12807_v8 = vpop.f32.mrf.mxu1  ;;  %18625 = vst [vmem:[#allocation58_spill] sm:$0xff] %v12868_v21 }
 0x104   :  { %v12816_v48 = vpop.f32.mrf.mxu1  ;;  %2147 = vmatmul.mubr.bf16.gmra.mxu1 %v11584_v16  ;;  %v805_v16 = vshll.u32 %v12856_v3, 16 }
 0x105   :  { %2154 = vmatprep.mubr.bf16.mxu1 %v12478_v23 }
 0x106   :  { %v12828_v53 = vpop.f32.mrf.mxu1  ;;  %v807_v62 = vrot.slane %v805_v16, 1 }
 0x108   :  { %v12830_v11 = vpop.f32.mrf.mxu1  ;;  %1537 = vmatmul.mubr.bf16.gmra.mxu0 %v12788_v59  ;;  %v808_v19 = vor.u32 %v807_v62, %v803_v47  ;;  %v11593_v62 = vld [vmem:[%s18211_s0 + $0x164] ss:$0 sps:$4 sm:$0x11]  }
 0x109   :  { %1544 = vmatprep.mubr.bf16.mxu0 %v12868_v21 }
 0x10a   :  { %v12839_v41 = vpop.f32.mrf.mxu1 }
 0x10c   :  { %v12848_v61 = vpop.f32.mrf.mxu1  ;;  %2155 = vmatmul.mubr.bf16.gmra.mxu1 %v11588_v20  ;;  %v810_v20 = vshll.u32 %v11590_v30, 16  ;;  %v12887_v30 = vld [vmem:[%s18211_s0 + $0x15c] sm:$0xff]  }
 0x10d   :  { %2162 = vmatprep.mubr.bf16.mxu1 %v12516_v57  ;;  %18626 = vst [vmem:[#allocation59_spill] sm:$0xff] %v12887_v30  ;;  %v817_v5 = vshll.u32 %v12887_v30, 16 }
 0x10e   :  { %v12863_v28 = vpop.f32.mrf.mxu1  ;;  %v812_v16 = vrot.slane %v810_v20, 1  ;;  %v822_v20 = vshll.u32 %v11593_v62, 16 }
 0x10f   :  { %v819_v47 = vrot.slane %v817_v5, 1  ;;  %v1354_v35 = vpop.f32.mrf.mxu0  ;;  %v11594_v5 = vld [vmem:[%s18211_s0 + $0x90] sm:$0xff]  }
 0x110   :  { %v12865_v0 = vpop.f32.mrf.mxu1  ;;  %v12896_v26 = vsel %vm465_vm1, %v808_v19, %v812_v16  ;;  %1545 = vmatmul.mubr.bf16.gmra.mxu0 %v12824_v49  ;;  %v824_v62 = vrot.slane %v822_v20, 1 }
 0x111   :  { %18627 = vst [vmem:[#allocation60_spill] sm:$0xff] %v12896_v26  ;;  %1552 = vmatprep.mubr.bf16.mxu0 %v12896_v26  ;;  %v1356_v16 = vpop.f32.mrf.mxu0 }
 0x112   :  { %v12875_v2 = vpop.f32.mrf.mxu1  ;;  %v827_v16 = vshrl.u32 %v12917_v58, 16 }
 0x113   :  { %v1357_v50 = vpop.f32.mrf.mxu0 }
 0x114   :  { %v12879_v40 = vpop.f32.mrf.mxu1  ;;  %2163 = vmatmul.mubr.bf16.gmra.mxu1 %v11591_v9  ;;  %v815_v9 = vshrl.u32 %v12887_v30, 16 }
 0x115   :  { %2170 = vmatprep.mubr.bf16.mxu1 %v12544_v52  ;;  %v12906_v52 = vadd.f32 %v12795_v7, %v1354_v35  ;;  %v829_v35 = vshll.u32 %v12917_v58, 16  ;;  %v11333_v7 = vld [vmem:[%s18212_s1 + $0x1c8] sm:$0xff]  }
 0x116   :  { %v12891_v57 = vpop.f32.mrf.mxu1  ;;  %v820_v43 = vor.u32 %v819_v47, %v815_v9  ;;  %2842 = vmatpush2.bf16.msra.mxu1 %v11333_v7  ;;  %v1359_v47 = vpop.f32.mrf.mxu0 }
 0x117   :  { %2843 = vmatprep.subr.bf16.mxu1 %v18593_v10 }
 0x118   :  { %v12893_v23 = vpop.f32.mrf.mxu1  ;;  %v12932_v20 = vsel %vm465_vm1, %v820_v43, %v824_v62  ;;  %1553 = vmatmul.mubr.bf16.gmra.mxu0 %v12856_v3  ;;  %v12945_v43 = vld [vmem:[%s18211_s0 + $0xd8] sm:$0xff]  }
 0x119   :  { %18630 = vst [vmem:[#allocation63_spill] sm:$0xff] %v12932_v20  ;;  %1560 = vmatprep.mubr.bf16.mxu0 %v12932_v20  ;;  %v846_v20 = vshll.u32 %v11599_v15, 16  ;;  %v13000_v15 = vld [vmem:[%s18211_s0 + $0xa8] sm:$0xff]  }
 0x11a   :  { %v12902_v60 = vpop.f32.mrf.mxu1  ;;  %18640 = vst [vmem:[#allocation73_spill] sm:$0xff] %v13000_v15 }
 0x11c   :  { %v12909_v19 = vpop.f32.mrf.mxu1  ;;  %2171 = vmatmul.mubr.bf16.gmra.mxu1 %v11594_v5  ;;  %v12927_v5 = vadd.f32 %v12807_v8, %v1357_v50  ;;  %v1362_v50 = vpop.f32.mrf.mxu0 }
 0x11d   :  { %18628 = vst [vmem:[#allocation61_spill] sm:$0xff] %v12909_v19  ;;  %2178 = vmatprep.mubr.bf16.mxu1 %v12560_v29  ;;  %v831_v29 = vrot.slane %v829_v35, 1  ;;  %v834_v19 = vshll.u32 %v11596_v63, 16  ;;  %v12948_v8 = vadd.f32 %v12780_v44, %v1362_v50  ;;  %v12956_v63 = vld [vmem:[%s18211_s0 + $0x9c] sm:$0xff]  }
 0x11e   :  { %v12924_v42 = vpop.f32.mrf.mxu1  ;;  %18632 = vst [vmem:[#allocation65_spill] sm:$0xff] %v12956_v63  ;;  %v1364_v35 = vpop.f32.mrf.mxu0 }
 0x11f   :  { %v832_v7 = vor.u32 %v831_v29, %v827_v16  ;;  %v836_v47 = vrot.slane %v834_v19, 1  ;;  %v685_v29 = vshll.u32 %v12945_v43, 16 }
 0x120   :  { %v12929_v9 = vpop.f32.mrf.mxu1  ;;  %1561 = vmatmul.mubr.bf16.gmra.mxu0 %v12887_v30 }
 0x121   :  { %18629 = vst [vmem:[#allocation62_spill] sm:$0xff] %v12929_v9  ;;  %v12962_v9 = vld [vmem:[%s18211_s0 + $0x174] sm:$0xff]  }
 0x122   :  { %v12939_v17 = vpop.f32.mrf.mxu1  ;;  %v841_v44 = vshll.u32 %v12962_v9, 16 }
 0x124   :  { %v12951_v62 = vpop.f32.mrf.mxu1  ;;  %2179 = vmatmul.mubr.bf16.gmra.mxu1 %v12956_v63  ;;  %v12980_v63 = vsel %vm465_vm1, %v832_v7, %v836_v47 }
 0x125   :  { %18631 = vst [vmem:[#allocation64_spill] sm:$0xff] %v12951_v62  ;;  %2186 = vmatprep.mubr.bf16.mxu1 %v12584_v4  ;;  %v1365_v62 = vpop.f32.mrf.mxu0  ;;  %18636 = vst [vmem:[#allocation69_spill] sm:$0xff] %v12980_v63  ;;  %v839_v4 = vshrl.u32 %v12962_v9, 16  ;;  %1568 = vmatprep.mubr.bf16.mxu0 %v12980_v63 }
 0x126   :  { %v12966_v50 = vpop.f32.mrf.mxu1  ;;  %v12975_v19 = vadd.f32 %v12797_v37, %v1365_v62  ;;  %v683_v37 = vshrl.u32 %v12945_v43, 16  ;;  %v687_v62 = vrot.slane %v685_v29, 1  ;;  %v13006_v29 = vld [vmem:[%s18211_s0 + $0x180] sm:$0xff]  }
 0x127   :  { %18633 = vst [vmem:[#allocation66_spill] sm:$0xff] %v12966_v50  ;;  %v1367_v35 = vpop.f32.mrf.mxu0  ;;  %v843_v50 = vrot.slane %v841_v44, 1 }
 0x128   :  { %v12977_v16 = vpop.f32.mrf.mxu1  ;;  %v690_v35 = vshll.u32 %v12971_v55, 16  ;;  %1569 = vmatmul.mubr.bf16.gmra.mxu0 %v12917_v58 }
 0x129   :  { %18635 = vst [vmem:[#allocation68_spill] sm:$0xff] %v12977_v16  ;;  %v1370_v26 = vpop.f32.mrf.mxu0  ;;  %v844_v16 = vor.u32 %v843_v50, %v839_v4 }
 0x12a   :  { %v12986_v3 = vpop.f32.mrf.mxu1  ;;  %v12992_v7 = vadd.f32 %v12828_v53, %v1370_v26  ;;  %v853_v26 = vshll.u32 %v13006_v29, 16  ;;  %v11334_v53 = vld [vmem:[%s18212_s1 + $0x1c0] sm:$0xff]  }
 0x12b   :  { %18637 = vst [vmem:[#allocation70_spill] sm:$0xff] %v12986_v3  ;;  %v1372_v44 = vpop.f32.mrf.mxu0  ;;  %v848_v3 = vrot.slane %v846_v20, 1  ;;  %2844 = vmatpush2.bf16.msra.mxu1 %v11334_v53 }
 0x12c   :  { %18638 = vst [vmem:[#allocation71_spill] sm:$0xff] %v12992_v7  ;;  %v12995_v47 = vpop.f32.mrf.mxu1  ;;  %2187 = vmatmul.mubr.bf16.gmra.mxu1 %v13000_v15  ;;  %v688_v15 = vor.u32 %v687_v62, %v683_v37  ;;  %v692_v44 = vrot.slane %v690_v35, 1  ;;  %v855_v7 = vrot.slane %v853_v26, 1 }
 0x12d   :  { %18639 = vst [vmem:[#allocation72_spill] sm:$0xff] %v12995_v47  ;;  %2194 = vmatprep.mubr.bf16.mxu1 %v12605_v32  ;;  %v1373_v63 = vpop.f32.mrf.mxu0  ;;  %v13021_v30 = vsel %vm465_vm1, %v844_v16, %v848_v3  ;;  %v851_v32 = vshrl.u32 %v13006_v29, 16  ;;  %v13040_v16 = vld [vmem:[%s18211_s0 + $0xb4] sm:$0xff]  }
 0x12e   :  { %v13013_v47 = vpop.f32.mrf.mxu1  ;;  %v13016_v4 = vadd.f32 %v12839_v41, %v1373_v63  ;;  %18643 = vst [vmem:[#allocation76_spill] sm:$0xff] %v13021_v30  ;;  %v693_v41 = vsel %vm465_vm1, %v688_v15, %v692_v44  ;;  %1576 = vmatprep.mubr.bf16.mxu0 %v13021_v30  ;;  %18646 = vst [vmem:[#allocation79_spill] sm:$0xff] %v13040_v16  ;;  %v13046_v15 = vld [vmem:[%s18211_s0 + $0x18c] sm:$0xff]  }
 0x12f   :  { %18641 = vst [vmem:[#allocation74_spill] sm:$0xff] %v13013_v47  ;;  %v1375_v50 = vpop.f32.mrf.mxu0  ;;  %v11602_v47 = vld [vmem:[%s18211_s0 + $0x188] ss:$0 sps:$4 sm:$0x11]  }
 0x130   :  { %v13018_v20 = vpop.f32.mrf.mxu1  ;;  %v858_v55 = vshll.u32 %v11602_v47, 16  ;;  %v856_v47 = vor.u32 %v855_v7, %v851_v32  ;;  %v13054_v50 = vld [vmem:[%s18212_s1 + $0x238] sm:$0xff]   ;;  %1577 = vmatmul.mubr.bf16.gmra.mxu0 %v12962_v9 }
 0x131   :  { %18642 = vst [vmem:[#allocation75_spill] sm:$0xff] %v13018_v20  ;;  %v1378_v62 = vpop.f32.mrf.mxu0  ;;  %10876 = vmatprep.subr.bf16.mxu0 %v13054_v50 }
 0x132   :  { %v13027_v37 = vpop.f32.mrf.mxu1  ;;  %v13032_v63 = vadd.f32 %v12816_v48, %v1378_v62  ;;  %v860_v26 = vrot.slane %v858_v55, 1  ;;  %v865_v48 = vshll.u32 %v13046_v15, 16 }
 0x133   :  { %18644 = vst [vmem:[#allocation77_spill] sm:$0xff] %v13027_v37  ;;  %v1380_v35 = vpop.f32.mrf.mxu0 }
 0x134   :  { %v13035_v3 = vpop.f32.mrf.mxu1  ;;  %2195 = vmatmul.mubr.bf16.gmra.mxu1 %v13040_v16  ;;  %v13062_v7 = vsel %vm465_vm1, %v856_v47, %v860_v26  ;;  %v863_v35 = vshrl.u32 %v13046_v15, 16  ;;  %v11605_v16 = vld [vmem:[%s18211_s0 + $0x194] ss:$0 sps:$4 sm:$0x11]  }
 0x135   :  { %18645 = vst [vmem:[#allocation78_spill] sm:$0xff] %v13035_v3  ;;  %2202 = vmatprep.mubr.bf16.mxu1 %v693_v41  ;;  %v1381_v44 = vpop.f32.mrf.mxu0  ;;  %18649 = vst [vmem:[#allocation82_spill] sm:$0xff] %v13062_v7  ;;  %v867_v41 = vrot.slane %v865_v48, 1  ;;  %v870_v3 = vshll.u32 %v11605_v16, 16  ;;  %1584 = vmatprep.mubr.bf16.mxu0 %v13062_v7  ;;  %v11606_v16 = vld [vmem:[%s18211_s0 + $0x198] sm:$0xff]  }
 0x136   :  { %v13049_v53 = vpop.f32.mrf.mxu1  ;;  %v13057_v62 = vadd.f32 %v12830_v11, %v1381_v44 }
 0x137   :  { %18647 = vst [vmem:[#allocation80_spill] sm:$0xff] %v13049_v53  ;;  %v1383_v32 = vpop.f32.mrf.mxu0  ;;  %v868_v48 = vor.u32 %v867_v41, %v863_v35  ;;  %v11607_v41 = vld [vmem:[%s18211_s0 + $0x1a0] ss:$0 sps:$4 sm:$0x11]  }
 0x138   :  { %v13059_v55 = vpop.f32.mrf.mxu1  ;;  %v872_v32 = vrot.slane %v870_v3, 1  ;;  %v875_v3 = vshrl.u32 %v11606_v16, 16  ;;  %v882_v37 = vshll.u32 %v11607_v41, 16  ;;  %1585 = vmatmul.mubr.bf16.gmra.mxu0 %v13006_v29 }
 0x139   :  { %18648 = vst [vmem:[#allocation81_spill] sm:$0xff] %v13059_v55  ;;  %v1386_v11 = vpop.f32.mrf.mxu0  ;;  %v877_v55 = vshll.u32 %v11606_v16, 16 }
 0x13a   :  { %v13069_v53 = vpop.f32.mrf.mxu1  ;;  %v13073_v44 = vadd.f32 %v12863_v28, %v1386_v11 }
 0x13b   :  { %18650 = vst [vmem:[#allocation83_spill] sm:$0xff] %v13069_v53  ;;  %v1388_v26 = vpop.f32.mrf.mxu0  ;;  %v879_v35 = vrot.slane %v877_v55, 1 }
 0x13c   :  { %v13076_v47 = vpop.f32.mrf.mxu1  ;;  %2203 = vmatmul.mubr.bf16.gmra.mxu1 %v12945_v43  ;;  %v13091_v26 = vsel %vm465_vm1, %v868_v48, %v872_v32  ;;  %v884_v32 = vrot.slane %v882_v37, 1 }
 0x13d   :  { %18651 = vst [vmem:[#allocation84_spill] sm:$0xff] %v13076_v47  ;;  %2210 = vmatprep.mubr.bf16.mxu1 %v12656_v24  ;;  %v1389_v28 = vpop.f32.mrf.mxu0  ;;  %18654 = vst [vmem:[#allocation87_spill] sm:$0xff] %v13091_v26  ;;  %1592 = vmatprep.mubr.bf16.mxu0 %v13091_v26  ;;  %v880_v48 = vor.u32 %v879_v35, %v875_v3  ;;  %v11608_v35 = vld [vmem:[%s18211_s0] sm:$0xff]  }
 0x13e   :  { %v13083_v53 = vpop.f32.mrf.mxu1  ;;  %v13086_v11 = vadd.f32 %v12875_v2, %v1389_v28 }
 0x13f   :  { %18652 = vst [vmem:[#allocation85_spill] sm:$0xff] %v13083_v53  ;;  %v1391_v47 = vpop.f32.mrf.mxu0 }
 0x140   :  { %v13088_v20 = vpop.f32.mrf.mxu1  ;;  %1593 = vmatmul.mubr.bf16.gmra.mxu0 %v13046_v15 }
 0x141   :  { %18653 = vst [vmem:[#allocation86_spill] sm:$0xff] %v13088_v20  ;;  %v1394_v53 = vpop.f32.mrf.mxu0 }
 0x142   :  { %v13096_v24 = vpop.f32.mrf.mxu1  ;;  %v13100_v2 = vadd.f32 %v12848_v61, %v1394_v53  ;;  %v13115_v53 = vsel %vm465_vm1, %v880_v48, %v884_v32  ;;  %v11609_v48 = vld [vmem:[%s18211_s0 + $0x8] ss:$0 sps:$4 sm:$0x11]  }
 0x143   :  { %18655 = vst [vmem:[#allocation88_spill] sm:$0xff] %v13096_v24  ;;  %v1396_v55 = vpop.f32.mrf.mxu0  ;;  %18657 = vst [vmem:[#allocation90_spill] sm:$0xff] %v13115_v53  ;;  %1600 = vmatprep.mubr.bf16.mxu0 %v13115_v53  ;;  %v936_v32 = vrot.slane %v11609_v48, 1 }
 0x144   :  { %v13103_v47 = vpop.f32.mrf.mxu1  ;;  %2211 = vmatmul.mubr.bf16.gmra.mxu1 %v12690_v45  ;;  %v935_v55 = vrot.slane %v11608_v35, 1 }
 0x145   :  { %18656 = vst [vmem:[#allocation89_spill] sm:$0xff] %v13103_v47  ;;  %2218 = vmatprep.mubr.bf16.mxu1 %v12685_v56  ;;  %v1397_v41 = vpop.f32.mrf.mxu0 }
 0x146   :  { %v13107_v28 = vpop.f32.mrf.mxu1  ;;  %v13110_v20 = vadd.f32 %v12865_v0, %v1397_v41 }
 0x147   :  { %v1399_v61 = vpop.f32.mrf.mxu0 }
 0x148   :  { %v13112_v24 = vpop.f32.mrf.mxu1  ;;  %1601 = vmatmul.mubr.bf16.gmra.mxu0 %v11606_v16 }
 0x149   :  { %v1402_v45 = vpop.f32.mrf.mxu0 }
 0x14a   :  { %v13117_v47 = vpop.f32.mrf.mxu1  ;;  %v13121_v37 = vadd.f32 %v12891_v57, %v1402_v45 }
 0x14b   :  { %v1404_v0 = vpop.f32.mrf.mxu0 }
 0x14c   :  { %v13124_v3 = vpop.f32.mrf.mxu1  ;;  %2219 = vmatmul.mubr.bf16.gmra.mxu1 %v12716_v1  ;;  %v937_v0 = vsel %vm934_vm0, %v935_v55, %v936_v32 }
 0x14d   :  { %18658 = vst [vmem:[#allocation91_spill] sm:$0xff] %v13124_v3  ;;  %2226 = vmatprep.mubr.bf16.mxu1 %v12711_v31  ;;  %v1405_v41 = vpop.f32.mrf.mxu0  ;;  %10812 = vmatprep.mubr.bf16.mxu0 %v937_v0 }
 0x14e   :  { %v13134_v57 = vpop.f32.mrf.mxu1  ;;  %v13137_v61 = vadd.f32 %v12902_v60, %v1405_v41 }
 0x14f   :  { %v1407_v45 = vpop.f32.mrf.mxu0 }
 0x150   :  { %v13139_v1 = vpop.f32.mrf.mxu1  ;;  %10813 = vmatmul.mubr.bf16.vlgmr.msra.gmra.mxu0 %v11890_v18 }
 0x151   :  { %18659 = vst [vmem:[#allocation92_spill] sm:$0xff] %v13139_v1  ;;  %v1410_v35 = vpop.f32.mrf.mxu0  ;;  %10816 = vmatprep.mubr.bf16.mxu0 %v11946_v34  ;;  %10877 = vmatpush3.bf16.msra.mxu0 %v13054_v50  ;;  %v18692_v1 = vld [vmem:[#allocation17_spill] sm:$0xff] }
 0x152   :  { %v13142_v53 = vpop.f32.mrf.mxu1  ;;  %v13145_v56 = vadd.f32 %v12879_v40, %v1410_v35  ;;  %v11336_v40 = vld [vmem:[%s18212_s1 + $0x230] sm:$0xff]   ;;  %v11337_v35 = vld [vmem:[%s18212_s1 + $0x228] sm:$0xff]  }
 0x153   :  { %18660 = vst [vmem:[#allocation93_spill] sm:$0xff] %v13142_v53  ;;  %v1412_v31 = vpop.f32.mrf.mxu0  ;;  %10878 = vmatprep.subr.bf16.mxu0 %v11336_v40 }
 0x154   :  { %v13147_v48 = vpop.f32.mrf.mxu1  ;;  %2227 = vmatmul.mubr.bf16.gmra.mxu1 %v12734_v46 }
 0x155   :  { %18661 = vst [vmem:[#allocation94_spill] sm:$0xff] %v13147_v48  ;;  %2234 = vmatprep.mubr.bf16.mxu1 %v12729_v14  ;;  %v1413_v41 = vpop.f32.mrf.mxu0  ;;  %10879 = vmatpush3.bf16.msra.mxu0 %v11336_v40  ;;  %v18677_v14 = vld [vmem:[#allocation9_spill] sm:$0xff]  ;;  %v18687_v48 = vld [vmem:[#allocation14_spill] sm:$0xff] }
 0x156   :  { %v13151_v60 = vpop.f32.mrf.mxu1  ;;  %v13154_v55 = vadd.f32 %v12893_v23, %v1413_v41  ;;  %10880 = vmatprep.subr.bf16.mxu0 %v11337_v35 }
 0x157   :  { %18662 = vst [vmem:[#allocation95_spill] sm:$0xff] %v13151_v60  ;;  %v1415_v16 = vpop.f32.mrf.mxu0 }
 0x158   :  { %v13156_v32 = vpop.f32.mrf.mxu1  ;;  %10817 = vmatmul.mubr.bf16.gmra.mxu0 %v11955_v36 }
 0x159   :  { %18663 = vst [vmem:[#allocation96_spill] sm:$0xff] %v13156_v32  ;;  %v1418_v0 = vpop.f32.mrf.mxu0  ;;  %10820 = vmatprep.mubr.bf16.mxu0 %v11996_v51  ;;  %10881 = vmatpush3.bf16.msra.mxu0 %v11337_v35 }
 0x15a   :  { %v13161_v45 = vpop.f32.mrf.mxu1  ;;  %v13165_v31 = vadd.f32 %v12924_v42, %v1418_v0 }
 0x15b   :  { %18664 = vst [vmem:[#allocation97_spill] sm:$0xff] %v13161_v45  ;;  %v1420_v46 = vpop.f32.mrf.mxu0 }
 0x15c   :  { %v13169_v23 = vpop.f32.mrf.mxu1  ;;  %2235 = vmatmul.mubr.bf16.gmra.mxu1 %v12756_v33  ;;  %v11338_v33 = vld [vmem:[%s18212_s1 + $0x220] sm:$0xff]  }
 0x15d   :  { %18665 = vst [vmem:[#allocation98_spill] sm:$0xff] %v13169_v23  ;;  %2242 = vmatprep.mubr.bf16.mxu1 %v12751_v38  ;;  %v1421_v42 = vpop.f32.mrf.mxu0  ;;  %10882 = vmatprep.subr.bf16.mxu0 %v11338_v33 }
 0x15e   :  { %v13176_v18 = vpop.f32.mrf.mxu1  ;;  %v13179_v41 = vadd.f32 %v12939_v17, %v1421_v42  ;;  %v11339_v42 = vld [vmem:[%s18212_s1 + $0x218] sm:$0xff]   ;;  %10883 = vmatpush3.bf16.msra.mxu0 %v11338_v33 }
 0x15f   :  { %18666 = vst [vmem:[#allocation99_spill] sm:$0xff] %v13176_v18  ;;  %v1423_v16 = vpop.f32.mrf.mxu0  ;;  %10884 = vmatprep.subr.bf16.mxu0 %v11339_v42 }
 0x160   :  { %v13181_v50 = vpop.f32.mrf.mxu1  ;;  %10821 = vmatmul.mubr.bf16.gmra.mxu0 %v12009_v54 }
 0x161   :  { %18667 = vst [vmem:[#allocation100_spill] sm:$0xff] %v13181_v50  ;;  %v13188_v46 = vpop.f32.mrf.mxu0  ;;  %10824 = vmatprep.mubr.bf16.mxu0 %v12051_v6 }
 0x162   :  { %v13186_v0 = vpop.f32.mrf.mxu1  ;;  %10885 = vmatpush3.bf16.msra.mxu0 %v11339_v42 }
 0x163   :  { %18668 = vst [vmem:[#allocation101_spill] sm:$0xff] %v13186_v0  ;;  %v1428_v40 = vpop.f32.mrf.mxu0 }
 0x164   :  { %v13192_v17 = vpop.f32.mrf.mxu1  ;;  %2243 = vmatmul.mubr.bf16.gmra.mxu1 %v12776_v25  ;;  %v11340_v25 = vld [vmem:[%s18212_s1 + $0x210] sm:$0xff]  }
 0x165   :  { %18669 = vst [vmem:[#allocation102_spill] sm:$0xff] %v13192_v17  ;;  %2250 = vmatprep.mubr.bf16.mxu1 %v12768_v27  ;;  %v13201_v38 = vpop.f32.mrf.mxu0  ;;  %10886 = vmatprep.subr.bf16.mxu0 %v11340_v25 }
 0x166   :  { %v13199_v16 = vpop.f32.mrf.mxu1  ;;  %10887 = vmatpush3.bf16.msra.mxu0 %v11340_v25 }
 0x167   :  { %18670 = vst [vmem:[#allocation103_spill] sm:$0xff] %v13199_v16  ;;  %v1431_v35 = vpop.f32.mrf.mxu0 }
 0x168   :  { %v13203_v50 = vpop.f32.mrf.mxu1  ;;  %v11341_v35 = vld [vmem:[%s18212_s1 + $0x208] sm:$0xff]   ;;  %10825 = vmatmul.mubr.bf16.gmra.mxu0 %v18677_v14 }
 0x169   :  { %18671 = vst [vmem:[#allocation104_spill] sm:$0xff] %v13203_v50  ;;  %v13210_v17 = vpop.f32.mrf.mxu0  ;;  %10888 = vmatprep.subr.bf16.mxu0 %v11341_v35 }
 0x16a   :  { %v13208_v40 = vpop.f32.mrf.mxu1  ;;  %10889 = vmatpush3.bf16.msra.mxu0 %v11341_v35 }
 0x16b   :  { %18672 = vst [vmem:[#allocation105_spill] sm:$0xff] %v13208_v40  ;;  %v1436_v33 = vpop.f32.mrf.mxu0 }
 0x16c   :  { %v13214_v27 = vpop.f32.mrf.mxu1  ;;  %2251 = vmatmul.mubr.bf16.gmra.mxu1 %v12812_v22  ;;  %v11342_v22 = vld [vmem:[%s18212_s1 + $0x200] sm:$0xff]  }
 0x16d   :  { %18673 = vst [vmem:[#allocation106_spill] sm:$0xff] %v13214_v27  ;;  %2258 = vmatprep.mubr.bf16.mxu1 %v12800_v39  ;;  %v13223_v40 = vpop.f32.mrf.mxu0  ;;  %v18678_v39 = vld [vmem:[#allocation10_spill] sm:$0xff]  ;;  %10890 = vmatprep.subr.bf16.mxu0 %v11342_v22 }
 0x16e   :  { %v13221_v50 = vpop.f32.mrf.mxu1  ;;  %10828 = vmatprep.mubr.bf16.mxu0 %v18678_v39  ;;  %10891 = vmatpush3.bf16.msra.mxu0 %v11342_v22 }
 0x16f   :  { %18674 = vst [vmem:[#allocation107_spill] sm:$0xff] %v13221_v50  ;;  %v1439_v42 = vpop.f32.mrf.mxu0  ;;  %7109 = vmatprep.subr.bf16.mxu0 %v18593_v10 }
 0x170   :  { %v13225_v16 = vpop.f32.mrf.mxu1 }
 0x171   :  { %18675 = vst [vmem:[#allocation108_spill] sm:$0xff] %v13225_v16  ;;  %v13232_v27 = vpop.f32.mrf.mxu0 }
 0x172   :  { %v13230_v33 = vpop.f32.mrf.mxu1 }
 0x173   :  { %18676 = vst [vmem:[#allocation109_spill] sm:$0xff] %v13230_v33  ;;  %v1444_v25 = vpop.f32.mrf.mxu0 }
 0x174   :  { %v13236_v50 = vpop.f32.mrf.mxu1  ;;  %2259 = vmatmul.mubr.bf16.gmra.mxu1 %v12844_v12  ;;  %v18684_v12 = vld [vmem:[#allocation13_spill] sm:$0xff] }
 0x175   :  { %18679 = vst [vmem:[#allocation9_spill] sm:$0xff] %v13236_v50  ;;  %2266 = vmatprep.mubr.bf16.mxu1 %v12833_v13  ;;  %v13242_v16 = vpop.f32.mrf.mxu0  ;;  %v18683_v50 = vld [vmem:[#allocation11_spill] sm:$0xff] }
 0x176   :  { %v13240_v42 = vpop.f32.mrf.mxu1  ;;  %10829 = vmatmul.mubr.bf16.gmra.mxu0 %v18683_v50 }
 0x177   :  { %18680 = vst [vmem:[#allocation10_spill] sm:$0xff] %v13240_v42  ;;  %v1447_v23 = vpop.f32.mrf.mxu0  ;;  %10832 = vmatprep.mubr.bf16.mxu0 %v18684_v12 }
 0x178   :  { %v13244_v33 = vpop.f32.mrf.mxu1 }
 0x179   :  { %18681 = vst [vmem:[#allocation110_spill] sm:$0xff] %v13244_v33  ;;  %v13249_v35 = vpop.f32.mrf.mxu0 }
 0x17a   :  { %v13247_v0 = vpop.f32.mrf.mxu1 }
 0x17b   :  { %18682 = vst [vmem:[#allocation111_spill] sm:$0xff] %v13247_v0  ;;  %v1452_v42 = vpop.f32.mrf.mxu0 }
 0x17c   :  { %v2076_v25 = vpop.f32.mrf.mxu1  ;;  %2267 = vmatmul.mubr.bf16.gmra.mxu1 %v12788_v59  ;;  %v18688_v59 = vld [vmem:[#allocation16_spill] sm:$0xff] }
 0x17d   :  { %v13255_v13 = vadd.f32 %v2076_v25, %v12906_v52  ;;  %2274 = vmatprep.mubr.bf16.mxu1 %v12868_v21  ;;  %v13258_v22 = vpop.f32.mrf.mxu0 }
 0x17e   :  { %v2078_v23 = vpop.f32.mrf.mxu1  ;;  %10833 = vmatmul.mubr.bf16.gmra.mxu0 %v18687_v48 }
 0x17f   :  { %18685 = vst [vmem:[#allocation11_spill] sm:$0xff] %v13255_v13  ;;  %v1455_v33 = vpop.f32.mrf.mxu0  ;;  %10836 = vmatprep.mubr.bf16.mxu0 %v18688_v59  ;;  %v18690_v23 = vld [vmem:[#allocation60_spill] sm:$0xff] }
 0x180   :  { %v2079_v10 = vpop.f32.mrf.mxu1 }
 0x181   :  { %v13261_v0 = vadd.f32 %v2079_v10, %v12927_v5  ;;  %v13263_v32 = vpop.f32.mrf.mxu0 }
 0x182   :  { %v2081_v18 = vpop.f32.mrf.mxu1 }
 0x183   :  { %18686 = vst [vmem:[#allocation13_spill] sm:$0xff] %v13261_v0  ;;  %v1460_v52 = vpop.f32.mrf.mxu0  ;;  %v18696_v0 = vld [vmem:[#allocation71_spill] sm:$0xff] }
 0x184   :  { %v2084_v42 = vpop.f32.mrf.mxu1  ;;  %2275 = vmatmul.mubr.bf16.gmra.mxu1 %v12824_v49  ;;  %v18693_v49 = vld [vmem:[#allocation19_spill] sm:$0xff] }
 0x185   :  { %v13269_v25 = vadd.f32 %v2084_v42, %v12948_v8  ;;  %2282 = vmatprep.mubr.bf16.mxu1 %v18690_v23  ;;  %v13272_v21 = vpop.f32.mrf.mxu0  ;;  %v18694_v8 = vld [vmem:[#allocation57_spill] sm:$0xff]  ;;  %v18695_v23 = vld [vmem:[#allocation67_spill] sm:$0xff] }
 0x186   :  { %v2086_v33 = vpop.f32.mrf.mxu1  ;;  %10837 = vmatmul.mubr.bf16.gmra.mxu0 %v18692_v1  ;;  %v990_v3 = vrot.slane %v18695_v23, 1  ;;  %v18701_v23 = vld [vmem:[#allocation59_spill] sm:$0xff] }
 0x187   :  { %18689 = vst [vmem:[#allocation14_spill] sm:$0xff] %v13269_v25  ;;  %v1463_v5 = vpop.f32.mrf.mxu0  ;;  %10840 = vmatprep.mubr.bf16.mxu0 %v18693_v49  ;;  %v989_v33 = vrot.slane %v12945_v43, 1  ;;  %v18700_v43 = vld [vmem:[#allocation20_spill] sm:$0xff] }
 0x188   :  { %v2087_v10 = vpop.f32.mrf.mxu1 }
 0x189   :  { %v13275_v18 = vadd.f32 %v2087_v10, %v12975_v19  ;;  %v13277_v60 = vpop.f32.mrf.mxu0  ;;  %v18698_v19 = vld [vmem:[#allocation63_spill] sm:$0xff]  ;;  %v991_v13 = vsel %vm934_vm0, %v989_v33, %v990_v3 }
 0x18a   :  { %v2089_v45 = vpop.f32.mrf.mxu1 }
 0x18b   :  { %18691 = vst [vmem:[#allocation16_spill] sm:$0xff] %v13275_v18  ;;  %v1468_v42 = vpop.f32.mrf.mxu0 }
 0x18c   :  { %v2092_v52 = vpop.f32.mrf.mxu1  ;;  %2283 = vmatmul.mubr.bf16.gmra.mxu1 %v18694_v8 }
 0x18d   :  { %v13285_v5 = vadd.f32 %v2092_v52, %v18696_v0  ;;  %2290 = vmatprep.mubr.bf16.mxu1 %v18698_v19  ;;  %v13288_v10 = vpop.f32.mrf.mxu0  ;;  %v18702_v19 = vld [vmem:[#allocation69_spill] sm:$0xff] }
 0x18e   :  { %v2094_v45 = vpop.f32.mrf.mxu1  ;;  %10841 = vmatmul.mubr.bf16.gmra.mxu0 %v18700_v43 }
 0x18f   :  { %18697 = vst [vmem:[#allocation17_spill] sm:$0xff] %v13285_v5  ;;  %v1471_v53 = vpop.f32.mrf.mxu0  ;;  %10844 = vmatprep.mubr.bf16.mxu0 %v991_v13  ;;  %v18704_v13 = vld [vmem:[#allocation23_spill] sm:$0xff]  ;;  %v18733_v5 = vld [vmem:[#allocation41_spill] sm:$0xff] }
 0x190   :  { %v2095_v18 = vpop.f32.mrf.mxu1 }
 0x191   :  { %v13292_v25 = vadd.f32 %v2095_v18, %v13016_v4  ;;  %v13294_v42 = vpop.f32.mrf.mxu0 }
 0x192   :  { %v2097_v8 = vpop.f32.mrf.mxu1 }
 0x193   :  { %18699 = vst [vmem:[#allocation19_spill] sm:$0xff] %v13292_v25  ;;  %v1476_v52 = vpop.f32.mrf.mxu0 }
 0x194   :  { %v2100_v0 = vpop.f32.mrf.mxu1  ;;  %2291 = vmatmul.mubr.bf16.gmra.mxu1 %v18701_v23  ;;  %v18705_v23 = vld [vmem:[#allocation25_spill] sm:$0xff] }
 0x195   :  { %v13299_v45 = vadd.f32 %v2100_v0, %v13032_v63  ;;  %2298 = vmatprep.mubr.bf16.mxu1 %v18702_v19  ;;  %v13302_v3 = vpop.f32.mrf.mxu0 }
 0x196   :  { %v2102_v53 = vpop.f32.mrf.mxu1  ;;  %10845 = vmatmul.mubr.bf16.gmra.mxu0 %v18704_v13 }
 0x197   :  { %v1479_v18 = vpop.f32.mrf.mxu0  ;;  %10848 = vmatprep.mubr.bf16.mxu0 %v18705_v23 }
 0x198   :  { %v2103_v4 = vpop.f32.mrf.mxu1 }
 0x199   :  { %v13305_v33 = vadd.f32 %v2103_v4, %v13057_v62  ;;  %v13307_v25 = vpop.f32.mrf.mxu0 }
 0x19a   :  { %v2105_v8 = vpop.f32.mrf.mxu1 }
 0x19b   :  { %18703 = vst [vmem:[#allocation57_spill] sm:$0xff] %v13305_v33  ;;  %v1484_v63 = vpop.f32.mrf.mxu0  ;;  %v18708_v33 = vld [vmem:[#allocation26_spill] sm:$0xff] }
 0x19c   :  { %v2108_v52 = vpop.f32.mrf.mxu1  ;;  %2299 = vmatmul.mubr.bf16.gmra.mxu1 %v12917_v58  ;;  %v18709_v58 = vld [vmem:[#allocation28_spill] sm:$0xff] }
 0x19d   :  { %v13313_v0 = vadd.f32 %v2108_v52, %v13073_v44  ;;  %2306 = vmatprep.mubr.bf16.mxu1 %v13021_v30  ;;  %v13316_v18 = vpop.f32.mrf.mxu0 }
 0x19e   :  { %v2110_v53 = vpop.f32.mrf.mxu1  ;;  %10849 = vmatmul.mubr.bf16.gmra.mxu0 %v18708_v33 }
 0x19f   :  { %18706 = vst [vmem:[#allocation67_spill] sm:$0xff] %v13313_v0  ;;  %v1487_v4 = vpop.f32.mrf.mxu0  ;;  %10852 = vmatprep.mubr.bf16.mxu0 %v18709_v58  ;;  %v18712_v0 = vld [vmem:[#allocation29_spill] sm:$0xff] }
 0x1a0   :  { %v2111_v62 = vpop.f32.mrf.mxu1 }
 0x1a1   :  { %v13319_v8 = vadd.f32 %v2111_v62, %v13086_v11  ;;  %v13321_v19 = vpop.f32.mrf.mxu0 }
 0x1a2   :  { %v2113_v13 = vpop.f32.mrf.mxu1 }
 0x1a3   :  { %18707 = vst [vmem:[#allocation71_spill] sm:$0xff] %v13319_v8  ;;  %v1492_v44 = vpop.f32.mrf.mxu0 }
 0x1a4   :  { %v2116_v63 = vpop.f32.mrf.mxu1  ;;  %2307 = vmatmul.mubr.bf16.gmra.mxu1 %v12962_v9  ;;  %v18713_v9 = vld [vmem:[#allocation31_spill] sm:$0xff] }
 0x1a5   :  { %v13327_v52 = vadd.f32 %v2116_v63, %v13100_v2  ;;  %2314 = vmatprep.mubr.bf16.mxu1 %v13062_v7  ;;  %v13330_v4 = vpop.f32.mrf.mxu0 }
 0x1a6   :  { %v2118_v53 = vpop.f32.mrf.mxu1  ;;  %10853 = vmatmul.mubr.bf16.gmra.mxu0 %v18712_v0 }
 0x1a7   :  { %18710 = vst [vmem:[#allocation20_spill] sm:$0xff] %v13327_v52  ;;  %v1495_v62 = vpop.f32.mrf.mxu0  ;;  %10856 = vmatprep.mubr.bf16.mxu0 %v18713_v9  ;;  %v18716_v52 = vld [vmem:[#allocation32_spill] sm:$0xff] }
 0x1a8   :  { %v2119_v11 = vpop.f32.mrf.mxu1 }
 0x1a9   :  { %v13333_v13 = vadd.f32 %v2119_v11, %v13110_v20  ;;  %v13335_v8 = vpop.f32.mrf.mxu0 }
 0x1aa   :  { %v2121_v30 = vpop.f32.mrf.mxu1 }
 0x1ab   :  { %18711 = vst [vmem:[#allocation59_spill] sm:$0xff] %v13333_v13  ;;  %v1500_v2 = vpop.f32.mrf.mxu0 }
 0x1ac   :  { %v2124_v44 = vpop.f32.mrf.mxu1  ;;  %2315 = vmatmul.mubr.bf16.gmra.mxu1 %v13006_v29  ;;  %v18717_v29 = vld [vmem:[#allocation34_spill] sm:$0xff] }
 0x1ad   :  { %v13341_v63 = vadd.f32 %v2124_v44, %v13121_v37  ;;  %2322 = vmatprep.mubr.bf16.mxu1 %v13091_v26  ;;  %v13344_v62 = vpop.f32.mrf.mxu0 }
 0x1ae   :  { %v2126_v53 = vpop.f32.mrf.mxu1  ;;  %10857 = vmatmul.mubr.bf16.gmra.mxu0 %v18716_v52 }
 0x1af   :  { %18714 = vst [vmem:[#allocation23_spill] sm:$0xff] %v13341_v63  ;;  %v1503_v30 = vpop.f32.mrf.mxu0  ;;  %10860 = vmatprep.mubr.bf16.mxu0 %v18717_v29  ;;  %v18719_v53 = vld [vmem:[#allocation12_spill] sm:$0xff]  ;;  %v18721_v29 = vld [vmem:[#allocation35_spill] sm:$0xff] }
 0x1b0   :  { %v2127_v20 = vpop.f32.mrf.mxu1 }
 0x1b1   :  { %v13347_v11 = vadd.f32 %v2127_v20, %v13137_v61  ;;  %v13349_v13 = vpop.f32.mrf.mxu0 }
 0x1b2   :  { %v2129_v7 = vpop.f32.mrf.mxu1 }
 0x1b3   :  { %18715 = vst [vmem:[#allocation25_spill] sm:$0xff] %v13347_v11  ;;  %v1508_v37 = vpop.f32.mrf.mxu0 }
 0x1b4   :  { %v2132_v2 = vpop.f32.mrf.mxu1  ;;  %2323 = vmatmul.mubr.bf16.gmra.mxu1 %v13046_v15  ;;  %v18722_v15 = vld [vmem:[#allocation37_spill] sm:$0xff] }
 0x1b5   :  { %v13355_v44 = vadd.f32 %v2132_v2, %v13145_v56  ;;  %2845 = vmatprep.mubr.bf16.mxu1 %v18719_v53  ;;  %v13358_v26 = vpop.f32.mrf.mxu0  ;;  %v11610_v56 = vld [vmem:[%s18211_s0 + $0x18] sm:$0xff]  }
 0x1b6   :  { %v2134_v30 = vpop.f32.mrf.mxu1  ;;  %10861 = vmatmul.mubr.bf16.gmra.mxu0 %v18721_v29  ;;  %v18726_v29 = vld [vmem:[#allocation38_spill] sm:$0xff] }
 0x1b7   :  { %18718 = vst [vmem:[#allocation26_spill] sm:$0xff] %v13355_v44  ;;  %v1511_v7 = vpop.f32.mrf.mxu0  ;;  %10864 = vmatprep.mubr.bf16.mxu0 %v18722_v15  ;;  %v18724_v30 = vld [vmem:[#allocation15_spill] sm:$0xff] }
 0x1b8   :  { %v2135_v61 = vpop.f32.mrf.mxu1 }
 0x1b9   :  { %v13361_v20 = vadd.f32 %v2135_v61, %v13154_v55  ;;  %v13363_v63 = vpop.f32.mrf.mxu0 }
 0x1ba   :  { %v2137_v11 = vpop.f32.mrf.mxu1 }
 0x1bb   :  { %18720 = vst [vmem:[#allocation28_spill] sm:$0xff] %v13361_v20  ;;  %v1516_v2 = vpop.f32.mrf.mxu0 }
 0x1bc   :  { %v2140_v37 = vpop.f32.mrf.mxu1  ;;  %2846 = vmatmul.mubr.bf16.vlgmr.msra.gmra.mxu1 %v11610_v56  ;;  %v18727_v56 = vld [vmem:[#allocation61_spill] sm:$0xff] }
 0x1bd   :  { %v13371_v53 = vadd.f32 %v2140_v37, %v13165_v31  ;;  %2853 = vmatprep.mubr.bf16.mxu1 %v18724_v30  ;;  %v13374_v11 = vpop.f32.mrf.mxu0  ;;  %v1716_v2 = vadd.f32 %v18727_v56, %v13188_v46  ;;  %v18728_v31 = vld [vmem:[#allocation40_spill] sm:$0xff]  ;;  %v11611_v30 = vld [vmem:[%s18211_s0 + $0x24] sm:$0xff]  }
 0x1be   :  { %v2142_v55 = vpop.f32.mrf.mxu1  ;;  %10865 = vmatmul.mubr.bf16.gmra.mxu0 %v18726_v29 }
 0x1bf   :  { %18723 = vst [vmem:[#allocation29_spill] sm:$0xff] %v13371_v53  ;;  %v1519_v7 = vpop.f32.mrf.mxu0  ;;  %10868 = vmatprep.mubr.bf16.mxu0 %v18728_v31 }
 0x1c0   :  { %v2143_v61 = vpop.f32.mrf.mxu1 }
 0x1c1   :  { %v13377_v20 = vadd.f32 %v2143_v61, %v13179_v41  ;;  %v13379_v44 = vpop.f32.mrf.mxu0  ;;  %v18730_v41 = vld [vmem:[#allocation18_spill] sm:$0xff] }
 0x1c2   :  { %v2145_v15 = vpop.f32.mrf.mxu1 }
 0x1c3   :  { %18725 = vst [vmem:[#allocation31_spill] sm:$0xff] %v13377_v20  ;;  %v1524_v55 = vpop.f32.mrf.mxu0  ;;  %v18731_v20 = vld [vmem:[#allocation62_spill] sm:$0xff] }
 0x1c4   :  { %v2148_v37 = vpop.f32.mrf.mxu1  ;;  %2854 = vmatmul.mubr.bf16.gmra.mxu1 %v11611_v30  ;;  %v1719_v53 = vadd.f32 %v18731_v20, %v13201_v38  ;;  %v18735_v30 = vld [vmem:[#allocation43_spill] sm:$0xff] }
 0x1c5   :  { %v13388_v7 = vadd.f32 %v2148_v37, %v1716_v2  ;;  %2861 = vmatprep.mubr.bf16.mxu1 %v18730_v41  ;;  %v13391_v61 = vpop.f32.mrf.mxu0  ;;  %v18734_v2 = vld [vmem:[#allocation66_spill] sm:$0xff]  ;;  %v11612_v41 = vld [vmem:[%s18211_s0 + $0x30] sm:$0xff]  }
 0x1c6   :  { %v2150_v15 = vpop.f32.mrf.mxu1  ;;  %10869 = vmatmul.mubr.bf16.gmra.mxu0 %v18733_v5  ;;  %v1724_v37 = vadd.f32 %v18734_v2, %v13210_v17 }
 0x1c7   :  { %18729 = vst [vmem:[#allocation12_spill] sm:$0xff] %v13388_v7  ;;  %v1527_v56 = vpop.f32.mrf.mxu0  ;;  %10872 = vmatprep.mubr.bf16.mxu0 %v18735_v30  ;;  %v18739_v7 = vld [vmem:[#allocation44_spill] sm:$0xff] }
 0x1c8   :  { %v2151_v46 = vpop.f32.mrf.mxu1 }
 0x1c9   :  { %v13395_v31 = vadd.f32 %v2151_v46, %v1719_v53  ;;  %v13397_v52 = vpop.f32.mrf.mxu0  ;;  %v18736_v53 = vld [vmem:[#allocation21_spill] sm:$0xff]  ;;  %v18737_v46 = vld [vmem:[#allocation70_spill] sm:$0xff] }
 0x1ca   :  { %v2153_v29 = vpop.f32.mrf.mxu1  ;;  %v1727_v56 = vadd.f32 %v18737_v46, %v13223_v40 }
 0x1cb   :  { %18732 = vst [vmem:[#allocation15_spill] sm:$0xff] %v13395_v31  ;;  %v1532_v38 = vpop.f32.mrf.mxu0 }
 0x1cc   :  { %v2156_v55 = vpop.f32.mrf.mxu1  ;;  %2862 = vmatmul.mubr.bf16.gmra.mxu1 %v11612_v41  ;;  %v11613_v38 = vld [vmem:[%s18211_s0 + $0x3c] sm:$0xff]  }
 0x1cd   :  { %v13406_v20 = vadd.f32 %v2156_v55, %v1724_v37  ;;  %2869 = vmatprep.mubr.bf16.mxu1 %v18736_v53  ;;  %v13409_v15 = vpop.f32.mrf.mxu0  ;;  %v18740_v37 = vld [vmem:[#allocation64_spill] sm:$0xff] }
 0x1ce   :  { %v2158_v29 = vpop.f32.mrf.mxu1  ;;  %10873 = vmatmul.mubr.bf16.gmra.mxu0 %v18739_v7  ;;  %v1732_v55 = vadd.f32 %v18740_v37, %v13232_v27 }
 0x1cf   :  { %v1535_v2 = vpop.f32.mrf.mxu0  ;;  %10892 = vmatprep.mubr.bf16.mxu0 %v11946_v34  ;;  %v18741_v29 = vld [vmem:[#allocation24_spill] sm:$0xff] }
 0x1d0   :  { %v2159_v17 = vpop.f32.mrf.mxu1 }
 0x1d1   :  { %v13413_v30 = vadd.f32 %v2159_v17, %v1727_v56  ;;  %v13415_v31 = vpop.f32.mrf.mxu0  ;;  %v18742_v56 = vld [vmem:[#allocation68_spill] sm:$0xff] }
 0x1d2   :  { %v2161_v5 = vpop.f32.mrf.mxu1  ;;  %v1735_v17 = vadd.f32 %v18742_v56, %v13242_v16 }
 0x1d3   :  { %18738 = vst [vmem:[#allocation61_spill] sm:$0xff] %v13413_v30  ;;  %v1540_v40 = vpop.f32.mrf.mxu0 }
 0x1d4   :  { %v2164_v41 = vpop.f32.mrf.mxu1  ;;  %2870 = vmatmul.mubr.bf16.gmra.mxu1 %v11613_v38  ;;  %v11614_v40 = vld [vmem:[%s18211_s0 + $0x48] sm:$0xff]  }
 0x1d5   :  { %v13424_v53 = vadd.f32 %v2164_v41, %v1732_v55  ;;  %2877 = vmatprep.mubr.bf16.mxu1 %v18741_v29  ;;  %v13427_v46 = vpop.f32.mrf.mxu0  ;;  %v18743_v55 = vld [vmem:[#allocation74_spill] sm:$0xff] }
 0x1d6   :  { %v2166_v5 = vpop.f32.mrf.mxu1  ;;  %10893 = vmatmul.mubr.bf16.vlgmr.msra.gmra.mxu0 %v11955_v36  ;;  %v1740_v41 = vadd.f32 %v18743_v55, %v13249_v35  ;;  %v18745_v36 = vld [vmem:[#allocation77_spill] sm:$0xff] }
 0x1d7   :  { %v1543_v2 = vpop.f32.mrf.mxu0  ;;  %10896 = vmatprep.mubr.bf16.mxu0 %v11996_v51  ;;  %v18744_v5 = vld [vmem:[#allocation27_spill] sm:$0xff] }
 0x1d8   :  { %v2167_v27 = vpop.f32.mrf.mxu1 }
 0x1d9   :  { %v13431_v34 = vadd.f32 %v2167_v27, %v1735_v17  ;;  %v13433_v30 = vpop.f32.mrf.mxu0  ;;  %v1743_v27 = vadd.f32 %v18745_v36, %v13258_v22 }
 0x1da   :  { %v2169_v37 = vpop.f32.mrf.mxu1 }
 0x1db   :  { %v1548_v16 = vpop.f32.mrf.mxu0 }
 0x1dc   :  { %v2172_v38 = vpop.f32.mrf.mxu1  ;;  %2878 = vmatmul.mubr.bf16.gmra.mxu1 %v11614_v40  ;;  %v11615_v16 = vld [vmem:[%s18211_s0 + $0x54] sm:$0xff]  }
 0x1dd   :  { %v13442_v29 = vadd.f32 %v2172_v38, %v1740_v41  ;;  %2885 = vmatprep.mubr.bf16.mxu1 %v18744_v5  ;;  %v13445_v17 = vpop.f32.mrf.mxu0  ;;  %v18747_v41 = vld [vmem:[#allocation72_spill] sm:$0xff] }
 0x1de   :  { %v2174_v56 = vpop.f32.mrf.mxu1  ;;  %10897 = vmatmul.mubr.bf16.gmra.mxu0 %v12009_v54  ;;  %v1748_v38 = vadd.f32 %v18747_v41, %v13263_v32  ;;  %v18749_v54 = vld [vmem:[#allocation75_spill] sm:$0xff] }
 0x1df   :  { %v1551_v2 = vpop.f32.mrf.mxu0  ;;  %10900 = vmatprep.mubr.bf16.mxu0 %v12051_v6  ;;  %v18748_v56 = vld [vmem:[#allocation30_spill] sm:$0xff] }
 0x1e0   :  { %v2175_v35 = vpop.f32.mrf.mxu1 }
 0x1e1   :  { %v13449_v51 = vadd.f32 %v2175_v35, %v1743_v27  ;;  %v13451_v55 = vpop.f32.mrf.mxu0  ;;  %v1751_v35 = vadd.f32 %v18749_v54, %v13272_v21 }
 0x1e2   :  { %v2177_v37 = vpop.f32.mrf.mxu1 }
 0x1e3   :  { %18746 = vst [vmem:[#allocation18_spill] sm:$0xff] %v13449_v51  ;;  %v1556_v22 = vpop.f32.mrf.mxu0 }
 0x1e4   :  { %v2180_v40 = vpop.f32.mrf.mxu1  ;;  %2886 = vmatmul.mubr.bf16.gmra.mxu1 %v11615_v16  ;;  %v11616_v22 = vld [vmem:[%s18211_s0 + $0x60] sm:$0xff]  }
 0x1e5   :  { %v13460_v5 = vadd.f32 %v2180_v40, %v1748_v38  ;;  %2893 = vmatprep.mubr.bf16.mxu1 %v18748_v56  ;;  %v13463_v27 = vpop.f32.mrf.mxu0  ;;  %v18750_v38 = vld [vmem:[#allocation80_spill] sm:$0xff] }
 0x1e6   :  { %v2182_v36 = vpop.f32.mrf.mxu1  ;;  %10901 = vmatmul.mubr.bf16.gmra.mxu0 %v18677_v14  ;;  %v1756_v40 = vadd.f32 %v18750_v38, %v13277_v60  ;;  %v18752_v14 = vld [vmem:[#allocation83_spill] sm:$0xff] }
 0x1e7   :  { %v1559_v2 = vpop.f32.mrf.mxu0  ;;  %10904 = vmatprep.mubr.bf16.mxu0 %v18678_v39  ;;  %v18751_v36 = vld [vmem:[#allocation33_spill] sm:$0xff] }
 0x1e8   :  { %v2183_v32 = vpop.f32.mrf.mxu1 }
 0x1e9   :  { %v13467_v6 = vadd.f32 %v2183_v32, %v1751_v35  ;;  %v13469_v41 = vpop.f32.mrf.mxu0  ;;  %v1759_v32 = vadd.f32 %v18752_v14, %v13288_v10 }
 0x1ea   :  { %v2185_v37 = vpop.f32.mrf.mxu1 }
 0x1eb   :  { %v1564_v21 = vpop.f32.mrf.mxu0 }
 0x1ec   :  { %v2188_v16 = vpop.f32.mrf.mxu1  ;;  %2894 = vmatmul.mubr.bf16.gmra.mxu1 %v11616_v22  ;;  %v11617_v21 = vld [vmem:[%s18211_s0 + $0x6c] sm:$0xff]  }
 0x1ed   :  { %v13478_v56 = vadd.f32 %v2188_v16, %v1756_v40  ;;  %2901 = vmatprep.mubr.bf16.mxu1 %v18751_v36  ;;  %v13481_v35 = vpop.f32.mrf.mxu0  ;;  %v18754_v40 = vld [vmem:[#allocation78_spill] sm:$0xff] }
 0x1ee   :  { %v2190_v54 = vpop.f32.mrf.mxu1  ;;  %10905 = vmatmul.mubr.bf16.gmra.mxu0 %v18683_v50  ;;  %v1764_v16 = vadd.f32 %v18754_v40, %v13294_v42  ;;  %v18756_v50 = vld [vmem:[#allocation81_spill] sm:$0xff] }
 0x1ef   :  { %v1567_v2 = vpop.f32.mrf.mxu0  ;;  %10908 = vmatprep.mubr.bf16.mxu0 %v18684_v12  ;;  %v18755_v54 = vld [vmem:[#allocation36_spill] sm:$0xff] }
 0x1f0   :  { %v2191_v60 = vpop.f32.mrf.mxu1 }
 0x1f1   :  { %v13485_v39 = vadd.f32 %v2191_v60, %v1759_v32  ;;  %v13487_v38 = vpop.f32.mrf.mxu0  ;;  %v1767_v60 = vadd.f32 %v18756_v50, %v13302_v3 }
 0x1f2   :  { %v2193_v37 = vpop.f32.mrf.mxu1 }
 0x1f3   :  { %18753 = vst [vmem:[#allocation62_spill] sm:$0xff] %v13485_v39  ;;  %v1572_v10 = vpop.f32.mrf.mxu0 }
 0x1f4   :  { %v2196_v22 = vpop.f32.mrf.mxu1  ;;  %2902 = vmatmul.mubr.bf16.gmra.mxu1 %v11617_v21  ;;  %v11618_v10 = vld [vmem:[%s18211_s0 + $0x78] sm:$0xff]  }
 0x1f5   :  { %v13496_v36 = vadd.f32 %v2196_v22, %v1764_v16  ;;  %2909 = vmatprep.mubr.bf16.mxu1 %v18755_v54  ;;  %v13499_v32 = vpop.f32.mrf.mxu0  ;;  %v18757_v16 = vld [vmem:[#allocation85_spill] sm:$0xff] }
 0x1f6   :  { %v2198_v14 = vpop.f32.mrf.mxu1  ;;  %10909 = vmatmul.mubr.bf16.gmra.mxu0 %v18687_v48  ;;  %v1772_v22 = vadd.f32 %v18757_v16, %v13307_v25  ;;  %v18759_v48 = vld [vmem:[#allocation88_spill] sm:$0xff] }
 0x1f7   :  { %v1575_v2 = vpop.f32.mrf.mxu0  ;;  %10912 = vmatprep.mubr.bf16.mxu0 %v18688_v59  ;;  %v18758_v14 = vld [vmem:[#allocation39_spill] sm:$0xff] }
 0x1f8   :  { %v2199_v42 = vpop.f32.mrf.mxu1 }
 0x1f9   :  { %v13503_v12 = vadd.f32 %v2199_v42, %v1767_v60  ;;  %v13505_v40 = vpop.f32.mrf.mxu0  ;;  %v1775_v42 = vadd.f32 %v18759_v48, %v13316_v18 }
 0x1fa   :  { %v2201_v37 = vpop.f32.mrf.mxu1 }
 0x1fb   :  { %v1580_v3 = vpop.f32.mrf.mxu0 }
 0x1fc   :  { %v2204_v21 = vpop.f32.mrf.mxu1  ;;  %2910 = vmatmul.mubr.bf16.gmra.mxu1 %v11618_v10  ;;  %v11619_v3 = vld [vmem:[%s18211_s0 + $0x84] sm:$0xff]  }
 0x1fd   :  { %v13514_v54 = vadd.f32 %v2204_v21, %v1772_v22  ;;  %2917 = vmatprep.mubr.bf16.mxu1 %v18758_v14  ;;  %v13517_v60 = vpop.f32.mrf.mxu0  ;;  %v18761_v22 = vld [vmem:[#allocation84_spill] sm:$0xff] }
 0x1fe   :  { %v2206_v50 = vpop.f32.mrf.mxu1  ;;  %10913 = vmatmul.mubr.bf16.gmra.mxu0 %v18692_v1  ;;  %v1780_v21 = vadd.f32 %v18761_v22, %v13321_v19  ;;  %v18763_v1 = vld [vmem:[#allocation86_spill] sm:$0xff]  ;;  %v13547_v19 = vld [vmem:[%s18211_s0 + $0xd4] ss:$0 sps:$4 sm:$0x11]  }
 0x1ff   :  { %v1583_v2 = vpop.f32.mrf.mxu0  ;;  %10916 = vmatprep.mubr.bf16.mxu0 %v18693_v49  ;;  %v18762_v50 = vld [vmem:[#allocation42_spill] sm:$0xff] }
 0x200   :  { %v2207_v25 = vpop.f32.mrf.mxu1  ;;  %v13542_v49 = vld [vmem:[%s18211_s0 + $0xcc] sm:$0xff]  }
 0x201   :  { %v13521_v59 = vadd.f32 %v2207_v25, %v1775_v42  ;;  %v13523_v16 = vpop.f32.mrf.mxu0  ;;  %v1783_v25 = vadd.f32 %v18763_v1, %v13330_v4  ;;  %v1788_v4 = vadd.f32 %v13107_v28, %v13335_v8  ;;  %v11620_v1 = vld [vmem:[%s18211_s0 + $0x90] sm:$0xff]   ;;  %v1791_v28 = vadd.f32 %v13117_v47, %v13344_v62 }
 0x202   :  { %v2209_v37 = vpop.f32.mrf.mxu1  ;;  %v18770_v62 = vld [vmem:[#allocation47_spill] sm:$0xff] }
 0x203   :  { %18760 = vst [vmem:[#allocation66_spill] sm:$0xff] %v13521_v59  ;;  %v1588_v18 = vpop.f32.mrf.mxu0 }
 0x204   :  { %v2212_v10 = vpop.f32.mrf.mxu1  ;;  %2918 = vmatmul.mubr.bf16.gmra.mxu1 %v11619_v3  ;;  %v18765_v3 = vld [vmem:[#allocation22_spill] sm:$0xff]  ;;  %v986_v18 = vrot.slane %v13542_v49, 1 }
 0x205   :  { %v13532_v14 = vadd.f32 %v2212_v10, %v1780_v21  ;;  %2925 = vmatprep.mubr.bf16.mxu1 %v18762_v50  ;;  %v13535_v42 = vpop.f32.mrf.mxu0  ;;  %v987_v50 = vrot.slane %v13547_v19, 1 }
 0x206   :  { %v2214_v48 = vpop.f32.mrf.mxu1  ;;  %10917 = vmatmul.mubr.bf16.gmra.mxu0 %v18700_v43 }
 0x207   :  { %v1591_v37 = vpop.f32.mrf.mxu0  ;;  %10920 = vmatprep.mubr.bf16.mxu0 %v18765_v3  ;;  %v988_v8 = vsel %vm934_vm0, %v986_v18, %v987_v50 }
 0x208   :  { %v2215_v2 = vpop.f32.mrf.mxu1  ;;  %v18766_v37 = vld [vmem:[#allocation45_spill] sm:$0xff] }
 0x209   :  { %v13549_v22 = vadd.f32 %v2215_v2, %v1783_v25  ;;  %v13551_v10 = vpop.f32.mrf.mxu0 }
 0x20a   :  { %v2217_v21 = vpop.f32.mrf.mxu1  ;;  %18764 = vst [vmem:[#allocation21_spill] sm:$0xff] %v13551_v10 }
 0x20b   :  { %v1596_v25 = vpop.f32.mrf.mxu0 }
 0x20c   :  { %v2220_v48 = vpop.f32.mrf.mxu1  ;;  %2926 = vmatmul.mubr.bf16.gmra.mxu1 %v11620_v1  ;;  %v18769_v25 = vld [vmem:[#allocation65_spill] sm:$0xff] }
 0x20d   :  { %v13562_v2 = vadd.f32 %v2220_v48, %v1788_v4  ;;  %2933 = vmatprep.mubr.bf16.mxu1 %v18766_v37  ;;  %v13565_v21 = vpop.f32.mrf.mxu0  ;;  %v18768_v4 = vld [vmem:[#allocation89_spill] sm:$0xff] }
 0x20e   :  { %v2222_v43 = vpop.f32.mrf.mxu1  ;;  %10921 = vmatmul.mubr.bf16.gmra.mxu0 %v988_v8  ;;  %v1796_v48 = vadd.f32 %v18768_v4, %v13349_v13  ;;  %v1804_v8 = vadd.f32 %v13134_v57, %v13363_v63  ;;  %v673_v57 = vshll.u32 %v13542_v49, 16  ;;  %v18775_v63 = vld [vmem:[#allocation93_spill] sm:$0xff] }
 0x20f   :  { %v1599_v59 = vpop.f32.mrf.mxu0  ;;  %10924 = vmatprep.mubr.bf16.mxu0 %v18705_v23 }
 0x210   :  { %v2223_v3 = vpop.f32.mrf.mxu1 }
 0x211   :  { %v13570_v39 = vadd.f32 %v2223_v3, %v1791_v28  ;;  %v13572_v10 = vpop.f32.mrf.mxu0  ;;  %v18771_v3 = vld [vmem:[#allocation14_spill] sm:$0xff] }
 0x212   :  { %v2225_v51 = vpop.f32.mrf.mxu1 }
 0x213   :  { %18767 = vst [vmem:[#allocation70_spill] sm:$0xff] %v13570_v39  ;;  %v1604_v37 = vpop.f32.mrf.mxu0  ;;  %v1799_v51 = vadd.f32 %v13112_v24, %v13358_v26 }
 0x214   :  { %v2228_v1 = vpop.f32.mrf.mxu1  ;;  %2934 = vmatmul.mubr.bf16.gmra.mxu1 %v18769_v25  ;;  %v18773_v25 = vld [vmem:[#allocation11_spill] sm:$0xff] }
 0x215   :  { %v13578_v47 = vadd.f32 %v2228_v1, %v1796_v48  ;;  %2941 = vmatprep.mubr.bf16.mxu1 %v18770_v62  ;;  %v13581_v18 = vpop.f32.mrf.mxu0  ;;  %v18772_v1 = vld [vmem:[#allocation73_spill] sm:$0xff]  ;;  %v18774_v62 = vld [vmem:[#allocation48_spill] sm:$0xff] }
 0x216   :  { %v2230_v59 = vpop.f32.mrf.mxu1  ;;  %10925 = vmatmul.mubr.bf16.gmra.mxu0 %v18708_v33 }
 0x217   :  { %v1607_v43 = vpop.f32.mrf.mxu0  ;;  %10928 = vmatprep.mubr.bf16.mxu0 %v18709_v58 }
 0x218   :  { %v2231_v50 = vpop.f32.mrf.mxu1 }
 0x219   :  { %v13585_v28 = vadd.f32 %v2231_v50, %v1799_v51  ;;  %v10814_v23 = vpop.f32.mrf.mxu0  ;;  %v1807_v51 = vadd.f32 %v18775_v63, %v13374_v11  ;;  %v18776_v50 = vld [vmem:[#allocation16_spill] sm:$0xff]  ;;  %v18779_v11 = vld [vmem:[#allocation91_spill] sm:$0xff] }
 0x21a   :  { %v2233_v13 = vpop.f32.mrf.mxu1  ;;  %v13591_v4 = vadd.f32 %v10814_v23, %v18771_v3 }
 0x21b   :  { %v2365_v26 = vpop.f32.mrf.mxu0 }
 0x21c   :  { %v2236_v48 = vpop.f32.mrf.mxu1  ;;  %2942 = vmatmul.mubr.bf16.gmra.mxu1 %v18772_v1  ;;  %v13598_v37 = vadd.f32 %v2365_v26, %v18773_v25  ;;  %v671_v26 = vshrl.u32 %v13542_v49, 16  ;;  %v675_v25 = vrot.slane %v673_v57, 1 }
 0x21d   :  { %v13595_v24 = vadd.f32 %v2236_v48, %v1804_v8  ;;  %2949 = vmatprep.mubr.bf16.mxu1 %v18774_v62  ;;  %v10815_v59 = vpop.f32.mrf.mxu0  ;;  %v18778_v8 = vld [vmem:[#allocation13_spill] sm:$0xff]  ;;  %v678_v62 = vshll.u32 %v13547_v19, 16 }
 0x21e   :  { %v2238_v33 = vpop.f32.mrf.mxu1  ;;  %v13605_v58 = vadd.f32 %v10815_v59, %v18776_v50  ;;  %10929 = vmatmul.mubr.bf16.gmra.mxu0 %v18712_v0  ;;  %v18782_v19 = vld [vmem:[#allocation49_spill] sm:$0xff] }
 0x21f   :  { %v2368_v13 = vpop.f32.mrf.mxu0  ;;  %v1812_v33 = vadd.f32 %v18779_v11, %v13379_v44  ;;  %10932 = vmatprep.mubr.bf16.mxu0 %v18713_v9  ;;  %v680_v44 = vrot.slane %v678_v62, 1  ;;  %v18784_v11 = vld [vmem:[#allocation57_spill] sm:$0xff] }
 0x220   :  { %v2239_v43 = vpop.f32.mrf.mxu1  ;;  %v13610_v3 = vadd.f32 %v2368_v13, %v18778_v8  ;;  %v18781_v13 = vld [vmem:[#allocation17_spill] sm:$0xff] }
 0x221   :  { %v13607_v23 = vadd.f32 %v2239_v43, %v1807_v51  ;;  %v10818_v1 = vpop.f32.mrf.mxu0  ;;  %v18780_v51 = vld [vmem:[#allocation79_spill] sm:$0xff] }
 0x222   :  { %v2241_v48 = vpop.f32.mrf.mxu1  ;;  %v13618_v59 = vadd.f32 %v10818_v1, %v13299_v45  ;;  %v18783_v45 = vld [vmem:[#allocation92_spill] sm:$0xff] }
 0x223   :  { %18777 = vst [vmem:[#allocation44_spill] sm:$0xff] %v13607_v23  ;;  %v2381_v50 = vpop.f32.mrf.mxu0  ;;  %v676_v48 = vor.u32 %v675_v25, %v671_v26  ;;  %v1815_v1 = vadd.f32 %v18783_v45, %v13391_v61  ;;  %v18787_v26 = vld [vmem:[#allocation95_spill] sm:$0xff]  ;;  %v18788_v61 = vld [vmem:[#allocation20_spill] sm:$0xff] }
 0x224   :  { %v2244_v63 = vpop.f32.mrf.mxu1  ;;  %2950 = vmatmul.mubr.bf16.gmra.mxu1 %v18780_v51  ;;  %v13625_v57 = vadd.f32 %v2381_v50, %v18781_v13  ;;  %v1820_v25 = vadd.f32 %v18787_v26, %v13397_v52 }
 0x225   :  { %v13622_v43 = vadd.f32 %v2244_v63, %v1812_v33  ;;  %2957 = vmatprep.mubr.bf16.mxu1 %v18782_v19  ;;  %v10819_v8 = vpop.f32.mrf.mxu0  ;;  %v18785_v33 = vld [vmem:[#allocation19_spill] sm:$0xff]  ;;  %v681_v19 = vsel %vm465_vm1, %v676_v48, %v680_v44 }
 0x226   :  { %v2246_v0 = vpop.f32.mrf.mxu1  ;;  %v13631_v9 = vadd.f32 %v10819_v8, %v18784_v11  ;;  %v18790_v8 = vld [vmem:[#allocation34_spill] sm:$0xff]  ;;  %v18791_v48 = vld [vmem:[#allocation67_spill] sm:$0xff] }
 0x227   :  { %v2384_v51 = vpop.f32.mrf.mxu0  ;;  %v18786_v0 = vld [vmem:[#allocation32_spill] sm:$0xff] }
 0x228   :  { %v2247_v23 = vpop.f32.mrf.mxu1  ;;  %v13636_v63 = vadd.f32 %v2384_v51, %v18785_v33  ;;  %10933 = vmatmul.mubr.bf16.gmra.mxu0 %v18786_v0  ;;  %v18793_v33 = vld [vmem:[#allocation97_spill] sm:$0xff] }
 0x229   :  { %v13633_v39 = vadd.f32 %v2247_v23, %v1815_v1  ;;  %v10822_v13 = vpop.f32.mrf.mxu0  ;;  %10936 = vmatprep.mubr.bf16.mxu0 %v18790_v8  ;;  %v11621_v23 = vld [vmem:[%s18211_s0 + $0xc0] sm:$0xff]  }
 0x22a   :  { %v2249_v50 = vpop.f32.mrf.mxu1  ;;  %v13643_v62 = vadd.f32 %v10822_v13, %v18788_v61  ;;  %v18794_v13 = vld [vmem:[#allocation59_spill] sm:$0xff] }
 0x22b   :  { %v2397_v1 = vpop.f32.mrf.mxu0  ;;  %v1823_v50 = vadd.f32 %v18793_v33, %v13409_v15  ;;  %v18801_v15 = vld [vmem:[#allocation37_spill] sm:$0xff] }
 0x22c   :  { %18789 = vst [vmem:[#allocation64_spill] sm:$0xff] %v13643_v62  ;;  %v2252_v45 = vpop.f32.mrf.mxu1  ;;  %2958 = vmatmul.mubr.bf16.gmra.mxu1 %v11621_v23  ;;  %v13652_v44 = vadd.f32 %v2397_v1, %v18791_v48  ;;  %v18796_v23 = vld [vmem:[#allocation71_spill] sm:$0xff] }
 0x22d   :  { %v13649_v11 = vadd.f32 %v2252_v45, %v1820_v25  ;;  %2965 = vmatprep.mubr.bf16.mxu1 %v681_v19  ;;  %v10823_v52 = vpop.f32.mrf.mxu0  ;;  %v18797_v1 = vld [vmem:[#allocation35_spill] sm:$0xff]  ;;  %v18798_v19 = vld [vmem:[#allocation94_spill] sm:$0xff] }
 0x22e   :  { %18792 = vst [vmem:[#allocation24_spill] sm:$0xff] %v13652_v44  ;;  %v2254_v51 = vpop.f32.mrf.mxu1  ;;  %v13657_v0 = vadd.f32 %v10823_v52, %v18794_v13  ;;  %v1828_v48 = vadd.f32 %v18798_v19, %v13415_v31  ;;  %v18802_v13 = vld [vmem:[#allocation23_spill] sm:$0xff]  ;;  %v18805_v31 = vld [vmem:[#allocation96_spill] sm:$0xff] }
 0x22f   :  { %v2400_v61 = vpop.f32.mrf.mxu0  ;;  %v18799_v51 = vld [vmem:[#allocation26_spill] sm:$0xff] }
 0x230   :  { %v2255_v26 = vpop.f32.mrf.mxu1  ;;  %v13662_v62 = vadd.f32 %v2400_v61, %v18796_v23  ;;  %10937 = vmatmul.mubr.bf16.gmra.mxu0 %v18797_v1  ;;  %v18804_v61 = vld [vmem:[#allocation50_spill] sm:$0xff]  ;;  %v1831_v1 = vadd.f32 %v18805_v31, %v13427_v46  ;;  %v18813_v46 = vld [vmem:[#allocation40_spill] sm:$0xff]  ;;  %v11622_v31 = vld [vmem:[%s18211_s0 + $0xf0] sm:$0xff]  }
 0x231   :  { %v13659_v8 = vadd.f32 %v2255_v26, %v1823_v50  ;;  %v10826_v45 = vpop.f32.mrf.mxu0  ;;  %10940 = vmatprep.mubr.bf16.mxu0 %v18801_v15 }
 0x232   :  { %v2257_v25 = vpop.f32.mrf.mxu1  ;;  %v13668_v44 = vadd.f32 %v10826_v45, %v18799_v51  ;;  %v18806_v45 = vld [vmem:[#allocation28_spill] sm:$0xff] }
 0x233   :  { %18795 = vst [vmem:[#allocation68_spill] sm:$0xff] %v13659_v8  ;;  %v2413_v33 = vpop.f32.mrf.mxu0 }
 0x234   :  { %18800 = vst [vmem:[#allocation74_spill] sm:$0xff] %v13668_v44  ;;  %v2260_v52 = vpop.f32.mrf.mxu1  ;;  %2966 = vmatmul.mubr.bf16.gmra.mxu1 %v13542_v49  ;;  %v13675_v26 = vadd.f32 %v2413_v33, %v18802_v13  ;;  %v18807_v49 = vld [vmem:[#allocation25_spill] sm:$0xff]  ;;  %v18809_v13 = vld [vmem:[#allocation38_spill] sm:$0xff] }
 0x235   :  { %v13672_v50 = vadd.f32 %v2260_v52, %v1828_v48  ;;  %2973 = vmatprep.mubr.bf16.mxu1 %v18804_v61  ;;  %v10827_v25 = vpop.f32.mrf.mxu0  ;;  %v18810_v61 = vld [vmem:[#allocation99_spill] sm:$0xff] }
 0x236   :  { %18803 = vst [vmem:[#allocation27_spill] sm:$0xff] %v13675_v26  ;;  %v2262_v23 = vpop.f32.mrf.mxu1  ;;  %v13681_v19 = vadd.f32 %v10827_v25, %v18806_v45  ;;  %v18811_v26 = vld [vmem:[#allocation12_spill] sm:$0xff] }
 0x237   :  { %v2416_v15 = vpop.f32.mrf.mxu0  ;;  %v1836_v23 = vadd.f32 %v18810_v61, %v13433_v30 }
 0x238   :  { %v2263_v51 = vpop.f32.mrf.mxu1  ;;  %v13686_v48 = vadd.f32 %v2416_v15, %v18807_v49  ;;  %10941 = vmatmul.mubr.bf16.gmra.mxu0 %v18809_v13  ;;  %v18815_v49 = vld [vmem:[#allocation51_spill] sm:$0xff] }
 0x239   :  { %v13683_v8 = vadd.f32 %v2263_v51, %v1831_v1  ;;  %v10830_v33 = vpop.f32.mrf.mxu0  ;;  %10944 = vmatprep.mubr.bf16.mxu0 %v18813_v46  ;;  %v18814_v51 = vld [vmem:[#allocation29_spill] sm:$0xff]  ;;  %v18817_v13 = vld [vmem:[#allocation15_spill] sm:$0xff] }
 0x23a   :  { %18808 = vst [vmem:[#allocation77_spill] sm:$0xff] %v13686_v48  ;;  %v2265_v52 = vpop.f32.mrf.mxu1  ;;  %v13692_v44 = vadd.f32 %v10830_v33, %v18811_v26  ;;  %v18816_v26 = vld [vmem:[#allocation101_spill] sm:$0xff] }
 0x23b   :  { %v2429_v1 = vpop.f32.mrf.mxu0  ;;  %v1839_v33 = vadd.f32 %v18816_v26, %v13445_v17  ;;  %v18819_v48 = vld [vmem:[#allocation41_spill] sm:$0xff] }
 0x23c   :  { %18812 = vst [vmem:[#allocation72_spill] sm:$0xff] %v13692_v44  ;;  %v2268_v25 = vpop.f32.mrf.mxu1  ;;  %2974 = vmatmul.mubr.bf16.gmra.mxu1 %v11622_v31  ;;  %v13701_v15 = vadd.f32 %v2429_v1, %v18814_v51  ;;  %v18820_v1 = vld [vmem:[#allocation98_spill] sm:$0xff] }
 0x23d   :  { %v13698_v45 = vadd.f32 %v2268_v25, %v1836_v23  ;;  %2981 = vmatprep.mubr.bf16.mxu1 %v18815_v49  ;;  %v10831_v52 = vpop.f32.mrf.mxu0  ;;  %v1844_v51 = vadd.f32 %v18820_v1, %v13451_v55  ;;  %v13737_v1 = vld [vmem:[%s18211_s0 + $0x1a4] sm:$0xff]  }
 0x23e   :  { %v2270_v30 = vpop.f32.mrf.mxu1  ;;  %v13707_v61 = vadd.f32 %v10831_v52, %v18817_v13  ;;  %v11623_v52 = vld [vmem:[%s18211_s0 + $0xfc] sm:$0xff]  }
 0x23f   :  { %v13709_v44 = vpop.f32.mrf.mxu0  ;;  %v18822_v30 = vld [vmem:[#allocation43_spill] sm:$0xff] }
 0x240   :  { %v2271_v46 = vpop.f32.mrf.mxu1  ;;  %10945 = vmatmul.mubr.bf16.gmra.mxu0 %v18819_v48  ;;  %v18823_v48 = vld [vmem:[#allocation52_spill] sm:$0xff] }
 0x241   :  { %v13711_v31 = vadd.f32 %v2271_v46, %v1839_v33  ;;  %v10834_v25 = vpop.f32.mrf.mxu0  ;;  %10948 = vmatprep.mubr.bf16.mxu0 %v18822_v30 }
 0x242   :  { %v2273_v23 = vpop.f32.mrf.mxu1  ;;  %v13717_v49 = vadd.f32 %v10834_v25, %v13424_v53  ;;  %v18824_v53 = vld [vmem:[#allocation100_spill] sm:$0xff] }
 0x243   :  { %18818 = vst [vmem:[#allocation30_spill] sm:$0xff] %v13711_v31  ;;  %v2445_v26 = vpop.f32.mrf.mxu0  ;;  %v1847_v23 = vadd.f32 %v18824_v53, %v13463_v27 }
 0x244   :  { %18821 = vst [vmem:[#allocation75_spill] sm:$0xff] %v13717_v49  ;;  %v2276_v17 = vpop.f32.mrf.mxu1  ;;  %2982 = vmatmul.mubr.bf16.gmra.mxu1 %v11623_v52  ;;  %v13726_v13 = vadd.f32 %v2445_v26, %v13406_v20  ;;  %v13742_v20 = vld [vmem:[%s18211_s0 + $0x1ac] ss:$0 sps:$4 sm:$0x11]  }
 0x245   :  { %v13723_v33 = vadd.f32 %v2276_v17, %v1844_v51  ;;  %2989 = vmatprep.mubr.bf16.mxu1 %v18823_v48  ;;  %v10835_v46 = vpop.f32.mrf.mxu0  ;;  %v1041_v53 = vrot.slane %v13742_v20, 1 }
 0x246   :  { %v2278_v55 = vpop.f32.mrf.mxu1  ;;  %v13732_v25 = vadd.f32 %v10835_v46, %v13431_v34  ;;  %v18826_v34 = vld [vmem:[#allocation103_spill] sm:$0xff]  ;;  %v1040_v46 = vrot.slane %v13737_v1, 1 }
 0x247   :  { %v13744_v30 = vpop.f32.mrf.mxu0  ;;  %v1852_v26 = vadd.f32 %v18826_v34, %v13469_v41  ;;  %v18828_v55 = vld [vmem:[#allocation46_spill] sm:$0xff]  ;;  %v18830_v34 = vld [vmem:[#allocation105_spill] sm:$0xff] }
 0x248   :  { %18825 = vst [vmem:[#allocation80_spill] sm:$0xff] %v13732_v25  ;;  %v2279_v51 = vpop.f32.mrf.mxu1  ;;  %10949 = vmatmul.mubr.bf16.gmra.mxu0 %v18739_v7  ;;  %v1042_v25 = vsel %vm934_vm0, %v1040_v46, %v1041_v53 }
 0x249   :  { %v13746_v17 = vadd.f32 %v2279_v51, %v1847_v23  ;;  %v10838_v27 = vpop.f32.mrf.mxu0  ;;  %10952 = vmatprep.mubr.bf16.mxu0 %v18828_v55  ;;  %v11624_v23 = vld [vmem:[%s18211_s0 + $0x108] sm:$0xff]   ;;  %v1855_v55 = vadd.f32 %v18830_v34, %v13481_v35 }
 0x24a   :  { %v2281_v52 = vpop.f32.mrf.mxu1  ;;  %v13752_v48 = vadd.f32 %v10838_v27, %v13460_v5  ;;  %v18829_v5 = vld [vmem:[#allocation53_spill] sm:$0xff] }
 0x24b   :  { %v2461_v51 = vpop.f32.mrf.mxu0 }
 0x24c   :  { %18827 = vst [vmem:[#allocation33_spill] sm:$0xff] %v13752_v48  ;;  %v2284_v31 = vpop.f32.mrf.mxu1  ;;  %2990 = vmatmul.mubr.bf16.gmra.mxu1 %v11624_v23  ;;  %v13763_v41 = vadd.f32 %v2461_v51, %v13442_v29  ;;  %v18832_v51 = vld [vmem:[#allocation102_spill] sm:$0xff] }
 0x24d   :  { %v13760_v7 = vadd.f32 %v2284_v31, %v1852_v26  ;;  %2997 = vmatprep.mubr.bf16.mxu1 %v18829_v5  ;;  %v10839_v27 = vpop.f32.mrf.mxu0  ;;  %v1860_v5 = vadd.f32 %v18832_v51, %v13487_v38  ;;  %v18834_v38 = vld [vmem:[#allocation104_spill] sm:$0xff] }
 0x24e   :  { %v2286_v52 = vpop.f32.mrf.mxu1  ;;  %v13769_v48 = vadd.f32 %v10839_v27, %v13467_v6  ;;  %v11625_v6 = vld [vmem:[%s18211_s0 + $0x114] sm:$0xff]   ;;  %v18833_v27 = vld [vmem:[#allocation54_spill] sm:$0xff] }
 0x24f   :  { %v13772_v23 = vpop.f32.mrf.mxu0 }
 0x250   :  { %v2287_v49 = vpop.f32.mrf.mxu1  ;;  %10953 = vmatmul.mubr.bf16.gmra.mxu0 %v1042_v25 }
 0x251   :  { %v13774_v31 = vadd.f32 %v2287_v49, %v1855_v55  ;;  %v10842_v29 = vpop.f32.mrf.mxu0 }
 0x252   :  { %v2289_v26 = vpop.f32.mrf.mxu1  ;;  %v13779_v52 = vadd.f32 %v10842_v29, %v13496_v36  ;;  %v1863_v36 = vadd.f32 %v18834_v38, %v13499_v32  ;;  %v11626_v32 = vld [vmem:[%s18211_s0 + $0x120] sm:$0xff]   ;;  %v18836_v38 = vld [vmem:[#allocation55_spill] sm:$0xff] }
 0x253   :  { %18831 = vst [vmem:[#allocation83_spill] sm:$0xff] %v13774_v31  ;;  %v2477_v46 = vpop.f32.mrf.mxu0  ;;  %v18842_v31 = vld [vmem:[#allocation21_spill] sm:$0xff] }
 0x254   :  { %v2292_v35 = vpop.f32.mrf.mxu1  ;;  %2998 = vmatmul.mubr.bf16.gmra.mxu1 %v11625_v6  ;;  %v13787_v49 = vadd.f32 %v2477_v46, %v13478_v56  ;;  %v18835_v56 = vld [vmem:[#allocation107_spill] sm:$0xff] }
 0x255   :  { %v13784_v53 = vadd.f32 %v2292_v35, %v1860_v5  ;;  %3005 = vmatprep.mubr.bf16.mxu1 %v18833_v27  ;;  %v10843_v34 = vpop.f32.mrf.mxu0  ;;  %v1868_v6 = vadd.f32 %v18835_v56, %v13505_v40  ;;  %v18837_v40 = vld [vmem:[#allocation109_spill] sm:$0xff] }
 0x256   :  { %v2294_v25 = vpop.f32.mrf.mxu1  ;;  %v13793_v55 = vadd.f32 %v10843_v34, %v13503_v12 }
 0x257   :  { %v13795_v29 = vpop.f32.mrf.mxu0 }
 0x258   :  { %v2295_v26 = vpop.f32.mrf.mxu1 }
 0x259   :  { %v13797_v51 = vadd.f32 %v2295_v26, %v1863_v36  ;;  %v10846_v35 = vpop.f32.mrf.mxu0 }
 0x25a   :  { %v2297_v5 = vpop.f32.mrf.mxu1  ;;  %v13802_v46 = vadd.f32 %v10846_v35, %v13532_v14  ;;  %v1871_v14 = vadd.f32 %v18837_v40, %v13517_v60  ;;  %v11627_v60 = vld [vmem:[%s18211_s0 + $0x12c] sm:$0xff]  }
 0x25b   :  { %v2493_v12 = vpop.f32.mrf.mxu0 }
 0x25c   :  { %v2300_v27 = vpop.f32.mrf.mxu1  ;;  %3006 = vmatmul.mubr.bf16.gmra.mxu1 %v11626_v32  ;;  %v13810_v34 = vadd.f32 %v2493_v12, %v13514_v54  ;;  %v18839_v54 = vld [vmem:[#allocation106_spill] sm:$0xff] }
 0x25d   :  { %v13807_v25 = vadd.f32 %v2300_v27, %v1868_v6  ;;  %3013 = vmatprep.mubr.bf16.mxu1 %v18836_v38  ;;  %v10847_v26 = vpop.f32.mrf.mxu0  ;;  %v1876_v12 = vadd.f32 %v18839_v54, %v13523_v16  ;;  %v18841_v16 = vld [vmem:[#allocation108_spill] sm:$0xff] }
 0x25e   :  { %v2302_v36 = vpop.f32.mrf.mxu1  ;;  %v13816_v5 = vadd.f32 %v10847_v26, %v13549_v22 }
 0x25f   :  { %v13818_v56 = vpop.f32.mrf.mxu0 }
 0x260   :  { %v2303_v35 = vpop.f32.mrf.mxu1 }
 0x261   :  { %v13820_v32 = vadd.f32 %v2303_v35, %v1871_v14  ;;  %v10850_v27 = vpop.f32.mrf.mxu0  ;;  %v18840_v14 = vld [vmem:[#allocation56_spill] sm:$0xff] }
 0x262   :  { %v2305_v6 = vpop.f32.mrf.mxu1  ;;  %v13825_v38 = vadd.f32 %v10850_v27, %v13578_v47  ;;  %v1879_v47 = vadd.f32 %v18841_v16, %v13535_v42  ;;  %v11628_v42 = vld [vmem:[%s18211_s0 + $0x138] sm:$0xff]  }
 0x263   :  { %18838 = vst [vmem:[#allocation78_spill] sm:$0xff] %v13820_v32  ;;  %v2509_v22 = vpop.f32.mrf.mxu0 }
 0x264   :  { %v2308_v36 = vpop.f32.mrf.mxu1  ;;  %3014 = vmatmul.mubr.bf16.gmra.mxu1 %v11627_v60  ;;  %v13833_v40 = vadd.f32 %v2509_v22, %v13562_v2  ;;  %v18843_v2 = vld [vmem:[#allocation10_spill] sm:$0xff] }
 0x265   :  { %v13830_v26 = vadd.f32 %v2308_v36, %v1876_v12  ;;  %3021 = vmatprep.mubr.bf16.mxu1 %v18840_v14  ;;  %v10851_v6 = vpop.f32.mrf.mxu0  ;;  %v1884_v22 = vadd.f32 %v18843_v2, %v18842_v31  ;;  %v18846_v31 = vld [vmem:[#allocation111_spill] sm:$0xff] }
 0x266   :  { %v2310_v35 = vpop.f32.mrf.mxu1  ;;  %v13839_v27 = vadd.f32 %v10851_v6, %v13585_v28 }
 0x267   :  { %v13841_v32 = vpop.f32.mrf.mxu0 }
 0x268   :  { %v2311_v54 = vpop.f32.mrf.mxu1 }
 0x269   :  { %v13843_v60 = vadd.f32 %v2311_v54, %v1879_v47  ;;  %v10854_v36 = vpop.f32.mrf.mxu0  ;;  %v18845_v47 = vld [vmem:[#allocation58_spill] sm:$0xff] }
 0x26a   :  { %v2313_v12 = vpop.f32.mrf.mxu1  ;;  %v13848_v14 = vadd.f32 %v10854_v36, %v13622_v43  ;;  %v1887_v43 = vadd.f32 %v18846_v31, %v13565_v21  ;;  %v11629_v21 = vld [vmem:[%s18211_s0 + $0x144] sm:$0xff]  }
 0x26b   :  { %v2525_v28 = vpop.f32.mrf.mxu0 }
 0x26c   :  { %18844 = vst [vmem:[#allocation36_spill] sm:$0xff] %v13848_v14  ;;  %v2316_v35 = vpop.f32.mrf.mxu1  ;;  %3022 = vmatmul.mubr.bf16.gmra.mxu1 %v11628_v42  ;;  %v13856_v16 = vadd.f32 %v2525_v28, %v13595_v24  ;;  %v18849_v24 = vld [vmem:[#allocation9_spill] sm:$0xff] }
 0x26d   :  { %v13853_v6 = vadd.f32 %v2316_v35, %v1884_v22  ;;  %3029 = vmatprep.mubr.bf16.mxu1 %v18845_v47  ;;  %v10855_v12 = vpop.f32.mrf.mxu0  ;;  %v1892_v28 = vadd.f32 %v18849_v24, %v13572_v10  ;;  %v18852_v10 = vld [vmem:[#allocation110_spill] sm:$0xff] }
 0x26e   :  { %v2318_v54 = vpop.f32.mrf.mxu1  ;;  %v13862_v36 = vadd.f32 %v10855_v12, %v13633_v39  ;;  %v1895_v24 = vadd.f32 %v18852_v10, %v13581_v18 }
 0x26f   :  { %v13864_v14 = vpop.f32.mrf.mxu0 }
 0x270   :  { %18847 = vst [vmem:[#allocation81_spill] sm:$0xff] %v13862_v36  ;;  %v2319_v2 = vpop.f32.mrf.mxu1 }
 0x271   :  { %v13866_v42 = vadd.f32 %v2319_v2, %v1887_v43  ;;  %v10858_v35 = vpop.f32.mrf.mxu0  ;;  %v18851_v43 = vld [vmem:[#allocation60_spill] sm:$0xff] }
 0x272   :  { %v2321_v22 = vpop.f32.mrf.mxu1  ;;  %v13871_v47 = vadd.f32 %v10858_v35, %v13672_v50 }
 0x273   :  { %18848 = vst [vmem:[#allocation85_spill] sm:$0xff] %v13866_v42  ;;  %v2541_v39 = vpop.f32.mrf.mxu0 }
 0x274   :  { %18850 = vst [vmem:[#allocation39_spill] sm:$0xff] %v13871_v47  ;;  %v2324_v54 = vpop.f32.mrf.mxu1  ;;  %3030 = vmatmul.mubr.bf16.gmra.mxu1 %v11629_v21  ;;  %v13877_v31 = vadd.f32 %v2541_v39, %v13649_v11 }
 0x275   :  { %v2325_v12 = vadd.f32 %v2324_v54, %v1892_v28  ;;  %3037 = vmatprep.mubr.bf16.mxu1 %v18851_v43  ;;  %v10859_v22 = vpop.f32.mrf.mxu0  ;;  %v11630_v54 = vld [vmem:[%s18211_s0 + $0x150] sm:$0xff]  }
 0x276   :  { %v2326_v2 = vpop.f32.mrf.mxu1  ;;  %v13883_v50 = vadd.f32 %v10859_v22, %v13683_v8  ;;  %v18854_v8 = vld [vmem:[#allocation63_spill] sm:$0xff] }
 0x277   :  { %v13885_v42 = vpop.f32.mrf.mxu0 }
 0x278   :  { %v2327_v35 = vpop.f32.mrf.mxu1 }
 0x279   :  { %v2328_v47 = vadd.f32 %v2327_v35, %v1895_v24  ;;  %v10862_v36 = vpop.f32.mrf.mxu0 }
 0x27a   :  { %v2329_v21 = vpop.f32.mrf.mxu1  ;;  %v13888_v28 = vadd.f32 %v10862_v36, %v13723_v33 }
 0x27b   :  { %v2557_v39 = vpop.f32.mrf.mxu0 }
 0x27c   :  { %18853 = vst [vmem:[#allocation88_spill] sm:$0xff] %v13888_v28  ;;  %v2847_v11 = vpop.f32.mrf.mxu1  ;;  %3038 = vmatmul.mubr.bf16.gmra.mxu1 %v11630_v54  ;;  %v13894_v18 = vadd.f32 %v2557_v39, %v13698_v45  ;;  %v11631_v45 = vld [vmem:[%s18211_s0 + $0x15c] sm:$0xff]  }
 0x27d   :  { %3045 = vmatprep.mubr.bf16.mxu1 %v18854_v8  ;;  %v10863_v2 = vpop.f32.mrf.mxu0 }
 0x27e   :  { %v2849_v43 = vpop.f32.mrf.mxu1  ;;  %v13898_v22 = vadd.f32 %v10863_v2, %v13746_v17  ;;  %v18858_v17 = vld [vmem:[#allocation69_spill] sm:$0xff] }
 0x27f   :  { %v13900_v33 = vpop.f32.mrf.mxu0 }
 0x280   :  { %18855 = vst [vmem:[#allocation84_spill] sm:$0xff] %v13898_v22  ;;  %v2850_v10 = vpop.f32.mrf.mxu1 }
 0x281   :  { %v10866_v24 = vpop.f32.mrf.mxu0 }
 0x282   :  { %v2852_v36 = vpop.f32.mrf.mxu1  ;;  %v13903_v35 = vadd.f32 %v10866_v24, %v13784_v53 }
 0x283   :  { %v2573_v54 = vpop.f32.mrf.mxu0 }
 0x284   :  { %18856 = vst [vmem:[#allocation42_spill] sm:$0xff] %v13903_v35  ;;  %v2855_v21 = vpop.f32.mrf.mxu1  ;;  %3046 = vmatmul.mubr.bf16.gmra.mxu1 %v11631_v45  ;;  %v13909_v39 = vadd.f32 %v2573_v54, %v13760_v7  ;;  %v11632_v7 = vld [vmem:[%s18211_s0 + $0x168] sm:$0xff]  }
 0x285   :  { %3053 = vmatprep.mubr.bf16.mxu1 %v18858_v17  ;;  %v10867_v43 = vpop.f32.mrf.mxu0 }
 0x286   :  { %18857 = vst [vmem:[#allocation86_spill] sm:$0xff] %v13909_v39  ;;  %v2857_v8 = vpop.f32.mrf.mxu1  ;;  %v13913_v2 = vadd.f32 %v10867_v43, %v13797_v51  ;;  %v18863_v51 = vld [vmem:[#allocation76_spill] sm:$0xff] }
 0x287   :  { %v13915_v53 = vpop.f32.mrf.mxu0 }
 0x288   :  { %18859 = vst [vmem:[#allocation22_spill] sm:$0xff] %v13913_v2  ;;  %v2858_v36 = vpop.f32.mrf.mxu1  ;;  %18860 = vst [vmem:[#allocation45_spill] sm:$0xff] %v13915_v53 }
 0x289   :  { %v10870_v35 = vpop.f32.mrf.mxu0 }
 0x28a   :  { %v2860_v24 = vpop.f32.mrf.mxu1  ;;  %v13918_v22 = vadd.f32 %v10870_v35, %v13830_v26 }
 0x28b   :  { %v2589_v54 = vpop.f32.mrf.mxu0 }
 0x28c   :  { %18861 = vst [vmem:[#allocation89_spill] sm:$0xff] %v13918_v22  ;;  %v2863_v45 = vpop.f32.mrf.mxu1  ;;  %3054 = vmatmul.mubr.bf16.gmra.mxu1 %v11632_v7  ;;  %v13924_v17 = vadd.f32 %v2589_v54, %v13807_v25  ;;  %v11633_v25 = vld [vmem:[%s18211_s0 + $0x174] sm:$0xff]  }
 0x28d   :  { %3061 = vmatprep.mubr.bf16.mxu1 %v18863_v51  ;;  %v10871_v43 = vpop.f32.mrf.mxu0  ;;  %v18868_v51 = vld [vmem:[#allocation82_spill] sm:$0xff] }
 0x28e   :  { %18862 = vst [vmem:[#allocation65_spill] sm:$0xff] %v13924_v17  ;;  %v2865_v8 = vpop.f32.mrf.mxu1  ;;  %v13928_v24 = vadd.f32 %v10871_v43, %v13843_v60 }
 0x28f   :  { %v13930_v26 = vpop.f32.mrf.mxu0 }
 0x290   :  { %18864 = vst [vmem:[#allocation47_spill] sm:$0xff] %v13928_v24  ;;  %v2866_v2 = vpop.f32.mrf.mxu1  ;;  %18865 = vst [vmem:[#allocation14_spill] sm:$0xff] %v13930_v26 }
 0x291   :  { %v10874_v22 = vpop.f32.mrf.mxu0 }
 0x292   :  { %v2868_v35 = vpop.f32.mrf.mxu1  ;;  %v13932_v39 = vadd.f32 %v10874_v22, %v2325_v12 }
 0x293   :  { %v2605_v7 = vpop.f32.mrf.mxu0 }
 0x294   :  { %18866 = vst [vmem:[#allocation73_spill] sm:$0xff] %v13932_v39  ;;  %v2871_v53 = vpop.f32.mrf.mxu1  ;;  %3062 = vmatmul.mubr.bf16.gmra.mxu1 %v11633_v25  ;;  %v13938_v54 = vadd.f32 %v2605_v7, %v13853_v6  ;;  %v11634_v25 = vld [vmem:[%s18211_s0 + $0x180] sm:$0xff]  }
 0x295   :  { %3069 = vmatprep.mubr.bf16.mxu1 %v18868_v51  ;;  %v10875_v8 = vpop.f32.mrf.mxu0 }
 0x296   :  { %18867 = vst [vmem:[#allocation11_spill] sm:$0xff] %v13938_v54  ;;  %v2873_v60 = vpop.f32.mrf.mxu1  ;;  %v13941_v43 = vadd.f32 %v10875_v8, %v2328_v47 }
 0x297   :  { %v13943_v24 = vpop.f32.mrf.mxu0  ;;  %v18871_v60 = vld [vmem:[#allocation87_spill] sm:$0xff] }
 0x298   :  { %18869 = vst [vmem:[#allocation48_spill] sm:$0xff] %v13941_v43  ;;  %v2874_v35 = vpop.f32.mrf.mxu1  ;;  %18870 = vst [vmem:[#allocation93_spill] sm:$0xff] %v13943_v24  ;;  %v889_v43 = vshll.u32 %v13737_v1, 16 }
 0x299   :  { %v10894_v22 = vpop.f32.mrf.mxu0 }
 0x29a   :  { %v2876_v12 = vpop.f32.mrf.mxu1  ;;  %v3145_v39 = vadd.f32 %v10894_v22, %v2855_v21 }
 0x29b   :  { %v3136_v6 = vpop.f32.mrf.mxu0 }
 0x29c   :  { %v2879_v26 = vpop.f32.mrf.mxu1  ;;  %3070 = vmatmul.mubr.bf16.gmra.mxu1 %v11634_v25  ;;  %v13949_v7 = vadd.f32 %v3145_v39, %v13591_v4  ;;  %v3137_v51 = vadd.f32 %v3136_v6, %v2847_v11  ;;  %v887_v11 = vshrl.u32 %v13737_v1, 16  ;;  %v891_v39 = vrot.slane %v889_v43, 1 }
 0x29d   :  { %3077 = vmatprep.mubr.bf16.mxu1 %v18871_v60  ;;  %v10895_v8 = vpop.f32.mrf.mxu0  ;;  %v894_v6 = vshll.u32 %v13742_v20, 16 }
 0x29e   :  { %v2881_v47 = vpop.f32.mrf.mxu1  ;;  %v13954_v12 = vadd.f32 %v3137_v51, %v13598_v37  ;;  %v3148_v21 = vadd.f32 %v10895_v8, %v2858_v36  ;;  %v11635_v36 = vld [vmem:[%s18211_s0 + $0x18c] sm:$0xff]   ;;  %v892_v20 = vor.u32 %v891_v39, %v887_v11  ;;  %v18876_v39 = vld [vmem:[#allocation64_spill] sm:$0xff] }
 0x29f   :  { %v3139_v24 = vpop.f32.mrf.mxu0  ;;  %v896_v8 = vrot.slane %v894_v6, 1 }
 0x2a0   :  { %v2882_v22 = vpop.f32.mrf.mxu1  ;;  %v13957_v54 = vadd.f32 %v3148_v21, %v13605_v58  ;;  %v3140_v25 = vadd.f32 %v3139_v24, %v2850_v10  ;;  %v18874_v24 = vld [vmem:[#allocation90_spill] sm:$0xff] }
 0x2a1   :  { %v10898_v4 = vpop.f32.mrf.mxu0 }
 0x2a2   :  { %18872 = vst [vmem:[#allocation16_spill] sm:$0xff] %v13957_v54  ;;  %v2884_v17 = vpop.f32.mrf.mxu1  ;;  %v13962_v60 = vadd.f32 %v3140_v25, %v13610_v3  ;;  %v3161_v47 = vadd.f32 %v10898_v4, %v2871_v53 }
 0x2a3   :  { %v3152_v58 = vpop.f32.mrf.mxu0 }
 0x2a4   :  { %18873 = vst [vmem:[#allocation13_spill] sm:$0xff] %v13962_v60  ;;  %v2887_v37 = vpop.f32.mrf.mxu1  ;;  %3078 = vmatmul.mubr.bf16.gmra.mxu1 %v11635_v36  ;;  %v13968_v10 = vadd.f32 %v3161_v47, %v13618_v59  ;;  %v3153_v17 = vadd.f32 %v3152_v58, %v2863_v45  ;;  %v897_v45 = vsel %vm465_vm1, %v892_v20, %v896_v8 }
 0x2a5   :  { %3085 = vmatprep.mubr.bf16.mxu1 %v18874_v24  ;;  %v10899_v51 = vpop.f32.mrf.mxu0 }
 0x2a6   :  { %v2889_v43 = vpop.f32.mrf.mxu1  ;;  %v13972_v3 = vadd.f32 %v3153_v17, %v13625_v57  ;;  %v3164_v53 = vadd.f32 %v10899_v51, %v2874_v35  ;;  %v11636_v57 = vld [vmem:[%s18211_s0 + $0x198] sm:$0xff]  }
 0x2a7   :  { %v3155_v25 = vpop.f32.mrf.mxu0  ;;  %v18877_v17 = vld [vmem:[#allocation24_spill] sm:$0xff] }
 0x2a8   :  { %18875 = vst [vmem:[#allocation91_spill] sm:$0xff] %v13972_v3  ;;  %v2890_v21 = vpop.f32.mrf.mxu1  ;;  %v13975_v4 = vadd.f32 %v3164_v53, %v13631_v9  ;;  %v3156_v36 = vadd.f32 %v3155_v25, %v2866_v2 }
 0x2a9   :  { %v10902_v59 = vpop.f32.mrf.mxu0 }
 0x2aa   :  { %v2892_v28 = vpop.f32.mrf.mxu1  ;;  %v13979_v47 = vadd.f32 %v3156_v36, %v13636_v63  ;;  %v3177_v58 = vadd.f32 %v10902_v59, %v2887_v37 }
 0x2ab   :  { %v3168_v35 = vpop.f32.mrf.mxu0 }
 0x2ac   :  { %v2895_v11 = vpop.f32.mrf.mxu1  ;;  %3086 = vmatmul.mubr.bf16.gmra.mxu1 %v11636_v57  ;;  %v13985_v6 = vadd.f32 %v3177_v58, %v18876_v39  ;;  %v3169_v9 = vadd.f32 %v3168_v35, %v2879_v26  ;;  %v18879_v39 = vld [vmem:[#allocation27_spill] sm:$0xff] }
 0x2ad   :  { %3093 = vmatprep.mubr.bf16.mxu1 %v897_v45  ;;  %v10903_v2 = vpop.f32.mrf.mxu0 }
 0x2ae   :  { %v2897_v28 = vpop.f32.mrf.mxu1  ;;  %v13988_v24 = vadd.f32 %v3169_v9, %v18877_v17  ;;  %v3180_v63 = vadd.f32 %v10903_v2, %v2890_v21  ;;  %v18878_v21 = vld [vmem:[#allocation74_spill] sm:$0xff] }
 0x2af   :  { %v3171_v37 = vpop.f32.mrf.mxu0 }
 0x2b0   :  { %v2898_v43 = vpop.f32.mrf.mxu1  ;;  %v13991_v51 = vadd.f32 %v3180_v63, %v13657_v0  ;;  %v3172_v20 = vadd.f32 %v3171_v37, %v2882_v22 }
 0x2b1   :  { %v10906_v53 = vpop.f32.mrf.mxu0 }
 0x2b2   :  { %v2900_v8 = vpop.f32.mrf.mxu1  ;;  %v13994_v25 = vadd.f32 %v3172_v20, %v13662_v62 }
 0x2b3   :  { %v3184_v26 = vpop.f32.mrf.mxu0 }
 0x2b4   :  { %v2903_v36 = vpop.f32.mrf.mxu1  ;;  %3094 = vmatmul.mubr.bf16.gmra.mxu1 %v13737_v1  ;;  %v3185_v45 = vadd.f32 %v3184_v26, %v2895_v11  ;;  %v18880_v1 = vld [vmem:[#allocation77_spill] sm:$0xff] }
 0x2b5   :  { %v3193_v59 = vadd.f32 %v10906_v53, %v2903_v36  ;;  %v10907_v57 = vpop.f32.mrf.mxu0 }
 0x2b6   :  { %v2905_v58 = vpop.f32.mrf.mxu1  ;;  %v14001_v0 = vadd.f32 %v3185_v45, %v18879_v39 }
 0x2b7   :  { %v13998_v35 = vadd.f32 %v3193_v59, %v18878_v21  ;;  %v3187_v9 = vpop.f32.mrf.mxu0  ;;  %v18881_v58 = vld [vmem:[#allocation31_spill] sm:$0xff] }
 0x2b8   :  { %v2906_v22 = vpop.f32.mrf.mxu1  ;;  %v3188_v2 = vadd.f32 %v3187_v9, %v2898_v43  ;;  %v2433_v43 = vadd.f32 %v13709_v44, %v18881_v58 }
 0x2b9   :  { %v3196_v28 = vadd.f32 %v10907_v57, %v2906_v22  ;;  %v10910_v17 = vpop.f32.mrf.mxu0 }
 0x2ba   :  { %v2908_v62 = vpop.f32.mrf.mxu1  ;;  %v14007_v37 = vadd.f32 %v3188_v2, %v18880_v1 }
 0x2bb   :  { %v14004_v63 = vadd.f32 %v3196_v28, %v13681_v19  ;;  %v3200_v20 = vpop.f32.mrf.mxu0  ;;  %v18882_v62 = vld [vmem:[#allocation72_spill] sm:$0xff] }
 0x2bc   :  { %v2911_v11 = vpop.f32.mrf.mxu1 }
 0x2bd   :  { %v3201_v8 = vadd.f32 %v3200_v20, %v2911_v11  ;;  %v10911_v36 = vpop.f32.mrf.mxu0 }
 0x2be   :  { %v2913_v53 = vpop.f32.mrf.mxu1 }
 0x2bf   :  { %v14010_v26 = vadd.f32 %v3201_v8, %v13701_v15  ;;  %v3203_v45 = vpop.f32.mrf.mxu0 }
 0x2c0   :  { %v2914_v59 = vpop.f32.mrf.mxu1 }
 0x2c1   :  { %v3204_v57 = vadd.f32 %v3203_v45, %v2914_v59  ;;  %v10914_v19 = vpop.f32.mrf.mxu0 }
 0x2c2   :  { %v2916_v21 = vpop.f32.mrf.mxu1 }
 0x2c3   :  { %v14014_v39 = vadd.f32 %v3204_v57, %v2433_v43  ;;  %v3216_v2 = vpop.f32.mrf.mxu0  ;;  %v18883_v57 = vld [vmem:[#allocation61_spill] sm:$0xff] }
 0x2c4   :  { %v2919_v22 = vpop.f32.mrf.mxu1  ;;  %v2449_v21 = vadd.f32 %v13744_v30, %v18883_v57 }
 0x2c5   :  { %v3209_v9 = vadd.f32 %v10910_v17, %v2919_v22  ;;  %v10915_v8 = vpop.f32.mrf.mxu0  ;;  %v3457_v22 = vadd.f32 %v13962_v60, %v13954_v12 }
 0x2c6   :  { %v2921_v28 = vpop.f32.mrf.mxu1 }
 0x2c7   :  { %v14017_v1 = vadd.f32 %v3209_v9, %v18882_v62  ;;  %v3219_v58 = vpop.f32.mrf.mxu0 }
 0x2c8   :  { %v2922_v11 = vpop.f32.mrf.mxu1 }
 0x2c9   :  { %v3212_v15 = vadd.f32 %v10911_v36, %v2922_v11  ;;  %v10918_v28 = vpop.f32.mrf.mxu0 }
 0x2ca   :  { %v2924_v20 = vpop.f32.mrf.mxu1 }
 0x2cb   :  { %v14020_v53 = vadd.f32 %v3212_v15, %v13707_v61  ;;  %v3232_v20 = vpop.f32.mrf.mxu0 }
 0x2cc   :  { %v2927_v44 = vpop.f32.mrf.mxu1 }
 0x2cd   :  { %v3217_v59 = vadd.f32 %v3216_v2, %v2927_v44  ;;  %v3458_v2 = vadd.f32 %v3457_v22, %v13949_v7  ;;  %v10919_v60 = vpop.f32.mrf.mxu0 }
 0x2ce   :  { %v2929_v45 = vpop.f32.mrf.mxu1 }
 0x2cf   :  { %v14023_v43 = vadd.f32 %v3217_v59, %v13726_v13  ;;  %v18884_v13 = vld [vmem:[#allocation75_spill] sm:$0xff]  ;;  %v3459_v30 = vadd.f32 %v3458_v2, %v13957_v54 }
 0x2d0   :  { %v2930_v17 = vpop.f32.mrf.mxu1 }
 0x2d1   :  { %v3220_v36 = vadd.f32 %v3219_v58, %v2930_v17  ;;  %v18885_v58 = vld [vmem:[#allocation80_spill] sm:$0xff] }
 0x2d2   :  { %v2932_v9 = vpop.f32.mrf.mxu1 }
 0x2d3   :  { %v14029_v62 = vadd.f32 %v3220_v36, %v2449_v21  ;;  %v3460_v36 = vadd.f32 %v3459_v30, %v13972_v3  ;;  %v18888_v3 = vld [vmem:[#allocation33_spill] sm:$0xff] }
 0x2d4   :  { %v2935_v61 = vpop.f32.mrf.mxu1 }
 0x2d5   :  { %v3225_v11 = vadd.f32 %v10914_v19, %v2935_v61  ;;  %v3235_v19 = vpop.f32.mrf.mxu0 }
 0x2d6   :  { %v2937_v15 = vpop.f32.mrf.mxu1 }
 0x2d7   :  { %v14033_v44 = vadd.f32 %v3225_v11, %v18884_v13  ;;  %v18887_v15 = vld [vmem:[#allocation18_spill] sm:$0xff] }
 0x2d8   :  { %v2938_v59 = vpop.f32.mrf.mxu1  ;;  %v2465_v13 = vadd.f32 %v13772_v23, %v18887_v15 }
 0x2d9   :  { %v3228_v45 = vadd.f32 %v10915_v8, %v2938_v59  ;;  %v3461_v8 = vadd.f32 %v3460_v36, %v13979_v47 }
 0x2da   :  { %v2940_v57 = vpop.f32.mrf.mxu1 }
 0x2db   :  { %v14037_v17 = vadd.f32 %v3228_v45, %v18885_v58  ;;  %v10922_v57 = vpop.f32.mrf.mxu0  ;;  %v3462_v30 = vadd.f32 %v3461_v8, %v13968_v10 }
 0x2dc   :  { %v2943_v21 = vpop.f32.mrf.mxu1 }
 0x2dd   :  { %18886 = vst [vmem:[#allocation79_spill] sm:$0xff] %v14037_v17  ;;  %v3233_v9 = vadd.f32 %v3232_v20, %v2943_v21  ;;  %v3463_v54 = vadd.f32 %v3462_v30, %v13975_v4 }
 0x2de   :  { %v2945_v22 = vpop.f32.mrf.mxu1 }
 0x2df   :  { %v14041_v61 = vadd.f32 %v3233_v9, %v13763_v41  ;;  %v3248_v22 = vpop.f32.mrf.mxu0 }
 0x2e0   :  { %v2946_v11 = vpop.f32.mrf.mxu1 }
 0x2e1   :  { %v3236_v2 = vadd.f32 %v3235_v19, %v2946_v11  ;;  %v10923_v36 = vpop.f32.mrf.mxu0 }
 0x2e2   :  { %v2948_v59 = vpop.f32.mrf.mxu1 }
 0x2e3   :  { %v14046_v45 = vadd.f32 %v3236_v2, %v2465_v13  ;;  %v3464_v13 = vadd.f32 %v3463_v54, %v13988_v24 }
 0x2e4   :  { %v2951_v58 = vpop.f32.mrf.mxu1 }
 0x2e5   :  { %v3241_v20 = vadd.f32 %v10918_v28, %v2951_v58  ;;  %v3251_v28 = vpop.f32.mrf.mxu0  ;;  %v18889_v58 = vld [vmem:[#allocation62_spill] sm:$0xff] }
 0x2e6   :  { %v2953_v21 = vpop.f32.mrf.mxu1 }
 0x2e7   :  { %v14050_v41 = vadd.f32 %v3241_v20, %v18888_v3  ;;  %v2481_v20 = vadd.f32 %v13795_v29, %v18889_v58 }
 0x2e8   :  { %v2954_v9 = vpop.f32.mrf.mxu1 }
 0x2e9   :  { %v3244_v23 = vadd.f32 %v10919_v60, %v2954_v9  ;;  %v3465_v60 = vadd.f32 %v3464_v13, %v13994_v25  ;;  %v10926_v9 = vpop.f32.mrf.mxu0 }
 0x2ea   :  { %v2956_v15 = vpop.f32.mrf.mxu1 }
 0x2eb   :  { %v14054_v19 = vadd.f32 %v3244_v23, %v13769_v48  ;;  %v3466_v54 = vadd.f32 %v3465_v60, %v13985_v6 }
 0x2ec   :  { %v2959_v11 = vpop.f32.mrf.mxu1 }
 0x2ed   :  { %v3249_v2 = vadd.f32 %v3248_v22, %v2959_v11  ;;  %v3264_v11 = vpop.f32.mrf.mxu0 }
 0x2ee   :  { %v2961_v8 = vpop.f32.mrf.mxu1 }
 0x2ef   :  { %v14058_v59 = vadd.f32 %v3249_v2, %v13787_v49  ;;  %v3467_v8 = vadd.f32 %v3466_v54, %v13991_v51  ;;  %v10927_v13 = vpop.f32.mrf.mxu0 }
 0x2f0   :  { %v2962_v3 = vpop.f32.mrf.mxu1 }
 0x2f1   :  { %v3252_v30 = vadd.f32 %v3251_v28, %v2962_v3 }
 0x2f2   :  { %v2964_v21 = vpop.f32.mrf.mxu1 }
 0x2f3   :  { %v14063_v48 = vadd.f32 %v3252_v30, %v2481_v20  ;;  %v3468_v20 = vadd.f32 %v3467_v8, %v14001_v0 }
 0x2f4   :  { %v2967_v23 = vpop.f32.mrf.mxu1 }
 0x2f5   :  { %v3257_v22 = vadd.f32 %v10922_v57, %v2967_v23  ;;  %v3267_v57 = vpop.f32.mrf.mxu0  ;;  %v18891_v23 = vld [vmem:[#allocation66_spill] sm:$0xff] }
 0x2f6   :  { %v2969_v15 = vpop.f32.mrf.mxu1 }
 0x2f7   :  { %v14067_v49 = vadd.f32 %v3257_v22, %v13779_v52  ;;  %v2497_v22 = vadd.f32 %v13818_v56, %v18891_v23 }
 0x2f8   :  { %v2970_v2 = vpop.f32.mrf.mxu1 }
 0x2f9   :  { %v3260_v29 = vadd.f32 %v10923_v36, %v2970_v2  ;;  %v3469_v36 = vadd.f32 %v3468_v20, %v14007_v37  ;;  %v10930_v2 = vpop.f32.mrf.mxu0 }
 0x2fa   :  { %v2972_v58 = vpop.f32.mrf.mxu1 }
 0x2fb   :  { %v14071_v28 = vadd.f32 %v3260_v29, %v13793_v55  ;;  %v3470_v8 = vadd.f32 %v3469_v36, %v13998_v35 }
 0x2fc   :  { %v2975_v3 = vpop.f32.mrf.mxu1 }
 0x2fd   :  { %18890 = vst [vmem:[#allocation17_spill] sm:$0xff] %v14071_v28  ;;  %v3265_v30 = vadd.f32 %v3264_v11, %v2975_v3  ;;  %v3280_v3 = vpop.f32.mrf.mxu0 }
 0x2fe   :  { %v2977_v60 = vpop.f32.mrf.mxu1 }
 0x2ff   :  { %v14075_v21 = vadd.f32 %v3265_v30, %v13810_v34  ;;  %v3471_v60 = vadd.f32 %v3470_v8, %v14004_v63  ;;  %v10931_v20 = vpop.f32.mrf.mxu0 }
 0x300   :  { %v2978_v52 = vpop.f32.mrf.mxu1 }
 0x301   :  { %v3268_v54 = vadd.f32 %v3267_v57, %v2978_v52 }
 0x302   :  { %v2980_v15 = vpop.f32.mrf.mxu1 }
 0x303   :  { %v14080_v55 = vadd.f32 %v3268_v54, %v2497_v22  ;;  %v3472_v22 = vadd.f32 %v3471_v60, %v14010_v26 }
 0x304   :  { %v2983_v29 = vpop.f32.mrf.mxu1 }
 0x305   :  { %v3273_v11 = vadd.f32 %v10926_v9, %v2983_v29  ;;  %v3283_v9 = vpop.f32.mrf.mxu0  ;;  %v18895_v29 = vld [vmem:[#allocation70_spill] sm:$0xff] }
 0x306   :  { %v2985_v58 = vpop.f32.mrf.mxu1 }
 0x307   :  { %v14084_v34 = vadd.f32 %v3273_v11, %v13802_v46  ;;  %v2513_v11 = vadd.f32 %v13841_v32, %v18895_v29 }
 0x308   :  { %v2986_v30 = vpop.f32.mrf.mxu1 }
 0x309   :  { %18892 = vst [vmem:[#allocation49_spill] sm:$0xff] %v14084_v34  ;;  %v3276_v56 = vadd.f32 %v10927_v13, %v2986_v30  ;;  %v3473_v13 = vadd.f32 %v3472_v22, %v14014_v39  ;;  %v10934_v30 = vpop.f32.mrf.mxu0 }
 0x30a   :  { %v2988_v23 = vpop.f32.mrf.mxu1 }
 0x30b   :  { %v14088_v57 = vadd.f32 %v3276_v56, %v13816_v5  ;;  %v3474_v60 = vadd.f32 %v3473_v13, %v14017_v1 }
 0x30c   :  { %v2991_v52 = vpop.f32.mrf.mxu1 }
 0x30d   :  { %18893 = vst [vmem:[#allocation92_spill] sm:$0xff] %v14088_v57  ;;  %v3281_v54 = vadd.f32 %v3280_v3, %v2991_v52  ;;  %v3296_v52 = vpop.f32.mrf.mxu0 }
 0x30e   :  { %v2993_v36 = vpop.f32.mrf.mxu1 }
 0x30f   :  { %v14092_v15 = vadd.f32 %v3281_v54, %v13833_v40  ;;  %v3475_v40 = vadd.f32 %v3474_v60, %v14020_v53 }
 0x310   :  { %v2994_v46 = vpop.f32.mrf.mxu1 }
 0x311   :  { %18894 = vst [vmem:[#allocation57_spill] sm:$0xff] %v14092_v15  ;;  %v3284_v8 = vadd.f32 %v3283_v9, %v2994_v46  ;;  %v3476_v32 = vadd.f32 %v3475_v40, %v14023_v43  ;;  %v10935_v46 = vpop.f32.mrf.mxu0 }
 0x312   :  { %v2996_v58 = vpop.f32.mrf.mxu1 }
 0x313   :  { %v14097_v5 = vadd.f32 %v3284_v8, %v2513_v11  ;;  %v3477_v29 = vadd.f32 %v3476_v32, %v14029_v62 }
 0x314   :  { %v2999_v56 = vpop.f32.mrf.mxu1 }
 0x315   :  { %18896 = vst [vmem:[#allocation19_spill] sm:$0xff] %v14097_v5  ;;  %v3289_v3 = vadd.f32 %v10930_v2, %v2999_v56  ;;  %v3478_v2 = vadd.f32 %v3477_v29, %v14033_v44  ;;  %v3299_v56 = vpop.f32.mrf.mxu0 }
 0x316   :  { %v3001_v23 = vpop.f32.mrf.mxu1 }
 0x317   :  { %v14102_v54 = vadd.f32 %v3289_v3, %v13825_v38  ;;  %v3479_v38 = vadd.f32 %v3478_v2, %v14037_v17  ;;  %v10938_v32 = vpop.f32.mrf.mxu0 }
 0x318   :  { %v3002_v36 = vpop.f32.mrf.mxu1 }
 0x319   :  { %18897 = vst [vmem:[#allocation32_spill] sm:$0xff] %v14102_v54  ;;  %v3292_v22 = vadd.f32 %v10931_v20, %v3002_v36  ;;  %v18899_v20 = vld [vmem:[#allocation44_spill] sm:$0xff]  ;;  %v3480_v40 = vadd.f32 %v3479_v38, %v14041_v61 }
 0x31a   :  { %v3004_v9 = vpop.f32.mrf.mxu1  ;;  %v2529_v23 = vadd.f32 %v13864_v14, %v18899_v20 }
 0x31b   :  { %v14107_v11 = vadd.f32 %v3292_v22, %v13839_v27  ;;  %v3481_v22 = vadd.f32 %v3480_v40, %v14046_v45  ;;  %v18902_v40 = vld [vmem:[#allocation81_spill] sm:$0xff] }
 0x31c   :  { %v3007_v13 = vpop.f32.mrf.mxu1 }
 0x31d   :  { %18898 = vst [vmem:[#allocation95_spill] sm:$0xff] %v14107_v11  ;;  %v3297_v8 = vadd.f32 %v3296_v52, %v3007_v13  ;;  %v3482_v29 = vadd.f32 %v3481_v22, %v14050_v41 }
 0x31e   :  { %v3009_v58 = vpop.f32.mrf.mxu1 }
 0x31f   :  { %v14112_v60 = vadd.f32 %v3297_v8, %v13856_v16  ;;  %v3312_v16 = vpop.f32.mrf.mxu0  ;;  %v3483_v8 = vadd.f32 %v3482_v29, %v14054_v19  ;;  %v18901_v58 = vld [vmem:[#allocation36_spill] sm:$0xff] }
 0x320   :  { %v3010_v3 = vpop.f32.mrf.mxu1 }
 0x321   :  { %v3300_v36 = vadd.f32 %v3299_v56, %v3010_v3  ;;  %v3484_v56 = vadd.f32 %v3483_v8, %v14058_v59  ;;  %v10939_v20 = vpop.f32.mrf.mxu0 }
 0x322   :  { %v3012_v27 = vpop.f32.mrf.mxu1 }
 0x323   :  { %v14118_v9 = vadd.f32 %v3300_v36, %v2529_v23  ;;  %v3485_v23 = vadd.f32 %v3484_v56, %v14063_v48  ;;  %v3315_v29 = vpop.f32.mrf.mxu0 }
 0x324   :  { %v3015_v52 = vpop.f32.mrf.mxu1 }
 0x325   :  { %18900 = vst [vmem:[#allocation20_spill] sm:$0xff] %v14118_v9  ;;  %v3305_v13 = vadd.f32 %v10934_v30, %v3015_v52  ;;  %v3486_v30 = vadd.f32 %v3485_v23, %v14067_v49 }
 0x326   :  { %v3017_v2 = vpop.f32.mrf.mxu1 }
 0x327   :  { %v14123_v17 = vadd.f32 %v3305_v13, %v18901_v58  ;;  %v3487_v13 = vadd.f32 %v3486_v30, %v14071_v28  ;;  %v10942_v30 = vpop.f32.mrf.mxu0 }
 0x328   :  { %v3018_v14 = vpop.f32.mrf.mxu1 }
 0x329   :  { %v3308_v38 = vadd.f32 %v10935_v46, %v3018_v14  ;;  %v18905_v46 = vld [vmem:[#allocation68_spill] sm:$0xff]  ;;  %v3488_v14 = vadd.f32 %v3487_v13, %v14075_v21 }
 0x32a   :  { %v3020_v3 = vpop.f32.mrf.mxu1  ;;  %v2545_v58 = vadd.f32 %v13885_v42, %v18905_v46  ;;  %v3328_v42 = vpop.f32.mrf.mxu0 }
 0x32b   :  { %v14128_v36 = vadd.f32 %v3308_v38, %v18902_v40  ;;  %v3489_v3 = vadd.f32 %v3488_v14, %v14080_v55 }
 0x32c   :  { %v3023_v27 = vpop.f32.mrf.mxu1 }
 0x32d   :  { %18903 = vst [vmem:[#allocation34_spill] sm:$0xff] %v14128_v36  ;;  %v3313_v22 = vadd.f32 %v3312_v16, %v3023_v27  ;;  %v3490_v23 = vadd.f32 %v3489_v3, %v14084_v34 }
 0x32e   :  { %v3025_v52 = vpop.f32.mrf.mxu1 }
 0x32f   :  { %v14133_v2 = vadd.f32 %v3313_v22, %v13877_v31  ;;  %v3491_v31 = vadd.f32 %v3490_v23, %v14088_v57 }
 0x330   :  { %v3026_v8 = vpop.f32.mrf.mxu1 }
 0x331   :  { %18904 = vst [vmem:[#allocation67_spill] sm:$0xff] %v14133_v2  ;;  %v3316_v56 = vadd.f32 %v3315_v29, %v3026_v8  ;;  %v3492_v52 = vadd.f32 %v3491_v31, %v14092_v15 }
 0x332   :  { %v3028_v38 = vpop.f32.mrf.mxu1 }
 0x333   :  { %v14139_v40 = vadd.f32 %v3316_v56, %v2545_v58  ;;  %v3493_v13 = vadd.f32 %v3492_v52, %v14097_v5  ;;  %v10943_v58 = vpop.f32.mrf.mxu0 }
 0x334   :  { %v3031_v16 = vpop.f32.mrf.mxu1 }
 0x335   :  { %18906 = vst [vmem:[#allocation97_spill] sm:$0xff] %v14139_v40  ;;  %v3494_v8 = vadd.f32 %v3493_v13, %v14102_v54  ;;  %v3331_v3 = vpop.f32.mrf.mxu0  ;;  %v3321_v15 = vadd.f32 %v10938_v32, %v3031_v16 }
 0x336   :  { %v3033_v27 = vpop.f32.mrf.mxu1 }
 0x337   :  { %v3495_v14 = vadd.f32 %v3494_v8, %v14107_v11  ;;  %v10946_v31 = vpop.f32.mrf.mxu0  ;;  %v18907_v11 = vld [vmem:[#allocation39_spill] sm:$0xff] }
 0x338   :  { %v3034_v22 = vpop.f32.mrf.mxu1  ;;  %v14153_v34 = vadd.f32 %v3321_v15, %v18907_v11 }
 0x339   :  { %v3496_v38 = vadd.f32 %v3495_v14, %v14112_v60  ;;  %v3324_v13 = vadd.f32 %v10939_v20, %v3034_v22  ;;  %v3344_v54 = vpop.f32.mrf.mxu0 }
 0x33a   :  { %v3036_v28 = vpop.f32.mrf.mxu1  ;;  %18908 = vst [vmem:[#allocation59_spill] sm:$0xff] %v14153_v34 }
 0x33b   :  { %v3497_v23 = vadd.f32 %v3496_v38, %v14118_v9  ;;  %v14157_v9 = vadd.f32 %v3324_v13, %v13883_v50  ;;  %v10947_v16 = vpop.f32.mrf.mxu0 }
 0x33c   :  { %v3039_v29 = vpop.f32.mrf.mxu1 }
 0x33d   :  { %v3498_v28 = vadd.f32 %v3497_v23, %v14123_v17  ;;  %v3329_v14 = vadd.f32 %v3328_v42, %v3039_v29  ;;  %18909 = vst [vmem:[#allocation71_spill] sm:$0xff] %v14157_v9  ;;  %v3347_v13 = vpop.f32.mrf.mxu0 }
 0x33e   :  { %v3041_v46 = vpop.f32.mrf.mxu1 }
 0x33f   :  { %v3499_v5 = vadd.f32 %v3498_v28, %v14128_v36 }
 0x340   :  { %v3042_v56 = vpop.f32.mrf.mxu1 }
 0x341   :  { %v3500_v8 = vadd.f32 %v3499_v5, %v14133_v2  ;;  %v3332_v23 = vadd.f32 %v3331_v3, %v3042_v56  ;;  %v14163_v5 = vadd.f32 %v3329_v14, %v13894_v18  ;;  %v18913_v3 = vld [vmem:[#allocation88_spill] sm:$0xff] }
 0x342   :  { %v3044_v27 = vpop.f32.mrf.mxu1  ;;  %v18915_v14 = vld [vmem:[#allocation84_spill] sm:$0xff] }
 0x343   :  { %v3501_v38 = vadd.f32 %v3500_v8, %v14139_v40  ;;  %18911 = vst [vmem:[#allocation35_spill] sm:$0xff] %v14163_v5 }
 0x344   :  { %v3047_v57 = vpop.f32.mrf.mxu1 }
 0x345   :  { %v3502_v22 = vadd.f32 %v3501_v38, %v14153_v34  ;;  %v3337_v15 = vadd.f32 %v10942_v30, %v3047_v57  ;;  %v10950_v38 = vpop.f32.mrf.mxu0 }
 0x346   :  { %v3049_v52 = vpop.f32.mrf.mxu1 }
 0x347   :  { %v18910_v52 = vld [vmem:[#allocation30_spill] sm:$0xff]  ;;  %v3503_v42 = vadd.f32 %v3502_v22, %v14157_v9  ;;  %v14170_v8 = vadd.f32 %v3337_v15, %v18913_v3 }
 0x348   :  { %v3050_v46 = vpop.f32.mrf.mxu1  ;;  %v2561_v20 = vadd.f32 %v13900_v33, %v18910_v52  ;;  %v18919_v22 = vld [vmem:[#allocation86_spill] sm:$0xff] }
 0x349   :  { %v3340_v28 = vadd.f32 %v10943_v58, %v3050_v46  ;;  %v3504_v56 = vadd.f32 %v3503_v42, %v14163_v5  ;;  %18914 = vst [vmem:[#allocation26_spill] sm:$0xff] %v14170_v8 }
 0x34a   :  { %v3052_v27 = vpop.f32.mrf.mxu1  ;;  %v14166_v29 = vadd.f32 %v3332_v23, %v2561_v20  ;;  %v18917_v23 = vld [vmem:[#allocation83_spill] sm:$0xff]  ;;  %v18918_v20 = vld [vmem:[#allocation45_spill] sm:$0xff] }
 0x34b   :  { %v14174_v57 = vadd.f32 %v3340_v28, %v18915_v14  ;;  %v2577_v58 = vadd.f32 %v18918_v20, %v18917_v23 }
 0x34c   :  { %v3055_v32 = vpop.f32.mrf.mxu1  ;;  %18912 = vst [vmem:[#allocation94_spill] sm:$0xff] %v14166_v29  ;;  %v3505_v18 = vadd.f32 %v3504_v56, %v14166_v29 }
 0x34d   :  { %v3345_v33 = vadd.f32 %v3344_v54, %v3055_v32  ;;  %18916 = vst [vmem:[#allocation37_spill] sm:$0xff] %v14174_v57  ;;  %v3360_v54 = vpop.f32.mrf.mxu0 }
 0x34e   :  { %v3057_v11 = vpop.f32.mrf.mxu1  ;;  %v3506_v46 = vadd.f32 %v3505_v18, %v14170_v8 }
 0x34f   :  { %v14180_v11 = vadd.f32 %v3345_v33, %v18919_v22  ;;  %v10951_v23 = vpop.f32.mrf.mxu0  ;;  %v18924_v33 = vld [vmem:[#allocation22_spill] sm:$0xff] }
 0x350   :  { %v3058_v50 = vpop.f32.mrf.mxu1  ;;  %v3507_v32 = vadd.f32 %v3506_v46, %v14174_v57 }
 0x351   :  { %v3348_v30 = vadd.f32 %v3347_v13, %v3058_v50  ;;  %18920 = vst [vmem:[#allocation23_spill] sm:$0xff] %v14180_v11  ;;  %v18922_v50 = vld [vmem:[#allocation42_spill] sm:$0xff] }
 0x352   :  { %v3060_v27 = vpop.f32.mrf.mxu1  ;;  %v3508_v28 = vadd.f32 %v3507_v32, %v14180_v11  ;;  %v18926_v11 = vld [vmem:[#allocation78_spill] sm:$0xff] }
 0x353   :  { %v14183_v3 = vadd.f32 %v3348_v30, %v2577_v58  ;;  %v3363_v30 = vpop.f32.mrf.mxu0 }
 0x354   :  { %v3063_v52 = vpop.f32.mrf.mxu1 }
 0x355   :  { %v3353_v15 = vadd.f32 %v10946_v31, %v3063_v52  ;;  %18921 = vst [vmem:[#allocation50_spill] sm:$0xff] %v14183_v3  ;;  %v3509_v18 = vadd.f32 %v3508_v28, %v14183_v3  ;;  %v10954_v3 = vpop.f32.mrf.mxu0 }
 0x356   :  { %v3065_v42 = vpop.f32.mrf.mxu1 }
 0x357   :  { %v14187_v13 = vadd.f32 %v3353_v15, %v18922_v50  ;;  %v18925_v42 = vld [vmem:[#allocation65_spill] sm:$0xff]  ;;  %v18927_v15 = vld [vmem:[#allocation14_spill] sm:$0xff] }
 0x358   :  { %v3066_v56 = vpop.f32.mrf.mxu1  ;;  %v2593_v50 = vadd.f32 %v18927_v15, %v18926_v11  ;;  %v18930_v15 = vld [vmem:[#allocation11_spill] sm:$0xff] }
 0x359   :  { %18923 = vst [vmem:[#allocation96_spill] sm:$0xff] %v14187_v13  ;;  %v3356_v27 = vadd.f32 %v10947_v16, %v3066_v56  ;;  %v3510_v52 = vadd.f32 %v3509_v18, %v14187_v13  ;;  %v18928_v18 = vld [vmem:[#allocation89_spill] sm:$0xff] }
 0x35a   :  { %v3068_v14 = vpop.f32.mrf.mxu1 }
 0x35b   :  { %v3446_v20 = vadd.f32 %v3356_v27, %v18924_v33 }
 0x35c   :  { %v3071_v31 = vpop.f32.mrf.mxu1 }
 0x35d   :  { %v3361_v22 = vadd.f32 %v3360_v54, %v3071_v31  ;;  %v3511_v58 = vadd.f32 %v3510_v52, %v3446_v20 }
 0x35e   :  { %v3073_v46 = vpop.f32.mrf.mxu1 }
 0x35f   :  { %v3447_v57 = vadd.f32 %v3361_v22, %v18925_v42  ;;  %v3376_v46 = vpop.f32.mrf.mxu0  ;;  %v18929_v42 = vld [vmem:[#allocation47_spill] sm:$0xff] }
 0x360   :  { %v3074_v32 = vpop.f32.mrf.mxu1 }
 0x361   :  { %v3512_v16 = vadd.f32 %v3511_v58, %v3447_v57  ;;  %v3364_v56 = vadd.f32 %v3363_v30, %v3074_v32  ;;  %v10955_v11 = vpop.f32.mrf.mxu0 }
 0x362   :  { %v3076_v14 = vpop.f32.mrf.mxu1 }
 0x363   :  { %v3448_v8 = vadd.f32 %v3364_v56, %v2593_v50  ;;  %v3379_v56 = vpop.f32.mrf.mxu0 }
 0x364   :  { %v3079_v28 = vpop.f32.mrf.mxu1 }
 0x365   :  { %v3513_v27 = vadd.f32 %v3512_v16, %v3448_v8  ;;  %v3369_v33 = vadd.f32 %v10950_v38, %v3079_v28  ;;  %v18931_v38 = vld [vmem:[#allocation85_spill] sm:$0xff] }
 0x366   :  { %v3081_v29 = vpop.f32.mrf.mxu1 }
 0x367   :  { %v3449_v54 = vadd.f32 %v3369_v33, %v18928_v18  ;;  %v18932_v29 = vld [vmem:[#allocation93_spill] sm:$0xff] }
 0x368   :  { %v3082_v31 = vpop.f32.mrf.mxu1  ;;  %v2609_v14 = vadd.f32 %v18932_v29, %v18931_v38 }
 0x369   :  { %v3514_v52 = vadd.f32 %v3513_v27, %v3449_v54  ;;  %v3372_v13 = vadd.f32 %v10951_v23, %v3082_v31 }
 0x36a   :  { %v3084_v22 = vpop.f32.mrf.mxu1 }
 0x36b   :  { %v3450_v5 = vadd.f32 %v3372_v13, %v18929_v42  ;;  %v18933_v42 = vld [vmem:[#allocation73_spill] sm:$0xff] }
 0x36c   :  { %v3087_v9 = vpop.f32.mrf.mxu1 }
 0x36d   :  { %v3515_v58 = vadd.f32 %v3514_v52, %v3450_v5  ;;  %v3377_v30 = vadd.f32 %v3376_v46, %v3087_v9 }
 0x36e   :  { %v3089_v32 = vpop.f32.mrf.mxu1 }
 0x36f   :  { %v3451_v50 = vadd.f32 %v3377_v30, %v18930_v15  ;;  %v18934_v30 = vld [vmem:[#allocation48_spill] sm:$0xff] }
 0x370   :  { %v3090_v16 = vpop.f32.mrf.mxu1 }
 0x371   :  { %v3516_v28 = vadd.f32 %v3515_v58, %v3451_v50  ;;  %v3380_v33 = vadd.f32 %v3379_v56, %v3090_v16 }
 0x372   :  { %v3092_v18 = vpop.f32.mrf.mxu1 }
 0x373   :  { %v3452_v27 = vadd.f32 %v3380_v33, %v2609_v14  ;;  %v18944_v18 = vld [vmem:[#allocation16_spill] sm:$0xff] }
 0x374   :  { %v3095_v23 = vpop.f32.mrf.mxu1 }
 0x375   :  { %v3517_v31 = vadd.f32 %v3516_v28, %v3452_v27  ;;  %v3385_v22 = vadd.f32 %v10954_v3, %v3095_v23 }
 0x376   :  { %v3097_v13 = vpop.f32.mrf.mxu1 }
 0x377   :  { %v3453_v34 = vadd.f32 %v3385_v22, %v18933_v42 }
 0x378   :  { %v3098_v52 = vpop.f32.mrf.mxu1 }
 0x379   :  { %v3518_v9 = vadd.f32 %v3517_v31, %v3453_v34  ;;  %v3388_v46 = vadd.f32 %v10955_v11, %v3098_v52 }
 0x37a   :  { %v3100_v32 = vpop.f32.mrf.mxu1 }
 0x37b   :  { %v3454_v15 = vadd.f32 %v3388_v46, %v18934_v30 }
 0x37d   :  { %v3519_v40 = vadd.f32 %v3518_v9, %v3454_v15 }
 0x37f   :  { %v3520_v2 = vrot.slane %v3519_v40, 4 }
 0x381   :  { %v3521_v36 = vadd.f32 %v3520_v2, %v3519_v40 }
 0x383   :  { %v3522_v38 = vrot.slane %v3521_v36, 2 }
 0x385   :  { %v3523_v58 = vadd.f32 %v3522_v38, %v3521_v36 }
 0x387   :  { %v3524_v56 = vrot.slane %v3523_v58, 1 }
 0x389   :  { %v3525_v16 = vadd.f32 %v3524_v56, %v3523_v58 }
 0x38b   :  { %v14202_v29 = vmul.f32 0.001953125, %v3525_v16 }
 0x38d   :  { %v14205_v3 = vsub.f32 %v3446_v20, %v14202_v29  ;;  %v14208_v14 = vsub.f32 %v3447_v57, %v14202_v29  ;;  %v14211_v11 = vsub.f32 %v3448_v8, %v14202_v29  ;;  %v14214_v28 = vsub.f32 %v3449_v54, %v14202_v29  ;;  %v18943_v54 = vld [vmem:[#allocation13_spill] sm:$0xff] }
 0x38e   :  { %v14217_v2 = vsub.f32 %v3450_v5, %v14202_v29  ;;  %v14220_v36 = vsub.f32 %v3451_v50, %v14202_v29  ;;  %v14223_v40 = vsub.f32 %v3452_v27, %v14202_v29  ;;  %v14226_v20 = vsub.f32 %v3453_v34, %v14202_v29 }
 0x38f   :  { %18935 = vst [vmem:[#allocation28_spill] sm:$0xff] %v14205_v3  ;;  %18936 = vst [vmem:[#allocation25_spill] sm:$0xff] %v14208_v14  ;;  %v14229_v57 = vsub.f32 %v3454_v15, %v14202_v29  ;;  %v14233_v8 = vsub.f32 %v13954_v12, %v14202_v29  ;;  %v14237_v5 = vsub.f32 %v18943_v54, %v14202_v29  ;;  %v18945_v12 = vld [vmem:[#allocation91_spill] sm:$0xff] }
 0x390   :  { %18937 = vst [vmem:[#allocation38_spill] sm:$0xff] %v14211_v11  ;;  %18938 = vst [vmem:[#allocation99_spill] sm:$0xff] %v14214_v28  ;;  %v14241_v50 = vsub.f32 %v13949_v7, %v14202_v29  ;;  %v14249_v27 = vsub.f32 %v18944_v18, %v14202_v29  ;;  %v14253_v23 = vsub.f32 %v18945_v12, %v14202_v29 }
 0x391   :  { %18939 = vst [vmem:[#allocation12_spill] sm:$0xff] %v14217_v2  ;;  %18940 = vst [vmem:[#allocation40_spill] sm:$0xff] %v14220_v36  ;;  %v3591_v33 = vmul.f32 %v14233_v8, %v14233_v8  ;;  %v3592_v34 = vmul.f32 %v14237_v5, %v14237_v5  ;;  %v14259_v7 = vsub.f32 %v13979_v47, %v14202_v29 }
 0x392   :  { %18941 = vst [vmem:[#allocation29_spill] sm:$0xff] %v14223_v40  ;;  %18942 = vst [vmem:[#allocation51_spill] sm:$0xff] %v14226_v20  ;;  %v3593_v31 = vmul.f32 %v14241_v50, %v14241_v50  ;;  %v3594_v13 = vmul.f32 %v14249_v27, %v14249_v27  ;;  %v14265_v52 = vsub.f32 %v13968_v10, %v14202_v29 }
 0x393   :  { %v3655_v22 = vadd.f32 %v3592_v34, %v3591_v33  ;;  %v3595_v9 = vmul.f32 %v14253_v23, %v14253_v23  ;;  %v14271_v32 = vsub.f32 %v13975_v4, %v14202_v29  ;;  %v3596_v47 = vmul.f32 %v14259_v7, %v14259_v7 }
 0x394   :  { %v14277_v15 = vsub.f32 %v13988_v24, %v14202_v29  ;;  %v3597_v10 = vmul.f32 %v14265_v52, %v14265_v52  ;;  %v14283_v58 = vsub.f32 %v13994_v25, %v14202_v29  ;;  %v14289_v16 = vsub.f32 %v13985_v6, %v14202_v29 }
 0x395   :  { %v3656_v42 = vadd.f32 %v3655_v22, %v3593_v31  ;;  %v3598_v4 = vmul.f32 %v14271_v32, %v14271_v32  ;;  %v14295_v33 = vsub.f32 %v13991_v51, %v14202_v29  ;;  %v14301_v18 = vsub.f32 %v14001_v0, %v14202_v29 }
 0x396   :  { %v3599_v24 = vmul.f32 %v14277_v15, %v14277_v15  ;;  %v3600_v25 = vmul.f32 %v14283_v58, %v14283_v58  ;;  %v3601_v6 = vmul.f32 %v14289_v16, %v14289_v16  ;;  %v14307_v31 = vsub.f32 %v14007_v37, %v14202_v29 }
 0x397   :  { %v3657_v46 = vadd.f32 %v3656_v42, %v3594_v13  ;;  %v3602_v51 = vmul.f32 %v14295_v33, %v14295_v33  ;;  %v14313_v13 = vsub.f32 %v13998_v35, %v14202_v29  ;;  %v3603_v0 = vmul.f32 %v14301_v18, %v14301_v18 }
 0x398   :  { %v3604_v37 = vmul.f32 %v14307_v31, %v14307_v31 }
 0x399   :  { %v3658_v30 = vadd.f32 %v3657_v46, %v3595_v9  ;;  %v14319_v9 = vsub.f32 %v14004_v63, %v14202_v29  ;;  %v3605_v35 = vmul.f32 %v14313_v13, %v14313_v13 }
 0x39b   :  { %v3659_v38 = vadd.f32 %v3658_v30, %v3596_v47  ;;  %v14325_v47 = vsub.f32 %v14010_v26, %v14202_v29  ;;  %v3606_v63 = vmul.f32 %v14319_v9, %v14319_v9 }
 0x39d   :  { %v3660_v56 = vadd.f32 %v3659_v38, %v3597_v10  ;;  %v14331_v10 = vsub.f32 %v14014_v39, %v14202_v29  ;;  %v3607_v26 = vmul.f32 %v14325_v47, %v14325_v47 }
 0x39f   :  { %v3661_v54 = vadd.f32 %v3660_v56, %v3598_v4  ;;  %v14337_v4 = vsub.f32 %v14017_v1, %v14202_v29  ;;  %v3608_v39 = vmul.f32 %v14331_v10, %v14331_v10 }
 0x3a1   :  { %v3662_v34 = vadd.f32 %v3661_v54, %v3599_v24  ;;  %v14343_v24 = vsub.f32 %v14020_v53, %v14202_v29  ;;  %v3609_v1 = vmul.f32 %v14337_v4, %v14337_v4 }
 0x3a3   :  { %v3663_v12 = vadd.f32 %v3662_v34, %v3600_v25  ;;  %v14349_v25 = vsub.f32 %v14023_v43, %v14202_v29  ;;  %v3610_v53 = vmul.f32 %v14343_v24, %v14343_v24 }
 0x3a5   :  { %v3664_v22 = vadd.f32 %v3663_v12, %v3601_v6  ;;  %v14355_v6 = vsub.f32 %v14029_v62, %v14202_v29  ;;  %v3611_v43 = vmul.f32 %v14349_v25, %v14349_v25 }
 0x3a7   :  { %v3665_v42 = vadd.f32 %v3664_v22, %v3602_v51  ;;  %v14361_v51 = vsub.f32 %v14033_v44, %v14202_v29  ;;  %v3612_v62 = vmul.f32 %v14355_v6, %v14355_v6 }
 0x3a9   :  { %v3666_v46 = vadd.f32 %v3665_v42, %v3603_v0  ;;  %v18946_v0 = vld [vmem:[#allocation79_spill] sm:$0xff]  ;;  %v3613_v44 = vmul.f32 %v14361_v51, %v14361_v51 }
 0x3aa   :  { %v14367_v42 = vsub.f32 %v18946_v0, %v14202_v29  ;;  %v18947_v0 = vld [vmem:[#allocation17_spill] sm:$0xff] }
 0x3ab   :  { %v3667_v30 = vadd.f32 %v3666_v46, %v3604_v37  ;;  %v14373_v46 = vsub.f32 %v14041_v61, %v14202_v29 }
 0x3ad   :  { %v3668_v38 = vadd.f32 %v3667_v30, %v3605_v35  ;;  %v14379_v30 = vsub.f32 %v14046_v45, %v14202_v29  ;;  %v3615_v61 = vmul.f32 %v14373_v46, %v14373_v46 }
 0x3af   :  { %v3669_v56 = vadd.f32 %v3668_v38, %v3606_v63  ;;  %v3614_v63 = vmul.f32 %v14367_v42, %v14367_v42  ;;  %v3616_v45 = vmul.f32 %v14379_v30, %v14379_v30 }
 0x3b1   :  { %v3670_v54 = vadd.f32 %v3669_v56, %v3607_v26  ;;  %v14385_v26 = vsub.f32 %v14050_v41, %v14202_v29 }
 0x3b3   :  { %v3671_v34 = vadd.f32 %v3670_v54, %v3608_v39  ;;  %v14391_v39 = vsub.f32 %v14054_v19, %v14202_v29  ;;  %v3617_v41 = vmul.f32 %v14385_v26, %v14385_v26 }
 0x3b5   :  { %v3672_v12 = vadd.f32 %v3671_v34, %v3609_v1  ;;  %v14397_v1 = vsub.f32 %v14058_v59, %v14202_v29  ;;  %v3618_v19 = vmul.f32 %v14391_v39, %v14391_v39 }
 0x3b7   :  { %v3673_v22 = vadd.f32 %v3672_v12, %v3610_v53  ;;  %v14403_v53 = vsub.f32 %v14063_v48, %v14202_v29  ;;  %v3619_v59 = vmul.f32 %v14397_v1, %v14397_v1 }
 0x3b9   :  { %v3674_v37 = vadd.f32 %v3673_v22, %v3611_v43  ;;  %v14409_v43 = vsub.f32 %v14067_v49, %v14202_v29  ;;  %v3620_v48 = vmul.f32 %v14403_v53, %v14403_v53 }
 0x3bb   :  { %v3675_v35 = vadd.f32 %v3674_v37, %v3612_v62  ;;  %v14415_v62 = vsub.f32 %v18947_v0, %v14202_v29  ;;  %v3621_v49 = vmul.f32 %v14409_v43, %v14409_v43 }
 0x3bd   :  { %v3676_v38 = vadd.f32 %v3675_v35, %v3613_v44  ;;  %v11348_v44 = vld [vmem:[#allocation3 + $0xf8] sm:$0xff]   ;;  %v14421_v35 = vsub.f32 %v14075_v21, %v14202_v29  ;;  %v18949_v21 = vld [vmem:[#allocation49_spill] sm:$0xff] }
 0x3be   :  { %7110 = vmatpush1.bf16.msra.mxu0 %v11348_v44 }
 0x3bf   :  { %v3677_v56 = vadd.f32 %v3676_v38, %v3614_v63  ;;  %v11347_v38 = vld [vmem:[#allocation3 + $0x178] sm:$0xff]  }
 0x3c0   :  { %10956 = vmatprep.subr.bf16.mxu1 %v11347_v38 }
 0x3c1   :  { %v3678_v54 = vadd.f32 %v3677_v56, %v3615_v61  ;;  %v14427_v61 = vsub.f32 %v14080_v55, %v14202_v29  ;;  %v3622_v56 = vmul.f32 %v14415_v62, %v14415_v62  ;;  %10957 = vmatpush3.bf16.msra.mxu1 %v11347_v38  ;;  %v18950_v55 = vld [vmem:[#allocation92_spill] sm:$0xff]  ;;  %v18952_v38 = vld [vmem:[#allocation19_spill] sm:$0xff] }
 0x3c3   :  { %v3679_v34 = vadd.f32 %v3678_v54, %v3616_v45  ;;  %v18948_v54 = vmov 0  }
 0x3c4   :  { %7111 = vmatprep.subr.bf16.mxu0 %v18948_v54 }
 0x3c5   :  { %v3680_v12 = vadd.f32 %v3679_v34, %v3617_v41  ;;  %v11349_v41 = vld [vmem:[#allocation3 + $0xf0] sm:$0xff]   ;;  %v14434_v34 = vsub.f32 %v18949_v21, %v14202_v29  ;;  %v11351_v21 = vld [vmem:[#allocation3 + $0xe0] sm:$0xff]  }
 0x3c6   :  { %7112 = vmatpush1.bf16.msra.mxu0 %v11349_v41 }
 0x3c7   :  { %v3681_v22 = vadd.f32 %v3680_v12, %v3618_v19  ;;  %v3623_v19 = vmul.f32 %v14421_v35, %v14421_v35  ;;  %7113 = vmatprep.subr.bf16.mxu0 %v18948_v54 }
 0x3c9   :  { %v3682_v37 = vadd.f32 %v3681_v22, %v3619_v59  ;;  %v14440_v59 = vsub.f32 %v18950_v55, %v14202_v29  ;;  %v3624_v22 = vmul.f32 %v14427_v61, %v14427_v61 }
 0x3cb   :  { %v3683_v63 = vadd.f32 %v3682_v37, %v3620_v48  ;;  %v11350_v48 = vld [vmem:[#allocation3 + $0xe8] sm:$0xff]   ;;  %v18951_v37 = vld [vmem:[#allocation57_spill] sm:$0xff] }
 0x3cc   :  { %v14447_v44 = vsub.f32 %v18951_v37, %v14202_v29  ;;  %7114 = vmatpush1.bf16.msra.mxu0 %v11350_v48 }
 0x3cd   :  { %v3684_v45 = vadd.f32 %v3683_v63, %v3621_v49  ;;  %v3625_v49 = vmul.f32 %v14434_v34, %v14434_v34  ;;  %7115 = vmatprep.subr.bf16.mxu0 %v18948_v54 }
 0x3ce   :  { %v3627_v55 = vmul.f32 %v14447_v44, %v14447_v44 }
 0x3cf   :  { %v3685_v12 = vadd.f32 %v3684_v45, %v3622_v56  ;;  %v14453_v56 = vsub.f32 %v18952_v38, %v14202_v29  ;;  %v3626_v45 = vmul.f32 %v14440_v59, %v14440_v59  ;;  %v14473_v38 = vsub.f32 %v14112_v60, %v14202_v29 }
 0x3d0   :  { %7116 = vmatpush1.bf16.msra.mxu0 %v11351_v21  ;;  %v14486_v60 = vsub.f32 %v14123_v17, %v14202_v29 }
 0x3d1   :  { %v3686_v0 = vadd.f32 %v3685_v12, %v3623_v19  ;;  %18953 = vst [vmem:[#allocation101_spill] sm:$0xff] %v14453_v56  ;;  %v18954_v19 = vld [vmem:[#allocation32_spill] sm:$0xff]  ;;  %v3628_v37 = vmul.f32 %v14453_v56, %v14453_v56  ;;  %7117 = vmatprep.subr.bf16.mxu0 %v18948_v54  ;;  %18958 = vst [vmem:[#allocation98_spill] sm:$0xff] %v14473_v38 }
 0x3d2   :  { %v14460_v12 = vsub.f32 %v18954_v19, %v14202_v29  ;;  %18961 = vst [vmem:[#allocation52_spill] sm:$0xff] %v14486_v60 }
 0x3d3   :  { %v3687_v63 = vadd.f32 %v3686_v0, %v3624_v22  ;;  %v18956_v0 = vld [vmem:[#allocation95_spill] sm:$0xff] }
 0x3d4   :  { %18955 = vst [vmem:[#allocation15_spill] sm:$0xff] %v14460_v12  ;;  %v14466_v48 = vsub.f32 %v18956_v0, %v14202_v29  ;;  %v3629_v19 = vmul.f32 %v14460_v12, %v14460_v12  ;;  %v3631_v12 = vmul.f32 %v14473_v38, %v14473_v38  ;;  %v3633_v38 = vmul.f32 %v14486_v60, %v14486_v60 }
 0x3d5   :  { %v3688_v41 = vadd.f32 %v3687_v63, %v3625_v49  ;;  %v11353_v63 = vld [vmem:[#allocation3 + $0xd8] sm:$0xff]  }
 0x3d6   :  { %18957 = vst [vmem:[#allocation41_spill] sm:$0xff] %v14466_v48  ;;  %7118 = vmatpush1.bf16.msra.mxu0 %v11353_v63  ;;  %v3630_v0 = vmul.f32 %v14466_v48, %v14466_v48  ;;  %v18964_v48 = vld [vmem:[#allocation67_spill] sm:$0xff] }
 0x3d7   :  { %v3689_v22 = vadd.f32 %v3688_v41, %v3626_v45  ;;  %v18959_v41 = vld [vmem:[#allocation20_spill] sm:$0xff]  ;;  %7119 = vmatprep.subr.bf16.mxu0 %v18948_v54  ;;  %v14499_v17 = vsub.f32 %v18964_v48, %v14202_v29 }
 0x3d8   :  { %v14479_v21 = vsub.f32 %v18959_v41, %v14202_v29 }
 0x3d9   :  { %v3690_v49 = vadd.f32 %v3689_v22, %v3627_v55  ;;  %v11354_v22 = vld [vmem:[#allocation3 + $0xd0] sm:$0xff]   ;;  %18965 = vst [vmem:[#allocation103_spill] sm:$0xff] %v14499_v17  ;;  %v3635_v60 = vmul.f32 %v14499_v17, %v14499_v17 }
 0x3da   :  { %18960 = vst [vmem:[#allocation43_spill] sm:$0xff] %v14479_v21  ;;  %7120 = vmatpush1.bf16.msra.mxu0 %v11354_v22  ;;  %v3632_v41 = vmul.f32 %v14479_v21, %v14479_v21  ;;  %v18968_v21 = vld [vmem:[#allocation59_spill] sm:$0xff] }
 0x3db   :  { %v3691_v45 = vadd.f32 %v3690_v49, %v3628_v37  ;;  %v18962_v49 = vld [vmem:[#allocation34_spill] sm:$0xff]  ;;  %7121 = vmatprep.subr.bf16.mxu0 %v18948_v54  ;;  %v14512_v48 = vsub.f32 %v18968_v21, %v14202_v29 }
 0x3dc   :  { %v14492_v63 = vsub.f32 %v18962_v49, %v14202_v29 }
 0x3dd   :  { %v3692_v55 = vadd.f32 %v3691_v45, %v3629_v19  ;;  %v11355_v45 = vld [vmem:[#allocation3 + $0xc8] sm:$0xff]   ;;  %18969 = vst [vmem:[#allocation53_spill] sm:$0xff] %v14512_v48  ;;  %v3637_v17 = vmul.f32 %v14512_v48, %v14512_v48 }
 0x3de   :  { %18963 = vst [vmem:[#allocation100_spill] sm:$0xff] %v14492_v63  ;;  %7122 = vmatpush1.bf16.msra.mxu0 %v11355_v45  ;;  %v3634_v49 = vmul.f32 %v14492_v63, %v14492_v63  ;;  %v18972_v63 = vld [vmem:[#allocation35_spill] sm:$0xff] }
 0x3df   :  { %v3693_v37 = vadd.f32 %v3692_v55, %v3630_v0  ;;  %v18966_v55 = vld [vmem:[#allocation97_spill] sm:$0xff]  ;;  %7123 = vmatprep.subr.bf16.mxu0 %v18948_v54  ;;  %v14525_v21 = vsub.f32 %v18972_v63, %v14202_v29  ;;  %v11359_v63 = vld [vmem:[#allocation3 + $0x130] sm:$0xff]  }
 0x3e0   :  { %v14505_v22 = vsub.f32 %v18966_v55, %v14202_v29 }
 0x3e1   :  { %v3694_v19 = vadd.f32 %v3693_v37, %v3631_v12  ;;  %v11356_v37 = vld [vmem:[#allocation3 + $0xc0] sm:$0xff]   ;;  %18973 = vst [vmem:[#allocation102_spill] sm:$0xff] %v14525_v21 }
 0x3e2   :  { %18967 = vst [vmem:[#allocation46_spill] sm:$0xff] %v14505_v22  ;;  %7124 = vmatpush1.bf16.msra.mxu0 %v11356_v37  ;;  %v3636_v55 = vmul.f32 %v14505_v22, %v14505_v22  ;;  %v18974_v37 = vld [vmem:[#allocation94_spill] sm:$0xff] }
 0x3e3   :  { %v3695_v0 = vadd.f32 %v3694_v19, %v3632_v41  ;;  %v18970_v19 = vld [vmem:[#allocation71_spill] sm:$0xff]  ;;  %7125 = vmatprep.subr.bf16.mxu0 %v18948_v54  ;;  %v18976_v22 = vld [vmem:[#allocation26_spill] sm:$0xff] }
 0x3e4   :  { %v14518_v45 = vsub.f32 %v18970_v19, %v14202_v29  ;;  %v14531_v19 = vsub.f32 %v18974_v37, %v14202_v29  ;;  %v14538_v56 = vsub.f32 %v18976_v22, %v14202_v29  ;;  %v18978_v37 = vld [vmem:[#allocation37_spill] sm:$0xff]  ;;  %v11360_v22 = vld [vmem:[#allocation3 + $0x128] sm:$0xff]  }
 0x3e5   :  { %v3696_v12 = vadd.f32 %v3695_v0, %v3633_v38  ;;  %v11358_v0 = vld [vmem:[#allocation3 + $0x138] sm:$0xff]   ;;  %v14544_v48 = vsub.f32 %v18978_v37, %v14202_v29  ;;  %v11361_v37 = vld [vmem:[#allocation3 + $0x120] sm:$0xff]  }
 0x3e6   :  { %18971 = vst [vmem:[#allocation105_spill] sm:$0xff] %v14518_v45  ;;  %7126 = vmatpush2.bf16.msra.mxu0 %v11358_v0  ;;  %18975 = vst [vmem:[#allocation54_spill] sm:$0xff] %v14531_v19  ;;  %v11357_v0 = vld [vmem:[#allocation3 + $0x168] sm:$0xff]  }
 0x3e7   :  { %v3697_v41 = vadd.f32 %v3696_v12, %v3634_v49  ;;  %v11352_v12 = vld [vmem:[#allocation3 + $0x170] sm:$0xff]   ;;  %7127 = vmatprep.subr.bf16.mxu0 %v18948_v54  ;;  %18977 = vst [vmem:[#allocation104_spill] sm:$0xff] %v14538_v56 }
 0x3e8   :  { %10958 = vmatprep.subr.bf16.mxu1 %v11352_v12 }
 0x3e9   :  { %v3698_v38 = vadd.f32 %v3697_v41, %v3635_v60  ;;  %v3638_v60 = vmul.f32 %v14518_v45, %v14518_v45  ;;  %10959 = vmatpush3.bf16.msra.mxu1 %v11352_v12  ;;  %v18979_v12 = vld [vmem:[#allocation23_spill] sm:$0xff] }
 0x3ea   :  { %7128 = vmatpush2.bf16.msra.mxu0 %v11359_v63  ;;  %10960 = vmatprep.subr.bf16.mxu1 %v11357_v0  ;;  %v14551_v45 = vsub.f32 %v18979_v12, %v14202_v29  ;;  %v11362_v63 = vld [vmem:[#allocation3 + $0x160] sm:$0xff]   ;;  %v18982_v12 = vld [vmem:[#allocation96_spill] sm:$0xff] }
 0x3eb   :  { %v3699_v49 = vadd.f32 %v3698_v38, %v3636_v55  ;;  %v3639_v55 = vmul.f32 %v14525_v21, %v14525_v21  ;;  %7129 = vmatprep.subr.bf16.mxu0 %v18948_v54  ;;  %v18981_v21 = vld [vmem:[#allocation50_spill] sm:$0xff] }
 0x3ec   :  { %18980 = vst [vmem:[#allocation107_spill] sm:$0xff] %v14551_v45 }
 0x3ed   :  { %v3700_v41 = vadd.f32 %v3699_v49, %v3637_v17  ;;  %v3640_v17 = vmul.f32 %v14531_v19, %v14531_v19  ;;  %10961 = vmatpush3.bf16.msra.mxu1 %v11357_v0  ;;  %v14557_v19 = vsub.f32 %v18981_v21, %v14202_v29  ;;  %v11365_v0 = vld [vmem:[#allocation3 + $0x158] sm:$0xff]   ;;  %v11367_v21 = vld [vmem:[#allocation3 + $0x150] sm:$0xff]  }
 0x3ee   :  { %7130 = vmatpush2.bf16.msra.mxu0 %v11360_v22  ;;  %10962 = vmatprep.subr.bf16.mxu1 %v11362_v63  ;;  %v11363_v22 = vld [vmem:[#allocation3 + $0x118] sm:$0xff]  }
 0x3ef   :  { %v3701_v38 = vadd.f32 %v3700_v41, %v3638_v60  ;;  %v3641_v60 = vmul.f32 %v14538_v56, %v14538_v56  ;;  %7131 = vmatprep.subr.bf16.mxu0 %v18948_v54  ;;  %v14564_v56 = vsub.f32 %v18982_v12, %v14202_v29  ;;  %v11368_v12 = vld [vmem:[#allocation3 + $0x148] sm:$0xff]  }
 0x3f1   :  { %v3702_v49 = vadd.f32 %v3701_v38, %v3639_v55  ;;  %v3642_v55 = vmul.f32 %v14544_v48, %v14544_v48  ;;  %10963 = vmatpush3.bf16.msra.mxu1 %v11362_v63  ;;  %18983 = vst [vmem:[#allocation55_spill] sm:$0xff] %v14564_v56  ;;  %v3645_v63 = vmul.f32 %v14564_v56, %v14564_v56 }
 0x3f2   :  { %10964 = vmatprep.subr.bf16.mxu1 %v11365_v0  ;;  %7132 = vmatpush2.bf16.msra.mxu0 %v11361_v37 }
 0x3f3   :  { %v3703_v41 = vadd.f32 %v3702_v49, %v3640_v17  ;;  %v3643_v17 = vmul.f32 %v14551_v45, %v14551_v45  ;;  %7133 = vmatprep.subr.bf16.mxu0 %v18948_v54  ;;  %v11364_v45 = vld [vmem:[#allocation3 + $0x110] sm:$0xff]  }
 0x3f5   :  { %v3704_v38 = vadd.f32 %v3703_v41, %v3641_v60  ;;  %v3644_v60 = vmul.f32 %v14557_v19, %v14557_v19  ;;  %10965 = vmatpush3.bf16.msra.mxu1 %v11365_v0  ;;  %v11370_v0 = vld [vmem:[#allocation3 + $0x140] sm:$0xff]  }
 0x3f6   :  { %10966 = vmatprep.subr.bf16.mxu1 %v11367_v21  ;;  %7134 = vmatpush2.bf16.msra.mxu0 %v11363_v22 }
 0x3f7   :  { %v3705_v49 = vadd.f32 %v3704_v38, %v3642_v55  ;;  %v3646_v55 = vmul.f32 %v14205_v3, %v14205_v3  ;;  %7135 = vmatprep.subr.bf16.mxu0 %v18948_v54  ;;  %v3647_v38 = vmul.f32 %v14208_v14, %v14208_v14  ;;  %v19001_v14 = vld [vmem:[#allocation98_spill] sm:$0xff] }
 0x3f9   :  { %v3706_v41 = vadd.f32 %v3705_v49, %v3643_v17  ;;  %10967 = vmatpush3.bf16.msra.mxu1 %v11367_v21  ;;  %v11366_v49 = vld [vmem:[#allocation3 + $0x108] sm:$0xff]   ;;  %v11369_v21 = vld [vmem:[#allocation3 + $0x100] sm:$0xff]  }
 0x3fa   :  { %10968 = vmatprep.subr.bf16.mxu1 %v11368_v12  ;;  %7136 = vmatpush2.bf16.msra.mxu0 %v11364_v45  ;;  %v3651_v45 = vmul.f32 %v14220_v36, %v14220_v36 }
 0x3fb   :  { %v3707_v29 = vadd.f32 %v3706_v41, %v3644_v60  ;;  %v3648_v60 = vmul.f32 %v14211_v11, %v14211_v11  ;;  %7137 = vmatprep.subr.bf16.mxu0 %v18948_v54  ;;  %v3649_v41 = vmul.f32 %v14214_v28, %v14214_v28 }
 0x3fd   :  { %v3708_v37 = vadd.f32 %v3707_v29, %v3645_v63  ;;  %10969 = vmatpush3.bf16.msra.mxu1 %v11368_v12  ;;  %v3650_v29 = vmul.f32 %v14217_v2, %v14217_v2  ;;  %v14589_v12 = vld [vmem:[#allocation3 + $0xb8] sm:$0xff]  }
 0x3fe   :  { %10970 = vmatprep.subr.bf16.mxu1 %v11370_v0  ;;  %7138 = vmatpush2.bf16.msra.mxu0 %v11366_v49  ;;  %18984 = vst [vmem:[#allocation109_spill] sm:$0xff] %v14589_v12  ;;  %v3653_v49 = vmul.f32 %v14226_v20, %v14226_v20 }
 0x3ff   :  { %v3709_v17 = vadd.f32 %v3708_v37, %v3646_v55  ;;  %7139 = vmatprep.subr.bf16.mxu0 %v18948_v54 }
 0x401   :  { %v3710_v22 = vadd.f32 %v3709_v17, %v3647_v38  ;;  %10971 = vmatpush3.bf16.msra.mxu1 %v11370_v0  ;;  %v3652_v38 = vmul.f32 %v14223_v40, %v14223_v40  ;;  %v3654_v0 = vmul.f32 %v14229_v57, %v14229_v57 }
 0x402   :  { %7831 = vmatprep.subr.bf16.mxu1 %v18948_v54  ;;  %7140 = vmatpush2.bf16.msra.mxu0 %v11369_v21 }
 0x403   :  { %v3711_v63 = vadd.f32 %v3710_v22, %v3648_v60  ;;  %11036 = vmatprep.subr.bf16.mxu0 %v14589_v12  ;;  %v19000_v12 = vld [vmem:[#allocation41_spill] sm:$0xff] }
 0x405   :  { %v3712_v55 = vadd.f32 %v3711_v63, %v3649_v41 }
 0x407   :  { %v3713_v37 = vadd.f32 %v3712_v55, %v3650_v29 }
 0x409   :  { %v3714_v17 = vadd.f32 %v3713_v37, %v3651_v45  ;;  %v3728_v45 = vlaneseq }
 0x40b   :  { %v3715_v60 = vadd.f32 %v3714_v17, %v3652_v38  ;;  %v14598_v37 = vshrl.u32 %v3728_v45, 7  ;;  %v3455_v38 = vld [vmem:[%s18214_s3] sm:$0x1]  ;;  %v19002_v17 = vld [vmem:[#allocation43_spill] sm:$0xff]  ;;  %v19003_v45 = vld [vmem:[#allocation52_spill] sm:$0xff] }
 0x40d   :  { %v3716_v22 = vadd.f32 %v3715_v60, %v3653_v49  ;;  %18985 = vst [vmem:[#allocation106_spill] sm:$0xff] %v14598_v37  ;;  %v14604_v49 = vld [vmem:[#allocation2 + $0x1c] ss:$0 sps:$4 sm:$0xff]   ;;  %v14606_v60 = vld [vmem:[#allocation2 + $0x2c] ss:$0 sps:$4 sm:$0xff]   ;;  %v18997_v28 = vsub.s32 0, %v14598_v37 }
 0x40e   :  { %18986 = vst [vmem:[#allocation56_spill] sm:$0xff] %v14604_v49  ;;  %18987 = vst [vmem:[#allocation108_spill] sm:$0xff] %v14606_v60  ;;  %v19004_v37 = vld [vmem:[#allocation100_spill] sm:$0xff]  ;;  %v19020_v49 = vld [vmem:[#allocation25_spill] sm:$0xff] }
 0x40f   :  { %v3717_v41 = vadd.f32 %v3716_v22, %v3654_v0  ;;  %v14608_v0 = vld [vmem:[#allocation2 + $0x3c] ss:$0 sps:$4 sm:$0xff]   ;;  %v14610_v22 = vld [vmem:[#allocation2 + $0x4c] ss:$0 sps:$4 sm:$0xff]  }
 0x410   :  { %18988 = vst [vmem:[#allocation21_spill] sm:$0xff] %v14608_v0  ;;  %18989 = vst [vmem:[#allocation10_spill] sm:$0xff] %v14610_v22  ;;  %v19013_v22 = vld [vmem:[#allocation107_spill] sm:$0xff]  ;;  %v19018_v60 = vld [vmem:[#allocation28_spill] sm:$0xff] }
 0x411   :  { %v3718_v63 = vrot.slane %v3717_v41, 4  ;;  %v19016_v0 = vld [vmem:[#allocation55_spill] sm:$0xff] }
 0x413   :  { %v3719_v29 = vadd.f32 %v3718_v63, %v3717_v41  ;;  %v14620_v63 = vld [vmem:[#allocation2 + $0x9c] ss:$0 sps:$4 sm:$0xff]  }
 0x414   :  { %18994 = vst [vmem:[#allocation110_spill] sm:$0xff] %v14620_v63  ;;  %v19007_v63 = vld [vmem:[#allocation53_spill] sm:$0xff] }
 0x415   :  { %v3720_v21 = vrot.slane %v3719_v29, 2 }
 0x417   :  { %v3721_v55 = vadd.f32 %v3720_v21, %v3719_v29  ;;  %v14622_v29 = vld [vmem:[#allocation2 + $0xac] ss:$0 sps:$4 sm:$0xff]   ;;  %v14624_v21 = vld [vmem:[#allocation2 + $0xbc] ss:$0 sps:$4 sm:$0xff]  }
 0x418   :  { %18995 = vst [vmem:[#allocation63_spill] sm:$0xff] %v14622_v29  ;;  %18996 = vst [vmem:[#allocation69_spill] sm:$0xff] %v14624_v21  ;;  %v19005_v21 = vld [vmem:[#allocation103_spill] sm:$0xff]  ;;  %v19006_v29 = vld [vmem:[#allocation46_spill] sm:$0xff] }
 0x419   :  { %v3722_v54 = vrot.slane %v3721_v55, 1 }
 0x41b   :  { %v3723_v36 = vadd.f32 %v3722_v54, %v3721_v55  ;;  %v14618_v54 = vld [vmem:[#allocation2 + $0x8c] ss:$0 sps:$4 sm:$0xff]  }
 0x41c   :  { %18993 = vst [vmem:[#allocation60_spill] sm:$0xff] %v14618_v54  ;;  %v19008_v54 = vld [vmem:[#allocation105_spill] sm:$0xff] }
 0x41d   :  { %v3724_v2 = vmul.f32 0.001953125, %v3723_v36  ;;  %v14612_v36 = vld [vmem:[#allocation2 + $0x5c] ss:$0 sps:$4 sm:$0xff]  }
 0x41e   :  { %18990 = vst [vmem:[#allocation58_spill] sm:$0xff] %v14612_v36  ;;  %v19011_v36 = vld [vmem:[#allocation104_spill] sm:$0xff] }
 0x41f   :  { %v3725_v40 = vadd.f32 1e-05, %v3724_v2  ;;  %v14614_v2 = vld [vmem:[#allocation2 + $0x6c] ss:$0 sps:$4 sm:$0xff]  }
 0x420   :  { %18991 = vst [vmem:[#allocation111_spill] sm:$0xff] %v14614_v2  ;;  %v19010_v2 = vld [vmem:[#allocation54_spill] sm:$0xff] }
 0x421   :  { %11563 = vrsqrt.f32 %v3725_v40  ;;  %v14616_v40 = vld [vmem:[#allocation2 + $0x7c] ss:$0 sps:$4 sm:$0xff]  }
 0x422   :  { %18992 = vst [vmem:[#allocation9_spill] sm:$0xff] %v14616_v40  ;;  %v19009_v40 = vld [vmem:[#allocation102_spill] sm:$0xff] }
 0x42e   :  { %v11564_v41 = vpop.eup %11563 }
 0x42f   :  { %v3727_v55 = vmul.f32 %v11564_v41, %v3455_v38  ;;  %v14640_v38 = vld [vmem:[%s18214_s3 + $0x1] ss:$0 sm:$0xff] }
 0x431   :  { %v14632_v11 = vrot.slane %v3727_v55, %v18997_v28 }
 0x433   :  { %v3795_v55 = vmul.f32 %v14632_v11, %v14229_v57  ;;  %v14650_v3 = vmul.f32 %v14632_v11, %v14233_v8  ;;  %v14654_v56 = vmul.f32 %v14632_v11, %v14237_v5  ;;  %v14658_v41 = vmul.f32 %v14632_v11, %v14241_v50 }
 0x434   :  { %v14662_v20 = vmul.f32 %v14632_v11, %v14249_v27  ;;  %v14666_v28 = vmul.f32 %v14632_v11, %v14253_v23  ;;  %v14670_v57 = vmul.f32 %v14632_v11, %v14259_v7  ;;  %v14674_v8 = vmul.f32 %v14632_v11, %v14265_v52 }
 0x435   :  { %v3863_v5 = vadd.f32 %v14640_v38, %v3795_v55  ;;  %v14679_v50 = vmul.f32 %v14632_v11, %v14271_v32  ;;  %v14683_v27 = vmul.f32 %v14632_v11, %v14277_v15  ;;  %v14687_v23 = vmul.f32 %v14632_v11, %v14283_v58 }
 0x436   :  { %v14691_v7 = vmul.f32 %v14632_v11, %v14289_v16  ;;  %v14695_v52 = vmul.f32 %v14632_v11, %v14295_v33  ;;  %v14699_v32 = vmul.f32 %v14632_v11, %v14301_v18  ;;  %v14703_v15 = vmul.f32 %v14632_v11, %v14307_v31 }
 0x437   :  { %v3927_v55 = vmax.f32 %v3863_v5, 0.0  ;;  %v14707_v58 = vmul.f32 %v14632_v11, %v14313_v13  ;;  %v14711_v16 = vmul.f32 %v14632_v11, %v14319_v9  ;;  %v14715_v33 = vmul.f32 %v14632_v11, %v14325_v47 }
 0x438   :  { %v14719_v18 = vmul.f32 %v14632_v11, %v14331_v10  ;;  %v14723_v31 = vmul.f32 %v14632_v11, %v14337_v4  ;;  %v14727_v13 = vmul.f32 %v14632_v11, %v14343_v24  ;;  %v14731_v9 = vmul.f32 %v14632_v11, %v14349_v25 }
 0x439   :  { %v10475_v5 = vpack.c.bf16 %v3927_v55, %v3927_v55  ;;  %v14735_v47 = vmul.f32 %v14632_v11, %v14355_v6  ;;  %v14739_v10 = vmul.f32 %v14632_v11, %v14361_v51  ;;  %v14743_v4 = vmul.f32 %v14632_v11, %v14367_v42  ;;  %v18998_v55 = vld [vmem:[#allocation101_spill] sm:$0xff] }
 0x43a   :  { %v14747_v24 = vmul.f32 %v14632_v11, %v14373_v46  ;;  %v14751_v25 = vmul.f32 %v14632_v11, %v14379_v30  ;;  %v14755_v6 = vmul.f32 %v14632_v11, %v14385_v26  ;;  %v14759_v51 = vmul.f32 %v14632_v11, %v14391_v39 }
 0x43b   :  { %4329 = vst [vmem:[#allocation2 + $0x228] sm:$0xf] %v10475_v5  ;;  %v14763_v42 = vmul.f32 %v14632_v11, %v14397_v1  ;;  %v14767_v46 = vmul.f32 %v14632_v11, %v14403_v53  ;;  %v14771_v30 = vmul.f32 %v14632_v11, %v14409_v43  ;;  %v14775_v26 = vmul.f32 %v14632_v11, %v14415_v62  ;;  %v18999_v5 = vld [vmem:[#allocation15_spill] sm:$0xff] }
 0x43c   :  { %v14779_v39 = vmul.f32 %v14632_v11, %v14421_v35  ;;  %v14783_v1 = vmul.f32 %v14632_v11, %v14427_v61  ;;  %v14787_v53 = vmul.f32 %v14632_v11, %v14434_v34  ;;  %v14791_v43 = vmul.f32 %v14632_v11, %v14440_v59 }
 0x43d   :  { %v14795_v62 = vmul.f32 %v14632_v11, %v14447_v44  ;;  %v14799_v35 = vmul.f32 %v14632_v11, %v18998_v55  ;;  %v14803_v61 = vmul.f32 %v14632_v11, %v18999_v5  ;;  %v14807_v34 = vmul.f32 %v14632_v11, %v19000_v12 }
 0x43e   :  { %v14811_v59 = vmul.f32 %v14632_v11, %v19001_v14  ;;  %v14815_v44 = vmul.f32 %v14632_v11, %v19002_v17  ;;  %v14819_v55 = vmul.f32 %v14632_v11, %v19003_v45  ;;  %v14823_v5 = vmul.f32 %v14632_v11, %v19004_v37 }
 0x43f   :  { %v14827_v12 = vmul.f32 %v14632_v11, %v19005_v21  ;;  %v14831_v14 = vmul.f32 %v14632_v11, %v19006_v29  ;;  %v14835_v17 = vmul.f32 %v14632_v11, %v19007_v63  ;;  %v14839_v45 = vmul.f32 %v14632_v11, %v19008_v54 }
 0x440   :  { %v14843_v37 = vmul.f32 %v14632_v11, %v19009_v40  ;;  %v14847_v21 = vmul.f32 %v14632_v11, %v19010_v2  ;;  %v14851_v29 = vmul.f32 %v14632_v11, %v19011_v36  ;;  %v14855_v63 = vmul.f32 %v14632_v11, %v14544_v48 }
 0x441   :  { %v14859_v54 = vmul.f32 %v14632_v11, %v19013_v22  ;;  %v14863_v40 = vmul.f32 %v14632_v11, %v14557_v19  ;;  %v14867_v2 = vmul.f32 %v14632_v11, %v19016_v0  ;;  %v14871_v36 = vmul.f32 %v14632_v11, %v19018_v60 }
 0x442   :  { %19012 = vst [vmem:[#allocation76_spill] sm:$0xff] %v14855_v63  ;;  %v14875_v48 = vmul.f32 %v14632_v11, %v19020_v49  ;;  %v19022_v63 = vld [vmem:[#allocation38_spill] sm:$0xff] }
 0x443   :  { %19014 = vst [vmem:[#allocation82_spill] sm:$0xff] %v14859_v54  ;;  %19015 = vst [vmem:[#allocation87_spill] sm:$0xff] %v14863_v40  ;;  %v14879_v22 = vmul.f32 %v14632_v11, %v19022_v63  ;;  %v19023_v54 = vld [vmem:[#allocation99_spill] sm:$0xff]  ;;  %v19024_v40 = vld [vmem:[#allocation12_spill] sm:$0xff] }
 0x444   :  { %19017 = vst [vmem:[#allocation90_spill] sm:$0xff] %v14867_v2  ;;  %19019 = vst [vmem:[#allocation64_spill] sm:$0xff] %v14871_v36  ;;  %v14883_v19 = vmul.f32 %v14632_v11, %v19023_v54  ;;  %v14887_v0 = vmul.f32 %v14632_v11, %v19024_v40  ;;  %v19025_v2 = vld [vmem:[#allocation40_spill] sm:$0xff]  ;;  %v19026_v36 = vld [vmem:[#allocation29_spill] sm:$0xff]  ;;  %v14903_v54 = vadd.f32 %v14640_v38, %v14650_v3 }
 0x445   :  { %19021 = vst [vmem:[#allocation24_spill] sm:$0xff] %v14875_v48  ;;  %v14891_v60 = vmul.f32 %v14632_v11, %v19025_v2  ;;  %v14895_v49 = vmul.f32 %v14632_v11, %v19026_v36  ;;  %v19027_v48 = vld [vmem:[#allocation51_spill] sm:$0xff]  ;;  %v14907_v40 = vadd.f32 %v14640_v38, %v14654_v56  ;;  %v14911_v2 = vadd.f32 %v14640_v38, %v14658_v41 }
 0x446   :  { %v14899_v63 = vmul.f32 %v14632_v11, %v19027_v48  ;;  %v14915_v36 = vadd.f32 %v14640_v38, %v14662_v20  ;;  %v14919_v11 = vadd.f32 %v14640_v38, %v14666_v28  ;;  %v14923_v3 = vadd.f32 %v14640_v38, %v14670_v57 }
 0x447   :  { %v14927_v56 = vadd.f32 %v14640_v38, %v14674_v8  ;;  %v14931_v41 = vadd.f32 %v14640_v38, %v14679_v50  ;;  %v14935_v20 = vadd.f32 %v14640_v38, %v14683_v27  ;;  %v14939_v28 = vadd.f32 %v14640_v38, %v14687_v23 }
 0x448   :  { %v14943_v57 = vadd.f32 %v14640_v38, %v14691_v7  ;;  %v14947_v8 = vadd.f32 %v14640_v38, %v14695_v52  ;;  %v14951_v50 = vadd.f32 %v14640_v38, %v14699_v32  ;;  %v14955_v27 = vadd.f32 %v14640_v38, %v14703_v15 }
 0x449   :  { %v14959_v23 = vadd.f32 %v14640_v38, %v14707_v58  ;;  %v14963_v7 = vadd.f32 %v14640_v38, %v14711_v16  ;;  %v14967_v52 = vadd.f32 %v14640_v38, %v14715_v33  ;;  %v14971_v32 = vadd.f32 %v14640_v38, %v14719_v18  ;;  %v19037_v48 = vld [vmem:[#allocation76_spill] sm:$0xff] }
 0x44a   :  { %v14975_v15 = vadd.f32 %v14640_v38, %v14723_v31  ;;  %v14979_v58 = vadd.f32 %v14640_v38, %v14727_v13  ;;  %v14983_v16 = vadd.f32 %v14640_v38, %v14731_v9  ;;  %v14987_v33 = vadd.f32 %v14640_v38, %v14735_v47 }
 0x44b   :  { %v14991_v18 = vadd.f32 %v14640_v38, %v14739_v10  ;;  %v14995_v31 = vadd.f32 %v14640_v38, %v14743_v4  ;;  %v14999_v13 = vadd.f32 %v14640_v38, %v14747_v24  ;;  %v15003_v9 = vadd.f32 %v14640_v38, %v14751_v25 }
 0x44c   :  { %v15007_v47 = vadd.f32 %v14640_v38, %v14755_v6  ;;  %v15011_v10 = vadd.f32 %v14640_v38, %v14759_v51  ;;  %v15015_v4 = vadd.f32 %v14640_v38, %v14763_v42  ;;  %v15019_v24 = vadd.f32 %v14640_v38, %v14767_v46 }
 0x44d   :  { %v15023_v25 = vadd.f32 %v14640_v38, %v14771_v30  ;;  %v15027_v6 = vadd.f32 %v14640_v38, %v14775_v26  ;;  %v15031_v51 = vadd.f32 %v14640_v38, %v14779_v39  ;;  %v15035_v42 = vadd.f32 %v14640_v38, %v14783_v1 }
 0x44e   :  { %v15039_v46 = vadd.f32 %v14640_v38, %v14787_v53  ;;  %v15043_v30 = vadd.f32 %v14640_v38, %v14791_v43  ;;  %v15047_v26 = vadd.f32 %v14640_v38, %v14795_v62  ;;  %v15051_v39 = vadd.f32 %v14640_v38, %v14799_v35 }
 0x44f   :  { %v15055_v1 = vadd.f32 %v14640_v38, %v14803_v61  ;;  %v15059_v53 = vadd.f32 %v14640_v38, %v14807_v34  ;;  %v15063_v43 = vadd.f32 %v14640_v38, %v14811_v59  ;;  %v15067_v62 = vadd.f32 %v14640_v38, %v14815_v44 }
 0x450   :  { %19028 = vst [vmem:[#allocation74_spill] sm:$0xff] %v15047_v26  ;;  %19029 = vst [vmem:[#allocation27_spill] sm:$0xff] %v15051_v39  ;;  %v15071_v35 = vadd.f32 %v14640_v38, %v14819_v55  ;;  %v15075_v61 = vadd.f32 %v14640_v38, %v14823_v5  ;;  %v15079_v34 = vadd.f32 %v14640_v38, %v14827_v12 }
 0x451   :  { %19030 = vst [vmem:[#allocation77_spill] sm:$0xff] %v15055_v1  ;;  %19031 = vst [vmem:[#allocation31_spill] sm:$0xff] %v15059_v53  ;;  %v15083_v59 = vadd.f32 %v14640_v38, %v14831_v14  ;;  %v15087_v44 = vadd.f32 %v14640_v38, %v14835_v17  ;;  %v15091_v55 = vadd.f32 %v14640_v38, %v14839_v45 }
 0x452   :  { %v15095_v5 = vadd.f32 %v14640_v38, %v14843_v37  ;;  %v15099_v12 = vadd.f32 %v14640_v38, %v14847_v21  ;;  %v15103_v14 = vadd.f32 %v14640_v38, %v14851_v29  ;;  %v15107_v17 = vadd.f32 %v14640_v38, %v19037_v48 }
 0x453   :  { %19032 = vst [vmem:[#allocation72_spill] sm:$0xff] %v15087_v44  ;;  %19033 = vst [vmem:[#allocation61_spill] sm:$0xff] %v15091_v55  ;;  %v19038_v44 = vld [vmem:[#allocation82_spill] sm:$0xff]  ;;  %v19040_v55 = vld [vmem:[#allocation87_spill] sm:$0xff] }
 0x454   :  { %19034 = vst [vmem:[#allocation75_spill] sm:$0xff] %v15095_v5  ;;  %19035 = vst [vmem:[#allocation80_spill] sm:$0xff] %v15099_v12  ;;  %v15111_v45 = vadd.f32 %v14640_v38, %v19038_v44  ;;  %v15115_v37 = vadd.f32 %v14640_v38, %v19040_v55  ;;  %v19042_v5 = vld [vmem:[#allocation90_spill] sm:$0xff]  ;;  %v19044_v12 = vld [vmem:[#allocation64_spill] sm:$0xff]  ;;  %v15131_v44 = vadd.f32 %v14640_v38, %v14879_v22 }
 0x455   :  { %19036 = vst [vmem:[#allocation18_spill] sm:$0xff] %v15103_v14  ;;  %v15119_v21 = vadd.f32 %v14640_v38, %v19042_v5  ;;  %v15123_v29 = vadd.f32 %v14640_v38, %v19044_v12  ;;  %v19046_v14 = vld [vmem:[#allocation24_spill] sm:$0xff]  ;;  %v15135_v55 = vadd.f32 %v14640_v38, %v14883_v19  ;;  %v15139_v5 = vadd.f32 %v14640_v38, %v14887_v0 }
 0x456   :  { %19039 = vst [vmem:[#allocation33_spill] sm:$0xff] %v15111_v45  ;;  %19041 = vst [vmem:[#allocation62_spill] sm:$0xff] %v15115_v37  ;;  %v15127_v48 = vadd.f32 %v14640_v38, %v19046_v14  ;;  %v15143_v12 = vadd.f32 %v14640_v38, %v14891_v60  ;;  %v15147_v14 = vadd.f32 %v14640_v38, %v14895_v49  ;;  %v3865_v19 = vmax.f32 %v14907_v40, 0.0 }
 0x457   :  { %19043 = vst [vmem:[#allocation66_spill] sm:$0xff] %v15119_v21  ;;  %19045 = vst [vmem:[#allocation70_spill] sm:$0xff] %v15123_v29  ;;  %v15151_v22 = vadd.f32 %v14640_v38, %v14899_v63  ;;  %v3867_v0 = vmax.f32 %v14915_v36, 0.0  ;;  %v3869_v60 = vmax.f32 %v14923_v3, 0.0  ;;  %v3871_v49 = vmax.f32 %v14931_v41, 0.0 }
 0x458   :  { %19047 = vst [vmem:[#allocation44_spill] sm:$0xff] %v15127_v48  ;;  %19048 = vst [vmem:[#allocation36_spill] sm:$0xff] %v15131_v44  ;;  %v3864_v44 = vmax.f32 %v14903_v54, 0.0  ;;  %v3873_v38 = vmax.f32 %v14939_v28, 0.0  ;;  %v3874_v63 = vmax.f32 %v14943_v57, 0.0  ;;  %v19063_v28 = vmax.f32 %v14947_v8, 0.0 }
 0x459   :  { %19049 = vst [vmem:[#allocation81_spill] sm:$0xff] %v15135_v55  ;;  %19050 = vst [vmem:[#allocation68_spill] sm:$0xff] %v15139_v5  ;;  %v3866_v55 = vmax.f32 %v14911_v2, 0.0  ;;  %v3868_v5 = vmax.f32 %v14919_v11, 0.0  ;;  %v10413_v2 = vpack.c.bf16 %v3865_v19, %v3865_v19  ;;  %v10415_v36 = vpack.c.bf16 %v3867_v0, %v3867_v0 }
 0x45a   :  { %19051 = vst [vmem:[#allocation39_spill] sm:$0xff] %v15143_v12  ;;  %19052 = vst [vmem:[#allocation30_spill] sm:$0xff] %v15147_v14  ;;  %v3870_v12 = vmax.f32 %v14927_v56, 0.0  ;;  %v3872_v14 = vmax.f32 %v14935_v20, 0.0  ;;  %v10412_v45 = vpack.c.bf16 %v3864_v44, %v3864_v44  ;;  %v10417_v11 = vpack.c.bf16 %v3869_v60, %v3869_v60 }
 0x45b   :  { %v10414_v37 = vpack.c.bf16 %v3866_v55, %v3866_v55  ;;  %v10416_v21 = vpack.c.bf16 %v3868_v5, %v3868_v5  ;;  %v10419_v3 = vpack.c.bf16 %v3871_v49, %v3871_v49  ;;  %v10421_v56 = vpack.c.bf16 %v3873_v38, %v3873_v38  ;;  %4267 = vst [vmem:[#allocation2 + $0x18] sm:$0xf] %v10413_v2 }
 0x45c   :  { %v10418_v29 = vpack.c.bf16 %v3870_v12, %v3870_v12  ;;  %v10420_v48 = vpack.c.bf16 %v3872_v14, %v3872_v14  ;;  %v10422_v54 = vpack.c.bf16 %v3874_v63, %v3874_v63  ;;  %4266 = vst [vmem:[#allocation2 + $0x14] sm:$0xf] %v10412_v45  ;;  %v10423_v57 = vpack.c.bf16 %v19063_v28, %v19063_v28 }
 0x45d   :  { %4268 = vst [vmem:[#allocation2 + $0x24] sm:$0xf] %v10414_v37  ;;  %v19064_v40 = vmax.f32 %v14951_v50, 0.0  ;;  %v19065_v55 = vmax.f32 %v14955_v27, 0.0  ;;  %v19066_v12 = vmax.f32 %v14959_v23, 0.0  ;;  %v19067_v8 = vmax.f32 %v14963_v7, 0.0 }
 0x45e   :  { %4269 = vst [vmem:[#allocation2 + $0x28] sm:$0xf] %v10415_v36  ;;  %4270 = vst [vmem:[#allocation2 + $0x34] sm:$0xf] %v10416_v21  ;;  %v19068_v50 = vmax.f32 %v14967_v52, 0.0  ;;  %v19069_v27 = vmax.f32 %v14971_v32, 0.0 }
 0x45f   :  { %v10424_v44 = vpack.c.bf16 %v19064_v40, %v19064_v40  ;;  %v10425_v5 = vpack.c.bf16 %v19065_v55, %v19065_v55  ;;  %v10426_v14 = vpack.c.bf16 %v19066_v12, %v19066_v12  ;;  %4271 = vst [vmem:[#allocation2 + $0x38] sm:$0xf] %v10417_v11  ;;  %4272 = vst [vmem:[#allocation2 + $0x44] sm:$0xf] %v10418_v29  ;;  %v19070_v23 = vmax.f32 %v14975_v15, 0.0  ;;  %v19088_v55 = vld [vmem:[#allocation74_spill] sm:$0xff] }
 0x460   :  { %v19059_v26 = vld [vmem:[#allocation81_spill] sm:$0xff]  ;;  %v19060_v39 = vld [vmem:[#allocation68_spill] sm:$0xff]  ;;  %v10427_v45 = vpack.c.bf16 %v19067_v8, %v19067_v8  ;;  %v10428_v37 = vpack.c.bf16 %v19068_v50, %v19068_v50  ;;  %v10429_v19 = vpack.c.bf16 %v19069_v27, %v19069_v27  ;;  %4273 = vst [vmem:[#allocation2 + $0x48] sm:$0xf] %v10419_v3  ;;  %4274 = vst [vmem:[#allocation2 + $0x54] sm:$0xf] %v10420_v48 }
 0x461   :  { %v3922_v41 = vmax.f32 %v19059_v26, 0.0  ;;  %v3923_v20 = vmax.f32 %v19060_v39, 0.0  ;;  %v19061_v1 = vld [vmem:[#allocation39_spill] sm:$0xff]  ;;  %v19062_v53 = vld [vmem:[#allocation30_spill] sm:$0xff]  ;;  %v10430_v0 = vpack.c.bf16 %v19070_v23, %v19070_v23  ;;  %4275 = vst [vmem:[#allocation2 + $0x58] sm:$0xf] %v10421_v56 }
 0x462   :  { %4276 = vst [vmem:[#allocation2 + $0x64] sm:$0xf] %v10422_v54  ;;  %v19071_v7 = vmax.f32 %v14979_v58, 0.0  ;;  %v19072_v52 = vmax.f32 %v14983_v16, 0.0  ;;  %v19073_v32 = vmax.f32 %v14987_v33, 0.0  ;;  %v19074_v15 = vmax.f32 %v14991_v18, 0.0 }
 0x463   :  { %4277 = vst [vmem:[#allocation2 + $0x68] sm:$0xf] %v10423_v57  ;;  %4278 = vst [vmem:[#allocation2 + $0x74] sm:$0xf] %v10424_v44  ;;  %v19075_v58 = vmax.f32 %v14995_v31, 0.0  ;;  %v19076_v16 = vmax.f32 %v14999_v13, 0.0 }
 0x464   :  { %v10431_v21 = vpack.c.bf16 %v19071_v7, %v19071_v7  ;;  %v10432_v29 = vpack.c.bf16 %v19072_v52, %v19072_v52  ;;  %v10433_v60 = vpack.c.bf16 %v19073_v32, %v19073_v32  ;;  %v10434_v49 = vpack.c.bf16 %v19074_v15, %v19074_v15  ;;  %4279 = vst [vmem:[#allocation2 + $0x78] sm:$0xf] %v10425_v5  ;;  %v19090_v12 = vld [vmem:[#allocation27_spill] sm:$0xff]  ;;  %v19092_v8 = vld [vmem:[#allocation77_spill] sm:$0xff]  ;;  %v19102_v15 = vld [vmem:[#allocation72_spill] sm:$0xff] }
 0x465   :  { %4280 = vst [vmem:[#allocation2 + $0x84] sm:$0xf] %v10426_v14  ;;  %v10435_v48 = vpack.c.bf16 %v19075_v58, %v19075_v58  ;;  %v10436_v38 = vpack.c.bf16 %v19076_v16, %v19076_v16  ;;  %v19077_v33 = vmax.f32 %v15003_v9, 0.0  ;;  %v19078_v18 = vmax.f32 %v15007_v47, 0.0  ;;  %4281 = vst [vmem:[#allocation2 + $0x88] sm:$0xf] %v10427_v45 }
 0x466   :  { %4282 = vst [vmem:[#allocation2 + $0x94] sm:$0xf] %v10428_v37  ;;  %4283 = vst [vmem:[#allocation2 + $0x98] sm:$0xf] %v10429_v19  ;;  %v19079_v31 = vmax.f32 %v15011_v10, 0.0  ;;  %v19080_v13 = vmax.f32 %v15015_v4, 0.0 }
 0x467   :  { %v10437_v63 = vpack.c.bf16 %v19077_v33, %v19077_v33  ;;  %v10438_v54 = vpack.c.bf16 %v19078_v18, %v19078_v18  ;;  %4284 = vst [vmem:[#allocation2 + $0xa4] sm:$0xf] %v10430_v0  ;;  %v19081_v9 = vmax.f32 %v15019_v24, 0.0  ;;  %v19082_v47 = vmax.f32 %v15023_v25, 0.0  ;;  %4285 = vst [vmem:[#allocation2 + $0xa8] sm:$0xf] %v10431_v21 }
 0x468   :  { %v10439_v40 = vpack.c.bf16 %v19079_v31, %v19079_v31  ;;  %v10440_v2 = vpack.c.bf16 %v19080_v13, %v19080_v13  ;;  %4286 = vst [vmem:[#allocation2 + $0xb4] sm:$0xf] %v10432_v29  ;;  %4287 = vst [vmem:[#allocation2 + $0xb8] sm:$0xf] %v10433_v60  ;;  %v19083_v10 = vmax.f32 %v15027_v6, 0.0  ;;  %v19084_v4 = vmax.f32 %v15031_v51, 0.0 }
 0x469   :  { %v10441_v36 = vpack.c.bf16 %v19081_v9, %v19081_v9  ;;  %v10442_v11 = vpack.c.bf16 %v19082_v47, %v19082_v47  ;;  %4288 = vst [vmem:[#allocation2 + $0xc4] sm:$0xf] %v10434_v49  ;;  %v19085_v24 = vmax.f32 %v15035_v42, 0.0  ;;  %v19086_v25 = vmax.f32 %v15039_v46, 0.0  ;;  %4289 = vst [vmem:[#allocation2 + $0xc8] sm:$0xf] %v10435_v48 }
 0x46a   :  { %v10443_v3 = vpack.c.bf16 %v19083_v10, %v19083_v10  ;;  %v10444_v56 = vpack.c.bf16 %v19084_v4, %v19084_v4  ;;  %4290 = vst [vmem:[#allocation2 + $0xd4] sm:$0xf] %v10436_v38  ;;  %4291 = vst [vmem:[#allocation2 + $0xd8] sm:$0xf] %v10437_v63  ;;  %v19087_v6 = vmax.f32 %v15043_v30, 0.0  ;;  %v19089_v51 = vmax.f32 %v19088_v55, 0.0 }
 0x46b   :  { %v10445_v28 = vpack.c.bf16 %v19085_v24, %v19085_v24  ;;  %v10446_v57 = vpack.c.bf16 %v19086_v25, %v19086_v25  ;;  %4292 = vst [vmem:[#allocation2 + $0xe4] sm:$0xf] %v10438_v54  ;;  %v19091_v42 = vmax.f32 %v19090_v12, 0.0  ;;  %v19093_v46 = vmax.f32 %v19092_v8, 0.0  ;;  %4293 = vst [vmem:[#allocation2 + $0xe8] sm:$0xf] %v10439_v40 }
 0x46c   :  { %v10447_v44 = vpack.c.bf16 %v19087_v6, %v19087_v6  ;;  %v10448_v5 = vpack.c.bf16 %v19089_v51, %v19089_v51  ;;  %4294 = vst [vmem:[#allocation2 + $0xf4] sm:$0xf] %v10440_v2  ;;  %4295 = vst [vmem:[#allocation2 + $0xf8] sm:$0xf] %v10441_v36  ;;  %v19094_v30 = vld [vmem:[#allocation31_spill] sm:$0xff]  ;;  %v19096_v27 = vmax.f32 %v15063_v43, 0.0 }
 0x46d   :  { %v10449_v14 = vpack.c.bf16 %v19091_v42, %v19091_v42  ;;  %v10450_v45 = vpack.c.bf16 %v19093_v46, %v19093_v46  ;;  %4296 = vst [vmem:[#allocation2 + $0x104] sm:$0xf] %v10442_v11  ;;  %v19095_v50 = vmax.f32 %v19094_v30, 0.0  ;;  %v19097_v23 = vmax.f32 %v15067_v62, 0.0  ;;  %4297 = vst [vmem:[#allocation2 + $0x108] sm:$0xf] %v10443_v3 }
 0x46e   :  { %v10452_v19 = vpack.c.bf16 %v19096_v27, %v19096_v27  ;;  %v19098_v7 = vmax.f32 %v15071_v35, 0.0  ;;  %4298 = vst [vmem:[#allocation2 + $0x134] sm:$0xf] %v10444_v56  ;;  %4299 = vst [vmem:[#allocation2 + $0x138] sm:$0xf] %v10445_v28  ;;  %v19099_v52 = vmax.f32 %v15075_v61, 0.0 }
 0x46f   :  { %v10451_v37 = vpack.c.bf16 %v19095_v50, %v19095_v50  ;;  %v10453_v0 = vpack.c.bf16 %v19097_v23, %v19097_v23  ;;  %4300 = vst [vmem:[#allocation2 + $0x144] sm:$0xf] %v10446_v57  ;;  %v19100_v43 = vmax.f32 %v15079_v34, 0.0  ;;  %v19101_v62 = vmax.f32 %v15083_v59, 0.0  ;;  %4301 = vst [vmem:[#allocation2 + $0x148] sm:$0xf] %v10447_v44 }
 0x470   :  { %v10454_v21 = vpack.c.bf16 %v19098_v7, %v19098_v7  ;;  %v10455_v29 = vpack.c.bf16 %v19099_v52, %v19099_v52  ;;  %v19103_v35 = vmax.f32 %v19102_v15, 0.0  ;;  %4302 = vst [vmem:[#allocation2 + $0x154] sm:$0xf] %v10448_v5  ;;  %4303 = vst [vmem:[#allocation2 + $0x158] sm:$0xf] %v10449_v14  ;;  %v19104_v48 = vld [vmem:[#allocation61_spill] sm:$0xff] }
 0x471   :  { %v10456_v32 = vpack.c.bf16 %v19100_v43, %v19100_v43  ;;  %v10457_v60 = vpack.c.bf16 %v19101_v62, %v19101_v62  ;;  %4304 = vst [vmem:[#allocation2 + $0x164] sm:$0xf] %v10450_v45  ;;  %v4335_v58 = vld [vmem:[#allocation2 + $0x14] sm:$0xf]  ;;  %v4334_v61 = vld [vmem:[#allocation2 + $0x10] sm:$0xf] }
 0x472   :  { %v10458_v49 = vpack.c.bf16 %v19103_v35, %v19103_v35  ;;  %v19105_v16 = vmax.f32 %v19104_v48, 0.0  ;;  %v19106_v38 = vld [vmem:[#allocation75_spill] sm:$0xff]  ;;  %v19108_v63 = vld [vmem:[#allocation80_spill] sm:$0xff]  ;;  %v19110_v31 = vld [vmem:[#allocation18_spill] sm:$0xff]  ;;  %4305 = vst [vmem:[#allocation2 + $0x168] sm:$0xf] %v10451_v37  ;;  %v10470_v37 = vpack.c.bf16 %v3922_v41, %v3922_v41 }
 0x473   :  { %v19107_v33 = vmax.f32 %v19106_v38, 0.0  ;;  %v19109_v18 = vmax.f32 %v19108_v63, 0.0  ;;  %v19111_v40 = vmax.f32 %v19110_v31, 0.0  ;;  %4306 = vst [vmem:[#allocation2 + $0x174] sm:$0xf] %v10452_v19  ;;  %v19112_v11 = vmax.f32 %v15107_v17, 0.0 }
 0x474   :  { %v10459_v34 = vpack.c.bf16 %v19105_v16, %v19105_v16  ;;  %4307 = vst [vmem:[#allocation2 + $0x178] sm:$0xf] %v10453_v0  ;;  %4308 = vst [vmem:[#allocation2 + $0x184] sm:$0xf] %v10454_v21  ;;  %v4336_v2 = vld [vmem:[#allocation2 + $0x18] sm:$0xf]  ;;  %v10471_v0 = vpack.c.bf16 %v3923_v20, %v3923_v20  ;;  %v10197_v20 = vcombine.low %v4334_v61, %v4335_v58 }
 0x475   :  { %v10460_v59 = vpack.c.bf16 %v19107_v33, %v19107_v33  ;;  %v10461_v54 = vpack.c.bf16 %v19109_v18, %v19109_v18  ;;  %v10462_v13 = vpack.c.bf16 %v19111_v40, %v19111_v40  ;;  %v4339_v9 = vld [vmem:[#allocation2 + $0x24] sm:$0xf]  ;;  %v15336_v36 = vld [vmem:[#allocation2 + $0x28] sm:$0xf]  ;;  %v4338_v47 = vld [vmem:[#allocation2 + $0x20] sm:$0xf]  ;;  %v10463_v10 = vpack.c.bf16 %v19112_v11, %v19112_v11 }
 0x476   :  { %v19113_v3 = vld [vmem:[#allocation33_spill] sm:$0xff]  ;;  %v19115_v24 = vld [vmem:[#allocation62_spill] sm:$0xff]  ;;  %4309 = vst [vmem:[#allocation2 + $0x188] sm:$0xf] %v10455_v29  ;;  %4310 = vst [vmem:[#allocation2 + $0x194] sm:$0xf] %v10456_v32  ;;  %v10268_v39 = vcombine.low %v4335_v58, %v4336_v2  ;;  %v15403_v62 = vcombine.low %v4338_v47, %v4339_v9 }
 0x477   :  { %v19114_v4 = vmax.f32 %v19113_v3, 0.0  ;;  %v19116_v28 = vmax.f32 %v19115_v24, 0.0  ;;  %v19117_v57 = vld [vmem:[#allocation66_spill] sm:$0xff]  ;;  %4311 = vst [vmem:[#allocation2 + $0x198] sm:$0xf] %v10457_v60  ;;  %v19121_v14 = vld [vmem:[#allocation44_spill] sm:$0xff] }
 0x478   :  { %v19118_v6 = vmax.f32 %v19117_v57, 0.0  ;;  %4312 = vst [vmem:[#allocation2 + $0x1a4] sm:$0xf] %v10458_v49  ;;  %v15350_v55 = vld [vmem:[#allocation2 + $0x34] sm:$0xf]  ;;  %v19119_v5 = vld [vmem:[#allocation70_spill] sm:$0xff] }
 0x479   :  { %v10464_v56 = vpack.c.bf16 %v19114_v4, %v19114_v4  ;;  %v10465_v25 = vpack.c.bf16 %v19116_v28, %v19116_v28  ;;  %v15352_v17 = vld [vmem:[#allocation2 + $0x38] sm:$0xf]  ;;  %v15354_v51 = vld [vmem:[#allocation2 + $0x44] sm:$0xf]  ;;  %v19120_v12 = vmax.f32 %v19119_v5, 0.0  ;;  %v19122_v8 = vmax.f32 %v19121_v14, 0.0 }
 0x47a   :  { %v10466_v44 = vpack.c.bf16 %v19118_v6, %v19118_v6  ;;  %v19123_v45 = vld [vmem:[#allocation36_spill] sm:$0xff]  ;;  %4313 = vst [vmem:[#allocation2 + $0x1a8] sm:$0xf] %v10459_v34  ;;  %4314 = vst [vmem:[#allocation2 + $0x1b4] sm:$0xf] %v10460_v59  ;;  %v19125_v7 = vmax.f32 %v19061_v1, 0.0  ;;  %v15387_v1 = vcombine.low %v4339_v9, %v15336_v36 }
 0x47b   :  { %v10467_v42 = vpack.c.bf16 %v19120_v12, %v19120_v12  ;;  %v10468_v46 = vpack.c.bf16 %v19122_v8, %v19122_v8  ;;  %v19124_v30 = vmax.f32 %v19123_v45, 0.0  ;;  %4315 = vst [vmem:[#allocation2 + $0x1b8] sm:$0xf] %v10461_v54  ;;  %4316 = vst [vmem:[#allocation2 + $0x1c4] sm:$0xf] %v10462_v13  ;;  %v19126_v41 = vmax.f32 %v19062_v53, 0.0 }
 0x47c   :  { %v15368_v27 = vld [vmem:[#allocation2 + $0x48] sm:$0xf]  ;;  %v15370_v19 = vld [vmem:[#allocation2 + $0x54] sm:$0xf]  ;;  %v15372_v23 = vld [vmem:[#allocation2 + $0x58] sm:$0xf]  ;;  %v10472_v26 = vpack.c.bf16 %v19125_v7, %v19125_v7  ;;  %v15391_v53 = vcombine.low %v15350_v55, %v15352_v17 }
 0x47d   :  { %v10469_v50 = vpack.c.bf16 %v19124_v30, %v19124_v30  ;;  %v10473_v21 = vpack.c.bf16 %v19126_v41, %v19126_v41  ;;  %v19127_v52 = vmax.f32 %v15151_v22, 0.0  ;;  %4317 = vst [vmem:[#allocation2 + $0x1c8] sm:$0xf] %v10463_v10  ;;  %4318 = vst [vmem:[#allocation2 + $0x1d4] sm:$0xf] %v10464_v56  ;;  %v15393_v22 = vcombine.low %v4336_v2, %v4336_v2  ;;  %v19128_v34 = vld [vmem:[#allocation56_spill] sm:$0xff] }
 0x47e   :  { %4319 = vst [vmem:[#allocation2 + $0x1d8] sm:$0xf] %v10465_v25  ;;  %4320 = vst [vmem:[#allocation2 + $0x1e4] sm:$0xf] %v10466_v44  ;;  %v15397_v43 = vcombine.low %v15354_v51, %v15368_v27  ;;  %v15401_v32 = vcombine.low %v15370_v19, %v15372_v23  ;;  %v5198_v60 = vrot.slane %v10268_v39, 5  ;;  %v5201_v15 = vrot.slane %v15387_v1, 5 }
 0x47f   :  { %v10474_v29 = vpack.c.bf16 %v19127_v52, %v19127_v52  ;;  %4321 = vst [vmem:[#allocation2 + $0x1e8] sm:$0xf] %v10467_v42  ;;  %4322 = vst [vmem:[#allocation2 + $0x1f4] sm:$0xf] %v10468_v46  ;;  %v4807_v35 = vshrl.u32 %v10268_v39, 16  ;;  %v4810_v49 = vshll.u32 %v10268_v39, 16 }
 0x480   :  { %4323 = vst [vmem:[#allocation2 + $0x1f8] sm:$0xf] %v10469_v50  ;;  %4324 = vst [vmem:[#allocation2 + $0x204] sm:$0xf] %v10470_v37  ;;  %v5204_v58 = vrot.slane %v15391_v53, 5  ;;  %v5348_v61 = vshrl.u32 %v10197_v20, 16 }
 0x481   :  { %4325 = vst [vmem:[#allocation2 + $0x208] sm:$0xf] %v10471_v0  ;;  %4326 = vst [vmem:[#allocation2 + $0x214] sm:$0xf] %v10472_v26  ;;  %v5351_v48 = vshll.u32 %v10197_v20, 16  ;;  %v5356_v16 = vshrl.u32 %v15393_v22, 16 }
 0x482   :  { %4327 = vst [vmem:[#allocation2 + $0x218] sm:$0xf] %v10473_v21  ;;  %4328 = vst [vmem:[#allocation2 + $0x224] sm:$0xf] %v10474_v29  ;;  %v19129_v38 = vrot.slane %v19128_v34, 5  ;;  %v5374_v59 = vshrl.u32 %v5198_v60, 16 }
 0x483   :  { %v5377_v63 = vshll.u32 %v5198_v60, 16  ;;  %v19130_v18 = vld [vmem:[#allocation108_spill] sm:$0xff]  ;;  %v5417_v2 = vshrl.u32 %v5201_v15, 16  ;;  %v5420_v9 = vshll.u32 %v5201_v15, 16  ;;  %v4809_v44 = vrot.slane %v4807_v35, 4  ;;  %v19132_v14 = vld [vmem:[#allocation21_spill] sm:$0xff] }
 0x484   :  { %v5200_v33 = vsel %vm5194_vm2, %v5198_v60, %v19129_v38  ;;  %v19131_v54 = vrot.slane %v19130_v18, 5  ;;  %v5376_v47 = vrot.slane %v5374_v59, 3  ;;  %v4812_v42 = vrot.slane %v4810_v49, 5  ;;  %v11427_v0 = vld [vmem:[#allocation3 + $0x38] sm:$0xff]  }
 0x485   :  { %v5382_v40 = vshrl.u32 %v5200_v33, 16  ;;  %v5385_v13 = vshll.u32 %v5200_v33, 16  ;;  %v5379_v11 = vrot.slane %v5377_v63, 4  ;;  %v5419_v24 = vrot.slane %v5417_v2, 3  ;;  %v11431_v33 = vld [vmem:[#allocation3 + $0x30] sm:$0xff]  }
 0x486   :  { %v5203_v31 = vsel %vm5194_vm2, %v5201_v15, %v19131_v54  ;;  %v5422_v28 = vrot.slane %v5420_v9, 4  ;;  %v19133_v8 = vrot.slane %v19132_v14, 5  ;;  %v5460_v30 = vshrl.u32 %v5204_v58, 16 }
 0x487   :  { %v5425_v10 = vshrl.u32 %v5203_v31, 16  ;;  %v5428_v3 = vshll.u32 %v5203_v31, 16  ;;  %v5384_v4 = vrot.slane %v5382_v40, 3  ;;  %v5387_v56 = vrot.slane %v5385_v13, 4 }
 0x488   :  { %v5380_v25 = vor.u32 %v5379_v11, %v5376_v47  ;;  %v5423_v12 = vor.u32 %v5422_v28, %v5419_v24  ;;  %v5206_v46 = vsel %vm5194_vm2, %v5204_v58, %v19133_v8  ;;  %v5463_v50 = vshll.u32 %v5204_v58, 16  ;;  %v11436_v24 = vld [vmem:[#allocation3 + $0x28] sm:$0xff]  }
 0x489   :  { %v5427_v57 = vrot.slane %v5425_v10, 3  ;;  %v5430_v6 = vrot.slane %v5428_v3, 4  ;;  %v5388_v5 = vor.u32 %v5387_v56, %v5384_v4  ;;  %v5468_v37 = vshrl.u32 %v5206_v46, 16  ;;  %v19138_v3 = vld [vmem:[#allocation10_spill] sm:$0xff] }
 0x48a   :  { %v4813_v26 = vor.u32 %v4812_v42, %v4809_v44  ;;  %v5471_v41 = vshll.u32 %v5206_v46, 16  ;;  %v5350_v21 = vrot.slane %v5348_v61, 3  ;;  %v5462_v29 = vrot.slane %v5460_v30, 3 }
 0x48b   :  { %v5431_v45 = vor.u32 %v5430_v6, %v5427_v57  ;;  %v15418_v7 = vsel %vm5303_vm3, %v5380_v25, %v5388_v5  ;;  %v5465_v39 = vrot.slane %v5463_v50, 4  ;;  %v5470_v20 = vrot.slane %v5468_v37, 3  ;;  %v19140_v6 = vld [vmem:[#allocation58_spill] sm:$0xff]  ;;  %v11404_v5 = vld [vmem:[#allocation3 + $0xb0] sm:$0xff]  }
 0x48c   :  { %19134 = vst [vmem:[#allocation88_spill] sm:$0xff] %v15418_v7  ;;  %10972 = vmatprep.mubr.bf16.mxu1 %v15418_v7  ;;  %v5365_v60 = vshrl.u32 %v4813_v26, 16  ;;  %v5368_v15 = vshll.u32 %v4813_v26, 16  ;;  %v5473_v35 = vrot.slane %v5471_v41, 4  ;;  %v5353_v49 = vrot.slane %v5351_v48, 4  ;;  %v19142_v26 = vld [vmem:[#allocation109_spill] sm:$0xff] }
 0x48d   :  { %v15422_v52 = vsel %vm5303_vm3, %v5423_v12, %v5431_v45  ;;  %v5466_v58 = vor.u32 %v5465_v39, %v5462_v29  ;;  %v5358_v34 = vrot.slane %v5356_v16, 3  ;;  %v5359_v38 = vshll.u32 %v15393_v22, 16  ;;  %v11420_v7 = vld [vmem:[#allocation2 + $0x13c] ss:$0 sps:$4 sm:$0xff]  }
 0x48e   :  { %19135 = vst [vmem:[#allocation84_spill] sm:$0xff] %v15422_v52  ;;  %10973 = vmatmul.mubr.bf16.vlgmr.msra.gmra.mxu1 %v15422_v52  ;;  %v4815_v61 = vshrl.u32 %v15387_v1, 16  ;;  %v5367_v59 = vrot.slane %v5365_v60, 3  ;;  %v5370_v63 = vrot.slane %v5368_v15, 4  ;;  %v5474_v18 = vor.u32 %v5473_v35, %v5470_v20  ;;  %v15454_v15 = vld [vmem:[#allocation2 + $0x64] sm:$0xf] }
 0x48f   :  { %7832 = vmatpush1.bf16.msra.mxu1 %v11427_v0  ;;  %v5354_v54 = vor.u32 %v5353_v49, %v5350_v21  ;;  %v19136_v31 = vmov 0   ;;  %v5361_v40 = vrot.slane %v5359_v38, 4  ;;  %v4818_v2 = vshll.u32 %v15387_v1, 16  ;;  %v11430_v35 = vld [vmem:[#allocation3 + $0xa8] sm:$0xff]   ;;  %v11439_v49 = vld [vmem:[#allocation3 + $0x20] sm:$0xff]  }
 0x490   :  { %7833 = vmatprep.subr.bf16.mxu1 %v19136_v31  ;;  %v4817_v13 = vrot.slane %v4815_v61, 4  ;;  %v5207_v48 = vrot.slane %v15397_v43, 5  ;;  %v15430_v9 = vor.u32 %v5370_v63, %v5367_v59  ;;  %v15433_v22 = vsel %vm5303_vm3, %v5466_v58, %v5474_v18  ;;  %v4395_v52 = vld [vmem:[#allocation2 + $0x104] sm:$0xf] }
 0x491   :  { %19137 = vst [vmem:[#allocation83_spill] sm:$0xff] %v15433_v22  ;;  %v5210_v16 = vrot.slane %v15401_v32, 5  ;;  %v15438_v47 = vcombine.low %v15336_v36, %v15336_v36  ;;  %10976 = vmatprep.mubr.bf16.mxu1 %v15433_v22  ;;  %v5362_v11 = vor.u32 %v5361_v40, %v5358_v34  ;;  %v4820_v10 = vrot.slane %v4818_v2, 5  ;;  %v15464_v40 = vld [vmem:[#allocation2 + $0x74] sm:$0xf] }
 0x492   :  { %v19139_v4 = vrot.slane %v19138_v3, 5  ;;  %v5503_v56 = vshrl.u32 %v5207_v48, 16  ;;  %7141 = vmatprep.mubr.bf16.mxu0 %v15430_v9  ;;  %v5506_v28 = vshll.u32 %v5207_v48, 16  ;;  %v19141_v44 = vrot.slane %v19140_v6, 5 }
 0x493   :  { %7834 = vmatpush1.bf16.msra.mxu1 %v11431_v33  ;;  %v15450_v12 = vsel %vm5303_vm3, %v5354_v54, %v5362_v11  ;;  %v4821_v42 = vor.u32 %v4820_v10, %v4817_v13  ;;  %v5546_v8 = vshrl.u32 %v5210_v16, 16  ;;  %v5549_v50 = vshll.u32 %v5210_v16, 16  ;;  %v15458_v33 = vld [vmem:[#allocation2 + $0x68] sm:$0xf]  ;;  %v15466_v13 = vld [vmem:[#allocation2 + $0x78] sm:$0xf] }
 0x494   :  { %v5209_v1 = vsel %vm5194_vm2, %v5207_v48, %v19139_v4  ;;  %v5212_v36 = vsel %vm5194_vm2, %v5210_v16, %v19141_v44  ;;  %7835 = vmatprep.subr.bf16.mxu1 %v19136_v31  ;;  %v5505_v14 = vrot.slane %v5503_v56, 3  ;;  %7142 = vmatmul.mubr.bf16.vlgmr.msra.gmra.mxu0 %v15450_v12  ;;  %v5508_v46 = vrot.slane %v5506_v28, 4  ;;  %v11444_v56 = vld [vmem:[#allocation3 + $0x18] sm:$0xff]  }
 0x495   :  { %v5511_v25 = vshrl.u32 %v5209_v1, 16  ;;  %v5514_v57 = vshll.u32 %v5209_v1, 16  ;;  %v5408_v37 = vshrl.u32 %v4821_v42, 16  ;;  %v5411_v0 = vshll.u32 %v4821_v42, 16  ;;  %11037 = vmatpush3.bf16.msra.mxu0 %v19142_v26  ;;  %v4342_v1 = vld [vmem:[#allocation2 + $0x30] sm:$0xf] }
 0x496   :  { %v5548_v41 = vrot.slane %v5546_v8, 3  ;;  %v5554_v21 = vshrl.u32 %v5212_v36, 16  ;;  %v5509_v29 = vor.u32 %v5508_v46, %v5505_v14  ;;  %v5551_v20 = vrot.slane %v5549_v50, 4  ;;  %11038 = vmatprep.subr.bf16.mxu0 %v11404_v5  ;;  %v11447_v50 = vld [vmem:[#allocation3 + $0x10] sm:$0xff]  }
 0x497   :  { %v5513_v45 = vrot.slane %v5511_v25, 3  ;;  %v5516_v30 = vrot.slane %v5514_v57, 4  ;;  %7836 = vmatpush1.bf16.msra.mxu1 %v11436_v24  ;;  %v5557_v60 = vshll.u32 %v5212_v36, 16  ;;  %v5410_v58 = vrot.slane %v5408_v37, 3 }
 0x498   :  { %7837 = vmatprep.subr.bf16.mxu1 %v19136_v31  ;;  %v5413_v34 = vrot.slane %v5411_v0, 4  ;;  %v5556_v38 = vrot.slane %v5554_v21, 3  ;;  %v5391_v61 = vshrl.u32 %v15403_v62, 16  ;;  %v5552_v63 = vor.u32 %v5551_v20, %v5548_v41  ;;  %v19147_v0 = vld [vmem:[#allocation111_spill] sm:$0xff] }
 0x499   :  { %v5517_v39 = vor.u32 %v5516_v30, %v5513_v45  ;;  %v5559_v18 = vrot.slane %v5557_v60, 4  ;;  %v5394_v54 = vshll.u32 %v15403_v62, 16  ;;  %v5399_v16 = vshrl.u32 %v15438_v47, 16  ;;  %11039 = vmatpush3.bf16.msra.mxu0 %v11404_v5 }
 0x49a   :  { %v15468_v2 = vor.u32 %v5413_v34, %v5410_v58  ;;  %v5393_v48 = vrot.slane %v5391_v61, 3  ;;  %v5402_v11 = vshll.u32 %v15438_v47, 16  ;;  %v4823_v4 = vshrl.u32 %v15391_v53, 16  ;;  %11040 = vmatprep.subr.bf16.mxu0 %v11430_v35 }
 0x49b   :  { %v15461_v59 = vsel %vm5303_vm3, %v5509_v29, %v5517_v39  ;;  %v5560_v10 = vor.u32 %v5559_v18, %v5556_v38  ;;  %v5396_v3 = vrot.slane %v5394_v54, 4  ;;  %v4826_v62 = vshll.u32 %v15391_v53, 16  ;;  %7838 = vmatpush1.bf16.msra.mxu1 %v11439_v49  ;;  %v11452_v54 = vld [vmem:[#allocation3 + $0x8] sm:$0xff]  }
 0x49c   :  { %19143 = vst [vmem:[#allocation45_spill] sm:$0xff] %v15461_v59  ;;  %19144 = vst [vmem:[#allocation86_spill] sm:$0xff] %v15468_v2  ;;  %10977 = vmatmul.mubr.bf16.gmra.mxu1 %v15461_v59  ;;  %7149 = vmatprep.mubr.bf16.mxu0 %v15468_v2  ;;  %v5401_v24 = vrot.slane %v5399_v16, 3  ;;  %v5404_v28 = vrot.slane %v5402_v11, 4  ;;  %v15478_v25 = vcombine.low %v15454_v15, %v15458_v33  ;;  %v4825_v6 = vrot.slane %v4823_v4, 4 }
 0x49d   :  { %v15482_v47 = vcombine.low %v15464_v40, %v15466_v13  ;;  %7839 = vmatprep.subr.bf16.mxu1 %v19136_v31  ;;  %v15486_v53 = vsel %vm5303_vm3, %v5552_v63, %v5560_v10  ;;  %v5397_v57 = vor.u32 %v5396_v3, %v5393_v48  ;;  %v4828_v44 = vrot.slane %v4826_v62, 5  ;;  %11041 = vmatpush3.bf16.msra.mxu0 %v11430_v35  ;;  %v19149_v35 = vld [vmem:[#allocation9_spill] sm:$0xff] }
 0x49e   :  { %19145 = vst [vmem:[#allocation42_spill] sm:$0xff] %v15486_v53  ;;  %10980 = vmatprep.mubr.bf16.mxu1 %v15486_v53  ;;  %v5405_v36 = vor.u32 %v5404_v28, %v5401_v24  ;;  %v5213_v5 = vrot.slane %v15478_v25, 5  ;;  %v10201_v14 = vcombine.low %v4342_v1, %v15350_v55  ;;  %v10202_v46 = vcombine.low %v15352_v17, %v15352_v17  ;;  %v15512_v24 = vld [vmem:[#allocation2 + $0x88] sm:$0xf]  ;;  %v4346_v28 = vld [vmem:[#allocation2 + $0x40] sm:$0xf] }
 0x49f   :  { %v5216_v42 = vrot.slane %v15482_v47, 5  ;;  %v4829_v8 = vor.u32 %v4828_v44, %v4825_v6  ;;  %v4831_v45 = vshrl.u32 %v15397_v43, 16  ;;  %v4834_v30 = vshll.u32 %v15397_v43, 16  ;;  %7840 = vmatpush1.bf16.msra.mxu1 %v11444_v56  ;;  %v15510_v56 = vld [vmem:[#allocation2 + $0x84] sm:$0xf] }
 0x4a0   :  { %v15497_v37 = vsel %vm5303_vm3, %v5397_v57, %v5405_v36  ;;  %v19148_v26 = vrot.slane %v19147_v0, 5  ;;  %v5589_v21 = vshrl.u32 %v5213_v5, 16  ;;  %v5592_v55 = vshll.u32 %v5213_v5, 16  ;;  %7841 = vmatprep.subr.bf16.mxu1 %v19136_v31  ;;  %v15648_v53 = vld [vmem:[#allocation2 + $0xe4] sm:$0xf] }
 0x4a1   :  { %19146 = vst [vmem:[#allocation22_spill] sm:$0xff] %v15497_v37  ;;  %7150 = vmatmul.mubr.bf16.gmra.mxu0 %v15497_v37  ;;  %v5451_v17 = vshrl.u32 %v4829_v8, 16  ;;  %v5454_v29 = vshll.u32 %v4829_v8, 16  ;;  %v19150_v49 = vrot.slane %v19149_v35, 5  ;;  %v5632_v34 = vshrl.u32 %v5216_v42, 16 }
 0x4a2   :  { %v5215_v41 = vsel %vm5194_vm2, %v5213_v5, %v19148_v26  ;;  %v5591_v43 = vrot.slane %v5589_v21, 3  ;;  %v5594_v60 = vrot.slane %v5592_v55, 4  ;;  %v5635_v11 = vshll.u32 %v5216_v42, 16  ;;  %v15514_v5 = vld [vmem:[#allocation2 + $0x94] sm:$0xf] }
 0x4a3   :  { %v5597_v39 = vshrl.u32 %v5215_v41, 16  ;;  %v5600_v20 = vshll.u32 %v5215_v41, 16  ;;  %v5218_v58 = vsel %vm5194_vm2, %v5216_v42, %v19150_v49  ;;  %v5453_v38 = vrot.slane %v5451_v17, 3  ;;  %7842 = vmatpush1.bf16.msra.mxu1 %v11447_v50  ;;  %v15520_v26 = vld [vmem:[#allocation2 + $0x98] sm:$0xf] }
 0x4a4   :  { %v5456_v61 = vrot.slane %v5454_v29, 4  ;;  %v5595_v48 = vor.u32 %v5594_v60, %v5591_v43  ;;  %v5634_v16 = vrot.slane %v5632_v34, 3  ;;  %v5640_v10 = vshrl.u32 %v5218_v58, 16  ;;  %7843 = vmatprep.subr.bf16.mxu1 %v19136_v31  ;;  %v11455_v34 = vld [vmem:[#allocation3] sm:$0xff]  }
 0x4a5   :  { %v5599_v63 = vrot.slane %v5597_v39, 3  ;;  %v5602_v18 = vrot.slane %v5600_v20, 4  ;;  %v5643_v62 = vshll.u32 %v5218_v58, 16  ;;  %v5434_v1 = vshrl.u32 %v10201_v14, 16 }
 0x4a6   :  { %v15508_v3 = vor.u32 %v5456_v61, %v5453_v38  ;;  %v5637_v57 = vrot.slane %v5635_v11, 4  ;;  %v5642_v6 = vrot.slane %v5640_v10, 3  ;;  %v5437_v44 = vshll.u32 %v10201_v14, 16 }
 0x4a7   :  { %v5603_v4 = vor.u32 %v5602_v18, %v5599_v63  ;;  %v5442_v36 = vshrl.u32 %v10202_v46, 16  ;;  %v5645_v8 = vrot.slane %v5643_v62, 4  ;;  %v5436_v50 = vrot.slane %v5434_v1, 3  ;;  %7844 = vmatpush1.bf16.msra.mxu1 %v11452_v54 }
 0x4a8   :  { %19151 = vst [vmem:[#allocation65_spill] sm:$0xff] %v15508_v3  ;;  %7157 = vmatprep.mubr.bf16.mxu0 %v15508_v3  ;;  %v5445_v0 = vshll.u32 %v10202_v46, 16  ;;  %v5638_v41 = vor.u32 %v5637_v57, %v5634_v16  ;;  %v5439_v21 = vrot.slane %v5437_v44, 4  ;;  %v4833_v14 = vrot.slane %v4831_v45, 4  ;;  %7845 = vmatprep.subr.bf16.mxu1 %v19136_v31 }
 0x4a9   :  { %v15518_v42 = vsel %vm5303_vm3, %v5595_v48, %v5603_v4  ;;  %v5444_v55 = vrot.slane %v5442_v36, 3  ;;  %v5646_v17 = vor.u32 %v5645_v8, %v5642_v6  ;;  %v4836_v39 = vrot.slane %v4834_v30, 5  ;;  %v19155_v48 = vld [vmem:[#allocation60_spill] sm:$0xff]  ;;  %v19157_v6 = vld [vmem:[#allocation110_spill] sm:$0xff] }
 0x4aa   :  { %19152 = vst [vmem:[#allocation78_spill] sm:$0xff] %v15518_v42  ;;  %10981 = vmatmul.mubr.bf16.gmra.mxu1 %v15518_v42  ;;  %v5447_v29 = vrot.slane %v5445_v0, 4  ;;  %v15526_v20 = vcombine.low %v15510_v56, %v15512_v24  ;;  %v5440_v43 = vor.u32 %v5439_v21, %v5436_v50  ;;  %v15530_v46 = vcombine.low %v15514_v5, %v15520_v26  ;;  %v11460_v50 = vld [vmem:[#allocation3 + $0x78] sm:$0xff]  }
 0x4ab   :  { %v10203_v60 = vcombine.low %v4346_v28, %v15354_v51  ;;  %v15535_v35 = vcombine.low %v15368_v27, %v15368_v27  ;;  %v15538_v45 = vsel %vm5303_vm3, %v5638_v41, %v5646_v17  ;;  %v4837_v30 = vor.u32 %v4836_v39, %v4833_v14  ;;  %7846 = vmatpush1.bf16.msra.mxu1 %v11455_v34  ;;  %v15555_v14 = vld [vmem:[#allocation2 + $0xa4] sm:$0xf] }
 0x4ac   :  { %19153 = vst [vmem:[#allocation14_spill] sm:$0xff] %v15538_v45  ;;  %v5448_v49 = vor.u32 %v5447_v29, %v5444_v55  ;;  %v5219_v58 = vrot.slane %v15526_v20, 5  ;;  %10984 = vmatprep.mubr.bf16.mxu1 %v15538_v45  ;;  %v5222_v38 = vrot.slane %v15530_v46, 5  ;;  %v19156_v16 = vrot.slane %v19155_v48, 5  ;;  %7847 = vmatprep.subr.bf16.mxu1 %v19136_v31 }
 0x4ad   :  { %v5477_v61 = vshrl.u32 %v10203_v60, 16  ;;  %v5480_v63 = vshll.u32 %v10203_v60, 16  ;;  %v5485_v51 = vshrl.u32 %v15535_v35, 16  ;;  %v5494_v27 = vshrl.u32 %v4837_v30, 16  ;;  %v15559_v60 = vld [vmem:[#allocation2 + $0xa8] sm:$0xf] }
 0x4ae   :  { %v15545_v18 = vsel %vm5303_vm3, %v5440_v43, %v5448_v49  ;;  %v5497_v54 = vshll.u32 %v4837_v30, 16  ;;  %v5221_v11 = vsel %vm5194_vm2, %v5219_v58, %v19156_v16  ;;  %v5675_v10 = vshrl.u32 %v5219_v58, 16 }
 0x4af   :  { %19154 = vst [vmem:[#allocation89_spill] sm:$0xff] %v15545_v18  ;;  %7158 = vmatmul.mubr.bf16.gmra.mxu0 %v15545_v18  ;;  %v5678_v4 = vshll.u32 %v5219_v58, 16  ;;  %v5683_v62 = vshrl.u32 %v5221_v11, 16  ;;  %v5686_v1 = vshll.u32 %v5221_v11, 16  ;;  %v5496_v28 = vrot.slane %v5494_v27, 3  ;;  %7848 = vmatpush2.bf16.msra.mxu1 %v11460_v50 }
 0x4b0   :  { %v5499_v57 = vrot.slane %v5497_v54, 4  ;;  %v19158_v44 = vrot.slane %v19157_v6, 5  ;;  %v5718_v8 = vshrl.u32 %v5222_v38, 16  ;;  %v5677_v0 = vrot.slane %v5675_v10, 3  ;;  %v15561_v27 = vld [vmem:[#allocation2 + $0xb4] sm:$0xf]  ;;  %7849 = vmatprep.subr.bf16.mxu1 %v19136_v31 }
 0x4b1   :  { %v5680_v41 = vrot.slane %v5678_v4, 4  ;;  %v5685_v21 = vrot.slane %v5683_v62, 3  ;;  %v5688_v55 = vrot.slane %v5686_v1, 4  ;;  %v5721_v39 = vshll.u32 %v5222_v38, 16  ;;  %v11463_v54 = vld [vmem:[#allocation3 + $0xa0] sm:$0xff]  }
 0x4b2   :  { %v5224_v36 = vsel %vm5194_vm2, %v5222_v38, %v19158_v44  ;;  %v15557_v17 = vor.u32 %v5499_v57, %v5496_v28  ;;  %v5720_v29 = vrot.slane %v5718_v8, 3  ;;  %v5479_v34 = vrot.slane %v5477_v61, 3  ;;  %v15565_v38 = vld [vmem:[#allocation2 + $0xb8] sm:$0xf]  ;;  %v4350_v28 = vld [vmem:[#allocation2 + $0x50] sm:$0xf]  ;;  %11042 = vmatprep.subr.bf16.mxu0 %v11463_v54 }
 0x4b3   :  { %v5726_v43 = vshrl.u32 %v5224_v36, 16  ;;  %v5681_v49 = vor.u32 %v5680_v41, %v5677_v0  ;;  %v5689_v30 = vor.u32 %v5688_v55, %v5685_v21  ;;  %v5729_v58 = vshll.u32 %v5224_v36, 16  ;;  %11043 = vmatpush3.bf16.msra.mxu0 %v11463_v54 }
 0x4b4   :  { %19159 = vst [vmem:[#allocation47_spill] sm:$0xff] %v15557_v17  ;;  %7165 = vmatprep.mubr.bf16.mxu0 %v15557_v17  ;;  %v5723_v48 = vrot.slane %v5721_v39, 4  ;;  %v5482_v11 = vrot.slane %v5480_v63, 4  ;;  %v5487_v10 = vrot.slane %v5485_v51, 3  ;;  %v5488_v1 = vshll.u32 %v15535_v35, 16 }
 0x4b5   :  { %v5728_v16 = vrot.slane %v5726_v43, 3  ;;  %v15568_v4 = vsel %vm5303_vm3, %v5681_v49, %v5689_v30  ;;  %v5731_v62 = vrot.slane %v5729_v58, 4  ;;  %v4839_v61 = vshrl.u32 %v15401_v32, 16  ;;  %v11464_v43 = vld [vmem:[#allocation3 + $0x70] sm:$0xff]  }
 0x4b6   :  { %19160 = vst [vmem:[#allocation11_spill] sm:$0xff] %v15568_v4  ;;  %10985 = vmatmul.mubr.bf16.gmra.mxu1 %v15568_v4  ;;  %v5724_v57 = vor.u32 %v5723_v48, %v5720_v29  ;;  %v5483_v6 = vor.u32 %v5482_v11, %v5479_v34  ;;  %v4842_v44 = vshll.u32 %v15401_v32, 16  ;;  %v15576_v63 = vcombine.low %v15555_v14, %v15559_v60  ;;  %v19162_v30 = vld [vmem:[#allocation63_spill] sm:$0xff]  ;;  %v19165_v11 = vld [vmem:[#allocation69_spill] sm:$0xff]  ;;  %v11412_v4 = vld [vmem:[#allocation2 + $0xec] ss:$0 sps:$4 sm:$0xff]  }
 0x4b7   :  { %v5732_v51 = vor.u32 %v5731_v62, %v5728_v16  ;;  %v5490_v36 = vrot.slane %v5488_v1, 4  ;;  %v4841_v8 = vrot.slane %v4839_v61, 4  ;;  %v15580_v35 = vcombine.low %v15561_v27, %v15565_v38  ;;  %7850 = vmatpush2.bf16.msra.mxu1 %v11464_v43 }
 0x4b8   :  { %v4844_v50 = vrot.slane %v4842_v44, 5  ;;  %v5225_v0 = vrot.slane %v15576_v63, 5  ;;  %v10205_v41 = vcombine.low %v4350_v28, %v15370_v19  ;;  %v15586_v32 = vcombine.low %v15372_v23, %v15372_v23  ;;  %7851 = vmatprep.subr.bf16.mxu1 %v19136_v31 }
 0x4b9   :  { %v15589_v21 = vsel %vm5303_vm3, %v5724_v57, %v5732_v51  ;;  %v5491_v55 = vor.u32 %v5490_v36, %v5487_v10  ;;  %v5228_v29 = vrot.slane %v15580_v35, 5  ;;  %v4847_v39 = vshrl.u32 %v15478_v25, 16 }
 0x4ba   :  { %19161 = vst [vmem:[#allocation85_spill] sm:$0xff] %v15589_v21  ;;  %10988 = vmatprep.mubr.bf16.mxu1 %v15589_v21  ;;  %v4845_v49 = vor.u32 %v4844_v50, %v4841_v8  ;;  %v19163_v58 = vrot.slane %v19162_v30, 5  ;;  %v5761_v34 = vshrl.u32 %v5225_v0, 16  ;;  %v5764_v54 = vshll.u32 %v5225_v0, 16  ;;  %v11469_v8 = vld [vmem:[#allocation3 + $0x68] sm:$0xff]  }
 0x4bb   :  { %v15598_v23 = vsel %vm5303_vm3, %v5483_v6, %v5491_v55  ;;  %v19166_v10 = vrot.slane %v19165_v11, 5  ;;  %v5804_v36 = vshrl.u32 %v5228_v29, 16  ;;  %v5807_v6 = vshll.u32 %v5228_v29, 16  ;;  %v15605_v21 = vld [vmem:[#allocation2 + $0xc4] sm:$0xf]  ;;  %7852 = vmatpush2.bf16.msra.mxu1 %v11469_v8 }
 0x4bc   :  { %v5227_v19 = vsel %vm5194_vm2, %v5225_v0, %v19163_v58  ;;  %19164 = vst [vmem:[#allocation93_spill] sm:$0xff] %v15598_v23  ;;  %7166 = vmatmul.mubr.bf16.gmra.mxu0 %v15598_v23  ;;  %v5537_v1 = vshrl.u32 %v4845_v49, 16  ;;  %v5540_v61 = vshll.u32 %v4845_v49, 16  ;;  %v5763_v28 = vrot.slane %v5761_v34, 3  ;;  %v11406_v58 = vld [vmem:[#allocation2 + $0xcc] ss:$0 sps:$4 sm:$0xff]   ;;  %7853 = vmatprep.subr.bf16.mxu1 %v19136_v31 }
 0x4bd   :  { %v5769_v48 = vshrl.u32 %v5227_v19, 16  ;;  %v5772_v16 = vshll.u32 %v5227_v19, 16  ;;  %v5230_v62 = vsel %vm5194_vm2, %v5228_v29, %v19166_v10  ;;  %v5766_v57 = vrot.slane %v5764_v54, 4  ;;  %v11408_v49 = vld [vmem:[#allocation2 + $0xdc] ss:$0 sps:$4 sm:$0xff]  }
 0x4be   :  { %v5539_v50 = vrot.slane %v5537_v1, 3  ;;  %v5542_v0 = vrot.slane %v5540_v61, 4  ;;  %v5812_v30 = vshrl.u32 %v5230_v62, 16  ;;  %v5806_v43 = vrot.slane %v5804_v36, 3  ;;  %v15609_v29 = vld [vmem:[#allocation2 + $0xc8] sm:$0xf] }
 0x4bf   :  { %v5771_v44 = vrot.slane %v5769_v48, 3  ;;  %v5774_v51 = vrot.slane %v5772_v16, 4  ;;  %v5767_v55 = vor.u32 %v5766_v57, %v5763_v28  ;;  %v5809_v11 = vrot.slane %v5807_v6, 4  ;;  %v15616_v57 = vld [vmem:[#allocation2 + $0xd4] sm:$0xf] }
 0x4c0   :  { %v5815_v10 = vshll.u32 %v5230_v62, 16  ;;  %v15607_v34 = vor.u32 %v5542_v0, %v5539_v50  ;;  %v5814_v54 = vrot.slane %v5812_v30, 3  ;;  %v5520_v48 = vshrl.u32 %v10205_v41, 16  ;;  %v4354_v30 = vld [vmem:[#allocation2 + $0x60] sm:$0xf] }
 0x4c1   :  { %v5775_v19 = vor.u32 %v5774_v51, %v5771_v44  ;;  %v5523_v16 = vshll.u32 %v10205_v41, 16  ;;  %v5810_v61 = vor.u32 %v5809_v11, %v5806_v43  ;;  %v5528_v62 = vshrl.u32 %v15586_v32, 16  ;;  %v15618_v44 = vld [vmem:[#allocation2 + $0xd8] sm:$0xf] }
 0x4c2   :  { %19167 = vst [vmem:[#allocation73_spill] sm:$0xff] %v15607_v34  ;;  %v5817_v28 = vrot.slane %v5815_v10, 4  ;;  %7173 = vmatprep.mubr.bf16.mxu0 %v15607_v34  ;;  %v5522_v41 = vrot.slane %v5520_v48, 3  ;;  %v5531_v36 = vshll.u32 %v15586_v32, 16  ;;  %v4849_v6 = vrot.slane %v4847_v39, 4 }
 0x4c3   :  { %v15613_v1 = vsel %vm5303_vm3, %v5767_v55, %v5775_v19  ;;  %v5525_v51 = vrot.slane %v5523_v16, 4  ;;  %v5530_v50 = vrot.slane %v5528_v62, 3  ;;  %v4850_v0 = vshll.u32 %v15478_v25, 16  ;;  %v11472_v62 = vld [vmem:[#allocation3 + $0x60] sm:$0xff]  }
 0x4c4   :  { %19168 = vst [vmem:[#allocation48_spill] sm:$0xff] %v15613_v1  ;;  %10989 = vmatmul.mubr.bf16.gmra.mxu1 %v15613_v1  ;;  %v5818_v8 = vor.u32 %v5817_v28, %v5814_v54  ;;  %v15626_v55 = vcombine.low %v15605_v21, %v15609_v29  ;;  %v5533_v43 = vrot.slane %v5531_v36, 4  ;;  %v5232_v11 = vrot.slane %v11406_v58, 5 }
 0x4c5   :  { %v5526_v19 = vor.u32 %v5525_v51, %v5522_v41  ;;  %v15630_v10 = vcombine.low %v15616_v57, %v15618_v44  ;;  %v4852_v32 = vrot.slane %v4850_v0, 5  ;;  %v5235_v54 = vrot.slane %v11408_v49, 5  ;;  %7854 = vmatpush2.bf16.msra.mxu1 %v11472_v62 }
 0x4c6   :  { %v15633_v48 = vsel %vm5303_vm3, %v5810_v61, %v5818_v8  ;;  %v5231_v39 = vrot.slane %v15626_v55, 5  ;;  %v5534_v25 = vor.u32 %v5533_v43, %v5530_v50  ;;  %v10207_v28 = vcombine.low %v4354_v30, %v15454_v15  ;;  %7855 = vmatprep.subr.bf16.mxu1 %v19136_v31 }
 0x4c7   :  { %19169 = vst [vmem:[#allocation13_spill] sm:$0xff] %v15633_v48  ;;  %10992 = vmatprep.mubr.bf16.mxu1 %v15633_v48  ;;  %v5234_v16 = vrot.slane %v15630_v10, 5  ;;  %v10208_v58 = vcombine.low %v15458_v33, %v15458_v33  ;;  %v4853_v41 = vor.u32 %v4852_v32, %v4849_v6  ;;  %v11477_v48 = vld [vmem:[#allocation3 + $0x58] sm:$0xff]  }
 0x4c8   :  { %v5233_v51 = vsel %vm5194_vm2, %v5231_v39, %v5232_v11  ;;  %v5847_v61 = vshrl.u32 %v5231_v39, 16  ;;  %v5850_v36 = vshll.u32 %v5231_v39, 16  ;;  %v15643_v8 = vsel %vm5303_vm3, %v5526_v19, %v5534_v25 }
 0x4c9   :  { %19170 = vst [vmem:[#allocation16_spill] sm:$0xff] %v15643_v8  ;;  %v5855_v49 = vshrl.u32 %v5233_v51, 16  ;;  %v5858_v0 = vshll.u32 %v5233_v51, 16  ;;  %v5236_v50 = vsel %vm5194_vm2, %v5234_v16, %v5235_v54  ;;  %7174 = vmatmul.mubr.bf16.gmra.mxu0 %v15643_v8  ;;  %v5580_v15 = vshrl.u32 %v4853_v41, 16  ;;  %7856 = vmatpush2.bf16.msra.mxu1 %v11477_v48 }
 0x4ca   :  { %v5583_v30 = vshll.u32 %v4853_v41, 16  ;;  %v5849_v43 = vrot.slane %v5847_v61, 3  ;;  %v5852_v33 = vrot.slane %v5850_v36, 4  ;;  %v5890_v32 = vshrl.u32 %v5234_v16, 16  ;;  %7857 = vmatprep.subr.bf16.mxu1 %v19136_v31 }
 0x4cb   :  { %v5857_v6 = vrot.slane %v5855_v49, 3  ;;  %v5860_v11 = vrot.slane %v5858_v0, 4  ;;  %v5893_v39 = vshll.u32 %v5234_v16, 16  ;;  %v5582_v19 = vrot.slane %v5580_v15, 3  ;;  %v15652_v0 = vld [vmem:[#allocation2 + $0xe8] sm:$0xf] }
 0x4cc   :  { %v5585_v25 = vrot.slane %v5583_v30, 4  ;;  %v5853_v1 = vor.u32 %v5852_v33, %v5849_v43  ;;  %v5898_v51 = vshrl.u32 %v5236_v50, 16  ;;  %v5892_v62 = vrot.slane %v5890_v32, 3  ;;  %v4391_v33 = vld [vmem:[#allocation2 + $0xf4] sm:$0xf] }
 0x4cd   :  { %v5861_v54 = vor.u32 %v5860_v11, %v5857_v6  ;;  %v5895_v45 = vrot.slane %v5893_v39, 4  ;;  %v5901_v42 = vshll.u32 %v5236_v50, 16  ;;  %v5563_v36 = vshrl.u32 %v10207_v28, 16  ;;  %v11414_v50 = vld [vmem:[#allocation2 + $0xfc] ss:$0 sps:$4 sm:$0xff]  }
 0x4ce   :  { %v15650_v41 = vor.u32 %v5585_v25, %v5582_v19  ;;  %v5900_v61 = vrot.slane %v5898_v51, 3  ;;  %v5566_v49 = vshll.u32 %v10207_v28, 16  ;;  %v5571_v43 = vshrl.u32 %v10208_v58, 16  ;;  %v4392_v32 = vld [vmem:[#allocation2 + $0xf8] sm:$0xf] }
 0x4cf   :  { %v15656_v16 = vsel %vm5303_vm3, %v5853_v1, %v5861_v54  ;;  %v5896_v15 = vor.u32 %v5895_v45, %v5892_v62  ;;  %v5903_v30 = vrot.slane %v5901_v42, 4  ;;  %v5565_v48 = vrot.slane %v5563_v36, 3  ;;  %v4358_v45 = vld [vmem:[#allocation2 + $0x70] sm:$0xf] }
 0x4d0   :  { %19171 = vst [vmem:[#allocation91_spill] sm:$0xff] %v15650_v41  ;;  %19172 = vst [vmem:[#allocation79_spill] sm:$0xff] %v15656_v16  ;;  %7181 = vmatprep.mubr.bf16.mxu0 %v15650_v41  ;;  %10993 = vmatmul.mubr.bf16.gmra.mxu1 %v15656_v16  ;;  %v5568_v6 = vrot.slane %v5566_v49, 4  ;;  %v5574_v11 = vshll.u32 %v10208_v58, 16  ;;  %v4855_v28 = vshrl.u32 %v15482_v47, 16  ;;  %v5573_v19 = vrot.slane %v5571_v43, 3 }
 0x4d1   :  { %v5904_v39 = vor.u32 %v5903_v30, %v5900_v61  ;;  %v4858_v1 = vshll.u32 %v15482_v47, 16  ;;  %v15664_v42 = vcombine.low %v15648_v53, %v15652_v0  ;;  %v5238_v62 = vrot.slane %v11412_v4, 5 }
 0x4d2   :  { %v5569_v25 = vor.u32 %v5568_v6, %v5565_v48  ;;  %v5576_v51 = vrot.slane %v5574_v11, 4  ;;  %v4857_v54 = vrot.slane %v4855_v28, 4  ;;  %v15670_v16 = vcombine.low %v4391_v33, %v4392_v32  ;;  %v11480_v48 = vld [vmem:[#allocation3 + $0x50] sm:$0xff]  }
 0x4d3   :  { %v15667_v36 = vsel %vm5303_vm3, %v5896_v15, %v5904_v39  ;;  %v4860_v58 = vrot.slane %v4858_v1, 5  ;;  %v5237_v49 = vrot.slane %v15664_v42, 5  ;;  %v5241_v61 = vrot.slane %v11414_v50, 5  ;;  %7858 = vmatpush2.bf16.msra.mxu1 %v11480_v48  ;;  %v11483_v50 = vld [vmem:[#allocation3 + $0x48] sm:$0xff]  }
 0x4d4   :  { %19173 = vst [vmem:[#allocation17_spill] sm:$0xff] %v15667_v36  ;;  %10996 = vmatprep.mubr.bf16.mxu1 %v15667_v36  ;;  %v5577_v47 = vor.u32 %v5576_v51, %v5573_v19  ;;  %v10209_v30 = vcombine.low %v4358_v45, %v15464_v40  ;;  %v10210_v43 = vcombine.low %v15466_v13, %v15466_v13  ;;  %v5240_v39 = vrot.slane %v15670_v16, 5 }
 0x4d5   :  { %v4861_v6 = vor.u32 %v4860_v58, %v4857_v54  ;;  %v5239_v4 = vsel %vm5194_vm2, %v5237_v49, %v5238_v62  ;;  %v5933_v15 = vshrl.u32 %v5237_v49, 16  ;;  %v5936_v11 = vshll.u32 %v5237_v49, 16  ;;  %7859 = vmatprep.subr.bf16.mxu1 %v19136_v31 }
 0x4d6   :  { %v15678_v28 = vsel %vm5303_vm3, %v5569_v25, %v5577_v47  ;;  %v5941_v33 = vshrl.u32 %v5239_v4, 16  ;;  %v5944_v32 = vshll.u32 %v5239_v4, 16  ;;  %v5242_v54 = vsel %vm5194_vm2, %v5240_v39, %v5241_v61  ;;  %v11418_v4 = vld [vmem:[#allocation2 + $0x10c] ss:$0 sps:$4 sm:$0xff]  }
 0x4d7   :  { %19174 = vst [vmem:[#allocation49_spill] sm:$0xff] %v15678_v28  ;;  %7182 = vmatmul.mubr.bf16.gmra.mxu0 %v15678_v28  ;;  %v5623_v40 = vshrl.u32 %v4861_v6, 16  ;;  %v5626_v19 = vshll.u32 %v4861_v6, 16  ;;  %v5935_v13 = vrot.slane %v5933_v15, 3  ;;  %v5938_v1 = vrot.slane %v5936_v11, 4  ;;  %7860 = vmatpush2.bf16.msra.mxu1 %v11483_v50 }
 0x4d8   :  { %v5943_v45 = vrot.slane %v5941_v33, 3  ;;  %v5946_v51 = vrot.slane %v5944_v32, 4  ;;  %v5976_v25 = vshrl.u32 %v5240_v39, 16  ;;  %v5979_v47 = vshll.u32 %v5240_v39, 16  ;;  %v4396_v32 = vld [vmem:[#allocation2 + $0x108] sm:$0xf]  ;;  %7861 = vmatprep.subr.bf16.mxu1 %v19136_v31 }
 0x4d9   :  { %v5625_v62 = vrot.slane %v5623_v40, 3  ;;  %v5628_v58 = vrot.slane %v5626_v19, 4  ;;  %v5939_v49 = vor.u32 %v5938_v1, %v5935_v13  ;;  %v5984_v59 = vshrl.u32 %v5242_v54, 16  ;;  %v4407_v13 = vld [vmem:[#allocation2 + $0x134] sm:$0xf]  ;;  %v11486_v1 = vld [vmem:[#allocation3 + $0x40] sm:$0xff]  }
 0x4da   :  { %v5947_v48 = vor.u32 %v5946_v51, %v5943_v45  ;;  %v5978_v36 = vrot.slane %v5976_v25, 3  ;;  %v5987_v22 = vshll.u32 %v5242_v54, 16  ;;  %v5981_v15 = vrot.slane %v5979_v47, 4  ;;  %v4408_v54 = vld [vmem:[#allocation2 + $0x138] sm:$0xf] }
 0x4db   :  { %v15684_v6 = vor.u32 %v5628_v58, %v5625_v62  ;;  %v5606_v11 = vshrl.u32 %v10209_v30, 16  ;;  %v5609_v33 = vshll.u32 %v10209_v30, 16  ;;  %v5986_v39 = vrot.slane %v5984_v59, 3  ;;  %v4362_v59 = vld [vmem:[#allocation2 + $0x80] sm:$0xf]  ;;  %7862 = vmatpush2.bf16.msra.mxu1 %v11486_v1 }
 0x4dc   :  { %v15688_v61 = vsel %vm5303_vm3, %v5939_v49, %v5947_v48  ;;  %v5989_v40 = vrot.slane %v5987_v22, 4  ;;  %v5614_v19 = vshrl.u32 %v10210_v43, 16  ;;  %v5982_v50 = vor.u32 %v5981_v15, %v5978_v36 }
 0x4dd   :  { %19175 = vst [vmem:[#allocation92_spill] sm:$0xff] %v15684_v6  ;;  %19176 = vst [vmem:[#allocation57_spill] sm:$0xff] %v15688_v61  ;;  %7189 = vmatprep.mubr.bf16.mxu0 %v15684_v6  ;;  %10997 = vmatmul.mubr.bf16.gmra.mxu1 %v15688_v61  ;;  %v5608_v45 = vrot.slane %v5606_v11, 3  ;;  %v5611_v51 = vrot.slane %v5609_v33, 4  ;;  %v5617_v30 = vshll.u32 %v10210_v43, 16  ;;  %v4863_v58 = vshrl.u32 %v15526_v20, 16 }
 0x4de   :  { %v5990_v25 = vor.u32 %v5989_v40, %v5986_v39  ;;  %v5616_v62 = vrot.slane %v5614_v19, 3  ;;  %v4866_v49 = vshll.u32 %v15526_v20, 16  ;;  %v15694_v48 = vcombine.low %v4395_v52, %v4396_v32 }
 0x4df   :  { %v5612_v22 = vor.u32 %v5611_v51, %v5608_v45  ;;  %v5619_v47 = vrot.slane %v5617_v30, 4  ;;  %v5244_v6 = vrot.slane %v11418_v4, 5  ;;  %v4865_v36 = vrot.slane %v4863_v58, 4  ;;  %v11492_v45 = vld [vmem:[#allocation3 + $0x98] sm:$0xff]  }
 0x4e0   :  { %v15697_v61 = vsel %vm5303_vm3, %v5982_v50, %v5990_v25  ;;  %v4868_v15 = vrot.slane %v4866_v49, 5  ;;  %v15699_v43 = vcombine.low %v4407_v13, %v4408_v54  ;;  %v5243_v33 = vrot.slane %v15694_v48, 5  ;;  %11044 = vmatprep.subr.bf16.mxu0 %v11492_v45 }
 0x4e1   :  { %19177 = vst [vmem:[#allocation19_spill] sm:$0xff] %v15697_v61  ;;  %11000 = vmatprep.mubr.bf16.mxu1 %v15697_v61  ;;  %v5620_v11 = vor.u32 %v5619_v47, %v5616_v62  ;;  %v5253_v20 = vrot.slane %v11420_v7, 5  ;;  %v10211_v39 = vcombine.low %v4362_v59, %v15510_v56  ;;  %v10212_v4 = vcombine.low %v15512_v24, %v15512_v24  ;;  %v4411_v61 = vld [vmem:[#allocation2 + $0x144] sm:$0xf] }
 0x4e2   :  { %v4869_v40 = vor.u32 %v4868_v15, %v4865_v36  ;;  %v5252_v52 = vrot.slane %v15699_v43, 5  ;;  %v4871_v32 = vshrl.u32 %v15530_v46, 16  ;;  %v5245_v13 = vsel %vm5194_vm2, %v5243_v33, %v5244_v6  ;;  %11045 = vmatpush3.bf16.msra.mxu0 %v11492_v45 }
 0x4e3   :  { %v15709_v19 = vsel %vm5303_vm3, %v5612_v22, %v5620_v11  ;;  %v6851_v1 = vshrl.u32 %v5243_v33, 16  ;;  %v6854_v50 = vshll.u32 %v5243_v33, 16  ;;  %v6859_v51 = vshrl.u32 %v5245_v13, 16  ;;  %v11424_v11 = vld [vmem:[#allocation2 + $0x14c] ss:$0 sps:$4 sm:$0xff]  }
 0x4e4   :  { %19178 = vst [vmem:[#allocation32_spill] sm:$0xff] %v15709_v19  ;;  %7190 = vmatmul.mubr.bf16.gmra.mxu0 %v15709_v19  ;;  %v5666_v7 = vshrl.u32 %v4869_v40, 16  ;;  %v5669_v56 = vshll.u32 %v4869_v40, 16  ;;  %v6862_v30 = vshll.u32 %v5245_v13, 16  ;;  %v5254_v24 = vsel %vm5194_vm2, %v5252_v52, %v5253_v20  ;;  %v11426_v33 = vld [vmem:[#allocation2 + $0x15c] ss:$0 sps:$4 sm:$0xff]  }
 0x4e5   :  { %v6853_v54 = vrot.slane %v6851_v1, 3  ;;  %v6856_v25 = vrot.slane %v6854_v50, 4  ;;  %v6062_v62 = vshrl.u32 %v5252_v52, 16  ;;  %v6861_v59 = vrot.slane %v6859_v51, 3  ;;  %v4412_v20 = vld [vmem:[#allocation2 + $0x148] sm:$0xf] }
 0x4e6   :  { %v5668_v58 = vrot.slane %v5666_v7, 3  ;;  %v5671_v49 = vrot.slane %v5669_v56, 4  ;;  %v6864_v22 = vrot.slane %v6862_v30, 4  ;;  %v6065_v36 = vshll.u32 %v5252_v52, 16  ;;  %v4415_v51 = vld [vmem:[#allocation2 + $0x154] sm:$0xf] }
 0x4e7   :  { %v6857_v6 = vor.u32 %v6856_v25, %v6853_v54  ;;  %v6064_v47 = vrot.slane %v6062_v62, 3  ;;  %v6070_v15 = vshrl.u32 %v5254_v24, 16  ;;  %v6073_v1 = vshll.u32 %v5254_v24, 16  ;;  %v4416_v25 = vld [vmem:[#allocation2 + $0x158] sm:$0xf] }
 0x4e8   :  { %v15714_v40 = vor.u32 %v5671_v49, %v5668_v58  ;;  %v6865_v13 = vor.u32 %v6864_v22, %v6861_v59  ;;  %v5649_v50 = vshrl.u32 %v10211_v39, 16  ;;  %v6067_v19 = vrot.slane %v6065_v36, 4 }
 0x4e9   :  { %v6072_v28 = vrot.slane %v6070_v15, 3  ;;  %v5652_v7 = vshll.u32 %v10211_v39, 16  ;;  %v5657_v56 = vshrl.u32 %v10212_v4, 16  ;;  %v6075_v52 = vrot.slane %v6073_v1, 4  ;;  %v4366_v15 = vld [vmem:[#allocation2 + $0x90] sm:$0xf] }
 0x4ea   :  { %19179 = vst [vmem:[#allocation95_spill] sm:$0xff] %v15714_v40  ;;  %7197 = vmatprep.mubr.bf16.mxu0 %v15714_v40  ;;  %v15718_v45 = vsel %vm5303_vm3, %v6857_v6, %v6865_v13  ;;  %v5651_v30 = vrot.slane %v5649_v50, 3  ;;  %v5660_v54 = vshll.u32 %v10212_v4, 16  ;;  %v6068_v24 = vor.u32 %v6067_v19, %v6064_v47 }
 0x4eb   :  { %19180 = vst [vmem:[#allocation20_spill] sm:$0xff] %v15718_v45  ;;  %11001 = vmatmul.mubr.bf16.gmra.mxu1 %v15718_v45  ;;  %v5654_v62 = vrot.slane %v5652_v7, 4  ;;  %v5659_v58 = vrot.slane %v5657_v56, 3  ;;  %v4873_v49 = vrot.slane %v4871_v32, 4  ;;  %v6076_v59 = vor.u32 %v6075_v52, %v6072_v28  ;;  %v11435_v45 = vld [vmem:[#allocation2 + $0x17c] ss:$0 sps:$4 sm:$0xff]  }
 0x4ec   :  { %v5662_v22 = vrot.slane %v5660_v54, 4  ;;  %v4874_v39 = vshll.u32 %v15530_v46, 16  ;;  %v15722_v36 = vcombine.low %v4411_v61, %v4412_v20  ;;  %v5256_v6 = vrot.slane %v11424_v11, 5 }
 0x4ed   :  { %v5655_v40 = vor.u32 %v5654_v62, %v5651_v30  ;;  %v15724_v13 = vcombine.low %v4415_v51, %v4416_v25  ;;  %v5259_v1 = vrot.slane %v11426_v33, 5  ;;  %v15727_v4 = vsel %vm5303_vm3, %v6068_v24, %v6076_v59 }
 0x4ee   :  { %19181 = vst [vmem:[#allocation34_spill] sm:$0xff] %v15727_v4  ;;  %v5663_v50 = vor.u32 %v5662_v22, %v5659_v58  ;;  %v4876_v19 = vrot.slane %v4874_v39, 5  ;;  %v5255_v47 = vrot.slane %v15722_v36, 5  ;;  %11004 = vmatprep.mubr.bf16.mxu1 %v15727_v4  ;;  %v10213_v46 = vcombine.low %v4366_v15, %v15514_v5  ;;  %v11433_v15 = vld [vmem:[#allocation2 + $0x16c] ss:$0 sps:$4 sm:$0xff]  }
 0x4ef   :  { %v5258_v28 = vrot.slane %v15724_v13, 5  ;;  %v10214_v61 = vcombine.low %v15520_v26, %v15520_v26  ;;  %v4879_v32 = vshrl.u32 %v15576_v63, 16 }
 0x4f0   :  { %v15737_v11 = vsel %vm5303_vm3, %v5655_v40, %v5663_v50  ;;  %v4877_v33 = vor.u32 %v4876_v19, %v4873_v49  ;;  %v5257_v20 = vsel %vm5194_vm2, %v5255_v47, %v5256_v6  ;;  %v6105_v7 = vshrl.u32 %v5255_v47, 16 }
 0x4f1   :  { %19182 = vst [vmem:[#allocation67_spill] sm:$0xff] %v15737_v11  ;;  %7198 = vmatmul.mubr.bf16.gmra.mxu0 %v15737_v11  ;;  %v6108_v56 = vshll.u32 %v5255_v47, 16  ;;  %v6113_v51 = vshrl.u32 %v5257_v20, 16  ;;  %v6116_v52 = vshll.u32 %v5257_v20, 16  ;;  %v5260_v30 = vsel %vm5194_vm2, %v5258_v28, %v5259_v1  ;;  %v4419_v20 = vld [vmem:[#allocation2 + $0x164] sm:$0xf] }
 0x4f2   :  { %v5709_v5 = vshrl.u32 %v4877_v33, 16  ;;  %v5712_v54 = vshll.u32 %v4877_v33, 16  ;;  %v6107_v25 = vrot.slane %v6105_v7, 3  ;;  %v6148_v26 = vshrl.u32 %v5258_v28, 16 }
 0x4f3   :  { %v6110_v24 = vrot.slane %v6108_v56, 4  ;;  %v6115_v62 = vrot.slane %v6113_v51, 3  ;;  %v6118_v58 = vrot.slane %v6116_v52, 4  ;;  %v6151_v40 = vshll.u32 %v5258_v28, 16  ;;  %v4420_v56 = vld [vmem:[#allocation2 + $0x168] sm:$0xf] }
 0x4f4   :  { %v5711_v59 = vrot.slane %v5709_v5, 3  ;;  %v5714_v49 = vrot.slane %v5712_v54, 4  ;;  %v6150_v22 = vrot.slane %v6148_v26, 3  ;;  %v6156_v39 = vshrl.u32 %v5260_v30, 16  ;;  %v4423_v54 = vld [vmem:[#allocation2 + $0x174] sm:$0xf] }
 0x4f5   :  { %v6111_v6 = vor.u32 %v6110_v24, %v6107_v25  ;;  %v6119_v50 = vor.u32 %v6118_v58, %v6115_v62  ;;  %v6153_v19 = vrot.slane %v6151_v40, 4  ;;  %v6159_v47 = vshll.u32 %v5260_v30, 16  ;;  %v4424_v26 = vld [vmem:[#allocation2 + $0x178] sm:$0xf] }
 0x4f6   :  { %v15742_v1 = vor.u32 %v5714_v49, %v5711_v59  ;;  %v6158_v33 = vrot.slane %v6156_v39, 3  ;;  %v5692_v7 = vshrl.u32 %v10213_v46, 16  ;;  %v5695_v4 = vshll.u32 %v10213_v46, 16  ;;  %v4370_v49 = vld [vmem:[#allocation2 + $0xa0] sm:$0xf] }
 0x4f7   :  { %v15745_v51 = vsel %vm5303_vm3, %v6111_v6, %v6119_v50  ;;  %v6154_v28 = vor.u32 %v6153_v19, %v6150_v22  ;;  %v6161_v52 = vrot.slane %v6159_v47, 4  ;;  %v5700_v5 = vshrl.u32 %v10214_v61, 16 }
 0x4f8   :  { %19183 = vst [vmem:[#allocation97_spill] sm:$0xff] %v15742_v1  ;;  %19184 = vst [vmem:[#allocation59_spill] sm:$0xff] %v15745_v51  ;;  %7205 = vmatprep.mubr.bf16.mxu0 %v15742_v1  ;;  %11005 = vmatmul.mubr.bf16.gmra.mxu1 %v15745_v51  ;;  %v5694_v30 = vrot.slane %v5692_v7, 3  ;;  %v5697_v25 = vrot.slane %v5695_v4, 4  ;;  %v5703_v24 = vshll.u32 %v10214_v61, 16  ;;  %v4881_v62 = vrot.slane %v4879_v32, 4 }
 0x4f9   :  { %v6162_v58 = vor.u32 %v6161_v52, %v6158_v33  ;;  %v5702_v40 = vrot.slane %v5700_v5, 3  ;;  %v4882_v46 = vshll.u32 %v15576_v63, 16  ;;  %v15750_v59 = vcombine.low %v4419_v20, %v4420_v56 }
 0x4fa   :  { %v5698_v22 = vor.u32 %v5697_v25, %v5694_v30  ;;  %v5705_v39 = vrot.slane %v5703_v24, 4  ;;  %v5262_v6 = vrot.slane %v11433_v15, 5  ;;  %v15752_v50 = vcombine.low %v4423_v54, %v4424_v26 }
 0x4fb   :  { %v15755_v19 = vsel %vm5303_vm3, %v6154_v28, %v6162_v58  ;;  %v4884_v47 = vrot.slane %v4882_v46, 5  ;;  %v5261_v4 = vrot.slane %v15750_v59, 5  ;;  %v5265_v61 = vrot.slane %v11435_v45, 5 }
 0x4fc   :  { %19185 = vst [vmem:[#allocation71_spill] sm:$0xff] %v15755_v19  ;;  %11008 = vmatprep.mubr.bf16.mxu1 %v15755_v19  ;;  %v5706_v32 = vor.u32 %v5705_v39, %v5702_v40  ;;  %v5264_v63 = vrot.slane %v15752_v50, 5  ;;  %v10215_v20 = vcombine.low %v4370_v49, %v15555_v14  ;;  %v10216_v33 = vcombine.low %v15559_v60, %v15559_v60 }
 0x4fd   :  { %v4885_v15 = vor.u32 %v4884_v47, %v4881_v62  ;;  %v5263_v7 = vsel %vm5194_vm2, %v5261_v4, %v5262_v6  ;;  %v6191_v56 = vshrl.u32 %v5261_v4, 16  ;;  %v6194_v28 = vshll.u32 %v5261_v4, 16 }
 0x4fe   :  { %v15765_v52 = vsel %vm5303_vm3, %v5698_v22, %v5706_v32  ;;  %v6199_v5 = vshrl.u32 %v5263_v7, 16  ;;  %v6202_v45 = vshll.u32 %v5263_v7, 16  ;;  %v5266_v54 = vsel %vm5194_vm2, %v5264_v63, %v5265_v61  ;;  %v4427_v22 = vld [vmem:[#allocation2 + $0x184] sm:$0xf]  ;;  %v4428_v61 = vld [vmem:[#allocation2 + $0x188] sm:$0xf] }
 0x4ff   :  { %19186 = vst [vmem:[#allocation35_spill] sm:$0xff] %v15765_v52  ;;  %7206 = vmatmul.mubr.bf16.gmra.mxu0 %v15765_v52  ;;  %v5752_v26 = vshrl.u32 %v4885_v15, 16  ;;  %v5755_v30 = vshll.u32 %v4885_v15, 16  ;;  %v6193_v14 = vrot.slane %v6191_v56, 3  ;;  %v6196_v25 = vrot.slane %v6194_v28, 4 }
 0x500   :  { %v6201_v24 = vrot.slane %v6199_v5, 3  ;;  %v6204_v60 = vrot.slane %v6202_v45, 4  ;;  %v6234_v62 = vshrl.u32 %v5264_v63, 16  ;;  %v6237_v58 = vshll.u32 %v5264_v63, 16  ;;  %v11441_v28 = vld [vmem:[#allocation2 + $0x18c] ss:$0 sps:$4 sm:$0xff]  }
 0x501   :  { %v5754_v40 = vrot.slane %v5752_v26, 3  ;;  %v5757_v46 = vrot.slane %v5755_v30, 4  ;;  %v6197_v49 = vor.u32 %v6196_v25, %v6193_v14  ;;  %v6242_v39 = vshrl.u32 %v5266_v54, 16  ;;  %v11501_v5 = vld [vmem:[#allocation3 + $0x90] sm:$0xff]   ;;  %v4432_v25 = vld [vmem:[#allocation2 + $0x198] sm:$0xf] }
 0x502   :  { %v6205_v6 = vor.u32 %v6204_v60, %v6201_v24  ;;  %v6236_v47 = vrot.slane %v6234_v62, 3  ;;  %v6239_v4 = vrot.slane %v6237_v58, 4  ;;  %v6245_v32 = vshll.u32 %v5266_v54, 16  ;;  %v4431_v14 = vld [vmem:[#allocation2 + $0x194] sm:$0xf]  ;;  %11046 = vmatprep.subr.bf16.mxu0 %v11501_v5 }
 0x503   :  { %v15769_v7 = vor.u32 %v5757_v46, %v5754_v40  ;;  %v6244_v19 = vrot.slane %v6242_v39, 3  ;;  %v5735_v15 = vshrl.u32 %v10215_v20, 16  ;;  %v5738_v56 = vshll.u32 %v10215_v20, 16  ;;  %v11443_v20 = vld [vmem:[#allocation2 + $0x19c] ss:$0 sps:$4 sm:$0xff]   ;;  %11047 = vmatpush3.bf16.msra.mxu0 %v11501_v5 }
 0x504   :  { %v15772_v45 = vsel %vm5303_vm3, %v6197_v49, %v6205_v6  ;;  %v6240_v63 = vor.u32 %v6239_v4, %v6236_v47  ;;  %v6247_v26 = vrot.slane %v6245_v32, 4  ;;  %v5743_v30 = vshrl.u32 %v10216_v33, 16  ;;  %v4374_v39 = vld [vmem:[#allocation2 + $0xb0] sm:$0xf] }
 0x505   :  { %19187 = vst [vmem:[#allocation94_spill] sm:$0xff] %v15769_v7  ;;  %19188 = vst [vmem:[#allocation26_spill] sm:$0xff] %v15772_v45  ;;  %7213 = vmatprep.mubr.bf16.mxu0 %v15769_v7  ;;  %11009 = vmatmul.mubr.bf16.gmra.mxu1 %v15772_v45  ;;  %v5737_v54 = vrot.slane %v5735_v15, 3  ;;  %v5740_v24 = vrot.slane %v5738_v56, 4  ;;  %v5746_v60 = vshll.u32 %v10216_v33, 16  ;;  %v4887_v62 = vshrl.u32 %v15580_v35, 16 }
 0x506   :  { %v6248_v58 = vor.u32 %v6247_v26, %v6244_v19  ;;  %v5745_v40 = vrot.slane %v5743_v30, 3  ;;  %v4890_v46 = vshll.u32 %v15580_v35, 16  ;;  %v15778_v49 = vcombine.low %v4427_v22, %v4428_v61 }
 0x507   :  { %v5741_v6 = vor.u32 %v5740_v24, %v5737_v54  ;;  %v5748_v47 = vrot.slane %v5746_v60, 4  ;;  %v4889_v4 = vrot.slane %v4887_v62, 4  ;;  %v5268_v32 = vrot.slane %v11441_v28, 5 }
 0x508   :  { %v15781_v15 = vsel %vm5303_vm3, %v6240_v63, %v6248_v58  ;;  %v4892_v33 = vrot.slane %v4890_v46, 5  ;;  %v5267_v56 = vrot.slane %v15778_v49, 5  ;;  %v15784_v45 = vcombine.low %v4431_v14, %v4432_v25 }
 0x509   :  { %19189 = vst [vmem:[#allocation37_spill] sm:$0xff] %v15781_v15  ;;  %11012 = vmatprep.mubr.bf16.mxu1 %v15781_v15  ;;  %v5749_v35 = vor.u32 %v5748_v47, %v5745_v40  ;;  %v5271_v19 = vrot.slane %v11443_v20, 5  ;;  %v10217_v22 = vcombine.low %v4374_v39, %v15561_v27  ;;  %v10218_v61 = vcombine.low %v15565_v38, %v15565_v38  ;;  %v11449_v15 = vld [vmem:[#allocation2 + $0x1ac] ss:$0 sps:$4 sm:$0xff]  }
 0x50a   :  { %v4893_v26 = vor.u32 %v4892_v33, %v4889_v4  ;;  %v5269_v28 = vsel %vm5194_vm2, %v5267_v56, %v5268_v32  ;;  %v6277_v5 = vshrl.u32 %v5267_v56, 16  ;;  %v6280_v63 = vshll.u32 %v5267_v56, 16 }
 0x50b   :  { %v15792_v30 = vsel %vm5303_vm3, %v5741_v6, %v5749_v35  ;;  %v6285_v54 = vshrl.u32 %v5269_v28, 16  ;;  %v6288_v14 = vshll.u32 %v5269_v28, 16  ;;  %v5270_v25 = vrot.slane %v15784_v45, 5  ;;  %v4435_v35 = vld [vmem:[#allocation2 + $0x1a4] sm:$0xf] }
 0x50c   :  { %19190 = vst [vmem:[#allocation23_spill] sm:$0xff] %v15792_v30  ;;  %7214 = vmatmul.mubr.bf16.gmra.mxu0 %v15792_v30  ;;  %v5795_v24 = vshrl.u32 %v4893_v26, 16  ;;  %v5798_v60 = vshll.u32 %v4893_v26, 16  ;;  %v6279_v27 = vrot.slane %v6277_v5, 3  ;;  %v6282_v62 = vrot.slane %v6280_v63, 4 }
 0x50d   :  { %v6287_v20 = vrot.slane %v6285_v54, 3  ;;  %v6290_v38 = vrot.slane %v6288_v14, 4  ;;  %v5272_v58 = vsel %vm5194_vm2, %v5270_v25, %v5271_v19  ;;  %v6320_v40 = vshrl.u32 %v5270_v25, 16  ;;  %v4436_v28 = vld [vmem:[#allocation2 + $0x1a8] sm:$0xf] }
 0x50e   :  { %v5797_v46 = vrot.slane %v5795_v24, 3  ;;  %v5800_v39 = vrot.slane %v5798_v60, 4  ;;  %v6283_v47 = vor.u32 %v6282_v62, %v6279_v27  ;;  %v6323_v6 = vshll.u32 %v5270_v25, 16  ;;  %v4439_v54 = vld [vmem:[#allocation2 + $0x1b4] sm:$0xf] }
 0x50f   :  { %v6291_v4 = vor.u32 %v6290_v38, %v6287_v20  ;;  %v6322_v32 = vrot.slane %v6320_v40, 3  ;;  %v6328_v33 = vshrl.u32 %v5272_v58, 16  ;;  %v6331_v56 = vshll.u32 %v5272_v58, 16  ;;  %v4440_v25 = vld [vmem:[#allocation2 + $0x1b8] sm:$0xf] }
 0x510   :  { %v15797_v51 = vor.u32 %v5800_v39, %v5797_v46  ;;  %v6325_v26 = vrot.slane %v6323_v6, 4  ;;  %v5778_v5 = vshrl.u32 %v10217_v22, 16  ;;  %v5781_v63 = vshll.u32 %v10217_v22, 16  ;;  %v11451_v58 = vld [vmem:[#allocation2 + $0x1bc] ss:$0 sps:$4 sm:$0xff]  }
 0x511   :  { %v15800_v19 = vsel %vm5303_vm3, %v6283_v47, %v6291_v4  ;;  %v6330_v14 = vrot.slane %v6328_v33, 3  ;;  %v6333_v24 = vrot.slane %v6331_v56, 4  ;;  %v5786_v60 = vshrl.u32 %v10218_v61, 16  ;;  %v4378_v47 = vld [vmem:[#allocation2 + $0xc0] sm:$0xf] }
 0x512   :  { %19191 = vst [vmem:[#allocation50_spill] sm:$0xff] %v15797_v51  ;;  %19192 = vst [vmem:[#allocation96_spill] sm:$0xff] %v15800_v19  ;;  %7221 = vmatprep.mubr.bf16.mxu0 %v15797_v51  ;;  %11013 = vmatmul.mubr.bf16.gmra.mxu1 %v15800_v19  ;;  %v6326_v27 = vor.u32 %v6325_v26, %v6322_v32  ;;  %v5780_v62 = vrot.slane %v5778_v5, 3  ;;  %v5783_v20 = vrot.slane %v5781_v63, 4  ;;  %v5789_v38 = vshll.u32 %v10218_v61, 16 }
 0x513   :  { %v6334_v40 = vor.u32 %v6333_v24, %v6330_v14  ;;  %v5788_v46 = vrot.slane %v5786_v60, 3  ;;  %v4895_v22 = vshrl.u32 %v15626_v55, 16  ;;  %v4898_v39 = vshll.u32 %v15626_v55, 16 }
 0x514   :  { %v5784_v6 = vor.u32 %v5783_v20, %v5780_v62  ;;  %v5791_v4 = vrot.slane %v5789_v38, 4  ;;  %v15806_v33 = vcombine.low %v4435_v35, %v4436_v28  ;;  %v5274_v56 = vrot.slane %v11449_v15, 5 }
 0x515   :  { %v15809_v51 = vsel %vm5303_vm3, %v6326_v27, %v6334_v40  ;;  %v4897_v32 = vrot.slane %v4895_v22, 4  ;;  %v4900_v26 = vrot.slane %v4898_v39, 5  ;;  %v15811_v5 = vcombine.low %v4439_v54, %v4440_v25 }
 0x516   :  { %19193 = vst [vmem:[#allocation101_spill] sm:$0xff] %v15809_v51  ;;  %11016 = vmatprep.mubr.bf16.mxu1 %v15809_v51  ;;  %v5792_v61 = vor.u32 %v5791_v4, %v5788_v46  ;;  %v5273_v63 = vrot.slane %v15806_v33, 5  ;;  %v5277_v14 = vrot.slane %v11451_v58, 5  ;;  %v10219_v55 = vcombine.low %v4378_v47, %v15605_v21 }
 0x517   :  { %v4901_v24 = vor.u32 %v4900_v26, %v4897_v32  ;;  %v5276_v35 = vrot.slane %v15811_v5, 5  ;;  %v10220_v15 = vcombine.low %v15609_v29, %v15609_v29  ;;  %v4903_v28 = vshrl.u32 %v15630_v10, 16 }
 0x518   :  { %v15821_v60 = vsel %vm5303_vm3, %v5784_v6, %v5792_v61  ;;  %v5275_v54 = vsel %vm5194_vm2, %v5273_v63, %v5274_v56  ;;  %v6363_v25 = vshrl.u32 %v5273_v63, 16  ;;  %v6366_v27 = vshll.u32 %v5273_v63, 16  ;;  %v4443_v61 = vld [vmem:[#allocation2 + $0x1c4] sm:$0xf]  ;;  %v4444_v63 = vld [vmem:[#allocation2 + $0x1c8] sm:$0xf] }
 0x519   :  { %19194 = vst [vmem:[#allocation15_spill] sm:$0xff] %v15821_v60  ;;  %7222 = vmatmul.mubr.bf16.gmra.mxu0 %v15821_v60  ;;  %v5838_v62 = vshrl.u32 %v4901_v24, 16  ;;  %v5841_v20 = vshll.u32 %v4901_v24, 16  ;;  %v6371_v21 = vshrl.u32 %v5275_v54, 16  ;;  %v6374_v38 = vshll.u32 %v5275_v54, 16 }
 0x51a   :  { %v6365_v58 = vrot.slane %v6363_v25, 3  ;;  %v6368_v40 = vrot.slane %v6366_v27, 4  ;;  %v5278_v46 = vsel %vm5194_vm2, %v5276_v35, %v5277_v14  ;;  %v6406_v29 = vshrl.u32 %v5276_v35, 16  ;;  %v11457_v25 = vld [vmem:[#allocation2 + $0x1cc] ss:$0 sps:$4 sm:$0xff]  }
 0x51b   :  { %v5840_v22 = vrot.slane %v5838_v62, 3  ;;  %v5843_v39 = vrot.slane %v5841_v20, 4  ;;  %v6373_v47 = vrot.slane %v6371_v21, 3  ;;  %v6376_v6 = vrot.slane %v6374_v38, 4  ;;  %v4447_v27 = vld [vmem:[#allocation2 + $0x1d4] sm:$0xf] }
 0x51c   :  { %v6369_v4 = vor.u32 %v6368_v40, %v6365_v58  ;;  %v6408_v32 = vrot.slane %v6406_v29, 3  ;;  %v6409_v56 = vshll.u32 %v5276_v35, 16  ;;  %v6414_v26 = vshrl.u32 %v5278_v46, 16  ;;  %v11459_v20 = vld [vmem:[#allocation2 + $0x1dc] ss:$0 sps:$4 sm:$0xff]  }
 0x51d   :  { %v15826_v51 = vor.u32 %v5843_v39, %v5840_v22  ;;  %v6377_v24 = vor.u32 %v6376_v6, %v6373_v47  ;;  %v6417_v19 = vshll.u32 %v5278_v46, 16  ;;  %v5821_v54 = vshrl.u32 %v10219_v55, 16  ;;  %v4448_v40 = vld [vmem:[#allocation2 + $0x1d8] sm:$0xf] }
 0x51e   :  { %v6411_v60 = vrot.slane %v6409_v56, 4  ;;  %v6416_v14 = vrot.slane %v6414_v26, 3  ;;  %v5824_v30 = vshll.u32 %v10219_v55, 16  ;;  %v5829_v62 = vshrl.u32 %v10220_v15, 16  ;;  %v4382_v26 = vld [vmem:[#allocation2 + $0xd0] sm:$0xf] }
 0x51f   :  { %19195 = vst [vmem:[#allocation41_spill] sm:$0xff] %v15826_v51  ;;  %7229 = vmatprep.mubr.bf16.mxu0 %v15826_v51  ;;  %v15830_v21 = vsel %vm5303_vm3, %v6369_v4, %v6377_v24  ;;  %v6419_v35 = vrot.slane %v6417_v19, 4  ;;  %v5823_v38 = vrot.slane %v5821_v54, 3  ;;  %v5832_v58 = vshll.u32 %v10220_v15, 16 }
 0x520   :  { %19196 = vst [vmem:[#allocation98_spill] sm:$0xff] %v15830_v21  ;;  %11017 = vmatmul.mubr.bf16.gmra.mxu1 %v15830_v21  ;;  %v6412_v46 = vor.u32 %v6411_v60, %v6408_v32  ;;  %v5826_v29 = vrot.slane %v5824_v30, 4  ;;  %v5831_v22 = vrot.slane %v5829_v62, 3  ;;  %v4905_v39 = vrot.slane %v4903_v28, 4  ;;  %v11510_v28 = vld [vmem:[#allocation3 + $0x88] sm:$0xff]  }
 0x521   :  { %v6420_v47 = vor.u32 %v6419_v35, %v6416_v14  ;;  %v5834_v6 = vrot.slane %v5832_v58, 4  ;;  %v4906_v55 = vshll.u32 %v15630_v10, 16  ;;  %v15834_v56 = vcombine.low %v4443_v61, %v4444_v63  ;;  %11048 = vmatprep.subr.bf16.mxu0 %v11510_v28 }
 0x522   :  { %v5827_v51 = vor.u32 %v5826_v29, %v5823_v38  ;;  %v5280_v4 = vrot.slane %v11457_v25, 5  ;;  %v15836_v24 = vcombine.low %v4447_v27, %v4448_v40  ;;  %v5283_v19 = vrot.slane %v11459_v20, 5  ;;  %11049 = vmatpush3.bf16.msra.mxu0 %v11510_v28 }
 0x523   :  { %v15839_v15 = vsel %vm5303_vm3, %v6412_v46, %v6420_v47  ;;  %v5835_v54 = vor.u32 %v5834_v6, %v5831_v22  ;;  %v4908_v60 = vrot.slane %v4906_v55, 5  ;;  %v5279_v30 = vrot.slane %v15834_v56, 5 }
 0x524   :  { %19197 = vst [vmem:[#allocation43_spill] sm:$0xff] %v15839_v15  ;;  %11020 = vmatprep.mubr.bf16.mxu1 %v15839_v15  ;;  %v5282_v10 = vrot.slane %v15836_v24, 5  ;;  %v10221_v32 = vcombine.low %v4382_v26, %v15616_v57  ;;  %v10222_v61 = vcombine.low %v15618_v44, %v15618_v44  ;;  %v4911_v63 = vshrl.u32 %v15664_v42, 16  ;;  %v4452_v15 = vld [vmem:[#allocation2 + $0x1e8] sm:$0xf] }
 0x525   :  { %v15849_v25 = vsel %vm5303_vm3, %v5827_v51, %v5835_v54  ;;  %v4909_v27 = vor.u32 %v4908_v60, %v4905_v39  ;;  %v5281_v14 = vsel %vm5194_vm2, %v5279_v30, %v5280_v4  ;;  %v6449_v62 = vshrl.u32 %v5279_v30, 16  ;;  %v4451_v4 = vld [vmem:[#allocation2 + $0x1e4] sm:$0xf] }
 0x526   :  { %19198 = vst [vmem:[#allocation52_spill] sm:$0xff] %v15849_v25  ;;  %7230 = vmatmul.mubr.bf16.gmra.mxu0 %v15849_v25  ;;  %v6452_v20 = vshll.u32 %v5279_v30, 16  ;;  %v6457_v35 = vshrl.u32 %v5281_v14, 16  ;;  %v6460_v38 = vshll.u32 %v5281_v14, 16  ;;  %v5284_v57 = vsel %vm5194_vm2, %v5282_v10, %v5283_v19  ;;  %v4455_v19 = vld [vmem:[#allocation2 + $0x1f4] sm:$0xf] }
 0x527   :  { %v5881_v58 = vshrl.u32 %v4909_v27, 16  ;;  %v5884_v40 = vshll.u32 %v4909_v27, 16  ;;  %v6451_v44 = vrot.slane %v6449_v62, 3  ;;  %v6492_v46 = vshrl.u32 %v5282_v10, 16  ;;  %v11650_v25 = vld [vmem:[#allocation2 + $0x178] sm:$0xf] }
 0x528   :  { %v6454_v29 = vrot.slane %v6452_v20, 4  ;;  %v6459_v51 = vrot.slane %v6457_v35, 3  ;;  %v6462_v22 = vrot.slane %v6460_v38, 4  ;;  %v6495_v39 = vshll.u32 %v5282_v10, 16  ;;  %v11466_v20 = vld [vmem:[#allocation2 + $0x1ec] ss:$0 sps:$4 sm:$0xff]  }
 0x529   :  { %v5883_v47 = vrot.slane %v5881_v58, 3  ;;  %v5886_v6 = vrot.slane %v5884_v40, 4  ;;  %v6494_v55 = vrot.slane %v6492_v46, 3  ;;  %v6500_v26 = vshrl.u32 %v5284_v57, 16  ;;  %v4456_v40 = vld [vmem:[#allocation2 + $0x1f8] sm:$0xf] }
 0x52a   :  { %v6455_v54 = vor.u32 %v6454_v29, %v6451_v44  ;;  %v6463_v60 = vor.u32 %v6462_v22, %v6459_v51  ;;  %v6497_v30 = vrot.slane %v6495_v39, 4  ;;  %v6503_v14 = vshll.u32 %v5284_v57, 16  ;;  %v11468_v46 = vld [vmem:[#allocation2 + $0x1fc] ss:$0 sps:$4 sm:$0xff]  }
 0x52b   :  { %v15854_v21 = vor.u32 %v5886_v6, %v5883_v47  ;;  %v6502_v27 = vrot.slane %v6500_v26, 3  ;;  %v5864_v62 = vshrl.u32 %v10221_v32, 16  ;;  %v5867_v28 = vshll.u32 %v10221_v32, 16  ;;  %v4386_v6 = vld [vmem:[#allocation2 + $0xe0] sm:$0xf] }
 0x52c   :  { %v15857_v35 = vsel %vm5303_vm3, %v6455_v54, %v6463_v60  ;;  %v6498_v10 = vor.u32 %v6497_v30, %v6494_v55  ;;  %v6505_v38 = vrot.slane %v6503_v14, 4  ;;  %v5872_v58 = vshrl.u32 %v10222_v61, 16 }
 0x52d   :  { %19199 = vst [vmem:[#allocation100_spill] sm:$0xff] %v15854_v21  ;;  %19200 = vst [vmem:[#allocation103_spill] sm:$0xff] %v15857_v35  ;;  %7237 = vmatprep.mubr.bf16.mxu0 %v15854_v21  ;;  %11021 = vmatmul.mubr.bf16.gmra.mxu1 %v15857_v35  ;;  %v5866_v57 = vrot.slane %v5864_v62, 3  ;;  %v5869_v44 = vrot.slane %v5867_v28, 4  ;;  %v5875_v29 = vshll.u32 %v10222_v61, 16  ;;  %v4913_v51 = vrot.slane %v4911_v63, 4 }
 0x52e   :  { %v6506_v22 = vor.u32 %v6505_v38, %v6502_v27  ;;  %v5874_v39 = vrot.slane %v5872_v58, 3  ;;  %v4914_v32 = vshll.u32 %v15664_v42, 16  ;;  %v15862_v47 = vcombine.low %v4451_v4, %v4452_v15  ;;  %v4467_v35 = vld [vmem:[#allocation2 + $0x224] sm:$0xf] }
 0x52f   :  { %v5870_v55 = vor.u32 %v5869_v44, %v5866_v57  ;;  %v5877_v26 = vrot.slane %v5875_v29, 4  ;;  %v5286_v54 = vrot.slane %v11466_v20, 5  ;;  %v15864_v60 = vcombine.low %v4455_v19, %v4456_v40 }
 0x530   :  { %v15867_v30 = vsel %vm5303_vm3, %v6498_v10, %v6506_v22  ;;  %v4916_v14 = vrot.slane %v4914_v32, 5  ;;  %v5285_v62 = vrot.slane %v15862_v47, 5  ;;  %v5289_v61 = vrot.slane %v11468_v46, 5 }
 0x531   :  { %19201 = vst [vmem:[#allocation46_spill] sm:$0xff] %v15867_v30  ;;  %11024 = vmatprep.mubr.bf16.mxu1 %v15867_v30  ;;  %v5878_v63 = vor.u32 %v5877_v26, %v5874_v39  ;;  %v5288_v42 = vrot.slane %v15864_v60, 5  ;;  %v10223_v15 = vcombine.low %v4386_v6, %v15648_v53  ;;  %v10224_v4 = vcombine.low %v15652_v0, %v15652_v0 }
 0x532   :  { %v4917_v27 = vor.u32 %v4916_v14, %v4913_v51  ;;  %v5287_v19 = vsel %vm5194_vm2, %v5285_v62, %v5286_v54  ;;  %v6535_v28 = vshrl.u32 %v5285_v62, 16  ;;  %v6538_v20 = vshll.u32 %v5285_v62, 16 }
 0x533   :  { %v15877_v10 = vsel %vm5303_vm3, %v5870_v55, %v5878_v63  ;;  %v6543_v38 = vshrl.u32 %v5287_v19, 16  ;;  %v6546_v58 = vshll.u32 %v5287_v19, 16  ;;  %v5290_v40 = vsel %vm5194_vm2, %v5288_v42, %v5289_v61  ;;  %v4459_v55 = vld [vmem:[#allocation2 + $0x204] sm:$0xf]  ;;  %v4460_v61 = vld [vmem:[#allocation2 + $0x208] sm:$0xf] }
 0x534   :  { %19202 = vst [vmem:[#allocation53_spill] sm:$0xff] %v15877_v10  ;;  %7238 = vmatmul.mubr.bf16.gmra.mxu0 %v15877_v10  ;;  %v5924_v46 = vshrl.u32 %v4917_v27, 16  ;;  %v5927_v57 = vshll.u32 %v4917_v27, 16  ;;  %v6537_v53 = vrot.slane %v6535_v28, 3  ;;  %v6540_v44 = vrot.slane %v6538_v20, 4 }
 0x535   :  { %v6545_v29 = vrot.slane %v6543_v38, 3  ;;  %v6548_v0 = vrot.slane %v6546_v58, 4  ;;  %v6578_v51 = vshrl.u32 %v5288_v42, 16  ;;  %v6581_v22 = vshll.u32 %v5288_v42, 16  ;;  %v11474_v20 = vld [vmem:[#allocation2 + $0x20c] ss:$0 sps:$4 sm:$0xff]  }
 0x536   :  { %v5926_v39 = vrot.slane %v5924_v46, 3  ;;  %v5929_v32 = vrot.slane %v5927_v57, 4  ;;  %v6541_v6 = vor.u32 %v6540_v44, %v6537_v53  ;;  %v6586_v26 = vshrl.u32 %v5290_v40, 16  ;;  %v4463_v57 = vld [vmem:[#allocation2 + $0x214] sm:$0xf] }
 0x537   :  { %v6549_v54 = vor.u32 %v6548_v0, %v6545_v29  ;;  %v6580_v14 = vrot.slane %v6578_v51, 3  ;;  %v6583_v62 = vrot.slane %v6581_v22, 4  ;;  %v6589_v63 = vshll.u32 %v5290_v40, 16  ;;  %v4464_v53 = vld [vmem:[#allocation2 + $0x218] sm:$0xf] }
 0x538   :  { %v15881_v19 = vor.u32 %v5929_v32, %v5926_v39  ;;  %v6588_v30 = vrot.slane %v6586_v26, 3  ;;  %v5907_v27 = vshrl.u32 %v10223_v15, 16  ;;  %v5910_v28 = vshll.u32 %v10223_v15, 16  ;;  %v11476_v51 = vld [vmem:[#allocation2 + $0x21c] ss:$0 sps:$4 sm:$0xff]  }
 0x539   :  { %v15884_v38 = vsel %vm5303_vm3, %v6541_v6, %v6549_v54  ;;  %v6584_v42 = vor.u32 %v6583_v62, %v6580_v14  ;;  %v6591_v58 = vrot.slane %v6589_v63, 4  ;;  %v5915_v46 = vshrl.u32 %v10224_v4, 16  ;;  %v4390_v6 = vld [vmem:[#allocation2 + $0xf0] sm:$0xf] }
 0x53a   :  { %19203 = vst [vmem:[#allocation105_spill] sm:$0xff] %v15881_v19  ;;  %19204 = vst [vmem:[#allocation102_spill] sm:$0xff] %v15884_v38  ;;  %7245 = vmatprep.mubr.bf16.mxu0 %v15881_v19  ;;  %11025 = vmatmul.mubr.bf16.gmra.mxu1 %v15884_v38  ;;  %v5909_v40 = vrot.slane %v5907_v27, 3  ;;  %v5912_v44 = vrot.slane %v5910_v28, 4  ;;  %v5918_v29 = vshll.u32 %v10224_v4, 16  ;;  %v4919_v0 = vshrl.u32 %v15670_v16, 16 }
 0x53b   :  { %v6592_v15 = vor.u32 %v6591_v58, %v6588_v30  ;;  %v5917_v22 = vrot.slane %v5915_v46, 3  ;;  %v4922_v39 = vshll.u32 %v15670_v16, 16  ;;  %v15890_v32 = vcombine.low %v4459_v55, %v4460_v61  ;;  %v11637_v16 = vld [vmem:[#allocation2 + $0xf4] sm:$0xf]  ;;  %v11638_v61 = vld [vmem:[#allocation2 + $0xf8] sm:$0xf] }
 0x53c   :  { %v5913_v26 = vor.u32 %v5912_v44, %v5909_v40  ;;  %v5920_v54 = vrot.slane %v5918_v29, 4  ;;  %v4921_v14 = vrot.slane %v4919_v0, 4  ;;  %v5292_v62 = vrot.slane %v11474_v20, 5 }
 0x53d   :  { %v15893_v63 = vsel %vm5303_vm3, %v6584_v42, %v6592_v15  ;;  %v4924_v27 = vrot.slane %v4922_v39, 5  ;;  %v5291_v4 = vrot.slane %v15890_v32, 5  ;;  %v15896_v28 = vcombine.low %v4463_v57, %v4464_v53 }
 0x53e   :  { %19205 = vst [vmem:[#allocation54_spill] sm:$0xff] %v15893_v63  ;;  %11028 = vmatprep.mubr.bf16.mxu1 %v15893_v63  ;;  %v5921_v30 = vor.u32 %v5920_v54, %v5917_v22  ;;  %v5295_v58 = vrot.slane %v11476_v51, 5  ;;  %v10225_v55 = vcombine.low %v4390_v6, %v11637_v16  ;;  %v10226_v46 = vcombine.low %v11638_v61, %v11638_v61 }
 0x53f   :  { %v4925_v40 = vor.u32 %v4924_v27, %v4921_v14  ;;  %v5293_v44 = vsel %vm5194_vm2, %v5291_v4, %v5292_v62  ;;  %v6621_v20 = vshrl.u32 %v5291_v4, 16  ;;  %v6624_v29 = vshll.u32 %v5291_v4, 16 }
 0x540   :  { %v15901_v42 = vsel %vm5303_vm3, %v5913_v26, %v5921_v30  ;;  %v6629_v0 = vshrl.u32 %v5293_v44, 16  ;;  %v6632_v15 = vshll.u32 %v5293_v44, 16  ;;  %v5294_v57 = vrot.slane %v15896_v28, 5  ;;  %v11519_v30 = vld [vmem:[#allocation3 + $0x80] sm:$0xff]  }
 0x541   :  { %19206 = vst [vmem:[#allocation104_spill] sm:$0xff] %v15901_v42  ;;  %7246 = vmatmul.mubr.bf16.gmra.mxu0 %v15901_v42  ;;  %v5967_v53 = vshrl.u32 %v4925_v40, 16  ;;  %v5970_v51 = vshll.u32 %v4925_v40, 16  ;;  %v6623_v22 = vrot.slane %v6621_v20, 3  ;;  %v6626_v39 = vrot.slane %v6624_v29, 4  ;;  %11050 = vmatprep.subr.bf16.mxu0 %v11519_v30 }
 0x542   :  { %v6631_v6 = vrot.slane %v6629_v0, 3  ;;  %v6634_v54 = vrot.slane %v6632_v15, 4  ;;  %v5296_v14 = vsel %vm5194_vm2, %v5294_v57, %v5295_v58  ;;  %v6664_v62 = vshrl.u32 %v5294_v57, 16  ;;  %v11482_v0 = vld [vmem:[#allocation2 + $0x22c] ss:$0 sps:$4 sm:$0xff]   ;;  %11051 = vmatpush3.bf16.msra.mxu0 %v11519_v30 }
 0x543   :  { %v5969_v27 = vrot.slane %v5967_v53, 3  ;;  %v5972_v4 = vrot.slane %v5970_v51, 4  ;;  %v6627_v16 = vor.u32 %v6626_v39, %v6623_v22  ;;  %v6667_v26 = vshll.u32 %v5294_v57, 16  ;;  %v4468_v57 = vld [vmem:[#allocation2 + $0x228] sm:$0xf]  ;;  %8694 = vmatprep.subr.bf16.mxu0 %v19136_v31 }
 0x544   :  { %v6635_v61 = vor.u32 %v6634_v54, %v6631_v6  ;;  %v6666_v44 = vrot.slane %v6664_v62, 3  ;;  %v6672_v63 = vshrl.u32 %v5296_v14, 16  ;;  %v6675_v38 = vshll.u32 %v5296_v14, 16  ;;  %v4394_v14 = vld [vmem:[#allocation2 + $0x100] sm:$0xf] }
 0x545   :  { %v15906_v42 = vor.u32 %v5972_v4, %v5969_v27  ;;  %v6669_v40 = vrot.slane %v6667_v26, 4  ;;  %v5950_v20 = vshrl.u32 %v10225_v55, 16  ;;  %v5953_v29 = vshll.u32 %v10225_v55, 16 }
 0x546   :  { %v15909_v58 = vsel %vm5303_vm3, %v6627_v16, %v6635_v61  ;;  %v6674_v15 = vrot.slane %v6672_v63, 3  ;;  %v6677_v53 = vrot.slane %v6675_v38, 4  ;;  %v5958_v51 = vshrl.u32 %v10226_v46, 16 }
 0x547   :  { %19207 = vst [vmem:[#allocation107_spill] sm:$0xff] %v15906_v42  ;;  %19208 = vst [vmem:[#allocation55_spill] sm:$0xff] %v15909_v58  ;;  %7253 = vmatprep.mubr.bf16.mxu0 %v15906_v42  ;;  %11029 = vmatmul.mubr.bf16.gmra.mxu1 %v15909_v58  ;;  %v6670_v22 = vor.u32 %v6669_v40, %v6666_v44  ;;  %v5952_v39 = vrot.slane %v5950_v20, 3  ;;  %v5955_v6 = vrot.slane %v5953_v29, 4  ;;  %v5961_v54 = vshll.u32 %v10226_v46, 16 }
 0x548   :  { %v6678_v55 = vor.u32 %v6677_v53, %v6674_v15  ;;  %v5960_v62 = vrot.slane %v5958_v51, 3  ;;  %v4927_v27 = vshrl.u32 %v15694_v48, 16  ;;  %v4930_v4 = vshll.u32 %v15694_v48, 16  ;;  %v11639_v46 = vld [vmem:[#allocation2 + $0x104] sm:$0xf] }
 0x549   :  { %v5956_v38 = vor.u32 %v5955_v6, %v5952_v39  ;;  %v5963_v63 = vrot.slane %v5961_v54, 4  ;;  %v15916_v16 = vcombine.low %v4467_v35, %v4468_v57  ;;  %v5298_v26 = vrot.slane %v11482_v0, 5  ;;  %v11640_v48 = vld [vmem:[#allocation2 + $0x108] sm:$0xf] }
 0x54a   :  { %v15919_v30 = vsel %vm5303_vm3, %v6670_v22, %v6678_v55  ;;  %v4929_v61 = vrot.slane %v4927_v27, 4  ;;  %v4932_v44 = vrot.slane %v4930_v4, 5  ;;  %v10227_v40 = vcombine.low %v4394_v14, %v11639_v46  ;;  %v4331_v4 = vld [vmem:[#allocation2 + $0x4] sm:$0xf] }
 0x54b   :  { %19209 = vst [vmem:[#allocation28_spill] sm:$0xff] %v15919_v30  ;;  %11032 = vmatprep.mubr.bf16.mxu1 %v15919_v30  ;;  %v5964_v20 = vor.u32 %v5963_v63, %v5960_v62  ;;  %v5297_v29 = vrot.slane %v15916_v16, 5  ;;  %v10228_v15 = vcombine.low %v11640_v48, %v11640_v48  ;;  %v4951_v53 = vshrl.u32 %v15699_v43, 16  ;;  %v4330_v30 = vld [vmem:[#allocation2] sm:$0xf] }
 0x54c   :  { %v4933_v51 = vor.u32 %v4932_v44, %v4929_v61  ;;  %v6825_v35 = vshrl.u32 %v10227_v40, 16  ;;  %v6828_v57 = vshll.u32 %v10227_v40, 16  ;;  %v4954_v0 = vshll.u32 %v15699_v43, 16  ;;  %v4332_v40 = vld [vmem:[#allocation2 + $0x8] sm:$0xf] }
 0x54d   :  { %v15926_v22 = vsel %vm5303_vm3, %v5956_v38, %v5964_v20  ;;  %v5299_v39 = vsel %vm5194_vm2, %v5297_v29, %v5298_v26  ;;  %v6894_v6 = vshrl.u32 %v5297_v29, 16  ;;  %v6897_v54 = vshll.u32 %v5297_v29, 16 }
 0x54e   :  { %19210 = vst [vmem:[#allocation25_spill] sm:$0xff] %v15926_v22  ;;  %7254 = vmatmul.mubr.bf16.gmra.mxu0 %v15926_v22  ;;  %v6842_v14 = vshrl.u32 %v4933_v51, 16  ;;  %v6845_v55 = vshll.u32 %v4933_v51, 16  ;;  %v6902_v62 = vshrl.u32 %v5299_v39, 16  ;;  %v6905_v27 = vshll.u32 %v5299_v39, 16  ;;  %v15930_v43 = vpop.f32.mrf.mxu1 }
 0x54f   :  { %v6896_v63 = vrot.slane %v6894_v6, 3  ;;  %v6899_v61 = vrot.slane %v6897_v54, 4  ;;  %v6827_v44 = vrot.slane %v6825_v35, 3  ;;  %v6830_v46 = vrot.slane %v6828_v57, 4  ;;  %v4406_v51 = vld [vmem:[#allocation2 + $0x130] sm:$0xf] }
 0x550   :  { %v6844_v38 = vrot.slane %v6842_v14, 3  ;;  %v6847_v20 = vrot.slane %v6845_v55, 4  ;;  %v6904_v48 = vrot.slane %v6902_v62, 3  ;;  %v6907_v26 = vrot.slane %v6905_v27, 4  ;;  %v15932_v42 = vpop.f32.mrf.mxu1  ;;  %v11641_v27 = vld [vmem:[#allocation2 + $0x134] sm:$0xf] }
 0x551   :  { %v6900_v29 = vor.u32 %v6899_v61, %v6896_v63  ;;  %v6831_v58 = vor.u32 %v6830_v46, %v6827_v44  ;;  %v6833_v31 = vshrl.u32 %v10228_v15, 16  ;;  %v6836_v22 = vshll.u32 %v10228_v15, 16 }
 0x552   :  { %v15934_v39 = vor.u32 %v6847_v20, %v6844_v38  ;;  %v6908_v6 = vor.u32 %v6907_v26, %v6904_v48  ;;  %v4953_v35 = vrot.slane %v4951_v53, 4  ;;  %v4956_v57 = vrot.slane %v4954_v0, 5  ;;  %v15942_v61 = vpop.f32.mrf.mxu1 }
 0x553   :  { %v6835_v54 = vrot.slane %v6833_v31, 3  ;;  %v6838_v19 = vrot.slane %v6836_v22, 4  ;;  %v15936_v10 = vcombine.low %v4331_v4, %v4332_v40  ;;  %v10195_v14 = vcombine.low %v4330_v30, %v4331_v4 }
 0x554   :  { %19211 = vst [vmem:[#allocation38_spill] sm:$0xff] %v15934_v39  ;;  %7261 = vmatprep.mubr.bf16.mxu0 %v15934_v39  ;;  %v15940_v55 = vsel %vm5303_vm3, %v6900_v29, %v6908_v6  ;;  %v4957_v62 = vor.u32 %v4956_v57, %v4953_v35  ;;  %v10196_v15 = vcombine.low %v4332_v40, %v4332_v40  ;;  %v15950_v26 = vpop.f32.mrf.mxu0  ;;  %v15953_v35 = vpop.f32.mrf.mxu1  ;;  %v11526_v39 = vld [vmem:[#allocation3 + $0x238] sm:$0xff]  }
 0x555   :  { %19212 = vst [vmem:[#allocation99_spill] sm:$0xff] %v15936_v10  ;;  %19213 = vst [vmem:[#allocation12_spill] sm:$0xff] %v15940_v55  ;;  %v10233_v63 = vcombine.low %v4406_v51, %v11641_v27  ;;  %11033 = vmatmul.mubr.bf16.gmra.mxu1 %v15940_v55  ;;  %v6839_v53 = vor.u32 %v6838_v19, %v6835_v54  ;;  %v4799_v31 = vshrl.u32 %v15936_v10, 16  ;;  %v4802_v0 = vshll.u32 %v15936_v10, 16  ;;  %v4410_v55 = vld [vmem:[#allocation2 + $0x140] sm:$0xf] }
 0x556   :  { %v5305_v22 = vshrl.u32 %v10195_v14, 16  ;;  %v6053_v30 = vshrl.u32 %v4957_v62, 16  ;;  %v6056_v4 = vshll.u32 %v4957_v62, 16  ;;  %v5308_v44 = vshll.u32 %v10195_v14, 16  ;;  %19215 = vst [vmem:[#allocation29_spill] sm:$0xff] %v15953_v35  ;;  %11116 = vmatprep.subr.bf16.mxu1 %v11526_v39 }
 0x557   :  { %v5313_v46 = vshrl.u32 %v10196_v15, 16  ;;  %v15948_v38 = vsel %vm5303_vm3, %v6831_v58, %v6839_v53  ;;  %v4801_v40 = vrot.slane %v4799_v31, 4  ;;  %v4804_v20 = vrot.slane %v4802_v0, 5  ;;  %v11642_v14 = vld [vmem:[#allocation2 + $0x138] sm:$0xf]  ;;  %v7145_v58 = vpop.f32.mrf.mxu0 }
 0x558   :  { %19214 = vst [vmem:[#allocation40_spill] sm:$0xff] %v15948_v38  ;;  %v5307_v48 = vrot.slane %v5305_v22, 3  ;;  %7262 = vmatmul.mubr.bf16.gmra.mxu0 %v15948_v38  ;;  %v6055_v19 = vrot.slane %v6053_v30, 3  ;;  %v6058_v29 = vrot.slane %v6056_v4, 4  ;;  %v5310_v51 = vrot.slane %v5308_v44, 4 }
 0x559   :  { %v5315_v6 = vrot.slane %v5313_v46, 3  ;;  %v4805_v57 = vor.u32 %v4804_v20, %v4801_v40  ;;  %v5316_v54 = vshll.u32 %v10196_v15, 16  ;;  %v10234_v62 = vcombine.low %v11642_v14, %v11642_v14  ;;  %v15958_v46 = vpop.f32.mrf.mxu0  ;;  %v11643_v35 = vld [vmem:[#allocation2 + $0x144] sm:$0xf] }
 0x55a   :  { %v6036_v27 = vshrl.u32 %v10233_v63, 16  ;;  %v15955_v53 = vor.u32 %v6058_v29, %v6055_v19  ;;  %v5311_v31 = vor.u32 %v5310_v51, %v5307_v48  ;;  %v6039_v0 = vshll.u32 %v10233_v63, 16  ;;  %19217 = vst [vmem:[#allocation76_spill] sm:$0xff] %v15958_v46 }
 0x55b   :  { %v4959_v22 = vshrl.u32 %v15722_v36, 16  ;;  %v5322_v38 = vshrl.u32 %v4805_v57, 16  ;;  %v5325_v30 = vshll.u32 %v4805_v57, 16  ;;  %v5318_v4 = vrot.slane %v5316_v54, 4  ;;  %v7148_v58 = vpop.f32.mrf.mxu0 }
 0x55c   :  { %19216 = vst [vmem:[#allocation51_spill] sm:$0xff] %v15955_v53  ;;  %v6038_v44 = vrot.slane %v6036_v27, 3  ;;  %7269 = vmatprep.mubr.bf16.mxu0 %v15955_v53  ;;  %v6041_v15 = vrot.slane %v6039_v0, 4  ;;  %v6044_v40 = vshrl.u32 %v10234_v62, 16  ;;  %v6047_v20 = vshll.u32 %v10234_v62, 16  ;;  %v15961_v19 = vpop.f32.mrf.mxu1 }
 0x55d   :  { %v4961_v14 = vrot.slane %v4959_v22, 4  ;;  %v5324_v48 = vrot.slane %v5322_v38, 3  ;;  %v5327_v63 = vrot.slane %v5325_v30, 4  ;;  %v5319_v29 = vor.u32 %v5318_v4, %v5315_v6  ;;  %v11644_v53 = vld [vmem:[#allocation2 + $0x148] sm:$0xf] }
 0x55e   :  { %v4962_v51 = vshll.u32 %v15722_v36, 16  ;;  %v6042_v57 = vor.u32 %v6041_v15, %v6038_v44  ;;  %v6046_v54 = vrot.slane %v6044_v40, 3  ;;  %v6049_v27 = vrot.slane %v6047_v20, 4  ;;  %v15964_v10 = vpop.f32.mrf.mxu1  ;;  %v11645_v58 = vld [vmem:[#allocation2 + $0x154] sm:$0xf] }
 0x55f   :  { %v10235_v46 = vcombine.low %v4410_v55, %v11643_v35  ;;  %v5328_v0 = vor.u32 %v5327_v63, %v5324_v48  ;;  %v5320_v62 = vsel %vm5303_vm3, %v5311_v31, %v5319_v29  ;;  %v10236_v21 = vcombine.low %v11644_v53, %v11644_v53  ;;  %v4414_v55 = vld [vmem:[#allocation2 + $0x150] sm:$0xf] }
 0x560   :  { %v4964_v22 = vrot.slane %v4962_v51, 5  ;;  %v6050_v38 = vor.u32 %v6049_v27, %v6046_v54  ;;  %v4967_v36 = vshrl.u32 %v15724_v13, 16  ;;  %v4970_v40 = vshll.u32 %v15724_v13, 16  ;;  %v15972_v53 = vpop.f32.mrf.mxu1  ;;  %v11646_v54 = vld [vmem:[#allocation2 + $0x158] sm:$0xf] }
 0x561   :  { %v6079_v30 = vshrl.u32 %v10235_v46, 16  ;;  %v6082_v6 = vshll.u32 %v10235_v46, 16  ;;  %7863 = vmatprep.mubr.bf16.mxu1 %v5328_v0  ;;  %v6087_v44 = vshrl.u32 %v10236_v21, 16  ;;  %v6090_v15 = vshll.u32 %v10236_v21, 16  ;;  %v15976_v29 = vpop.f32.mrf.mxu0 }
 0x562   :  { %v4965_v4 = vor.u32 %v4964_v22, %v4961_v14  ;;  %7864 = vmatmul.mubr.bf16.vlgmr.msra.gmra.mxu1 %v5320_v62  ;;  %v15970_v35 = vsel %vm5303_vm3, %v6042_v57, %v6050_v38  ;;  %v4969_v48 = vrot.slane %v4967_v36, 4  ;;  %v4972_v51 = vrot.slane %v4970_v40, 5 }
 0x563   :  { %19218 = vst [vmem:[#allocation82_spill] sm:$0xff] %v15970_v35  ;;  %v6081_v31 = vrot.slane %v6079_v30, 3  ;;  %v6084_v20 = vrot.slane %v6082_v6, 4  ;;  %7871 = vmatprep.mubr.bf16.mxu1 %v15430_v9  ;;  %7270 = vmatmul.mubr.bf16.gmra.mxu0 %v15970_v35  ;;  %v6089_v63 = vrot.slane %v6087_v44, 3  ;;  %v6092_v21 = vrot.slane %v6090_v15, 4  ;;  %v7153_v38 = vpop.f32.mrf.mxu0  ;;  %v15979_v15 = vpop.f32.mrf.mxu1 }
 0x564   :  { %v6096_v46 = vshrl.u32 %v4965_v4, 16  ;;  %v6099_v14 = vshll.u32 %v4965_v4, 16  ;;  %v10237_v57 = vcombine.low %v4414_v55, %v11645_v58  ;;  %v10238_v27 = vcombine.low %v11646_v54, %v11646_v54  ;;  %11117 = vmatpush3.bf16.msra.mxu1 %v11526_v39  ;;  %v4418_v44 = vld [vmem:[#allocation2 + $0x160] sm:$0xf]  ;;  %19219 = vst [vmem:[#allocation87_spill] sm:$0xff] %v15979_v15 }
 0x565   :  { %v6085_v13 = vor.u32 %v6084_v20, %v6081_v31  ;;  %v6093_v22 = vor.u32 %v6092_v21, %v6089_v63  ;;  %v4975_v9 = vshrl.u32 %v15750_v59, 16  ;;  %v4973_v30 = vor.u32 %v4972_v51, %v4969_v48  ;;  %v15986_v39 = vpop.f32.mrf.mxu0  ;;  %v11647_v58 = vld [vmem:[#allocation2 + $0x164] sm:$0xf] }
 0x566   :  { %v6098_v0 = vrot.slane %v6096_v46, 3  ;;  %v6101_v62 = vrot.slane %v6099_v14, 4  ;;  %v6122_v6 = vshrl.u32 %v10237_v57, 16  ;;  %v6125_v36 = vshll.u32 %v10237_v57, 16 }
 0x567   :  { %v6130_v4 = vshrl.u32 %v10238_v27, 16  ;;  %v15984_v40 = vsel %vm5303_vm3, %v6085_v13, %v6093_v22  ;;  %v6133_v55 = vshll.u32 %v10238_v27, 16  ;;  %v6139_v20 = vshrl.u32 %v4973_v30, 16  ;;  %v7156_v54 = vpop.f32.mrf.mxu0 }
 0x568   :  { %v15981_v31 = vor.u32 %v6101_v62, %v6098_v0  ;;  %19221 = vst [vmem:[#allocation64_spill] sm:$0xff] %v15984_v40  ;;  %v6142_v46 = vshll.u32 %v4973_v30, 16  ;;  %v6124_v14 = vrot.slane %v6122_v6, 3  ;;  %v4977_v63 = vrot.slane %v4975_v9, 4  ;;  %v11648_v62 = vld [vmem:[#allocation2 + $0x168] sm:$0xf] }
 0x569   :  { %v6127_v48 = vrot.slane %v6125_v36, 4  ;;  %v6132_v21 = vrot.slane %v6130_v4, 3  ;;  %v4978_v51 = vshll.u32 %v15750_v59, 16  ;;  %v10239_v57 = vcombine.low %v4418_v44, %v11647_v58 }
 0x56a   :  { %19220 = vst [vmem:[#allocation90_spill] sm:$0xff] %v15981_v31  ;;  %7277 = vmatprep.mubr.bf16.mxu0 %v15981_v31  ;;  %7872 = vmatmul.mubr.bf16.gmra.mxu1 %v15450_v12  ;;  %v6141_v13 = vrot.slane %v6139_v20, 3  ;;  %v6144_v0 = vrot.slane %v6142_v46, 4  ;;  %v6135_v27 = vrot.slane %v6133_v55, 4  ;;  %v10240_v22 = vcombine.low %v11648_v62, %v11648_v62  ;;  %v15991_v38 = vpop.f32.mrf.mxu1  ;;  %v4422_v12 = vld [vmem:[#allocation2 + $0x170] sm:$0xf] }
 0x56b   :  { %7879 = vmatprep.mubr.bf16.mxu1 %v15468_v2  ;;  %7278 = vmatmul.mubr.bf16.gmra.mxu0 %v15984_v40  ;;  %v4980_v9 = vrot.slane %v4978_v51, 5  ;;  %v6165_v30 = vshrl.u32 %v10239_v57, 16  ;;  %v6168_v59 = vshll.u32 %v10239_v57, 16  ;;  %v4983_v4 = vshrl.u32 %v15752_v50, 16 }
 0x56c   :  { %v15995_v6 = vor.u32 %v6144_v0, %v6141_v13  ;;  %v6173_v36 = vshrl.u32 %v10240_v22, 16  ;;  %v15998_v44 = vpop.f32.mrf.mxu1  ;;  %v6176_v20 = vshll.u32 %v10240_v22, 16  ;;  %v6128_v46 = vor.u32 %v6127_v48, %v6124_v14  ;;  %v11649_v0 = vld [vmem:[#allocation2 + $0x174] sm:$0xf] }
 0x56d   :  { %v4981_v55 = vor.u32 %v4980_v9, %v4977_v63  ;;  %v6136_v58 = vor.u32 %v6135_v27, %v6132_v21  ;;  %v4985_v54 = vrot.slane %v4983_v4, 4  ;;  %v4986_v62 = vshll.u32 %v15752_v50, 16 }
 0x56e   :  { %19222 = vst [vmem:[#allocation24_spill] sm:$0xff] %v15995_v6  ;;  %7285 = vmatprep.mubr.bf16.mxu0 %v15995_v6  ;;  %v6167_v13 = vrot.slane %v6165_v30, 3  ;;  %v10241_v57 = vcombine.low %v4422_v12, %v11649_v0  ;;  %v16002_v15 = vpop.f32.mrf.mxu1  ;;  %v6170_v40 = vrot.slane %v6168_v59, 4  ;;  %v6175_v31 = vrot.slane %v6173_v36, 3 }
 0x56f   :  { %v6182_v51 = vshrl.u32 %v4981_v55, 16  ;;  %v6185_v2 = vshll.u32 %v4981_v55, 16  ;;  %v4988_v35 = vrot.slane %v4986_v62, 5  ;;  %v10242_v63 = vcombine.low %v11650_v25, %v11650_v25  ;;  %v16004_v22 = vpop.f32.mrf.mxu0 }
 0x570   :  { %v6178_v48 = vrot.slane %v6176_v20, 4  ;;  %v4991_v21 = vshrl.u32 %v15778_v49, 16  ;;  %v16009_v50 = vsel %vm5303_vm3, %v6128_v46, %v6136_v58  ;;  %v6208_v30 = vshrl.u32 %v10241_v57, 16  ;;  %v16015_v12 = vpop.f32.mrf.mxu1 }
 0x571   :  { %v6184_v9 = vrot.slane %v6182_v51, 3  ;;  %v6187_v14 = vrot.slane %v6185_v2, 4  ;;  %19223 = vst [vmem:[#allocation81_spill] sm:$0xff] %v16009_v50  ;;  %v4989_v27 = vor.u32 %v4988_v35, %v4985_v54  ;;  %v7161_v4 = vpop.f32.mrf.mxu0  ;;  %v6211_v59 = vshll.u32 %v10241_v57, 16  ;;  %19225 = vst [vmem:[#allocation39_spill] sm:$0xff] %v16015_v12 }
 0x572   :  { %7880 = vmatmul.mubr.bf16.gmra.mxu1 %v15497_v37  ;;  %v6216_v36 = vshrl.u32 %v10242_v63, 16  ;;  %v6219_v2 = vshll.u32 %v10242_v63, 16  ;;  %v6171_v35 = vor.u32 %v6170_v40, %v6167_v13  ;;  %v6179_v46 = vor.u32 %v6178_v48, %v6175_v31  ;;  %v4426_v51 = vld [vmem:[#allocation2 + $0x180] sm:$0xf]  ;;  %v11652_v31 = vld [vmem:[#allocation2 + $0x188] sm:$0xf] }
 0x573   :  { %7887 = vmatprep.mubr.bf16.mxu1 %v15508_v3  ;;  %7286 = vmatmul.mubr.bf16.gmra.mxu0 %v16009_v50  ;;  %v16013_v25 = vor.u32 %v6187_v14, %v6184_v9  ;;  %v6225_v55 = vshrl.u32 %v4989_v27, 16  ;;  %v6228_v20 = vshll.u32 %v4989_v27, 16  ;;  %v16017_v62 = vpop.f32.mrf.mxu0  ;;  %v4993_v58 = vrot.slane %v4991_v21, 4 }
 0x574   :  { %19226 = vst [vmem:[#allocation30_spill] sm:$0xff] %v16017_v62  ;;  %v4994_v54 = vshll.u32 %v15778_v49, 16  ;;  %v6210_v14 = vrot.slane %v6208_v30, 3  ;;  %v4999_v57 = vshrl.u32 %v15784_v45, 16  ;;  %v6213_v4 = vrot.slane %v6211_v59, 4 }
 0x575   :  { %19224 = vst [vmem:[#allocation68_spill] sm:$0xff] %v16013_v25  ;;  %7293 = vmatprep.mubr.bf16.mxu0 %v16013_v25  ;;  %v6227_v0 = vrot.slane %v6225_v55, 3  ;;  %v6230_v9 = vrot.slane %v6228_v20, 4  ;;  %v7164_v63 = vpop.f32.mrf.mxu0  ;;  %v6218_v3 = vrot.slane %v6216_v36, 3  ;;  %v6221_v37 = vrot.slane %v6219_v2, 4 }
 0x576   :  { %v4996_v27 = vrot.slane %v4994_v54, 5  ;;  %v16022_v12 = vpop.f32.mrf.mxu1  ;;  %v11651_v62 = vld [vmem:[#allocation2 + $0x184] sm:$0xf]  ;;  %v10244_v13 = vcombine.low %v11652_v31, %v11652_v31  ;;  %v16028_v49 = vsel %vm5303_vm3, %v6171_v35, %v6179_v46  ;;  %v5001_v30 = vrot.slane %v4999_v57, 4  ;;  %v11535_v54 = vld [vmem:[#allocation3 + $0x230] sm:$0xff]  }
 0x577   :  { %v10243_v25 = vcombine.low %v4426_v51, %v11651_v62  ;;  %19227 = vst [vmem:[#allocation74_spill] sm:$0xff] %v16028_v49  ;;  %v16030_v21 = vor.u32 %v6230_v9, %v6227_v0  ;;  %v5002_v59 = vshll.u32 %v15784_v45, 16  ;;  %v6214_v36 = vor.u32 %v6213_v4, %v6210_v14  ;;  %v4430_v57 = vld [vmem:[#allocation2 + $0x190] sm:$0xf]  ;;  %11118 = vmatprep.subr.bf16.mxu1 %v11535_v54  ;;  %v11653_v31 = vld [vmem:[#allocation2 + $0x194] sm:$0xf] }
 0x578   :  { %v4997_v40 = vor.u32 %v4996_v27, %v4993_v58  ;;  %v16024_v48 = vpop.f32.mrf.mxu1  ;;  %v6222_v2 = vor.u32 %v6221_v37, %v6218_v3  ;;  %v6259_v9 = vshrl.u32 %v10244_v13, 16  ;;  %v6262_v45 = vshll.u32 %v10244_v13, 16  ;;  %11119 = vmatpush3.bf16.msra.mxu1 %v11535_v54 }
 0x579   :  { %19228 = vst [vmem:[#allocation27_spill] sm:$0xff] %v16030_v21  ;;  %v6251_v58 = vshrl.u32 %v10243_v25, 16  ;;  %v6254_v35 = vshll.u32 %v10243_v25, 16  ;;  %v5004_v46 = vrot.slane %v5002_v59, 5  ;;  %v5007_v37 = vshrl.u32 %v15806_v33, 16 }
 0x57a   :  { %7888 = vmatmul.mubr.bf16.gmra.mxu1 %v15545_v18  ;;  %v6268_v55 = vshrl.u32 %v4997_v40, 16  ;;  %v6271_v20 = vshll.u32 %v4997_v40, 16  ;;  %v16035_v62 = vpop.f32.mrf.mxu1  ;;  %v16042_v3 = vsel %vm5303_vm3, %v6214_v36, %v6222_v2  ;;  %v10245_v59 = vcombine.low %v4430_v57, %v11653_v31 }
 0x57b   :  { %7895 = vmatprep.mubr.bf16.mxu1 %v15557_v17  ;;  %7294 = vmatmul.mubr.bf16.gmra.mxu0 %v16028_v49  ;;  %v5005_v27 = vor.u32 %v5004_v46, %v5001_v30  ;;  %19229 = vst [vmem:[#allocation77_spill] sm:$0xff] %v16042_v3  ;;  %v6253_v25 = vrot.slane %v6251_v58, 3  ;;  %v6256_v40 = vrot.slane %v6254_v35, 4  ;;  %v5010_v13 = vshll.u32 %v15806_v33, 16  ;;  %v11654_v46 = vld [vmem:[#allocation2 + $0x198] sm:$0xf] }
 0x57c   :  { %7301 = vmatprep.mubr.bf16.mxu0 %v16030_v21  ;;  %v6270_v51 = vrot.slane %v6268_v55, 3  ;;  %v6273_v0 = vrot.slane %v6271_v20, 4  ;;  %v16038_v63 = vpop.f32.mrf.mxu0  ;;  %v16044_v4 = vpop.f32.mrf.mxu1  ;;  %v6261_v20 = vrot.slane %v6259_v9, 3  ;;  %v6264_v30 = vrot.slane %v6262_v45, 4  ;;  %v4434_v9 = vld [vmem:[#allocation2 + $0x1a0] sm:$0xf] }
 0x57d   :  { %19230 = vst [vmem:[#allocation31_spill] sm:$0xff] %v16044_v4  ;;  %v10246_v17 = vcombine.low %v11654_v46, %v11654_v46  ;;  %v6311_v36 = vshrl.u32 %v5005_v27, 16  ;;  %v6314_v2 = vshll.u32 %v5005_v27, 16  ;;  %v5012_v54 = vrot.slane %v5010_v13, 5  ;;  %v11656_v4 = vld [vmem:[#allocation2 + $0x1a8] sm:$0xf] }
 0x57e   :  { %v7169_v14 = vpop.f32.mrf.mxu0  ;;  %v16047_v55 = vor.u32 %v6273_v0, %v6270_v51  ;;  %v6257_v35 = vor.u32 %v6256_v40, %v6253_v25  ;;  %v6294_v51 = vshrl.u32 %v10245_v59, 16  ;;  %v6297_v0 = vshll.u32 %v10245_v59, 16 }
 0x57f   :  { %v5009_v14 = vrot.slane %v5007_v37, 4  ;;  %v6302_v45 = vshrl.u32 %v10246_v17, 16  ;;  %v6305_v57 = vshll.u32 %v10246_v17, 16  ;;  %v5015_v31 = vshrl.u32 %v15811_v5, 16 }
 0x580   :  { %19231 = vst [vmem:[#allocation72_spill] sm:$0xff] %v16047_v55  ;;  %v16049_v18 = vpop.f32.mrf.mxu0  ;;  %v5018_v27 = vshll.u32 %v15811_v5, 16  ;;  %v6265_v13 = vor.u32 %v6264_v30, %v6261_v20  ;;  %v6313_v46 = vrot.slane %v6311_v36, 3  ;;  %v16063_v25 = vadd.f32 %v15932_v42, %v15950_v26 }
 0x581   :  { %v6296_v40 = vrot.slane %v6294_v51, 3  ;;  %v6299_v59 = vrot.slane %v6297_v0, 4  ;;  %v10248_v17 = vcombine.low %v11656_v4, %v11656_v4  ;;  %v6307_v5 = vrot.slane %v6305_v57, 4 }
 0x582   :  { %7896 = vmatmul.mubr.bf16.gmra.mxu1 %v15598_v23  ;;  %v7172_v58 = vpop.f32.mrf.mxu0  ;;  %v11655_v23 = vld [vmem:[#allocation2 + $0x1a4] sm:$0xf]  ;;  %v5017_v21 = vrot.slane %v5015_v31, 4  ;;  %v5020_v49 = vrot.slane %v5018_v27, 5  ;;  %v16069_v20 = vsel %vm5303_vm3, %v6257_v35, %v6265_v13  ;;  %v5023_v27 = vshrl.u32 %v15834_v56, 16 }
 0x583   :  { %7903 = vmatprep.mubr.bf16.mxu1 %v15607_v34  ;;  %7302 = vmatmul.mubr.bf16.gmra.mxu0 %v16042_v3  ;;  %v6316_v34 = vrot.slane %v6314_v2, 4  ;;  %v5013_v58 = vor.u32 %v5012_v54, %v5009_v14  ;;  %v6304_v3 = vrot.slane %v6302_v45, 3  ;;  %19234 = vst [vmem:[#allocation80_spill] sm:$0xff] %v16069_v20  ;;  %v6345_v2 = vshrl.u32 %v10248_v17, 16 }
 0x584   :  { %v16054_v33 = vpop.f32.mrf.mxu1  ;;  %7309 = vmatprep.mubr.bf16.mxu0 %v16047_v55  ;;  %v6348_v14 = vshll.u32 %v10248_v17, 16  ;;  %v6300_v35 = vor.u32 %v6299_v59, %v6296_v40  ;;  %v5021_v0 = vor.u32 %v5020_v49, %v5017_v21  ;;  %v16082_v45 = vadd.f32 %v15930_v43, %v15976_v29  ;;  %v11657_v40 = vld [vmem:[#allocation2 + $0x1b4] sm:$0xf]  ;;  %v11658_v59 = vld [vmem:[#allocation2 + $0x1b8] sm:$0xf] }
 0x585   :  { %19232 = vst [vmem:[#allocation61_spill] sm:$0xff] %v16054_v33  ;;  %v10247_v33 = vcombine.low %v4434_v9, %v11655_v23  ;;  %v16071_v23 = vor.u32 %v6316_v34, %v6313_v46  ;;  %v6354_v30 = vshrl.u32 %v5013_v58, 16  ;;  %v6357_v42 = vshll.u32 %v5013_v58, 16  ;;  %v4438_v9 = vld [vmem:[#allocation2 + $0x1b0] sm:$0xf] }
 0x586   :  { %v16059_v37 = vpop.f32.mrf.mxu1  ;;  %v6308_v34 = vor.u32 %v6307_v5, %v6304_v3  ;;  %v6347_v17 = vrot.slane %v6345_v2, 3  ;;  %v10249_v3 = vcombine.low %v4438_v9, %v11657_v40  ;;  %v6397_v29 = vshrl.u32 %v5021_v0, 16 }
 0x587   :  { %19235 = vst [vmem:[#allocation18_spill] sm:$0xff] %v16071_v23  ;;  %v6337_v4 = vshrl.u32 %v10247_v33, 16  ;;  %v6340_v36 = vshll.u32 %v10247_v33, 16  ;;  %v6356_v57 = vrot.slane %v6354_v30, 3  ;;  %v6359_v31 = vrot.slane %v6357_v42, 4  ;;  %v19239_v30 = vld [vmem:[#allocation49_spill] sm:$0xff] }
 0x588   :  { %v16065_v55 = vpop.f32.mrf.mxu1  ;;  %v5026_v33 = vshll.u32 %v15834_v56, 16  ;;  %v16091_v43 = vsel %vm5303_vm3, %v6300_v35, %v6308_v34  ;;  %v10250_v5 = vcombine.low %v11658_v59, %v11658_v59  ;;  %v6400_v42 = vshll.u32 %v5021_v0, 16 }
 0x589   :  { %19233 = vst [vmem:[#allocation75_spill] sm:$0xff] %v16065_v55  ;;  %v16073_v26 = vpop.f32.mrf.mxu0  ;;  %v6339_v46 = vrot.slane %v6337_v4, 3  ;;  %v6342_v58 = vrot.slane %v6340_v36, 4  ;;  %19238 = vst [vmem:[#allocation66_spill] sm:$0xff] %v16091_v43  ;;  %v16094_v56 = vor.u32 %v6359_v31, %v6356_v57  ;;  %v5025_v4 = vrot.slane %v5023_v27, 4 }
 0x58a   :  { %7904 = vmatmul.mubr.bf16.gmra.mxu1 %v15643_v8  ;;  %v16078_v51 = vpop.f32.mrf.mxu1  ;;  %v5028_v36 = vrot.slane %v5026_v33, 5  ;;  %v16102_v35 = vadd.f32 %v15942_v61, %v15986_v39  ;;  %v6380_v40 = vshrl.u32 %v10249_v3, 16  ;;  %v6383_v57 = vshll.u32 %v10249_v3, 16  ;;  %v4442_v31 = vld [vmem:[#allocation2 + $0x1c0] sm:$0xf] }
 0x58b   :  { %7911 = vmatprep.mubr.bf16.mxu1 %v15650_v41  ;;  %7310 = vmatmul.mubr.bf16.gmra.mxu0 %v16069_v20  ;;  %v7177_v54 = vpop.f32.mrf.mxu0  ;;  %19236 = vst [vmem:[#allocation33_spill] sm:$0xff] %v16078_v51  ;;  %19240 = vst [vmem:[#allocation70_spill] sm:$0xff] %v16094_v56  ;;  %v6343_v9 = vor.u32 %v6342_v58, %v6339_v46  ;;  %v16107_v0 = vadd.f32 %v15964_v10, %v16004_v22  ;;  %v6388_v27 = vshrl.u32 %v10250_v5, 16 }
 0x58c   :  { %7317 = vmatprep.mubr.bf16.mxu0 %v16071_v23  ;;  %v6350_v54 = vrot.slane %v6348_v14, 4  ;;  %v19242_v14 = vld [vmem:[#allocation92_spill] sm:$0xff]  ;;  %v5031_v33 = vshrl.u32 %v15836_v24, 16  ;;  %v6399_v58 = vrot.slane %v6397_v29, 3  ;;  %v6402_v61 = vrot.slane %v6400_v42, 4 }
 0x58d   :  { %v16086_v13 = vpop.f32.mrf.mxu0  ;;  %v6391_v39 = vshll.u32 %v10250_v5, 16  ;;  %v5029_v59 = vor.u32 %v5028_v36, %v5025_v4  ;;  %v6382_v10 = vrot.slane %v6380_v40, 3  ;;  %v6385_v22 = vrot.slane %v6383_v57, 4  ;;  %v19246_v4 = vld [vmem:[#allocation32_spill] sm:$0xff]  ;;  %v19248_v40 = vld [vmem:[#allocation95_spill] sm:$0xff] }
 0x58e   :  { %v6351_v34 = vor.u32 %v6350_v54, %v6347_v17  ;;  %v6390_v8 = vrot.slane %v6388_v27, 3  ;;  %v16120_v29 = vadd.f32 %v15961_v19, %v16038_v63  ;;  %v16125_v36 = vor.u32 %v6402_v61, %v6399_v58  ;;  %v11540_v27 = vld [vmem:[#allocation3 + $0x228] sm:$0xff]   ;;  %v4446_v63 = vld [vmem:[#allocation2 + $0x1d0] sm:$0xf] }
 0x58f   :  { %v7180_v49 = vpop.f32.mrf.mxu0  ;;  %v5039_v58 = vshrl.u32 %v15862_v47, 16  ;;  %v5042_v61 = vshll.u32 %v15862_v47, 16  ;;  %11120 = vmatprep.subr.bf16.mxu1 %v11540_v27  ;;  %v16138_v47 = vadd.f32 %v15972_v53, %v16049_v18 }
 0x590   :  { %v16088_v21 = vpop.f32.mrf.mxu1  ;;  %v5034_v49 = vshll.u32 %v15836_v24, 16  ;;  %v16116_v3 = vsel %vm5303_vm3, %v6343_v9, %v6351_v34  ;;  %19247 = vst [vmem:[#allocation21_spill] sm:$0xff] %v16125_v36  ;;  %v6440_v9 = vshrl.u32 %v5029_v59, 16  ;;  %v6443_v34 = vshll.u32 %v5029_v59, 16  ;;  %11121 = vmatpush3.bf16.msra.mxu1 %v11540_v27 }
 0x591   :  { %19237 = vst [vmem:[#allocation62_spill] sm:$0xff] %v16088_v21  ;;  %19244 = vst [vmem:[#allocation56_spill] sm:$0xff] %v16116_v3  ;;  %v5033_v21 = vrot.slane %v5031_v33, 4 }
 0x592   :  { %7912 = vmatmul.mubr.bf16.gmra.mxu1 %v19239_v30  ;;  %v16096_v2 = vpop.f32.mrf.mxu1  ;;  %v11660_v30 = vld [vmem:[#allocation2 + $0x1c8] sm:$0xf]  ;;  %v5036_v24 = vrot.slane %v5034_v49, 5 }
 0x593   :  { %19241 = vst [vmem:[#allocation44_spill] sm:$0xff] %v16096_v2  ;;  %7919 = vmatprep.mubr.bf16.mxu1 %v19242_v14  ;;  %7318 = vmatmul.mubr.bf16.gmra.mxu0 %v16091_v43  ;;  %v11659_v14 = vld [vmem:[#allocation2 + $0x1c4] sm:$0xf]  ;;  %v10252_v41 = vcombine.low %v11660_v30, %v11660_v30  ;;  %v11661_v2 = vld [vmem:[#allocation2 + $0x1d4] sm:$0xf] }
 0x594   :  { %7325 = vmatprep.mubr.bf16.mxu0 %v16094_v56  ;;  %v16111_v46 = vpop.f32.mrf.mxu1  ;;  %v10251_v17 = vcombine.low %v4442_v31, %v11659_v14  ;;  %v6393_v14 = vrot.slane %v6391_v39, 4  ;;  %v5037_v49 = vor.u32 %v5036_v24, %v5033_v21  ;;  %v10253_v55 = vcombine.low %v4446_v63, %v11661_v2  ;;  %v11662_v21 = vld [vmem:[#allocation2 + $0x1d8] sm:$0xf] }
 0x595   :  { %19243 = vst [vmem:[#allocation36_spill] sm:$0xff] %v16111_v46  ;;  %v6431_v19 = vshrl.u32 %v10252_v41, 16  ;;  %v6434_v33 = vshll.u32 %v10252_v41, 16  ;;  %v10254_v24 = vcombine.low %v11662_v21, %v11662_v21 }
 0x596   :  { %v16122_v42 = vpop.f32.mrf.mxu1  ;;  %v6423_v30 = vshrl.u32 %v10251_v17, 16  ;;  %v6426_v57 = vshll.u32 %v10251_v17, 16  ;;  %v6445_v17 = vrot.slane %v6443_v34, 4  ;;  %v6466_v18 = vshrl.u32 %v10253_v55, 16 }
 0x597   :  { %v16113_v54 = vpop.f32.mrf.mxu0  ;;  %19245 = vst [vmem:[#allocation108_spill] sm:$0xff] %v16122_v42  ;;  %v6433_v41 = vrot.slane %v6431_v19, 3  ;;  %v6469_v53 = vshll.u32 %v10253_v55, 16 }
 0x598   :  { %v6425_v46 = vrot.slane %v6423_v30, 3  ;;  %v6428_v42 = vrot.slane %v6426_v57, 4  ;;  %v6486_v30 = vshll.u32 %v5037_v49, 16  ;;  %v6477_v57 = vshll.u32 %v10254_v24, 16 }
 0x599   :  { %v7185_v5 = vpop.f32.mrf.mxu0  ;;  %v16159_v55 = vadd.f32 %v15991_v38, %v16113_v54 }
 0x59a   :  { %7920 = vmatmul.mubr.bf16.gmra.mxu1 %v19246_v4  ;;  %v6386_v5 = vor.u32 %v6385_v22, %v6382_v10  ;;  %v6442_v4 = vrot.slane %v6440_v9, 3  ;;  %v16142_v10 = vadd.f32 %v15998_v44, %v16073_v26  ;;  %v6483_v22 = vshrl.u32 %v5037_v49, 16 }
 0x59b   :  { %7927 = vmatprep.mubr.bf16.mxu1 %v19248_v40  ;;  %7326 = vmatmul.mubr.bf16.gmra.mxu0 %v16116_v3  ;;  %v7186_v31 = vpop.f32.mrf.mxu0  ;;  %v6394_v40 = vor.u32 %v6393_v14, %v6390_v8  ;;  %v6436_v8 = vrot.slane %v6434_v33, 4  ;;  %v5041_v14 = vrot.slane %v5039_v58, 4  ;;  %v5044_v9 = vrot.slane %v5042_v61, 5 }
 0x59c   :  { %7333 = vmatprep.mubr.bf16.mxu0 %v16125_v36  ;;  %v16148_v34 = vor.u32 %v6445_v17, %v6442_v4  ;;  %v6474_v26 = vshrl.u32 %v10254_v24, 16  ;;  %v6429_v19 = vor.u32 %v6428_v42, %v6425_v46  ;;  %v4450_v4 = vld [vmem:[#allocation2 + $0x1e0] sm:$0xf]  ;;  %v6488_v58 = vrot.slane %v6486_v30, 4  ;;  %v11663_v42 = vld [vmem:[#allocation2 + $0x1e4] sm:$0xf] }
 0x59d   :  { %v7188_v39 = vpop.f32.mrf.mxu0  ;;  %v16132_v59 = vpop.f32.mrf.mxu1  ;;  %v16146_v2 = vsel %vm5303_vm3, %v6386_v5, %v6394_v40  ;;  %v6437_v63 = vor.u32 %v6436_v8, %v6433_v41  ;;  %v6485_v40 = vrot.slane %v6483_v22, 3  ;;  %v5045_v33 = vor.u32 %v5044_v9, %v5041_v14  ;;  %v11664_v9 = vld [vmem:[#allocation2 + $0x1e8] sm:$0xf] }
 0x59e   :  { %19249 = vst [vmem:[#allocation10_spill] sm:$0xff] %v16132_v59  ;;  %19251 = vst [vmem:[#allocation109_spill] sm:$0xff] %v16146_v2  ;;  %v5047_v49 = vshrl.u32 %v15864_v60, 16  ;;  %v5050_v61 = vshll.u32 %v15864_v60, 16  ;;  %v6468_v5 = vrot.slane %v6466_v18, 3  ;;  %v6471_v17 = vrot.slane %v6469_v53, 4 }
 0x59f   :  { %v16134_v51 = vpop.f32.mrf.mxu1  ;;  %19252 = vst [vmem:[#allocation111_spill] sm:$0xff] %v16148_v34  ;;  %v6476_v24 = vrot.slane %v6474_v26, 3  ;;  %v6479_v46 = vrot.slane %v6477_v57, 4  ;;  %v10255_v41 = vcombine.low %v4450_v4, %v11663_v42  ;;  %v16164_v8 = vadd.f32 %v16002_v15, %v7186_v31 }
 0x5a0   :  { %19250 = vst [vmem:[#allocation58_spill] sm:$0xff] %v16134_v51  ;;  %v6526_v14 = vshrl.u32 %v5045_v33, 16  ;;  %v6529_v60 = vshll.u32 %v5045_v33, 16  ;;  %v10256_v30 = vcombine.low %v11664_v9, %v11664_v9  ;;  %v16170_v38 = vsel %vm5303_vm3, %v6429_v19, %v6437_v63  ;;  %v11665_v9 = vld [vmem:[#allocation2 + $0x1f4] sm:$0xf] }
 0x5a1   :  { %v16152_v44 = vpop.f32.mrf.mxu1  ;;  %19256 = vst [vmem:[#allocation63_spill] sm:$0xff] %v16170_v38  ;;  %v16172_v54 = vor.u32 %v6488_v58, %v6485_v40  ;;  %v5049_v18 = vrot.slane %v5047_v49, 4  ;;  %v5052_v53 = vrot.slane %v5050_v61, 5  ;;  %v6472_v15 = vor.u32 %v6471_v17, %v6468_v5 }
 0x5a2   :  { %7928 = vmatmul.mubr.bf16.gmra.mxu1 %v15737_v11  ;;  %19253 = vst [vmem:[#allocation9_spill] sm:$0xff] %v16152_v44  ;;  %v6480_v57 = vor.u32 %v6479_v46, %v6476_v24  ;;  %v6509_v33 = vshrl.u32 %v10255_v41, 16  ;;  %v6512_v4 = vshll.u32 %v10255_v41, 16  ;;  %v6528_v63 = vrot.slane %v6526_v14, 3  ;;  %v11666_v41 = vld [vmem:[#allocation2 + $0x1f8] sm:$0xf] }
 0x5a3   :  { %7935 = vmatprep.mubr.bf16.mxu1 %v15742_v1  ;;  %7334 = vmatmul.mubr.bf16.gmra.mxu0 %v16146_v2  ;;  %v16161_v21 = vpop.f32.mrf.mxu1  ;;  %19257 = vst [vmem:[#allocation69_spill] sm:$0xff] %v16172_v54  ;;  %v6531_v40 = vrot.slane %v6529_v60, 4  ;;  %v6517_v58 = vshrl.u32 %v10256_v30, 16  ;;  %v6520_v49 = vshll.u32 %v10256_v30, 16  ;;  %v5053_v42 = vor.u32 %v5052_v53, %v5049_v18  ;;  %v19264_v53 = vld [vmem:[#allocation23_spill] sm:$0xff] }
 0x5a4   :  { %7341 = vmatprep.mubr.bf16.mxu0 %v16148_v34  ;;  %v7191_v27 = vpop.f32.mrf.mxu0  ;;  %19254 = vst [vmem:[#allocation60_spill] sm:$0xff] %v16161_v21  ;;  %v5055_v5 = vshrl.u32 %v15890_v32, 16  ;;  %v5058_v17 = vshll.u32 %v15890_v32, 16  ;;  %v16187_v24 = vsel %vm5303_vm3, %v6472_v15, %v6480_v57  ;;  %v6511_v46 = vrot.slane %v6509_v33, 3  ;;  %v19284_v21 = vld [vmem:[#allocation99_spill] sm:$0xff] }
 0x5a5   :  { %v16180_v19 = vadd.f32 %v16024_v48, %v7191_v27  ;;  %19261 = vst [vmem:[#allocation115_spill] sm:$0xff] %v16187_v24  ;;  %v10258_v48 = vcombine.low %v11666_v41, %v11666_v41  ;;  %v16191_v14 = vor.u32 %v6531_v40, %v6528_v63  ;;  %v6514_v60 = vrot.slane %v6512_v4, 4 }
 0x5a6   :  { %v7193_v39 = vpop.f32.mrf.mxu0  ;;  %v6519_v30 = vrot.slane %v6517_v58, 3  ;;  %v6572_v32 = vshll.u32 %v5053_v42, 16  ;;  %v5195_v51 = vrot.slane %v19284_v21, 5 }
 0x5a7   :  { %v4454_v39 = vld [vmem:[#allocation2 + $0x1f0] sm:$0xf]  ;;  %19259 = vst [vmem:[#allocation113_spill] sm:$0xff] %v16180_v19  ;;  %19263 = vst [vmem:[#allocation117_spill] sm:$0xff] %v16191_v14  ;;  %v6560_v63 = vshrl.u32 %v10258_v48, 16  ;;  %v6563_v40 = vshll.u32 %v10258_v48, 16 }
 0x5a8   :  { %v16166_v22 = vpop.f32.mrf.mxu0 }
 0x5a9   :  { %19255 = vst [vmem:[#allocation110_spill] sm:$0xff] %v16166_v22  ;;  %v6562_v48 = vrot.slane %v6560_v63, 3  ;;  %v6565_v11 = vrot.slane %v6563_v40, 4  ;;  %v16220_v40 = vld [vmem:[#allocation2 + $0x124] sm:$0xf] }
 0x5aa   :  { %7936 = vmatmul.mubr.bf16.gmra.mxu1 %v15765_v52  ;;  %v7196_v26 = vpop.f32.mrf.mxu0  ;;  %v6569_v52 = vshrl.u32 %v5053_v42, 16  ;;  %v4458_v42 = vld [vmem:[#allocation2 + $0x200] sm:$0xf] }
 0x5ab   :  { %7943 = vmatprep.mubr.bf16.mxu1 %v15769_v7  ;;  %7342 = vmatmul.mubr.bf16.gmra.mxu0 %v16170_v38  ;;  %v16176_v31 = vpop.f32.mrf.mxu1  ;;  %v10257_v26 = vcombine.low %v4454_v39, %v11665_v9  ;;  %v6522_v7 = vrot.slane %v6520_v49, 4  ;;  %v5060_v39 = vrot.slane %v5058_v17, 5  ;;  %v19265_v9 = vld [vmem:[#allocation50_spill] sm:$0xff]  ;;  %v6515_v49 = vor.u32 %v6514_v60, %v6511_v46 }
 0x5ac   :  { %19258 = vst [vmem:[#allocation112_spill] sm:$0xff] %v16176_v31  ;;  %7349 = vmatprep.mubr.bf16.mxu0 %v16172_v54  ;;  %v5057_v31 = vrot.slane %v5055_v5, 4  ;;  %v5063_v5 = vshrl.u32 %v15896_v28, 16  ;;  %v5066_v17 = vshll.u32 %v15896_v28, 16 }
 0x5ad   :  { %v16182_v61 = vpop.f32.mrf.mxu1  ;;  %v6552_v15 = vshrl.u32 %v10257_v26, 16  ;;  %v6555_v4 = vshll.u32 %v10257_v26, 16 }
 0x5ae   :  { %19260 = vst [vmem:[#allocation114_spill] sm:$0xff] %v16182_v61  ;;  %v11668_v61 = vld [vmem:[#allocation2 + $0x208] sm:$0xf]  ;;  %v5065_v28 = vrot.slane %v5063_v5, 4  ;;  %v5068_v59 = vrot.slane %v5066_v17, 5 }
 0x5af   :  { %v16189_v27 = vpop.f32.mrf.mxu1  ;;  %v6557_v1 = vrot.slane %v6555_v4, 4  ;;  %v10260_v44 = vcombine.low %v11668_v61, %v11668_v61  ;;  %v6566_v4 = vor.u32 %v6565_v11, %v6562_v48  ;;  %v11546_v48 = vld [vmem:[#allocation3 + $0x220] sm:$0xff]  }
 0x5b0   :  { %19262 = vst [vmem:[#allocation116_spill] sm:$0xff] %v16189_v27  ;;  %v6574_v27 = vrot.slane %v6572_v32, 4  ;;  %11122 = vmatprep.subr.bf16.mxu1 %v11546_v48 }
 0x5b1   :  { %v7199_v18 = vpop.f32.mrf.mxu0  ;;  %v16200_v58 = vpop.f32.mrf.mxu1  ;;  %11123 = vmatpush3.bf16.msra.mxu1 %v11546_v48 }
 0x5b2   :  { %7944 = vmatmul.mubr.bf16.gmra.mxu1 %v19264_v53  ;;  %v16197_v57 = vadd.f32 %v16022_v12, %v7199_v18  ;;  %19267 = vst [vmem:[#allocation119_spill] sm:$0xff] %v16200_v58  ;;  %v6571_v53 = vrot.slane %v6569_v52, 3  ;;  %v5061_v12 = vor.u32 %v5060_v39, %v5057_v31  ;;  %v6554_v18 = vrot.slane %v6552_v15, 3  ;;  %v11667_v58 = vld [vmem:[#allocation2 + $0x204] sm:$0xf] }
 0x5b3   :  { %7951 = vmatprep.mubr.bf16.mxu1 %v19265_v9  ;;  %7350 = vmatmul.mubr.bf16.gmra.mxu0 %v16187_v24  ;;  %v7201_v33 = vpop.f32.mrf.mxu0  ;;  %v6523_v9 = vor.u32 %v6522_v7, %v6519_v30  ;;  %v10259_v46 = vcombine.low %v4458_v42, %v11667_v58  ;;  %v19270_v7 = vld [vmem:[#allocation15_spill] sm:$0xff]  ;;  %v19274_v39 = vld [vmem:[#allocation41_spill] sm:$0xff]  ;;  %v6606_v58 = vshll.u32 %v10260_v44, 16 }
 0x5b4   :  { %19266 = vst [vmem:[#allocation118_spill] sm:$0xff] %v16197_v57  ;;  %7357 = vmatprep.mubr.bf16.mxu0 %v16191_v14  ;;  %v16213_v31 = vor.u32 %v6574_v27, %v6571_v53  ;;  %v6615_v30 = vshll.u32 %v5061_v12, 16  ;;  %v4462_v15 = vld [vmem:[#allocation2 + $0x210] sm:$0xf]  ;;  %v6558_v61 = vor.u32 %v6557_v1, %v6554_v18  ;;  %v6603_v53 = vshrl.u32 %v10260_v44, 16 }
 0x5b5   :  { %v7202_v41 = vpop.f32.mrf.mxu0  ;;  %v16211_v52 = vsel %vm5303_vm3, %v6515_v49, %v6523_v9  ;;  %v6595_v63 = vshrl.u32 %v10259_v46, 16  ;;  %v16222_v9 = vld [vmem:[#allocation2 + $0x128] sm:$0xf]  ;;  %v6598_v27 = vshll.u32 %v10259_v46, 16  ;;  %v5069_v49 = vor.u32 %v5068_v59, %v5065_v28  ;;  %v11670_v44 = vld [vmem:[#allocation2 + $0x218] sm:$0xf] }
 0x5b6   :  { %v16205_v33 = vadd.f32 %v16035_v62, %v7202_v41  ;;  %19271 = vst [vmem:[#allocation122_spill] sm:$0xff] %v16211_v52  ;;  %19272 = vst [vmem:[#allocation123_spill] sm:$0xff] %v16213_v31  ;;  %v6612_v62 = vshrl.u32 %v5061_v12, 16  ;;  %v6617_v17 = vrot.slane %v6615_v30, 4  ;;  %v5071_v41 = vshrl.u32 %v15916_v16, 16 }
 0x5b7   :  { %v7204_v26 = vpop.f32.mrf.mxu0  ;;  %v5074_v12 = vshll.u32 %v15916_v16, 16  ;;  %v16230_v11 = vcombine.low %v16220_v40, %v16222_v9  ;;  %v16233_v46 = vsel %vm5303_vm3, %v6558_v61, %v6566_v4  ;;  %v6597_v59 = vrot.slane %v6595_v63, 3 }
 0x5b8   :  { %19268 = vst [vmem:[#allocation120_spill] sm:$0xff] %v16205_v33  ;;  %v16207_v60 = vpop.f32.mrf.mxu1  ;;  %v6614_v5 = vrot.slane %v6612_v62, 3  ;;  %v11669_v26 = vld [vmem:[#allocation2 + $0x214] sm:$0xf]  ;;  %19276 = vst [vmem:[#allocation126_spill] sm:$0xff] %v16233_v46  ;;  %v10262_v28 = vcombine.low %v11670_v44, %v11670_v44  ;;  %v6600_v30 = vrot.slane %v6598_v27, 4 }
 0x5b9   :  { %19269 = vst [vmem:[#allocation121_spill] sm:$0xff] %v16207_v60  ;;  %v10261_v1 = vcombine.low %v4462_v15, %v11669_v26  ;;  %v6608_v16 = vrot.slane %v6606_v58, 4  ;;  %v6658_v61 = vshll.u32 %v5069_v49, 16  ;;  %v5073_v4 = vrot.slane %v5071_v41, 4  ;;  %v19281_v44 = vld [vmem:[#allocation100_spill] sm:$0xff] }
 0x5ba   :  { %7952 = vmatmul.mubr.bf16.gmra.mxu1 %v19270_v7  ;;  %v16215_v32 = vpop.f32.mrf.mxu1  ;;  %v19279_v7 = vld [vmem:[#allocation52_spill] sm:$0xff]  ;;  %v16241_v60 = vor.u32 %v6617_v17, %v6614_v5  ;;  %v5076_v63 = vrot.slane %v5074_v12, 5  ;;  %v4946_v58 = vshll.u32 %v16230_v11, 16  ;;  %v6646_v5 = vshrl.u32 %v10262_v28, 16 }
 0x5bb   :  { %19273 = vst [vmem:[#allocation124_spill] sm:$0xff] %v16215_v32  ;;  %7959 = vmatprep.mubr.bf16.mxu1 %v19274_v39  ;;  %7358 = vmatmul.mubr.bf16.gmra.mxu0 %v16211_v52  ;;  %v6655_v39 = vshrl.u32 %v5069_v49, 16  ;;  %v11530_v32 = vld [vmem:[#allocation2 + $0xc] ss:$0 sps:$4 sm:$0xff]   ;;  %v6641_v27 = vshll.u32 %v10261_v1, 16  ;;  %v6649_v17 = vshll.u32 %v10262_v28, 16  ;;  %v6601_v49 = vor.u32 %v6600_v30, %v6597_v59 }
 0x5bc   :  { %7365 = vmatprep.mubr.bf16.mxu0 %v16213_v31  ;;  %v16224_v42 = vpop.f32.mrf.mxu1  ;;  %19280 = vst [vmem:[#allocation129_spill] sm:$0xff] %v16241_v60  ;;  %v4948_v22 = vrot.slane %v4946_v58, 5  ;;  %v6648_v28 = vrot.slane %v6646_v5, 3  ;;  %v11671_v59 = vld [vmem:[#allocation2 + $0x224] sm:$0xf] }
 0x5bd   :  { %19275 = vst [vmem:[#allocation125_spill] sm:$0xff] %v16224_v42  ;;  %v6605_v42 = vrot.slane %v6603_v53, 3  ;;  %v4943_v53 = vshrl.u32 %v16230_v11, 16  ;;  %v6657_v12 = vrot.slane %v6655_v39, 3  ;;  %v6643_v57 = vrot.slane %v6641_v27, 4 }
 0x5be   :  { %v16238_v26 = vpop.f32.mrf.mxu1  ;;  %v6651_v48 = vrot.slane %v6649_v17, 4  ;;  %v11672_v39 = vld [vmem:[#allocation2 + $0x228] sm:$0xf]  ;;  %v4402_v58 = vld [vmem:[#allocation2 + $0x120] sm:$0xf] }
 0x5bf   :  { %v7207_v18 = vpop.f32.mrf.mxu0  ;;  %19278 = vst [vmem:[#allocation128_spill] sm:$0xff] %v16238_v26  ;;  %v6609_v41 = vor.u32 %v6608_v16, %v6605_v42  ;;  %v6660_v26 = vrot.slane %v6658_v61, 4  ;;  %v10264_v30 = vcombine.low %v11672_v39, %v11672_v39  ;;  %v19287_v61 = vld [vmem:[#allocation53_spill] sm:$0xff] }
 0x5c0   :  { %v16236_v62 = vadd.f32 %v16059_v37, %v7207_v18  ;;  %v6638_v37 = vshrl.u32 %v10261_v1, 16  ;;  %v5077_v1 = vor.u32 %v5076_v63, %v5073_v4  ;;  %v6652_v5 = vor.u32 %v6651_v48, %v6648_v28 }
 0x5c1   :  { %v7209_v15 = vpop.f32.mrf.mxu0  ;;  %v16256_v16 = vsel %vm5303_vm3, %v6601_v49, %v6609_v41  ;;  %v16259_v4 = vor.u32 %v6660_v26, %v6657_v12  ;;  %v6876_v26 = vshrl.u32 %v10264_v30, 16  ;;  %v5331_v12 = vshrl.u32 %v5195_v51, 16 }
 0x5c2   :  { %19277 = vst [vmem:[#allocation127_spill] sm:$0xff] %v16236_v62  ;;  %7960 = vmatmul.mubr.bf16.gmra.mxu1 %v19279_v7  ;;  %v4466_v15 = vld [vmem:[#allocation2 + $0x220] sm:$0xf]  ;;  %v5196_v62 = vrot.slane %v11530_v32, 5  ;;  %v6640_v33 = vrot.slane %v6638_v37, 3  ;;  %19286 = vst [vmem:[#allocation132_spill] sm:$0xff] %v16256_v16  ;;  %v10232_v28 = vcombine.low %v16222_v9, %v16222_v9 }
 0x5c3   :  { %7967 = vmatprep.mubr.bf16.mxu1 %v19281_v44  ;;  %7366 = vmatmul.mubr.bf16.gmra.mxu0 %v16233_v46  ;;  %v16247_v18 = vpop.f32.mrf.mxu0  ;;  %v10263_v42 = vcombine.low %v4466_v15, %v11671_v59  ;;  %19288 = vst [vmem:[#allocation133_spill] sm:$0xff] %v16259_v4  ;;  %v6885_v21 = vshrl.u32 %v5077_v1, 16  ;;  %v6888_v32 = vshll.u32 %v5077_v1, 16  ;;  %v19290_v37 = vld [vmem:[#allocation105_spill] sm:$0xff]  ;;  %v5334_v15 = vshll.u32 %v5195_v51, 16 }
 0x5c4   :  { %19282 = vst [vmem:[#allocation130_spill] sm:$0xff] %v16247_v18  ;;  %7373 = vmatprep.mubr.bf16.mxu0 %v16241_v60  ;;  %v4945_v18 = vrot.slane %v4943_v53, 4  ;;  %v5197_v63 = vsel %vm5194_vm2, %v5195_v51, %v5196_v62  ;;  %v6644_v27 = vor.u32 %v6643_v57, %v6640_v33 }
 0x5c5   :  { %v7212_v44 = vpop.f32.mrf.mxu0  ;;  %v16250_v7 = vpop.f32.mrf.mxu1  ;;  %v6868_v17 = vshrl.u32 %v10263_v42, 16  ;;  %v6871_v49 = vshll.u32 %v10263_v42, 16  ;;  %v5339_v62 = vshrl.u32 %v5197_v63, 16  ;;  %v5342_v1 = vshll.u32 %v5197_v63, 16 }
 0x5c6   :  { %19283 = vst [vmem:[#allocation131_spill] sm:$0xff] %v16250_v7  ;;  %v4949_v53 = vor.u32 %v4948_v22, %v4945_v18  ;;  %v6887_v59 = vrot.slane %v6885_v21, 3  ;;  %v6890_v39 = vrot.slane %v6888_v32, 4  ;;  %v16275_v48 = vsel %vm5303_vm3, %v6644_v27, %v6652_v5  ;;  %v19296_v27 = vld [vmem:[#allocation107_spill] sm:$0xff] }
 0x5c7   :  { %v16253_v19 = vpop.f32.mrf.mxu1  ;;  %19292 = vst [vmem:[#allocation136_spill] sm:$0xff] %v16275_v48  ;;  %v6870_v42 = vrot.slane %v6868_v17, 3  ;;  %v6873_v51 = vrot.slane %v6871_v49, 4  ;;  %v5333_v21 = vrot.slane %v5331_v12, 3  ;;  %v5341_v32 = vrot.slane %v5339_v62, 3  ;;  %v11549_v12 = vld [vmem:[#allocation3 + $0x218] sm:$0xff]  }
 0x5c8   :  { %19285 = vst [vmem:[#allocation99_spill] sm:$0xff] %v16253_v19  ;;  %v6010_v33 = vshrl.u32 %v4949_v53, 16  ;;  %v6013_v18 = vshll.u32 %v4949_v53, 16  ;;  %v6001_v49 = vshrl.u32 %v10232_v28, 16  ;;  %11124 = vmatprep.subr.bf16.mxu1 %v11549_v12 }
 0x5c9   :  { %v16262_v44 = vpop.f32.mrf.mxu1  ;;  %11125 = vmatpush3.bf16.msra.mxu1 %v11549_v12  ;;  %v11532_v12 = vld [vmem:[#allocation3 + $0x1b0] sm:$0xff]  }
 0x5ca   :  { %7968 = vmatmul.mubr.bf16.gmra.mxu1 %v19287_v61  ;;  %19289 = vst [vmem:[#allocation134_spill] sm:$0xff] %v16262_v44  ;;  %v6879_v44 = vshll.u32 %v10264_v30, 16  ;;  %v6878_v61 = vrot.slane %v6876_v26, 3  ;;  %v5336_v30 = vrot.slane %v5334_v15, 4  ;;  %v6012_v5 = vrot.slane %v6010_v33, 3  ;;  %v11551_v33 = vld [vmem:[#allocation3 + $0x210] sm:$0xff]  }
 0x5cb   :  { %7975 = vmatprep.mubr.bf16.mxu1 %v19290_v37  ;;  %7374 = vmatmul.mubr.bf16.gmra.mxu0 %v16256_v16  ;;  %v10231_v37 = vcombine.low %v4402_v58, %v16220_v40  ;;  %v16270_v22 = vpop.f32.mrf.mxu1  ;;  %v5344_v40 = vrot.slane %v5342_v1, 4  ;;  %v19293_v58 = vld [vmem:[#allocation104_spill] sm:$0xff]  ;;  %v6015_v17 = vrot.slane %v6013_v18, 4  ;;  %v6004_v26 = vshll.u32 %v10232_v28, 16 }
 0x5cc   :  { %7381 = vmatprep.mubr.bf16.mxu0 %v16259_v4  ;;  %v16267_v41 = vpop.f32.mrf.mxu0  ;;  %19291 = vst [vmem:[#allocation135_spill] sm:$0xff] %v16270_v22  ;;  %v6881_v53 = vrot.slane %v6879_v44, 4  ;;  %v5337_v62 = vor.u32 %v5336_v30, %v5333_v21  ;;  %11126 = vmatprep.subr.bf16.mxu1 %v11551_v33 }
 0x5cd   :  { %v5993_v7 = vshrl.u32 %v10231_v37, 16  ;;  %v5996_v22 = vshll.u32 %v10231_v37, 16  ;;  %v5345_v44 = vor.u32 %v5344_v40, %v5341_v32  ;;  %v6874_v37 = vor.u32 %v6873_v51, %v6870_v42  ;;  %v11552_v42 = vld [vmem:[#allocation3 + $0x208] sm:$0xff]   ;;  %11127 = vmatpush3.bf16.msra.mxu1 %v11551_v33 }
 0x5ce   :  { %v7217_v57 = vpop.f32.mrf.mxu0  ;;  %v6882_v1 = vor.u32 %v6881_v53, %v6878_v61  ;;  %11128 = vmatprep.subr.bf16.mxu1 %v11552_v42  ;;  %v11554_v53 = vld [vmem:[#allocation3 + $0x200] sm:$0xff]  }
 0x5cf   :  { %v16280_v57 = vor.u32 %v6890_v39, %v6887_v59  ;;  %v5995_v59 = vrot.slane %v5993_v7, 3  ;;  %v6016_v39 = vor.u32 %v6015_v17, %v6012_v5  ;;  %v5346_v28 = vsel %vm5303_vm3, %v5337_v62, %v5345_v44  ;;  %v11531_v5 = vld [vmem:[#allocation3 + $0x1b8] sm:$0xff]  }
 0x5d0   :  { %v16277_v63 = vpop.f32.mrf.mxu0  ;;  %v16296_v21 = vsel %vm5303_vm3, %v6874_v37, %v6882_v1  ;;  %v19307_v62 = vmov 0   ;;  %v11533_v1 = vld [vmem:[#allocation3 + $0x1a8] sm:$0xff]  }
 0x5d1   :  { %19294 = vst [vmem:[#allocation137_spill] sm:$0xff] %v16280_v57  ;;  %19300 = vst [vmem:[#allocation141_spill] sm:$0xff] %v16296_v21  ;;  %11129 = vmatpush3.bf16.msra.mxu1 %v11552_v42 }
 0x5d2   :  { %7976 = vmatmul.mubr.bf16.gmra.mxu1 %v19293_v58  ;;  %v7220_v9 = vpop.f32.mrf.mxu0  ;;  %v16282_v19 = vpop.f32.mrf.mxu1  ;;  %11130 = vmatprep.subr.bf16.mxu1 %v11554_v53 }
 0x5d3   :  { %19295 = vst [vmem:[#allocation138_spill] sm:$0xff] %v16282_v19  ;;  %7983 = vmatprep.mubr.bf16.mxu1 %v19296_v27  ;;  %7382 = vmatmul.mubr.bf16.gmra.mxu0 %v16275_v48  ;;  %v5998_v9 = vrot.slane %v5996_v22, 4  ;;  %v6003_v19 = vrot.slane %v6001_v49, 3  ;;  %v6006_v27 = vrot.slane %v6004_v26, 4  ;;  %v19305_v49 = vld [vmem:[#allocation88_spill] sm:$0xff] }
 0x5d4   :  { %7389 = vmatprep.mubr.bf16.mxu0 %v16280_v57  ;;  %v16287_v15 = vpop.f32.mrf.mxu1  ;;  %v19299_v57 = vld [vmem:[#allocation25_spill] sm:$0xff]  ;;  %v19306_v26 = vld [vmem:[#allocation84_spill] sm:$0xff] }
 0x5d5   :  { %19297 = vst [vmem:[#allocation139_spill] sm:$0xff] %v16287_v15  ;;  %v5999_v7 = vor.u32 %v5998_v9, %v5995_v59  ;;  %v6007_v61 = vor.u32 %v6006_v27, %v6003_v19  ;;  %v19304_v27 = vld [vmem:[#allocation51_spill] sm:$0xff]  ;;  %11131 = vmatpush3.bf16.msra.mxu1 %v11554_v53  ;;  %v19310_v9 = vld [vmem:[#allocation82_spill] sm:$0xff]  ;;  %v11536_v53 = vld [vmem:[#allocation3 + $0x198] sm:$0xff]  }
 0x5d6   :  { %v16289_v18 = vpop.f32.mrf.mxu1 }
 0x5d7   :  { %19298 = vst [vmem:[#allocation140_spill] sm:$0xff] %v16289_v18  ;;  %v6008_v32 = vsel %vm5303_vm3, %v5999_v7, %v6007_v61  ;;  %v19312_v7 = vld [vmem:[#allocation83_spill] sm:$0xff]  ;;  %v19313_v61 = vld [vmem:[#allocation45_spill] sm:$0xff] }
 0x5d8   :  { %v16299_v51 = vpop.f32.mrf.mxu1 }
 0x5d9   :  { %v16292_v58 = vpop.f32.mrf.mxu0  ;;  %19301 = vst [vmem:[#allocation142_spill] sm:$0xff] %v16299_v51  ;;  %v19340_v51 = vld [vmem:[#allocation79_spill] sm:$0xff] }
 0x5da   :  { %7984 = vmatmul.mubr.bf16.gmra.mxu1 %v19299_v57  ;;  %v19339_v57 = vld [vmem:[#allocation13_spill] sm:$0xff] }
 0x5db   :  { %7390 = vmatmul.mubr.bf16.gmra.mxu0 %v16296_v21  ;;  %7991 = vmatprep.mubr.bf16.mxu1 %v6016_v39  ;;  %v7225_v22 = vpop.f32.mrf.mxu0  ;;  %v11538_v21 = vld [vmem:[#allocation3 + $0x188] sm:$0xff]  }
 0x5dc   :  { %11052 = vmatprep.mubr.bf16.mxu0 %v5346_v28  ;;  %v19311_v28 = vld [vmem:[#allocation90_spill] sm:$0xff]  ;;  %v11534_v22 = vld [vmem:[#allocation3 + $0x1a0] sm:$0xff]  }
 0x5dd   :  { %v16301_v30 = vpop.f32.mrf.mxu0 }
 0x5df   :  { %v7228_v40 = vpop.f32.mrf.mxu0 }
 0x5e0   :  { %v16304_v17 = vpop.f32.mrf.mxu1 }
 0x5e1   :  { %19302 = vst [vmem:[#allocation143_spill] sm:$0xff] %v16304_v17  ;;  %v5249_v17 = vrot.slane %v16230_v11, 5  ;;  %v11545_v11 = vld [vmem:[#allocation3 + $0x1e0] sm:$0xff]  }
 0x5e2   :  { %7992 = vmatmul.mubr.bf16.gmra.mxu1 %v6008_v32  ;;  %v16306_v19 = vpop.f32.mrf.mxu1 }
 0x5e3   :  { %19303 = vst [vmem:[#allocation144_spill] sm:$0xff] %v16306_v19  ;;  %7999 = vmatprep.mubr.bf16.mxu1 %v19304_v27  ;;  %11053 = vmatmul.mubr.bf16.vlgmr.msra.gmra.mxu0 %v19305_v49  ;;  %v19318_v49 = vld [vmem:[#allocation42_spill] sm:$0xff] }
 0x5e4   :  { %11056 = vmatprep.mubr.bf16.mxu0 %v19306_v26  ;;  %8695 = vmatpush1.bf16.msra.mxu0 %v11531_v5  ;;  %v16312_v44 = vpop.f32.mrf.mxu1  ;;  %v19316_v5 = vld [vmem:[#allocation64_spill] sm:$0xff] }
 0x5e5   :  { %8696 = vmatprep.subr.bf16.mxu0 %v19307_v62  ;;  %19308 = vst [vmem:[#allocation51_spill] sm:$0xff] %v16312_v44  ;;  %v19331_v44 = vld [vmem:[#allocation85_spill] sm:$0xff] }
 0x5e6   :  { %v16314_v37 = vpop.f32.mrf.mxu0  ;;  %v16317_v39 = vpop.f32.mrf.mxu1 }
 0x5e7   :  { %19309 = vst [vmem:[#allocation88_spill] sm:$0xff] %v16317_v39 }
 0x5e8   :  { %8697 = vmatpush1.bf16.msra.mxu0 %v11532_v12  ;;  %v7233_v59 = vpop.f32.mrf.mxu0  ;;  %v19319_v12 = vld [vmem:[#allocation78_spill] sm:$0xff] }
 0x5e9   :  { %8698 = vmatprep.subr.bf16.mxu0 %v19307_v62  ;;  %v11537_v59 = vld [vmem:[#allocation3 + $0x190] sm:$0xff]  }
 0x5ea   :  { %8000 = vmatmul.mubr.bf16.gmra.mxu1 %v19310_v9  ;;  %v16320_v33 = vpop.f32.mrf.mxu0 }
 0x5eb   :  { %8007 = vmatprep.mubr.bf16.mxu1 %v19311_v28  ;;  %11057 = vmatmul.mubr.bf16.gmra.mxu0 %v19312_v7  ;;  %v19333_v28 = vld [vmem:[#allocation48_spill] sm:$0xff] }
 0x5ec   :  { %11060 = vmatprep.mubr.bf16.mxu0 %v19313_v61  ;;  %8699 = vmatpush1.bf16.msra.mxu0 %v11533_v1  ;;  %v7236_v42 = vpop.f32.mrf.mxu0 }
 0x5ed   :  { %8700 = vmatprep.subr.bf16.mxu0 %v19307_v62  ;;  %v16326_v32 = vpop.f32.mrf.mxu1 }
 0x5ee   :  { %19314 = vst [vmem:[#allocation84_spill] sm:$0xff] %v16326_v32 }
 0x5ef   :  { %v16328_v40 = vpop.f32.mrf.mxu1 }
 0x5f0   :  { %19315 = vst [vmem:[#allocation82_spill] sm:$0xff] %v16328_v40  ;;  %8701 = vmatpush1.bf16.msra.mxu0 %v11534_v22  ;;  %v11542_v40 = vld [vmem:[#allocation3 + $0x1f8] sm:$0xff]  }
 0x5f1   :  { %8702 = vmatprep.subr.bf16.mxu0 %v19307_v62  ;;  %v16332_v27 = vpop.f32.mrf.mxu1 }
 0x5f2   :  { %8008 = vmatmul.mubr.bf16.gmra.mxu1 %v19316_v5  ;;  %19317 = vst [vmem:[#allocation83_spill] sm:$0xff] %v16332_v27  ;;  %v19325_v5 = vld [vmem:[#allocation11_spill] sm:$0xff] }
 0x5f3   :  { %8015 = vmatprep.mubr.bf16.mxu1 %v15995_v6  ;;  %11061 = vmatmul.mubr.bf16.gmra.mxu0 %v19318_v49  ;;  %v16340_v22 = vpop.f32.mrf.mxu1  ;;  %v19323_v6 = vld [vmem:[#allocation68_spill] sm:$0xff] }
 0x5f4   :  { %11064 = vmatprep.mubr.bf16.mxu0 %v19319_v12  ;;  %v16337_v1 = vpop.f32.mrf.mxu0  ;;  %8703 = vmatpush1.bf16.msra.mxu0 %v11536_v53  ;;  %19320 = vst [vmem:[#allocation45_spill] sm:$0xff] %v16340_v22  ;;  %v19324_v53 = vld [vmem:[#allocation14_spill] sm:$0xff]  ;;  %v11539_v22 = vld [vmem:[#allocation3 + $0x180] sm:$0xff]  }
 0x5f5   :  { %8704 = vmatprep.subr.bf16.mxu0 %v19307_v62 }
 0x5f6   :  { %v7241_v9 = vpop.f32.mrf.mxu0 }
 0x5f8   :  { %v16342_v42 = vpop.f32.mrf.mxu0  ;;  %8705 = vmatpush1.bf16.msra.mxu0 %v11537_v59 }
 0x5f9   :  { %19321 = vst [vmem:[#allocation42_spill] sm:$0xff] %v16342_v42  ;;  %8706 = vmatprep.subr.bf16.mxu0 %v19307_v62 }
 0x5fa   :  { %8016 = vmatmul.mubr.bf16.gmra.mxu1 %v16009_v50  ;;  %v7244_v27 = vpop.f32.mrf.mxu0  ;;  %v16346_v32 = vpop.f32.mrf.mxu1 }
 0x5fb   :  { %19322 = vst [vmem:[#allocation78_spill] sm:$0xff] %v16346_v32  ;;  %8023 = vmatprep.mubr.bf16.mxu1 %v19323_v6  ;;  %11065 = vmatmul.mubr.bf16.gmra.mxu0 %v19324_v53  ;;  %v19329_v27 = vld [vmem:[#allocation74_spill] sm:$0xff]  ;;  %v19330_v6 = vld [vmem:[#allocation27_spill] sm:$0xff] }
 0x5fc   :  { %11068 = vmatprep.mubr.bf16.mxu0 %v19325_v5  ;;  %v16351_v9 = vpop.f32.mrf.mxu1  ;;  %8707 = vmatpush1.bf16.msra.mxu0 %v11538_v21  ;;  %v11541_v32 = vld [vmem:[#allocation2 + $0x12c] ss:$0 sps:$4 sm:$0xff]  }
 0x5fd   :  { %19326 = vst [vmem:[#allocation14_spill] sm:$0xff] %v16351_v9  ;;  %8708 = vmatprep.subr.bf16.mxu0 %v19307_v62  ;;  %v5250_v39 = vrot.slane %v11541_v32, 5 }
 0x5fe   :  { %v16354_v59 = vpop.f32.mrf.mxu1 }
 0x5ff   :  { %19327 = vst [vmem:[#allocation11_spill] sm:$0xff] %v16354_v59  ;;  %v11543_v59 = vld [vmem:[#allocation3 + $0x1f0] sm:$0xff]  }
 0x600   :  { %8709 = vmatpush1.bf16.msra.mxu0 %v11539_v22  ;;  %v16362_v21 = vpop.f32.mrf.mxu1 }
 0x601   :  { %v16356_v50 = vpop.f32.mrf.mxu0  ;;  %8710 = vmatprep.subr.bf16.mxu0 %v19307_v62  ;;  %19332 = vst [vmem:[#allocation85_spill] sm:$0xff] %v16362_v21  ;;  %v19338_v21 = vld [vmem:[#allocation72_spill] sm:$0xff] }
 0x602   :  { %19328 = vst [vmem:[#allocation145_spill] sm:$0xff] %v16356_v50  ;;  %8024 = vmatmul.mubr.bf16.gmra.mxu1 %v19329_v27 }
 0x603   :  { %8031 = vmatprep.mubr.bf16.mxu1 %v19330_v6  ;;  %11069 = vmatmul.mubr.bf16.gmra.mxu0 %v19331_v44  ;;  %v7249_v9 = vpop.f32.mrf.mxu0  ;;  %v11544_v6 = vld [vmem:[#allocation3 + $0x1e8] sm:$0xff]  }
 0x604   :  { %11072 = vmatprep.mubr.bf16.mxu0 %v19333_v28  ;;  %8711 = vmatpush2.bf16.msra.mxu0 %v11542_v40  ;;  %v19337_v9 = vld [vmem:[#allocation77_spill] sm:$0xff]  ;;  %v5251_v40 = vsel %vm5194_vm2, %v5249_v17, %v5250_v39  ;;  %v11547_v39 = vld [vmem:[#allocation3 + $0x1d8] sm:$0xff]  }
 0x605   :  { %v16365_v22 = vpop.f32.mrf.mxu0  ;;  %8712 = vmatprep.subr.bf16.mxu0 %v19307_v62 }
 0x606   :  { %19334 = vst [vmem:[#allocation48_spill] sm:$0xff] %v16365_v22 }
 0x607   :  { %v7252_v27 = vpop.f32.mrf.mxu0  ;;  %v16369_v19 = vpop.f32.mrf.mxu1 }
 0x608   :  { %19335 = vst [vmem:[#allocation146_spill] sm:$0xff] %v16369_v19  ;;  %8713 = vmatpush2.bf16.msra.mxu0 %v11543_v59  ;;  %v6019_v59 = vshrl.u32 %v5249_v17, 16  ;;  %v6022_v27 = vshll.u32 %v5249_v17, 16  ;;  %v6027_v19 = vshrl.u32 %v5251_v40, 16 }
 0x609   :  { %v16371_v18 = vpop.f32.mrf.mxu1  ;;  %8714 = vmatprep.subr.bf16.mxu0 %v19307_v62 }
 0x60a   :  { %19336 = vst [vmem:[#allocation147_spill] sm:$0xff] %v16371_v18  ;;  %8032 = vmatmul.mubr.bf16.gmra.mxu1 %v19337_v9  ;;  %v6030_v18 = vshll.u32 %v5251_v40, 16  ;;  %v6021_v22 = vrot.slane %v6019_v59, 3  ;;  %v6024_v50 = vrot.slane %v6022_v27, 4  ;;  %v6029_v42 = vrot.slane %v6027_v19, 3  ;;  %v19343_v40 = vld [vmem:[#allocation17_spill] sm:$0xff] }
 0x60b   :  { %8039 = vmatprep.mubr.bf16.mxu1 %v19338_v21  ;;  %11073 = vmatmul.mubr.bf16.gmra.mxu0 %v19339_v57  ;;  %v16379_v32 = vpop.f32.mrf.mxu1 }
 0x60c   :  { %11076 = vmatprep.mubr.bf16.mxu0 %v19340_v51  ;;  %8715 = vmatpush2.bf16.msra.mxu0 %v11544_v6  ;;  %19341 = vst [vmem:[#allocation13_spill] sm:$0xff] %v16379_v32  ;;  %v6032_v6 = vrot.slane %v6030_v18, 4  ;;  %v19344_v32 = vld [vmem:[#allocation57_spill] sm:$0xff]  ;;  %v6025_v59 = vor.u32 %v6024_v50, %v6021_v22  ;;  %v19348_v50 = vld [vmem:[#allocation19_spill] sm:$0xff] }
 0x60d   :  { %8716 = vmatprep.subr.bf16.mxu0 %v19307_v62  ;;  %v16384_v21 = vpop.f32.mrf.mxu1  ;;  %v11553_v22 = vld [vmem:[#allocation3 + $0x1c0] sm:$0xff]  }
 0x60e   :  { %v16382_v15 = vpop.f32.mrf.mxu0  ;;  %19342 = vst [vmem:[#allocation79_spill] sm:$0xff] %v16384_v21  ;;  %v6033_v19 = vor.u32 %v6032_v6, %v6029_v42 }
 0x610   :  { %v7257_v9 = vpop.f32.mrf.mxu0  ;;  %8717 = vmatpush2.bf16.msra.mxu0 %v11545_v11  ;;  %v11548_v11 = vld [vmem:[#allocation3 + $0x1d0] sm:$0xff]  }
 0x611   :  { %8718 = vmatprep.subr.bf16.mxu0 %v19307_v62 }
 0x612   :  { %8040 = vmatmul.mubr.bf16.gmra.mxu1 %v16069_v20  ;;  %v16388_v17 = vpop.f32.mrf.mxu0  ;;  %v11550_v20 = vld [vmem:[#allocation3 + $0x1c8] sm:$0xff]  }
 0x613   :  { %8047 = vmatprep.mubr.bf16.mxu1 %v16071_v23  ;;  %11077 = vmatmul.mubr.bf16.gmra.mxu0 %v19343_v40  ;;  %v6034_v23 = vsel %vm5303_vm3, %v6025_v59, %v6033_v19 }
 0x614   :  { %11080 = vmatprep.mubr.bf16.mxu0 %v19344_v32  ;;  %v7260_v9 = vpop.f32.mrf.mxu0  ;;  %8719 = vmatpush2.bf16.msra.mxu0 %v11547_v39 }
 0x615   :  { %v16393_v21 = vpop.f32.mrf.mxu1  ;;  %8720 = vmatprep.subr.bf16.mxu0 %v19307_v62 }
 0x616   :  { %19345 = vst [vmem:[#allocation17_spill] sm:$0xff] %v16393_v21  ;;  %v19353_v21 = vld [vmem:[#allocation29_spill] sm:$0xff] }
 0x617   :  { %v16396_v18 = vpop.f32.mrf.mxu1 }
 0x618   :  { %19346 = vst [vmem:[#allocation57_spill] sm:$0xff] %v16396_v18  ;;  %v16398_v27 = vpop.f32.mrf.mxu0  ;;  %8721 = vmatpush2.bf16.msra.mxu0 %v11548_v11 }
 0x619   :  { %8722 = vmatprep.subr.bf16.mxu0 %v19307_v62  ;;  %v16403_v9 = vpop.f32.mrf.mxu1 }
 0x61a   :  { %8048 = vmatmul.mubr.bf16.gmra.mxu1 %v16091_v43  ;;  %v7265_v39 = vpop.f32.mrf.mxu0  ;;  %19347 = vst [vmem:[#allocation148_spill] sm:$0xff] %v16403_v9  ;;  %v19350_v9 = vld [vmem:[#allocation34_spill] sm:$0xff]  ;;  %v19361_v43 = vld [vmem:[#allocation96_spill] sm:$0xff] }
 0x61b   :  { %8055 = vmatprep.mubr.bf16.mxu1 %v16094_v56  ;;  %11081 = vmatmul.mubr.bf16.gmra.mxu0 %v19348_v50  ;;  %v16410_v6 = vpop.f32.mrf.mxu1 }
 0x61c   :  { %v16407_v42 = vpop.f32.mrf.mxu0  ;;  %11084 = vmatprep.mubr.bf16.mxu0 %v6034_v23  ;;  %8723 = vmatpush2.bf16.msra.mxu0 %v11550_v20  ;;  %19349 = vst [vmem:[#allocation19_spill] sm:$0xff] %v16410_v6  ;;  %v19351_v23 = vld [vmem:[#allocation59_spill] sm:$0xff] }
 0x61d   :  { %8724 = vmatprep.subr.bf16.mxu0 %v19307_v62  ;;  %v19352_v62 = vld [vmem:[#allocation76_spill] sm:$0xff] }
 0x61e   :  { %v7268_v11 = vpop.f32.mrf.mxu0  ;;  %v7436_v6 = vadd.f32 %v19353_v21, %v19352_v62  ;;  %v19356_v62 = vld [vmem:[#allocation26_spill] sm:$0xff] }
 0x620   :  { %8725 = vmatpush2.bf16.msra.mxu0 %v11553_v22 }
 0x622   :  { %v7865_v59 = vpop.f32.mrf.mxu1  ;;  %8056 = vmatmul.mubr.bf16.gmra.mxu1 %v16116_v3 }
 0x623   :  { %v16414_v19 = vadd.f32 %v7865_v59, %v16063_v25  ;;  %8063 = vmatprep.mubr.bf16.mxu1 %v16125_v36  ;;  %v16417_v39 = vpop.f32.mrf.mxu0  ;;  %11085 = vmatmul.mubr.bf16.gmra.mxu0 %v19350_v9 }
 0x624   :  { %v7867_v20 = vpop.f32.mrf.mxu1  ;;  %11088 = vmatprep.mubr.bf16.mxu0 %v19351_v23 }
 0x625   :  { %v7273_v11 = vpop.f32.mrf.mxu0  ;;  %v19355_v20 = vld [vmem:[#allocation71_spill] sm:$0xff] }
 0x626   :  { %v7868_v22 = vpop.f32.mrf.mxu1 }
 0x627   :  { %v16423_v18 = vadd.f32 %v7868_v22, %v7436_v6  ;;  %v16425_v3 = vpop.f32.mrf.mxu0 }
 0x628   :  { %v7870_v25 = vpop.f32.mrf.mxu1 }
 0x629   :  { %19354 = vst [vmem:[#allocation34_spill] sm:$0xff] %v16423_v18  ;;  %v7276_v59 = vpop.f32.mrf.mxu0 }
 0x62a   :  { %v7873_v56 = vpop.f32.mrf.mxu1  ;;  %8064 = vmatmul.mubr.bf16.gmra.mxu1 %v16146_v2 }
 0x62b   :  { %v16429_v36 = vadd.f32 %v7873_v56, %v16082_v45  ;;  %8071 = vmatprep.mubr.bf16.mxu1 %v16148_v34  ;;  %v16432_v9 = vpop.f32.mrf.mxu0  ;;  %11089 = vmatmul.mubr.bf16.gmra.mxu0 %v19355_v20  ;;  %v19360_v34 = vld [vmem:[#allocation37_spill] sm:$0xff] }
 0x62c   :  { %v7875_v21 = vpop.f32.mrf.mxu1  ;;  %11092 = vmatprep.mubr.bf16.mxu0 %v19356_v62 }
 0x62d   :  { %v7281_v6 = vpop.f32.mrf.mxu0 }
 0x62e   :  { %v7876_v11 = vpop.f32.mrf.mxu1 }
 0x62f   :  { %v16437_v22 = vadd.f32 %v7876_v11, %v16102_v35  ;;  %v16439_v25 = vpop.f32.mrf.mxu0  ;;  %v19362_v35 = vld [vmem:[#allocation30_spill] sm:$0xff]  ;;  %v19363_v11 = vld [vmem:[#allocation87_spill] sm:$0xff] }
 0x630   :  { %19357 = vst [vmem:[#allocation59_spill] sm:$0xff] %v16439_v25  ;;  %v7878_v59 = vpop.f32.mrf.mxu1  ;;  %v7452_v25 = vadd.f32 %v19363_v11, %v19362_v35  ;;  %v19366_v11 = vld [vmem:[#allocation98_spill] sm:$0xff] }
 0x631   :  { %v7284_v2 = vpop.f32.mrf.mxu0 }
 0x632   :  { %v7881_v45 = vpop.f32.mrf.mxu1  ;;  %8072 = vmatmul.mubr.bf16.gmra.mxu1 %v16170_v38 }
 0x633   :  { %v16443_v56 = vadd.f32 %v7881_v45, %v16107_v0  ;;  %8079 = vmatprep.mubr.bf16.mxu1 %v16172_v54  ;;  %v16446_v21 = vpop.f32.mrf.mxu0  ;;  %11093 = vmatmul.mubr.bf16.gmra.mxu0 %v19360_v34 }
 0x634   :  { %19359 = vst [vmem:[#allocation29_spill] sm:$0xff] %v16446_v21  ;;  %v7883_v6 = vpop.f32.mrf.mxu1  ;;  %11096 = vmatprep.mubr.bf16.mxu0 %v19361_v43  ;;  %v19365_v21 = vld [vmem:[#allocation101_spill] sm:$0xff] }
 0x635   :  { %19358 = vst [vmem:[#allocation76_spill] sm:$0xff] %v16443_v56  ;;  %v7289_v59 = vpop.f32.mrf.mxu0 }
 0x636   :  { %v7884_v2 = vpop.f32.mrf.mxu1 }
 0x637   :  { %v16452_v18 = vadd.f32 %v7884_v2, %v7452_v25  ;;  %v16454_v38 = vpop.f32.mrf.mxu0 }
 0x638   :  { %v7886_v0 = vpop.f32.mrf.mxu1 }
 0x639   :  { %v7292_v45 = vpop.f32.mrf.mxu0 }
 0x63a   :  { %v7889_v56 = vpop.f32.mrf.mxu1  ;;  %8080 = vmatmul.mubr.bf16.gmra.mxu1 %v16187_v24 }
 0x63b   :  { %v16458_v54 = vadd.f32 %v7889_v56, %v16120_v29  ;;  %8087 = vmatprep.mubr.bf16.mxu1 %v16191_v14  ;;  %v16461_v6 = vpop.f32.mrf.mxu0  ;;  %11097 = vmatmul.mubr.bf16.gmra.mxu0 %v19365_v21  ;;  %v19370_v14 = vld [vmem:[#allocation43_spill] sm:$0xff] }
 0x63c   :  { %19364 = vst [vmem:[#allocation71_spill] sm:$0xff] %v16461_v6  ;;  %v7891_v35 = vpop.f32.mrf.mxu1  ;;  %11100 = vmatprep.mubr.bf16.mxu0 %v19366_v11  ;;  %v19371_v6 = vld [vmem:[#allocation103_spill] sm:$0xff] }
 0x63d   :  { %v7297_v25 = vpop.f32.mrf.mxu0 }
 0x63e   :  { %v7892_v59 = vpop.f32.mrf.mxu1 }
 0x63f   :  { %v16466_v2 = vadd.f32 %v7892_v59, %v16138_v47  ;;  %v16468_v0 = vpop.f32.mrf.mxu0  ;;  %v19372_v47 = vld [vmem:[#allocation39_spill] sm:$0xff] }
 0x640   :  { %19367 = vst [vmem:[#allocation26_spill] sm:$0xff] %v16468_v0  ;;  %v7894_v45 = vpop.f32.mrf.mxu1  ;;  %v7468_v59 = vadd.f32 %v19372_v47, %v16086_v13  ;;  %v19376_v47 = vld [vmem:[#allocation102_spill] sm:$0xff] }
 0x641   :  { %v7300_v24 = vpop.f32.mrf.mxu0 }
 0x642   :  { %v7897_v29 = vpop.f32.mrf.mxu1  ;;  %8088 = vmatmul.mubr.bf16.gmra.mxu1 %v16211_v52 }
 0x643   :  { %v16472_v56 = vadd.f32 %v7897_v29, %v16142_v10  ;;  %8095 = vmatprep.mubr.bf16.mxu1 %v16213_v31  ;;  %v16475_v35 = vpop.f32.mrf.mxu0  ;;  %11101 = vmatmul.mubr.bf16.gmra.mxu0 %v19370_v14 }
 0x644   :  { %19369 = vst [vmem:[#allocation96_spill] sm:$0xff] %v16475_v35  ;;  %v7899_v25 = vpop.f32.mrf.mxu1  ;;  %11104 = vmatprep.mubr.bf16.mxu0 %v19371_v6  ;;  %v19375_v35 = vld [vmem:[#allocation46_spill] sm:$0xff] }
 0x645   :  { %19368 = vst [vmem:[#allocation37_spill] sm:$0xff] %v16472_v56  ;;  %v7305_v45 = vpop.f32.mrf.mxu0 }
 0x646   :  { %v7900_v24 = vpop.f32.mrf.mxu1 }
 0x647   :  { %v16481_v0 = vadd.f32 %v7900_v24, %v7468_v59  ;;  %v16483_v52 = vpop.f32.mrf.mxu0 }
 0x648   :  { %19373 = vst [vmem:[#allocation30_spill] sm:$0xff] %v16483_v52  ;;  %v7902_v10 = vpop.f32.mrf.mxu1  ;;  %v19381_v52 = vld [vmem:[#allocation55_spill] sm:$0xff] }
 0x649   :  { %v7308_v29 = vpop.f32.mrf.mxu0 }
 0x64a   :  { %v7905_v56 = vpop.f32.mrf.mxu1  ;;  %8096 = vmatmul.mubr.bf16.gmra.mxu1 %v16233_v46 }
 0x64b   :  { %v16487_v31 = vadd.f32 %v7905_v56, %v16159_v55  ;;  %8103 = vmatprep.mubr.bf16.mxu1 %v16241_v60  ;;  %v16490_v25 = vpop.f32.mrf.mxu0  ;;  %11105 = vmatmul.mubr.bf16.gmra.mxu0 %v19375_v35  ;;  %v19378_v56 = vld [vmem:[#allocation113_spill] sm:$0xff] }
 0x64c   :  { %19374 = vst [vmem:[#allocation87_spill] sm:$0xff] %v16490_v25  ;;  %v7907_v13 = vpop.f32.mrf.mxu1  ;;  %11108 = vmatprep.mubr.bf16.mxu0 %v19376_v47  ;;  %v19380_v25 = vld [vmem:[#allocation54_spill] sm:$0xff] }
 0x64d   :  { %v7313_v59 = vpop.f32.mrf.mxu0 }
 0x64e   :  { %v7908_v45 = vpop.f32.mrf.mxu1 }
 0x64f   :  { %v16495_v24 = vadd.f32 %v7908_v45, %v16164_v8  ;;  %v16497_v10 = vpop.f32.mrf.mxu0  ;;  %v19382_v8 = vld [vmem:[#allocation110_spill] sm:$0xff]  ;;  %v19383_v45 = vld [vmem:[#allocation31_spill] sm:$0xff] }
 0x650   :  { %19377 = vst [vmem:[#allocation101_spill] sm:$0xff] %v16497_v10  ;;  %v7910_v29 = vpop.f32.mrf.mxu1  ;;  %v7484_v10 = vadd.f32 %v19383_v45, %v19382_v8  ;;  %v19388_v45 = vld [vmem:[#allocation86_spill] sm:$0xff] }
 0x651   :  { %v7316_v46 = vpop.f32.mrf.mxu0 }
 0x652   :  { %v7913_v55 = vpop.f32.mrf.mxu1  ;;  %8104 = vmatmul.mubr.bf16.gmra.mxu1 %v16256_v16 }
 0x653   :  { %v16501_v60 = vadd.f32 %v7913_v55, %v19378_v56  ;;  %8111 = vmatprep.mubr.bf16.mxu1 %v16259_v4  ;;  %v16504_v13 = vpop.f32.mrf.mxu0  ;;  %11109 = vmatmul.mubr.bf16.gmra.mxu0 %v19380_v25  ;;  %v19385_v4 = vld [vmem:[#allocation118_spill] sm:$0xff] }
 0x654   :  { %19379 = vst [vmem:[#allocation98_spill] sm:$0xff] %v16504_v13  ;;  %v7915_v59 = vpop.f32.mrf.mxu1  ;;  %11112 = vmatprep.mubr.bf16.mxu0 %v19381_v52  ;;  %v19387_v52 = vld [vmem:[#allocation28_spill] sm:$0xff] }
 0x655   :  { %v7321_v29 = vpop.f32.mrf.mxu0 }
 0x656   :  { %v7916_v46 = vpop.f32.mrf.mxu1 }
 0x657   :  { %v16510_v47 = vadd.f32 %v7916_v46, %v7484_v10  ;;  %v16512_v16 = vpop.f32.mrf.mxu0  ;;  %v19389_v46 = vld [vmem:[#allocation120_spill] sm:$0xff] }
 0x658   :  { %19384 = vst [vmem:[#allocation43_spill] sm:$0xff] %v16512_v16  ;;  %v7918_v55 = vpop.f32.mrf.mxu1 }
 0x659   :  { %v7324_v56 = vpop.f32.mrf.mxu0 }
 0x65a   :  { %v7921_v35 = vpop.f32.mrf.mxu1  ;;  %8112 = vmatmul.mubr.bf16.gmra.mxu1 %v16275_v48 }
 0x65b   :  { %v16516_v13 = vadd.f32 %v7921_v35, %v19385_v4  ;;  %11132 = vmatprep.mubr.bf16.mxu1 %v19306_v26  ;;  %v16519_v59 = vpop.f32.mrf.mxu0  ;;  %11113 = vmatmul.mubr.bf16.gmra.mxu0 %v19387_v52  ;;  %v19391_v26 = vld [vmem:[#allocation127_spill] sm:$0xff] }
 0x65c   :  { %19386 = vst [vmem:[#allocation103_spill] sm:$0xff] %v16519_v59  ;;  %v7923_v8 = vpop.f32.mrf.mxu1  ;;  %8726 = vmatprep.mubr.bf16.mxu0 %v19388_v45  ;;  %v19393_v45 = vld [vmem:[#allocation22_spill] sm:$0xff]  ;;  %v19394_v59 = vld [vmem:[#allocation65_spill] sm:$0xff] }
 0x65d   :  { %v7329_v10 = vpop.f32.mrf.mxu0 }
 0x65e   :  { %v7924_v29 = vpop.f32.mrf.mxu1 }
 0x65f   :  { %v16524_v55 = vadd.f32 %v7924_v29, %v19389_v46  ;;  %v16526_v56 = vpop.f32.mrf.mxu0  ;;  %v19395_v29 = vld [vmem:[#allocation130_spill] sm:$0xff]  ;;  %v19396_v46 = vld [vmem:[#allocation33_spill] sm:$0xff] }
 0x660   :  { %19390 = vst [vmem:[#allocation39_spill] sm:$0xff] %v16526_v56  ;;  %v7926_v48 = vpop.f32.mrf.mxu1  ;;  %v7500_v56 = vadd.f32 %v19396_v46, %v19395_v29  ;;  %v19401_v29 = vld [vmem:[#allocation47_spill] sm:$0xff] }
 0x661   :  { %v7332_v16 = vpop.f32.mrf.mxu0  ;;  %v19402_v46 = vld [vmem:[#allocation75_spill] sm:$0xff] }
 0x662   :  { %v7929_v4 = vpop.f32.mrf.mxu1  ;;  %11133 = vmatmul.mubr.bf16.vlgmr.msra.gmra.mxu1 %v19312_v7 }
 0x663   :  { %v16530_v35 = vadd.f32 %v7929_v4, %v19391_v26  ;;  %11136 = vmatprep.mubr.bf16.mxu1 %v19313_v61  ;;  %v16533_v8 = vpop.f32.mrf.mxu0  ;;  %8727 = vmatmul.mubr.bf16.vlgmr.msra.gmra.mxu0 %v19393_v45  ;;  %v19398_v26 = vld [vmem:[#allocation61_spill] sm:$0xff] }
 0x664   :  { %19392 = vst [vmem:[#allocation113_spill] sm:$0xff] %v16533_v8  ;;  %v7931_v10 = vpop.f32.mrf.mxu1  ;;  %8734 = vmatprep.mubr.bf16.mxu0 %v19394_v59  ;;  %v7505_v61 = vadd.f32 %v19398_v26, %v16267_v41 }
 0x665   :  { %v7337_v48 = vpop.f32.mrf.mxu0  ;;  %v19400_v10 = vld [vmem:[#allocation89_spill] sm:$0xff] }
 0x666   :  { %v7932_v16 = vpop.f32.mrf.mxu1  ;;  %v7508_v48 = vadd.f32 %v19402_v46, %v16277_v63  ;;  %v19406_v63 = vld [vmem:[#allocation93_spill] sm:$0xff] }
 0x667   :  { %v16539_v52 = vadd.f32 %v7932_v16, %v7500_v56  ;;  %v16541_v7 = vpop.f32.mrf.mxu0  ;;  %v19407_v46 = vld [vmem:[#allocation73_spill] sm:$0xff] }
 0x668   :  { %19397 = vst [vmem:[#allocation110_spill] sm:$0xff] %v16541_v7  ;;  %v7934_v4 = vpop.f32.mrf.mxu1 }
 0x669   :  { %v7340_v25 = vpop.f32.mrf.mxu0 }
 0x66a   :  { %v7937_v8 = vpop.f32.mrf.mxu1  ;;  %11137 = vmatmul.mubr.bf16.gmra.mxu1 %v19318_v49 }
 0x66b   :  { %v16546_v45 = vadd.f32 %v7937_v8, %v7505_v61  ;;  %11140 = vmatprep.mubr.bf16.mxu1 %v19319_v12  ;;  %v16549_v59 = vpop.f32.mrf.mxu0  ;;  %8735 = vmatmul.mubr.bf16.gmra.mxu0 %v19400_v10  ;;  %v19404_v8 = vld [vmem:[#allocation44_spill] sm:$0xff] }
 0x66c   :  { %19399 = vst [vmem:[#allocation31_spill] sm:$0xff] %v16549_v59  ;;  %v7939_v56 = vpop.f32.mrf.mxu1  ;;  %8742 = vmatprep.mubr.bf16.mxu0 %v19401_v29  ;;  %v7513_v12 = vadd.f32 %v19404_v8, %v16292_v58 }
 0x66d   :  { %v7345_v16 = vpop.f32.mrf.mxu0 }
 0x66e   :  { %v7940_v41 = vpop.f32.mrf.mxu1 }
 0x66f   :  { %v16555_v25 = vadd.f32 %v7940_v41, %v7508_v48  ;;  %v16557_v4 = vpop.f32.mrf.mxu0  ;;  %v19408_v48 = vld [vmem:[#allocation108_spill] sm:$0xff] }
 0x670   :  { %19403 = vst [vmem:[#allocation118_spill] sm:$0xff] %v16557_v4  ;;  %v7942_v49 = vpop.f32.mrf.mxu1  ;;  %v7516_v16 = vadd.f32 %v19408_v48, %v16301_v30  ;;  %v19412_v30 = vld [vmem:[#allocation16_spill] sm:$0xff]  ;;  %v19413_v48 = vld [vmem:[#allocation91_spill] sm:$0xff] }
 0x671   :  { %v7348_v26 = vpop.f32.mrf.mxu0 }
 0x672   :  { %v7945_v61 = vpop.f32.mrf.mxu1  ;;  %11141 = vmatmul.mubr.bf16.gmra.mxu1 %v19324_v53 }
 0x673   :  { %v16562_v10 = vadd.f32 %v7945_v61, %v7513_v12  ;;  %11144 = vmatprep.mubr.bf16.mxu1 %v19325_v5  ;;  %v16565_v56 = vpop.f32.mrf.mxu0  ;;  %8743 = vmatmul.mubr.bf16.gmra.mxu0 %v19406_v63  ;;  %v19410_v12 = vld [vmem:[#allocation62_spill] sm:$0xff] }
 0x674   :  { %19405 = vst [vmem:[#allocation86_spill] sm:$0xff] %v16565_v56  ;;  %v7947_v29 = vpop.f32.mrf.mxu1  ;;  %8750 = vmatprep.mubr.bf16.mxu0 %v19407_v46  ;;  %v7521_v5 = vadd.f32 %v19410_v12, %v16314_v37  ;;  %v16587_v37 = vld [vmem:[#allocation2 + $0x114] sm:$0xf] }
 0x675   :  { %v7353_v41 = vpop.f32.mrf.mxu0 }
 0x676   :  { %v7948_v58 = vpop.f32.mrf.mxu1 }
 0x677   :  { %v16571_v49 = vadd.f32 %v7948_v58, %v7516_v16  ;;  %v16573_v8 = vpop.f32.mrf.mxu0  ;;  %v19414_v16 = vld [vmem:[#allocation36_spill] sm:$0xff] }
 0x678   :  { %19409 = vst [vmem:[#allocation120_spill] sm:$0xff] %v16573_v8  ;;  %v7950_v53 = vpop.f32.mrf.mxu1  ;;  %v7524_v41 = vadd.f32 %v19414_v16, %v16320_v33  ;;  %v19421_v8 = vld [vmem:[#allocation42_spill] sm:$0xff] }
 0x679   :  { %v7356_v26 = vpop.f32.mrf.mxu0  ;;  %v16589_v53 = vld [vmem:[#allocation2 + $0x118] sm:$0xf] }
 0x67a   :  { %v7953_v61 = vpop.f32.mrf.mxu1  ;;  %11145 = vmatmul.mubr.bf16.gmra.mxu1 %v19331_v44  ;;  %v16597_v26 = vcombine.low %v16587_v37, %v16589_v53 }
 0x67b   :  { %v16578_v63 = vadd.f32 %v7953_v61, %v7521_v5  ;;  %11148 = vmatprep.mubr.bf16.mxu1 %v19333_v28  ;;  %v16581_v29 = vpop.f32.mrf.mxu0  ;;  %8751 = vmatmul.mubr.bf16.gmra.mxu0 %v19412_v30  ;;  %v11556_v61 = vld [vmem:[#allocation2 + $0x11c] ss:$0 sps:$4 sm:$0xff]   ;;  %v19416_v30 = vld [vmem:[#allocation58_spill] sm:$0xff] }
 0x67c   :  { %19411 = vst [vmem:[#allocation127_spill] sm:$0xff] %v16581_v29  ;;  %v7955_v46 = vpop.f32.mrf.mxu1  ;;  %8758 = vmatprep.mubr.bf16.mxu0 %v19413_v48  ;;  %v5247_v29 = vrot.slane %v11556_v61, 5 }
 0x67d   :  { %v7361_v58 = vpop.f32.mrf.mxu0  ;;  %v7529_v46 = vadd.f32 %v19416_v30, %v16337_v1  ;;  %v19422_v1 = vld [vmem:[#allocation60_spill] sm:$0xff] }
 0x67e   :  { %v7956_v44 = vpop.f32.mrf.mxu1  ;;  %v19419_v58 = vld [vmem:[#allocation49_spill] sm:$0xff]  ;;  %v7532_v30 = vadd.f32 %v19422_v1, %v19421_v8 }
 0x67f   :  { %v16591_v12 = vadd.f32 %v7956_v44, %v7524_v41  ;;  %v16593_v5 = vpop.f32.mrf.mxu0 }
 0x680   :  { %19415 = vst [vmem:[#allocation22_spill] sm:$0xff] %v16593_v5  ;;  %v7958_v28 = vpop.f32.mrf.mxu1  ;;  %v5246_v5 = vrot.slane %v16597_v26, 5 }
 0x681   :  { %v7364_v33 = vpop.f32.mrf.mxu0  ;;  %v19420_v28 = vld [vmem:[#allocation92_spill] sm:$0xff] }
 0x682   :  { %v7961_v48 = vpop.f32.mrf.mxu1  ;;  %11149 = vmatmul.mubr.bf16.gmra.mxu1 %v19339_v57  ;;  %v8436_v61 = vshrl.u32 %v5246_v5, 16  ;;  %v8439_v1 = vshll.u32 %v5246_v5, 16 }
 0x683   :  { %v16602_v16 = vadd.f32 %v7961_v48, %v7529_v46  ;;  %11152 = vmatprep.mubr.bf16.mxu1 %v19340_v51  ;;  %v16605_v41 = vpop.f32.mrf.mxu0  ;;  %8759 = vmatmul.mubr.bf16.gmra.mxu0 %v19419_v58  ;;  %v5248_v48 = vsel %vm5194_vm2, %v5246_v5, %v5247_v29  ;;  %v19426_v58 = vld [vmem:[#allocation10_spill] sm:$0xff] }
 0x684   :  { %19418 = vst [vmem:[#allocation130_spill] sm:$0xff] %v16605_v41  ;;  %v7963_v44 = vpop.f32.mrf.mxu1  ;;  %8766 = vmatprep.mubr.bf16.mxu0 %v19420_v28  ;;  %v19425_v41 = vld [vmem:[#allocation145_spill] sm:$0xff]  ;;  %v8438_v7 = vrot.slane %v8436_v61, 3  ;;  %v19432_v5 = vld [vmem:[#allocation114_spill] sm:$0xff] }
 0x685   :  { %19417 = vst [vmem:[#allocation65_spill] sm:$0xff] %v16602_v16  ;;  %v7369_v33 = vpop.f32.mrf.mxu0  ;;  %v7537_v44 = vadd.f32 %v19426_v58, %v19425_v41  ;;  %v19430_v41 = vld [vmem:[#allocation48_spill] sm:$0xff] }
 0x686   :  { %v7964_v56 = vpop.f32.mrf.mxu1  ;;  %v8447_v33 = vshll.u32 %v5248_v48, 16 }
 0x687   :  { %v16612_v57 = vadd.f32 %v7964_v56, %v7532_v30  ;;  %v16614_v46 = vpop.f32.mrf.mxu0  ;;  %v19428_v56 = vld [vmem:[#allocation32_spill] sm:$0xff]  ;;  %v8444_v30 = vshrl.u32 %v5248_v48, 16  ;;  %v7545_v48 = vadd.f32 %v19432_v5, %v16382_v15 }
 0x688   :  { %19424 = vst [vmem:[#allocation61_spill] sm:$0xff] %v16614_v46  ;;  %v7966_v51 = vpop.f32.mrf.mxu1 }
 0x689   :  { %19423 = vst [vmem:[#allocation33_spill] sm:$0xff] %v16612_v57  ;;  %v7372_v4 = vpop.f32.mrf.mxu0  ;;  %v19429_v51 = vld [vmem:[#allocation95_spill] sm:$0xff]  ;;  %v8449_v57 = vrot.slane %v8447_v33, 4  ;;  %v19435_v33 = vld [vmem:[#allocation97_spill] sm:$0xff] }
 0x68a   :  { %v7969_v28 = vpop.f32.mrf.mxu1  ;;  %11153 = vmatmul.mubr.bf16.gmra.mxu1 %v19343_v40  ;;  %v19431_v4 = vld [vmem:[#allocation9_spill] sm:$0xff] }
 0x68b   :  { %v16620_v59 = vadd.f32 %v7969_v28, %v7537_v44  ;;  %11156 = vmatprep.mubr.bf16.mxu1 %v19344_v32  ;;  %v16623_v8 = vpop.f32.mrf.mxu0  ;;  %8767 = vmatmul.mubr.bf16.gmra.mxu0 %v19428_v56  ;;  %v7540_v58 = vadd.f32 %v19431_v4, %v19430_v41  ;;  %v8441_v32 = vrot.slane %v8439_v1, 4  ;;  %v19434_v41 = vld [vmem:[#allocation67_spill] sm:$0xff] }
 0x68c   :  { %19427 = vst [vmem:[#allocation89_spill] sm:$0xff] %v16623_v8  ;;  %v7971_v29 = vpop.f32.mrf.mxu1  ;;  %8774 = vmatprep.mubr.bf16.mxu0 %v19429_v51  ;;  %v8446_v8 = vrot.slane %v8444_v30, 3 }
 0x68d   :  { %v7377_v46 = vpop.f32.mrf.mxu0  ;;  %v8442_v4 = vor.u32 %v8441_v32, %v8438_v7  ;;  %v19438_v32 = vld [vmem:[#allocation35_spill] sm:$0xff] }
 0x68e   :  { %v7972_v40 = vpop.f32.mrf.mxu1  ;;  %v19433_v46 = vld [vmem:[#allocation20_spill] sm:$0xff]  ;;  %v8450_v1 = vor.u32 %v8449_v57, %v8446_v8 }
 0x68f   :  { %v16629_v44 = vadd.f32 %v7972_v40, %v7540_v58  ;;  %v16631_v28 = vpop.f32.mrf.mxu0  ;;  %v19436_v58 = vld [vmem:[#allocation119_spill] sm:$0xff] }
 0x690   :  { %v7974_v56 = vpop.f32.mrf.mxu1  ;;  %v7548_v15 = vadd.f32 %v19436_v58, %v16388_v17 }
 0x691   :  { %v7380_v29 = vpop.f32.mrf.mxu0 }
 0x692   :  { %v7977_v16 = vpop.f32.mrf.mxu1  ;;  %11157 = vmatmul.mubr.bf16.gmra.mxu1 %v19348_v50  ;;  %v19437_v29 = vld [vmem:[#allocation112_spill] sm:$0xff] }
 0x693   :  { %v16636_v51 = vadd.f32 %v7977_v16, %v7545_v48  ;;  %11160 = vmatprep.mubr.bf16.mxu1 %v19433_v46  ;;  %v16639_v61 = vpop.f32.mrf.mxu0  ;;  %8775 = vmatmul.mubr.bf16.gmra.mxu0 %v19434_v41  ;;  %v8451_v16 = vsel %vm5303_vm3, %v8442_v4, %v8450_v1  ;;  %v7553_v46 = vadd.f32 %v19437_v29, %v16398_v27  ;;  %v19440_v4 = vld [vmem:[#allocation116_spill] sm:$0xff] }
 0x694   :  { %v7979_v30 = vpop.f32.mrf.mxu1  ;;  %8782 = vmatprep.mubr.bf16.mxu0 %v19435_v33  ;;  %v7556_v1 = vadd.f32 %v19440_v4, %v16407_v42  ;;  %v19442_v42 = vld [vmem:[#allocation23_spill] sm:$0xff] }
 0x695   :  { %v7385_v40 = vpop.f32.mrf.mxu0  ;;  %v19439_v30 = vld [vmem:[#allocation94_spill] sm:$0xff] }
 0x696   :  { %v7980_v56 = vpop.f32.mrf.mxu1 }
 0x697   :  { %v16645_v5 = vadd.f32 %v7980_v56, %v7548_v15  ;;  %v16647_v50 = vpop.f32.mrf.mxu0  ;;  %v19441_v56 = vld [vmem:[#allocation124_spill] sm:$0xff] }
 0x698   :  { %v7982_v48 = vpop.f32.mrf.mxu1 }
 0x699   :  { %v7388_v7 = vpop.f32.mrf.mxu0 }
 0x69a   :  { %v7985_v57 = vpop.f32.mrf.mxu1  ;;  %11161 = vmatmul.mubr.bf16.gmra.mxu1 %v8451_v16 }
 0x69b   :  { %v16652_v8 = vadd.f32 %v7985_v57, %v7553_v46  ;;  %11164 = vmatprep.mubr.bf16.mxu1 %v19351_v23  ;;  %v16655_v17 = vpop.f32.mrf.mxu0  ;;  %8783 = vmatmul.mubr.bf16.gmra.mxu0 %v19438_v32  ;;  %v7561_v23 = vadd.f32 %v19441_v56, %v16417_v39  ;;  %v19443_v32 = vld [vmem:[#allocation50_spill] sm:$0xff] }
 0x69c   :  { %v7987_v41 = vpop.f32.mrf.mxu1  ;;  %8790 = vmatprep.mubr.bf16.mxu0 %v19439_v30 }
 0x69d   :  { %v7393_v33 = vpop.f32.mrf.mxu0  ;;  %v19444_v41 = vld [vmem:[#allocation128_spill] sm:$0xff] }
 0x69e   :  { %v7988_v58 = vpop.f32.mrf.mxu1  ;;  %v7564_v39 = vadd.f32 %v19444_v41, %v16425_v3 }
 0x69f   :  { %v16661_v27 = vadd.f32 %v7988_v58, %v7556_v1  ;;  %v16663_v15 = vpop.f32.mrf.mxu0 }
 0x6a0   :  { %v7990_v40 = vpop.f32.mrf.mxu1 }
 0x6a1   :  { %v7396_v16 = vpop.f32.mrf.mxu0 }
 0x6a2   :  { %v7993_v48 = vpop.f32.mrf.mxu1  ;;  %11165 = vmatmul.mubr.bf16.gmra.mxu1 %v19355_v20  ;;  %v19446_v16 = vld [vmem:[#allocation34_spill] sm:$0xff] }
 0x6a3   :  { %v16668_v29 = vadd.f32 %v7993_v48, %v7561_v23  ;;  %11168 = vmatprep.mubr.bf16.mxu1 %v19356_v62  ;;  %v11054_v46 = vpop.f32.mrf.mxu0  ;;  %8791 = vmatmul.mubr.bf16.gmra.mxu0 %v19442_v42 }
 0x6a4   :  { %v7995_v7 = vpop.f32.mrf.mxu1  ;;  %v16673_v57 = vadd.f32 %v11054_v46, %v16429_v36  ;;  %8798 = vmatprep.mubr.bf16.mxu0 %v19443_v32  ;;  %v19445_v36 = vld [vmem:[#allocation121_spill] sm:$0xff]  ;;  %v19447_v46 = vld [vmem:[#allocation15_spill] sm:$0xff] }
 0x6a5   :  { %v8154_v30 = vpop.f32.mrf.mxu0  ;;  %v7569_v40 = vadd.f32 %v19445_v36, %v16432_v9  ;;  %v19448_v7 = vld [vmem:[#allocation41_spill] sm:$0xff]  ;;  %v19449_v9 = vld [vmem:[#allocation59_spill] sm:$0xff] }
 0x6a6   :  { %v7996_v4 = vpop.f32.mrf.mxu1  ;;  %v16679_v20 = vadd.f32 %v8154_v30, %v16414_v19  ;;  %v19450_v32 = vld [vmem:[#allocation125_spill] sm:$0xff] }
 0x6a7   :  { %v16681_v1 = vadd.f32 %v7996_v4, %v7564_v39  ;;  %v11055_v62 = vpop.f32.mrf.mxu0  ;;  %v7572_v41 = vadd.f32 %v19450_v32, %v19449_v9  ;;  %v19451_v4 = vld [vmem:[#allocation76_spill] sm:$0xff] }
 0x6a8   :  { %v7998_v33 = vpop.f32.mrf.mxu1  ;;  %v16684_v58 = vadd.f32 %v11055_v62, %v16437_v22  ;;  %v19455_v32 = vld [vmem:[#allocation100_spill] sm:$0xff] }
 0x6a9   :  { %v8157_v56 = vpop.f32.mrf.mxu0 }
 0x6aa   :  { %v8001_v23 = vpop.f32.mrf.mxu1  ;;  %v16689_v48 = vadd.f32 %v8157_v56, %v19446_v16  ;;  %11169 = vmatmul.mubr.bf16.gmra.mxu1 %v19360_v34 }
 0x6ab   :  { %v16692_v3 = vadd.f32 %v8001_v23, %v7569_v40  ;;  %11172 = vmatprep.mubr.bf16.mxu1 %v19361_v43  ;;  %v11058_v19 = vpop.f32.mrf.mxu0  ;;  %8799 = vmatmul.mubr.bf16.gmra.mxu0 %v19447_v46  ;;  %v19452_v40 = vld [vmem:[#allocation29_spill] sm:$0xff] }
 0x6ac   :  { %v8003_v42 = vpop.f32.mrf.mxu1  ;;  %v16697_v22 = vadd.f32 %v11058_v19, %v16458_v54  ;;  %8806 = vmatprep.mubr.bf16.mxu0 %v19448_v7  ;;  %v19453_v54 = vld [vmem:[#allocation99_spill] sm:$0xff]  ;;  %v19454_v7 = vld [vmem:[#allocation52_spill] sm:$0xff] }
 0x6ad   :  { %v8170_v39 = vpop.f32.mrf.mxu0  ;;  %v7577_v56 = vadd.f32 %v19453_v54, %v19452_v40  ;;  %v19458_v54 = vld [vmem:[#allocation71_spill] sm:$0xff] }
 0x6ae   :  { %v8004_v30 = vpop.f32.mrf.mxu1  ;;  %v16703_v34 = vadd.f32 %v8170_v39, %v19451_v4  ;;  %v19457_v4 = vld [vmem:[#allocation37_spill] sm:$0xff] }
 0x6af   :  { %v16705_v62 = vadd.f32 %v8004_v30, %v7572_v41  ;;  %v11059_v43 = vpop.f32.mrf.mxu0  ;;  %v19456_v41 = vld [vmem:[#allocation135_spill] sm:$0xff] }
 0x6b0   :  { %v8006_v33 = vpop.f32.mrf.mxu1  ;;  %v16708_v36 = vadd.f32 %v11059_v43, %v16466_v2  ;;  %v7580_v39 = vadd.f32 %v19456_v41, %v16454_v38  ;;  %v19461_v41 = vld [vmem:[#allocation105_spill] sm:$0xff] }
 0x6b1   :  { %v8173_v23 = vpop.f32.mrf.mxu0 }
 0x6b2   :  { %v8009_v16 = vpop.f32.mrf.mxu1  ;;  %v16713_v19 = vadd.f32 %v8173_v23, %v16452_v18  ;;  %11173 = vmatmul.mubr.bf16.gmra.mxu1 %v19365_v21 }
 0x6b3   :  { %v16716_v46 = vadd.f32 %v8009_v16, %v7577_v56  ;;  %11176 = vmatprep.mubr.bf16.mxu1 %v19366_v11  ;;  %v11062_v42 = vpop.f32.mrf.mxu0  ;;  %8807 = vmatmul.mubr.bf16.gmra.mxu0 %v19454_v7 }
 0x6b4   :  { %v8011_v9 = vpop.f32.mrf.mxu1  ;;  %v16721_v2 = vadd.f32 %v11062_v42, %v16487_v31  ;;  %8814 = vmatprep.mubr.bf16.mxu0 %v19455_v32  ;;  %v19459_v31 = vld [vmem:[#allocation131_spill] sm:$0xff] }
 0x6b5   :  { %v8186_v18 = vpop.f32.mrf.mxu0  ;;  %v7585_v56 = vadd.f32 %v19459_v31, %v19458_v54  ;;  %v19460_v9 = vld [vmem:[#allocation53_spill] sm:$0xff] }
 0x6b6   :  { %v8012_v30 = vpop.f32.mrf.mxu1  ;;  %v16727_v21 = vadd.f32 %v8186_v18, %v19457_v4  ;;  %v19462_v18 = vld [vmem:[#allocation26_spill] sm:$0xff] }
 0x6b7   :  { %v16729_v43 = vadd.f32 %v8012_v30, %v7580_v39  ;;  %v11063_v11 = vpop.f32.mrf.mxu0  ;;  %v4935_v39 = vshrl.u32 %v16597_v26, 16  ;;  %v19463_v30 = vld [vmem:[#allocation134_spill] sm:$0xff] }
 0x6b8   :  { %v8014_v33 = vpop.f32.mrf.mxu1  ;;  %v16732_v40 = vadd.f32 %v11063_v11, %v16495_v24 }
 0x6b9   :  { %v8189_v23 = vpop.f32.mrf.mxu0 }
 0x6ba   :  { %v8017_v16 = vpop.f32.mrf.mxu1  ;;  %v16737_v42 = vadd.f32 %v8189_v23, %v16481_v0  ;;  %11177 = vmatmul.mubr.bf16.gmra.mxu1 %v19370_v14  ;;  %v4938_v0 = vshll.u32 %v16597_v26, 16  ;;  %v7588_v14 = vadd.f32 %v19463_v30, %v19462_v18  ;;  %v19467_v18 = vld [vmem:[#allocation46_spill] sm:$0xff] }
 0x6bb   :  { %v16740_v38 = vadd.f32 %v8017_v16, %v7585_v56  ;;  %11180 = vmatprep.mubr.bf16.mxu1 %v19371_v6  ;;  %v11066_v7 = vpop.f32.mrf.mxu0  ;;  %8815 = vmatmul.mubr.bf16.gmra.mxu0 %v19460_v9  ;;  %v4937_v56 = vrot.slane %v4935_v39, 4  ;;  %v19465_v16 = vld [vmem:[#allocation96_spill] sm:$0xff]  ;;  %v19468_v30 = vld [vmem:[#allocation102_spill] sm:$0xff] }
 0x6bc   :  { %v8019_v32 = vpop.f32.mrf.mxu1  ;;  %v16745_v24 = vadd.f32 %v11066_v7, %v16516_v13  ;;  %8822 = vmatprep.mubr.bf16.mxu0 %v19461_v41  ;;  %v4940_v23 = vrot.slane %v4938_v0, 5  ;;  %v19466_v7 = vld [vmem:[#allocation139_spill] sm:$0xff] }
 0x6bd   :  { %v8202_v4 = vpop.f32.mrf.mxu0  ;;  %v7593_v26 = vadd.f32 %v19466_v7, %v19465_v16  ;;  %v19471_v0 = vld [vmem:[#allocation107_spill] sm:$0xff] }
 0x6be   :  { %v8020_v11 = vpop.f32.mrf.mxu1  ;;  %v16753_v6 = vadd.f32 %v8202_v4, %v16501_v60  ;;  %v19469_v4 = vld [vmem:[#allocation104_spill] sm:$0xff] }
 0x6bf   :  { %v16755_v33 = vadd.f32 %v8020_v11, %v7588_v14  ;;  %v11067_v54 = vpop.f32.mrf.mxu0  ;;  %v4941_v11 = vor.u32 %v4940_v23, %v4937_v56 }
 0x6c0   :  { %v8022_v31 = vpop.f32.mrf.mxu1  ;;  %v16758_v13 = vadd.f32 %v11067_v54, %v16524_v55  ;;  %v4398_v54 = vld [vmem:[#allocation2 + $0x110] sm:$0xf] }
 0x6c1   :  { %v8205_v9 = vpop.f32.mrf.mxu0  ;;  %v19472_v31 = vld [vmem:[#allocation30_spill] sm:$0xff]  ;;  %v8427_v23 = vshrl.u32 %v4941_v11, 16 }
 0x6c2   :  { %19464 = vst [vmem:[#allocation47_spill] sm:$0xff] %v16758_v13  ;;  %v8025_v32 = vpop.f32.mrf.mxu1  ;;  %v16763_v41 = vadd.f32 %v8205_v9, %v16510_v47  ;;  %11181 = vmatmul.mubr.bf16.gmra.mxu1 %v19467_v18  ;;  %v19473_v47 = vld [vmem:[#allocation142_spill] sm:$0xff] }
 0x6c3   :  { %v16766_v60 = vadd.f32 %v8025_v32, %v7593_v26  ;;  %11184 = vmatprep.mubr.bf16.mxu1 %v19468_v30  ;;  %v11070_v14 = vpop.f32.mrf.mxu0  ;;  %8823 = vmatmul.mubr.bf16.gmra.mxu0 %v19469_v4  ;;  %v7596_v16 = vadd.f32 %v19473_v47, %v19472_v31  ;;  %v10229_v30 = vcombine.low %v4398_v54, %v16587_v37  ;;  %v8430_v4 = vshll.u32 %v4941_v11, 16  ;;  %v19480_v54 = vld [vmem:[#allocation55_spill] sm:$0xff] }
 0x6c4   :  { %v8027_v55 = vpop.f32.mrf.mxu1  ;;  %v16771_v39 = vadd.f32 %v11070_v14, %v16546_v45  ;;  %8830 = vmatprep.mubr.bf16.mxu0 %v19471_v0  ;;  %v10230_v45 = vcombine.low %v16589_v53, %v16589_v53  ;;  %v19477_v0 = vld [vmem:[#allocation138_spill] sm:$0xff] }
 0x6c5   :  { %v8218_v7 = vpop.f32.mrf.mxu0  ;;  %v19476_v55 = vld [vmem:[#allocation87_spill] sm:$0xff] }
 0x6c6   :  { %19470 = vst [vmem:[#allocation75_spill] sm:$0xff] %v16771_v39  ;;  %v8028_v9 = vpop.f32.mrf.mxu1  ;;  %v16777_v26 = vadd.f32 %v8218_v7, %v16530_v35  ;;  %v7601_v31 = vadd.f32 %v19477_v0, %v19476_v55  ;;  %v19479_v7 = vld [vmem:[#allocation54_spill] sm:$0xff]  ;;  %v8421_v11 = vshll.u32 %v10230_v45, 16 }
 0x6c7   :  { %v16779_v32 = vadd.f32 %v8028_v9, %v7596_v16  ;;  %v11071_v18 = vpop.f32.mrf.mxu0  ;;  %v19481_v9 = vld [vmem:[#allocation25_spill] sm:$0xff]  ;;  %v19483_v0 = vld [vmem:[#allocation38_spill] sm:$0xff] }
 0x6c8   :  { %19474 = vst [vmem:[#allocation44_spill] sm:$0xff] %v16777_v26  ;;  %v8030_v14 = vpop.f32.mrf.mxu1  ;;  %v16785_v56 = vadd.f32 %v11071_v18, %v16555_v25  ;;  %v8410_v25 = vshrl.u32 %v10229_v30, 16  ;;  %v8418_v18 = vshrl.u32 %v10230_v45, 16  ;;  %v8423_v26 = vrot.slane %v8421_v11, 4 }
 0x6c9   :  { %v8221_v47 = vpop.f32.mrf.mxu0 }
 0x6ca   :  { %19475 = vst [vmem:[#allocation93_spill] sm:$0xff] %v16785_v56  ;;  %v8033_v35 = vpop.f32.mrf.mxu1  ;;  %v16790_v16 = vadd.f32 %v8221_v47, %v16539_v52  ;;  %11185 = vmatmul.mubr.bf16.gmra.mxu1 %v19479_v7  ;;  %v8429_v52 = vrot.slane %v8427_v23, 3  ;;  %v8432_v47 = vrot.slane %v8430_v4, 4  ;;  %v8413_v56 = vshll.u32 %v10229_v30, 16  ;;  %v19484_v7 = vld [vmem:[#allocation101_spill] sm:$0xff] }
 0x6cb   :  { %v16793_v37 = vadd.f32 %v8033_v35, %v7601_v31  ;;  %11188 = vmatprep.mubr.bf16.mxu1 %v19480_v54  ;;  %v11074_v53 = vpop.f32.mrf.mxu0  ;;  %8831 = vmatmul.mubr.bf16.gmra.mxu0 %v19481_v9  ;;  %v19485_v31 = vld [vmem:[#allocation140_spill] sm:$0xff]  ;;  %v8412_v4 = vrot.slane %v8410_v25, 3 }
 0x6cc   :  { %19478 = vst [vmem:[#allocation73_spill] sm:$0xff] %v16790_v16  ;;  %v8035_v14 = vpop.f32.mrf.mxu1  ;;  %v16798_v55 = vadd.f32 %v11074_v53, %v16578_v63  ;;  %8838 = vmatprep.mubr.bf16.mxu0 %v19483_v0  ;;  %v7604_v35 = vadd.f32 %v19485_v31, %v19484_v7  ;;  %v8433_v23 = vor.u32 %v8432_v47, %v8429_v52  ;;  %v8415_v30 = vrot.slane %v8413_v56, 4  ;;  %v19487_v0 = vld [vmem:[#allocation98_spill] sm:$0xff]  ;;  %v4471_v47 = vld [vmem:[#allocation2 + $0x234] sm:$0xf] }
 0x6cd   :  { %v8234_v39 = vpop.f32.mrf.mxu0  ;;  %v8420_v14 = vrot.slane %v8418_v18, 3  ;;  %v19491_v18 = vld [vmem:[#allocation12_spill] sm:$0xff] }
 0x6ce   :  { %19482 = vst [vmem:[#allocation108_spill] sm:$0xff] %v16798_v55  ;;  %v8036_v54 = vpop.f32.mrf.mxu1  ;;  %v16804_v16 = vadd.f32 %v8234_v39, %v16562_v10  ;;  %v19488_v55 = vld [vmem:[#allocation144_spill] sm:$0xff]  ;;  %v8416_v25 = vor.u32 %v8415_v30, %v8412_v4  ;;  %v19499_v30 = vld [vmem:[#allocation103_spill] sm:$0xff] }
 0x6cf   :  { %v16806_v9 = vadd.f32 %v8036_v54, %v7604_v35  ;;  %v11075_v45 = vpop.f32.mrf.mxu0  ;;  %v7609_v7 = vadd.f32 %v19488_v55, %v19487_v0  ;;  %v19490_v39 = vld [vmem:[#allocation28_spill] sm:$0xff]  ;;  %v8424_v55 = vor.u32 %v8423_v26, %v8420_v14 }
 0x6d0   :  { %v8038_v63 = vpop.f32.mrf.mxu1  ;;  %v16809_v53 = vadd.f32 %v11075_v45, %v16591_v12  ;;  %v19492_v12 = vld [vmem:[#allocation40_spill] sm:$0xff]  ;;  %v19494_v45 = vld [vmem:[#allocation43_spill] sm:$0xff] }
 0x6d1   :  { %v8237_v31 = vpop.f32.mrf.mxu0  ;;  %v4472_v54 = vld [vmem:[#allocation2 + $0x238] sm:$0xf]  ;;  %v8425_v4 = vsel %vm5303_vm3, %v8416_v25, %v8424_v55 }
 0x6d2   :  { %19486 = vst [vmem:[#allocation62_spill] sm:$0xff] %v16809_v53  ;;  %v8041_v13 = vpop.f32.mrf.mxu1  ;;  %v16814_v10 = vadd.f32 %v8237_v31, %v16571_v49  ;;  %11189 = vmatmul.mubr.bf16.gmra.mxu1 %v19490_v39  ;;  %v11560_v49 = vld [vmem:[#allocation2 + $0x23c] ss:$0 sps:$4 sm:$0xff]   ;;  %v19496_v39 = vld [vmem:[#allocation65_spill] sm:$0xff] }
 0x6d3   :  { %v16817_v35 = vadd.f32 %v8041_v13, %v7609_v7  ;;  %11192 = vmatprep.mubr.bf16.mxu1 %v19491_v18  ;;  %v11078_v11 = vpop.f32.mrf.mxu0  ;;  %8839 = vmatmul.mubr.bf16.gmra.mxu0 %v19492_v12  ;;  %v19495_v63 = vld [vmem:[#allocation88_spill] sm:$0xff]  ;;  %v16826_v7 = vcombine.low %v4471_v47, %v4472_v54  ;;  %v5301_v12 = vrot.slane %v11560_v49, 5 }
 0x6d4   :  { %19489 = vst [vmem:[#allocation16_spill] sm:$0xff] %v16814_v10  ;;  %v8043_v52 = vpop.f32.mrf.mxu1  ;;  %v16822_v56 = vadd.f32 %v11078_v11, %v16620_v59  ;;  %8846 = vmatprep.mubr.bf16.mxu0 %v8433_v23  ;;  %v7612_v0 = vadd.f32 %v19495_v63, %v19494_v45  ;;  %v19500_v11 = vld [vmem:[#allocation143_spill] sm:$0xff] }
 0x6d5   :  { %v8250_v13 = vpop.f32.mrf.mxu0  ;;  %v5300_v23 = vrot.slane %v16826_v7, 5  ;;  %v7617_v45 = vadd.f32 %v19500_v11, %v19499_v30  ;;  %v19503_v11 = vld [vmem:[#allocation90_spill] sm:$0xff]  ;;  %v19505_v10 = vld [vmem:[#allocation51_spill] sm:$0xff] }
 0x6d6   :  { %19493 = vst [vmem:[#allocation91_spill] sm:$0xff] %v16822_v56  ;;  %v8044_v31 = vpop.f32.mrf.mxu1  ;;  %v16829_v18 = vadd.f32 %v8250_v13, %v19496_v39 }
 0x6d7   :  { %v16831_v52 = vadd.f32 %v8044_v31, %v7612_v0  ;;  %v11079_v59 = vpop.f32.mrf.mxu0  ;;  %v5302_v56 = vsel %vm5194_vm2, %v5300_v23, %v5301_v12  ;;  %v8479_v13 = vshrl.u32 %v5300_v23, 16  ;;  %v8482_v39 = vshll.u32 %v5300_v23, 16  ;;  %v19501_v0 = vld [vmem:[#allocation33_spill] sm:$0xff] }
 0x6d8   :  { %19497 = vst [vmem:[#allocation36_spill] sm:$0xff] %v16829_v18  ;;  %v8046_v26 = vpop.f32.mrf.mxu1  ;;  %v16835_v14 = vadd.f32 %v11079_v59, %v16629_v44  ;;  %v8487_v18 = vshrl.u32 %v5302_v56, 16  ;;  %v8490_v53 = vshll.u32 %v5302_v56, 16 }
 0x6d9   :  { %v8253_v63 = vpop.f32.mrf.mxu0  ;;  %v8481_v59 = vrot.slane %v8479_v13, 3  ;;  %v8484_v25 = vrot.slane %v8482_v39, 4 }
 0x6da   :  { %19498 = vst [vmem:[#allocation58_spill] sm:$0xff] %v16835_v14  ;;  %v8049_v49 = vpop.f32.mrf.mxu1  ;;  %v16842_v31 = vadd.f32 %v8253_v63, %v19501_v0  ;;  %v8489_v12 = vrot.slane %v8487_v18, 3  ;;  %v8492_v23 = vrot.slane %v8490_v53, 4  ;;  %v19504_v14 = vld [vmem:[#allocation39_spill] sm:$0xff] }
 0x6db   :  { %v16844_v26 = vadd.f32 %v8049_v49, %v7617_v45  ;;  %v11082_v44 = vpop.f32.mrf.mxu0  ;;  %8847 = vmatmul.mubr.bf16.gmra.mxu0 %v8425_v4  ;;  %v7620_v63 = vadd.f32 %v19505_v10, %v19504_v14  ;;  %v4470_v53 = vld [vmem:[#allocation2 + $0x230] sm:$0xf]  ;;  %v19507_v10 = vld [vmem:[#allocation82_spill] sm:$0xff] }
 0x6dc   :  { %19502 = vst [vmem:[#allocation49_spill] sm:$0xff] %v16842_v31  ;;  %v8051_v55 = vpop.f32.mrf.mxu1  ;;  %v16847_v30 = vadd.f32 %v11082_v44, %v16652_v8  ;;  %8854 = vmatprep.mubr.bf16.mxu0 %v19503_v11  ;;  %v8485_v31 = vor.u32 %v8484_v25, %v8481_v59  ;;  %v8493_v4 = vor.u32 %v8492_v23, %v8489_v12 }
 0x6dd   :  { %v8266_v0 = vpop.f32.mrf.mxu0  ;;  %v10266_v44 = vcombine.low %v4472_v54, %v4472_v54  ;;  %v19506_v55 = vld [vmem:[#allocation113_spill] sm:$0xff]  ;;  %v10265_v25 = vcombine.low %v4470_v53, %v4471_v47 }
 0x6de   :  { %v8052_v56 = vpop.f32.mrf.mxu1  ;;  %v16853_v45 = vadd.f32 %v8266_v0, %v16636_v51  ;;  %v8494_v18 = vsel %vm5303_vm3, %v8485_v31, %v8493_v4  ;;  %v7625_v14 = vadd.f32 %v19507_v10, %v19506_v55  ;;  %v19508_v0 = vld [vmem:[#allocation64_spill] sm:$0xff] }
 0x6df   :  { %v16855_v13 = vadd.f32 %v8052_v56, %v7620_v63  ;;  %v11083_v39 = vpop.f32.mrf.mxu0  ;;  %11193 = vmatmul.mubr.bf16.gmra.mxu1 %v8494_v18  ;;  %v8461_v12 = vshrl.u32 %v10266_v44, 16  ;;  %v8464_v23 = vshll.u32 %v10266_v44, 16  ;;  %v8453_v31 = vshrl.u32 %v10265_v25, 16  ;;  %v19509_v4 = vld [vmem:[#allocation24_spill] sm:$0xff]  ;;  %v19510_v18 = vld [vmem:[#allocation110_spill] sm:$0xff] }
 0x6e0   :  { %v8054_v49 = vpop.f32.mrf.mxu1  ;;  %v16858_v8 = vadd.f32 %v11083_v39, %v16661_v27  ;;  %v8456_v39 = vshll.u32 %v10265_v25, 16 }
 0x6e1   :  { %v8269_v59 = vpop.f32.mrf.mxu0  ;;  %v8463_v47 = vrot.slane %v8461_v12, 3  ;;  %v8466_v49 = vrot.slane %v8464_v23, 4  ;;  %v8455_v44 = vrot.slane %v8453_v31, 3  ;;  %v19512_v12 = vld [vmem:[#allocation31_spill] sm:$0xff]  ;;  %v19513_v23 = vld [vmem:[#allocation84_spill] sm:$0xff] }
 0x6e2   :  { %v8057_v51 = vpop.f32.mrf.mxu1  ;;  %v16864_v11 = vadd.f32 %v8269_v59, %v16645_v5  ;;  %v19511_v5 = vld [vmem:[#allocation45_spill] sm:$0xff]  ;;  %v8458_v59 = vrot.slane %v8456_v39, 4 }
 0x6e3   :  { %v16866_v63 = vadd.f32 %v8057_v51, %v7625_v14  ;;  %v11086_v27 = vpop.f32.mrf.mxu0  ;;  %8855 = vmatmul.mubr.bf16.gmra.mxu0 %v19508_v0  ;;  %v7628_v53 = vadd.f32 %v19511_v5, %v19510_v18  ;;  %v8467_v51 = vor.u32 %v8466_v49, %v8463_v47  ;;  %v19514_v49 = vld [vmem:[#allocation81_spill] sm:$0xff] }
 0x6e4   :  { %v8059_v56 = vpop.f32.mrf.mxu1  ;;  %v16870_v54 = vadd.f32 %v11086_v27, %v16692_v3  ;;  %8862 = vmatprep.mubr.bf16.mxu0 %v19509_v4  ;;  %v8459_v25 = vor.u32 %v8458_v59, %v8455_v44  ;;  %v7633_v4 = vadd.f32 %v19513_v23, %v19512_v12  ;;  %v19516_v44 = vld [vmem:[#allocation118_spill] sm:$0xff] }
 0x6e5   :  { %v8282_v55 = vpop.f32.mrf.mxu0 }
 0x6e6   :  { %v8060_v10 = vpop.f32.mrf.mxu1  ;;  %v16876_v14 = vadd.f32 %v8282_v55, %v16668_v29  ;;  %v16889_v29 = vsel %vm5303_vm3, %v8459_v25, %v8467_v51  ;;  %v19515_v55 = vld [vmem:[#allocation68_spill] sm:$0xff] }
 0x6e7   :  { %v16878_v0 = vadd.f32 %v8060_v10, %v7628_v53  ;;  %v11087_v3 = vpop.f32.mrf.mxu0  ;;  %v19517_v10 = vld [vmem:[#allocation83_spill] sm:$0xff] }
 0x6e8   :  { %v8062_v27 = vpop.f32.mrf.mxu1  ;;  %v16881_v56 = vadd.f32 %v11087_v3, %v16705_v62  ;;  %v7636_v59 = vadd.f32 %v19517_v10, %v19516_v44  ;;  %v19520_v44 = vld [vmem:[#allocation74_spill] sm:$0xff] }
 0x6e9   :  { %v8285_v18 = vpop.f32.mrf.mxu0 }
 0x6ea   :  { %v8065_v5 = vpop.f32.mrf.mxu1  ;;  %v16886_v31 = vadd.f32 %v8285_v18, %v16681_v1  ;;  %v19519_v18 = vld [vmem:[#allocation14_spill] sm:$0xff] }
 0x6eb   :  { %v8066_v39 = vadd.f32 %v8065_v5, %v7633_v4  ;;  %v11090_v47 = vpop.f32.mrf.mxu0  ;;  %8863 = vmatmul.mubr.bf16.gmra.mxu0 %v19514_v49  ;;  %v19518_v4 = vld [vmem:[#allocation86_spill] sm:$0xff] }
 0x6ec   :  { %v8067_v53 = vpop.f32.mrf.mxu1  ;;  %v16893_v62 = vadd.f32 %v11090_v47, %v16740_v38  ;;  %8870 = vmatprep.mubr.bf16.mxu0 %v19515_v55  ;;  %v7641_v38 = vadd.f32 %v19519_v18, %v19518_v4 }
 0x6ed   :  { %v8298_v3 = vpop.f32.mrf.mxu0 }
 0x6ee   :  { %v8068_v27 = vpop.f32.mrf.mxu1  ;;  %v16899_v1 = vadd.f32 %v8298_v3, %v16716_v46  ;;  %v19524_v3 = vld [vmem:[#allocation85_spill] sm:$0xff] }
 0x6ef   :  { %v8069_v51 = vadd.f32 %v8068_v27, %v7636_v59  ;;  %v11091_v25 = vpop.f32.mrf.mxu0  ;;  %v19522_v59 = vld [vmem:[#allocation27_spill] sm:$0xff] }
 0x6f0   :  { %v8070_v12 = vpop.f32.mrf.mxu1  ;;  %v16902_v23 = vadd.f32 %v11091_v25, %v16755_v33  ;;  %v19523_v33 = vld [vmem:[#allocation120_spill] sm:$0xff] }
 0x6f1   :  { %v8301_v5 = vpop.f32.mrf.mxu0  ;;  %v7644_v27 = vadd.f32 %v19524_v3, %v19523_v33 }
 0x6f2   :  { %v8073_v47 = vpop.f32.mrf.mxu1  ;;  %v16907_v49 = vadd.f32 %v8301_v5, %v16729_v43 }
 0x6f3   :  { %v16909_v53 = vadd.f32 %v8073_v47, %v7641_v38  ;;  %v11094_v55 = vpop.f32.mrf.mxu0  ;;  %8871 = vmatmul.mubr.bf16.gmra.mxu0 %v19520_v44  ;;  %v19526_v47 = vld [vmem:[#allocation127_spill] sm:$0xff]  ;;  %v19527_v44 = vld [vmem:[#allocation78_spill] sm:$0xff] }
 0x6f4   :  { %v8075_v46 = vpop.f32.mrf.mxu1  ;;  %v16913_v10 = vadd.f32 %v11094_v55, %v16793_v37  ;;  %8878 = vmatprep.mubr.bf16.mxu0 %v19522_v59  ;;  %v7649_v37 = vadd.f32 %v19527_v44, %v19526_v47 }
 0x6f5   :  { %v8314_v25 = vpop.f32.mrf.mxu0 }
 0x6f6   :  { %19521 = vst [vmem:[#allocation92_spill] sm:$0xff] %v16913_v10  ;;  %v8076_v12 = vpop.f32.mrf.mxu1  ;;  %v16919_v4 = vadd.f32 %v8314_v25, %v16766_v60  ;;  %v19528_v10 = vld [vmem:[#allocation77_spill] sm:$0xff]  ;;  %v19530_v25 = vld [vmem:[#allocation72_spill] sm:$0xff] }
 0x6f7   :  { %v8077_v43 = vadd.f32 %v8076_v12, %v7644_v27  ;;  %v11095_v18 = vpop.f32.mrf.mxu0  ;;  %v19532_v12 = vld [vmem:[#allocation11_spill] sm:$0xff] }
 0x6f8   :  { %v8078_v38 = vpop.f32.mrf.mxu1  ;;  %v16922_v5 = vadd.f32 %v11095_v18, %v16806_v9  ;;  %v19531_v9 = vld [vmem:[#allocation22_spill] sm:$0xff] }
 0x6f9   :  { %v8317_v55 = vpop.f32.mrf.mxu0  ;;  %v7652_v18 = vadd.f32 %v19532_v12, %v19531_v9 }
 0x6fa   :  { %19525 = vst [vmem:[#allocation42_spill] sm:$0xff] %v16922_v5  ;;  %v8081_v46 = vpop.f32.mrf.mxu1  ;;  %v16927_v59 = vadd.f32 %v8317_v55, %v16779_v32  ;;  %v19537_v5 = vld [vmem:[#allocation80_spill] sm:$0xff] }
 0x6fb   :  { %v8082_v33 = vadd.f32 %v8081_v46, %v7649_v37  ;;  %v11098_v3 = vpop.f32.mrf.mxu0  ;;  %8879 = vmatmul.mubr.bf16.gmra.mxu0 %v19528_v10  ;;  %v19534_v10 = vld [vmem:[#allocation130_spill] sm:$0xff] }
 0x6fc   :  { %v8083_v60 = vpop.f32.mrf.mxu1  ;;  %v16931_v27 = vadd.f32 %v11098_v3, %v16844_v26  ;;  %8886 = vmatprep.mubr.bf16.mxu0 %v19530_v25 }
 0x6fd   :  { %v8330_v38 = vpop.f32.mrf.mxu0  ;;  %v19535_v60 = vld [vmem:[#allocation147_spill] sm:$0xff] }
 0x6fe   :  { %19529 = vst [vmem:[#allocation60_spill] sm:$0xff] %v16931_v27  ;;  %v8084_v47 = vpop.f32.mrf.mxu1  ;;  %v16937_v44 = vadd.f32 %v8330_v38, %v16817_v35  ;;  %v7657_v26 = vadd.f32 %v19535_v60, %v19534_v10 }
 0x6ff   :  { %v8085_v32 = vadd.f32 %v8084_v47, %v7652_v18  ;;  %v11099_v55 = vpop.f32.mrf.mxu0  ;;  %v19539_v18 = vld [vmem:[#allocation18_spill] sm:$0xff]  ;;  %v19540_v47 = vld [vmem:[#allocation61_spill] sm:$0xff] }
 0x700   :  { %v8086_v37 = vpop.f32.mrf.mxu1  ;;  %v16940_v46 = vadd.f32 %v11099_v55, %v16855_v13  ;;  %v19541_v13 = vld [vmem:[#allocation79_spill] sm:$0xff] }
 0x701   :  { %v8333_v3 = vpop.f32.mrf.mxu0  ;;  %v7660_v55 = vadd.f32 %v19541_v13, %v19540_v47  ;;  %v19544_v13 = vld [vmem:[#allocation66_spill] sm:$0xff] }
 0x702   :  { %19533 = vst [vmem:[#allocation145_spill] sm:$0xff] %v16940_v46  ;;  %v8089_v27 = vpop.f32.mrf.mxu1  ;;  %v16945_v25 = vadd.f32 %v8333_v3, %v16831_v52 }
 0x703   :  { %v8090_v9 = vadd.f32 %v8089_v27, %v7657_v26  ;;  %v11102_v12 = vpop.f32.mrf.mxu0  ;;  %8887 = vmatmul.mubr.bf16.gmra.mxu0 %v19537_v5  ;;  %v19542_v26 = vld [vmem:[#allocation89_spill] sm:$0xff]  ;;  %v19543_v5 = vld [vmem:[#allocation146_spill] sm:$0xff] }
 0x704   :  { %19536 = vst [vmem:[#allocation10_spill] sm:$0xff] %v16945_v25  ;;  %v8091_v35 = vpop.f32.mrf.mxu1  ;;  %v16948_v38 = vadd.f32 %v11102_v12, %v8066_v39  ;;  %8894 = vmatprep.mubr.bf16.mxu0 %v19539_v18 }
 0x705   :  { %v8346_v37 = vpop.f32.mrf.mxu0  ;;  %v7665_v35 = vadd.f32 %v19543_v5, %v19542_v26 }
 0x706   :  { %19538 = vst [vmem:[#allocation32_spill] sm:$0xff] %v16948_v38  ;;  %v8092_v46 = vpop.f32.mrf.mxu1  ;;  %v16954_v10 = vadd.f32 %v8346_v37, %v16866_v63 }
 0x707   :  { %v8093_v60 = vadd.f32 %v8092_v46, %v7660_v55  ;;  %v11103_v52 = vpop.f32.mrf.mxu0  ;;  %v19546_v46 = vld [vmem:[#allocation70_spill] sm:$0xff] }
 0x708   :  { %v8094_v3 = vpop.f32.mrf.mxu1  ;;  %v16956_v27 = vadd.f32 %v11103_v52, %v8069_v51  ;;  %v19547_v51 = vld [vmem:[#allocation13_spill] sm:$0xff] }
 0x709   :  { %v8349_v39 = vpop.f32.mrf.mxu0  ;;  %v7668_v55 = vadd.f32 %v19547_v51, %v16631_v28  ;;  %v19552_v28 = vld [vmem:[#allocation56_spill] sm:$0xff] }
 0x70a   :  { %v8097_v12 = vpop.f32.mrf.mxu1  ;;  %v16961_v18 = vadd.f32 %v8349_v39, %v16878_v0  ;;  %v19550_v39 = vld [vmem:[#allocation57_spill] sm:$0xff] }
 0x70b   :  { %v8098_v38 = vadd.f32 %v8097_v12, %v7665_v35  ;;  %v11106_v47 = vpop.f32.mrf.mxu0  ;;  %8895 = vmatmul.mubr.bf16.gmra.mxu0 %v19544_v13 }
 0x70c   :  { %v8099_v25 = vpop.f32.mrf.mxu1  ;;  %v16964_v63 = vadd.f32 %v11106_v47, %v8082_v33  ;;  %8902 = vmatprep.mubr.bf16.mxu0 %v19546_v46 }
 0x70d   :  { %v8362_v37 = vpop.f32.mrf.mxu0  ;;  %v7673_v25 = vadd.f32 %v19550_v39, %v16639_v61 }
 0x70e   :  { %19545 = vst [vmem:[#allocation95_spill] sm:$0xff] %v16964_v63  ;;  %v8100_v52 = vpop.f32.mrf.mxu1  ;;  %v16970_v3 = vadd.f32 %v8362_v37, %v16909_v53  ;;  %v19554_v53 = vld [vmem:[#allocation21_spill] sm:$0xff] }
 0x70f   :  { %v8101_v26 = vadd.f32 %v8100_v52, %v7668_v55  ;;  %v11107_v0 = vpop.f32.mrf.mxu0  ;;  %v19555_v55 = vld [vmem:[#allocation19_spill] sm:$0xff] }
 0x710   :  { %19548 = vst [vmem:[#allocation48_spill] sm:$0xff] %v16970_v3  ;;  %v8102_v5 = vpop.f32.mrf.mxu1  ;;  %v16972_v35 = vadd.f32 %v11107_v0, %v8085_v32  ;;  %v7676_v32 = vadd.f32 %v19555_v55, %v16647_v50  ;;  %v19561_v55 = vld [vmem:[#allocation111_spill] sm:$0xff] }
 0x711   :  { %v8365_v33 = vpop.f32.mrf.mxu0 }
 0x712   :  { %19549 = vst [vmem:[#allocation9_spill] sm:$0xff] %v16972_v35  ;;  %v8105_v12 = vpop.f32.mrf.mxu1  ;;  %v16976_v47 = vadd.f32 %v8365_v33, %v8077_v43 }
 0x713   :  { %v8106_v13 = vadd.f32 %v8105_v12, %v7673_v25  ;;  %v11110_v46 = vpop.f32.mrf.mxu0  ;;  %8903 = vmatmul.mubr.bf16.gmra.mxu0 %v19552_v28  ;;  %v19558_v25 = vld [vmem:[#allocation17_spill] sm:$0xff] }
 0x714   :  { %19551 = vst [vmem:[#allocation114_spill] sm:$0xff] %v16976_v47  ;;  %v8107_v51 = vpop.f32.mrf.mxu1  ;;  %v16979_v63 = vadd.f32 %v11110_v46, %v8098_v38  ;;  %8910 = vmatprep.mubr.bf16.mxu0 %v19554_v53  ;;  %v7681_v33 = vadd.f32 %v19558_v25, %v16655_v17  ;;  %v19560_v53 = vld [vmem:[#allocation109_spill] sm:$0xff] }
 0x715   :  { %v8378_v37 = vpop.f32.mrf.mxu0 }
 0x716   :  { %19553 = vst [vmem:[#allocation20_spill] sm:$0xff] %v16979_v63  ;;  %v8108_v52 = vpop.f32.mrf.mxu1  ;;  %v16984_v0 = vadd.f32 %v8378_v37, %v8090_v9  ;;  %v19562_v9 = vld [vmem:[#allocation148_spill] sm:$0xff] }
 0x717   :  { %v8109_v61 = vadd.f32 %v8108_v52, %v7676_v32  ;;  %v11111_v5 = vpop.f32.mrf.mxu0  ;;  %v7684_v32 = vadd.f32 %v19562_v9, %v16663_v15  ;;  %v19568_v15 = vld [vmem:[#allocation69_spill] sm:$0xff] }
 0x718   :  { %19556 = vst [vmem:[#allocation67_spill] sm:$0xff] %v16984_v0  ;;  %v8110_v43 = vpop.f32.mrf.mxu1  ;;  %v16986_v39 = vadd.f32 %v11111_v5, %v8101_v26 }
 0x719   :  { %v8381_v12 = vpop.f32.mrf.mxu0 }
 0x71a   :  { %19557 = vst [vmem:[#allocation97_spill] sm:$0xff] %v16986_v39  ;;  %v8113_v38 = vpop.f32.mrf.mxu1  ;;  %v16990_v46 = vadd.f32 %v8381_v12, %v8093_v60 }
 0x71b   :  { %v8114_v28 = vadd.f32 %v8113_v38, %v7681_v33  ;;  %v11114_v51 = vpop.f32.mrf.mxu0  ;;  %8911 = vmatmul.mubr.bf16.gmra.mxu0 %v19560_v53 }
 0x71c   :  { %19559 = vst [vmem:[#allocation119_spill] sm:$0xff] %v16990_v46  ;;  %v8115_v50 = vpop.f32.mrf.mxu1  ;;  %8918 = vmatprep.mubr.bf16.mxu0 %v19561_v55 }
 0x71d   :  { %v16996_v37 = vadd.f32 %v11114_v51, %v8114_v28  ;;  %v8394_v26 = vpop.f32.mrf.mxu0  ;;  %v19567_v50 = vld [vmem:[#allocation63_spill] sm:$0xff] }
 0x71e   :  { %v8116_v52 = vpop.f32.mrf.mxu1  ;;  %v16998_v5 = vadd.f32 %v8394_v26, %v8106_v13 }
 0x71f   :  { %19563 = vst [vmem:[#allocation112_spill] sm:$0xff] %v16996_v37  ;;  %v8117_v17 = vadd.f32 %v8116_v52, %v7684_v32  ;;  %v11115_v43 = vpop.f32.mrf.mxu0  ;;  %v19576_v37 = vld [vmem:[#allocation133_spill] sm:$0xff] }
 0x720   :  { %19564 = vst [vmem:[#allocation35_spill] sm:$0xff] %v16998_v5  ;;  %v8118_v60 = vpop.f32.mrf.mxu1 }
 0x721   :  { %v17000_v25 = vadd.f32 %v11115_v43, %v8117_v17  ;;  %v8397_v33 = vpop.f32.mrf.mxu0 }
 0x722   :  { %v17002_v12 = vadd.f32 %v8397_v33, %v8109_v61  ;;  %v11134_v38 = vpop.f32.mrf.mxu1  ;;  %v19569_v33 = vld [vmem:[#allocation115_spill] sm:$0xff] }
 0x723   :  { %19565 = vst [vmem:[#allocation94_spill] sm:$0xff] %v17000_v25  ;;  %v8728_v53 = vpop.f32.mrf.mxu0  ;;  %8919 = vmatmul.mubr.bf16.gmra.mxu0 %v19567_v50  ;;  %v19570_v25 = vld [vmem:[#allocation117_spill] sm:$0xff] }
 0x724   :  { %19566 = vst [vmem:[#allocation116_spill] sm:$0xff] %v17002_v12  ;;  %v9017_v55 = vpop.f32.mrf.mxu1  ;;  %8926 = vmatprep.mubr.bf16.mxu0 %v19568_v15 }
 0x725   :  { %v9018_v28 = vadd.f32 %v9017_v55, %v8728_v53  ;;  %v8730_v51 = vpop.f32.mrf.mxu0 }
 0x726   :  { %v11135_v9 = vpop.f32.mrf.mxu1 }
 0x727   :  { %v17007_v13 = vadd.f32 %v9018_v28, %v16679_v20  ;;  %v8731_v32 = vpop.f32.mrf.mxu0 }
 0x728   :  { %v9020_v26 = vpop.f32.mrf.mxu1 }
 0x729   :  { %v9021_v52 = vadd.f32 %v9020_v26, %v8731_v32  ;;  %v8733_v17 = vpop.f32.mrf.mxu0 }
 0x72a   :  { %v11138_v43 = vpop.f32.mrf.mxu1 }
 0x72b   :  { %v17010_v61 = vadd.f32 %v9021_v52, %v16689_v48  ;;  %v8736_v60 = vpop.f32.mrf.mxu0  ;;  %8927 = vmatmul.mubr.bf16.gmra.mxu0 %v19569_v33  ;;  %v19571_v52 = vld [vmem:[#allocation122_spill] sm:$0xff]  ;;  %v19572_v33 = vld [vmem:[#allocation123_spill] sm:$0xff] }
 0x72c   :  { %v9026_v50 = vadd.f32 %v11134_v38, %v8736_v60  ;;  %8934 = vmatprep.mubr.bf16.mxu0 %v19570_v25  ;;  %v9033_v20 = vpop.f32.mrf.mxu1 }
 0x72d   :  { %v8738_v53 = vpop.f32.mrf.mxu0 }
 0x72e   :  { %v17015_v55 = vadd.f32 %v9026_v50, %v16673_v57  ;;  %v11139_v48 = vpop.f32.mrf.mxu1 }
 0x72f   :  { %v8739_v15 = vpop.f32.mrf.mxu0 }
 0x730   :  { %v9029_v28 = vadd.f32 %v11135_v9, %v8739_v15  ;;  %v9036_v57 = vpop.f32.mrf.mxu1 }
 0x731   :  { %v8741_v51 = vpop.f32.mrf.mxu0 }
 0x732   :  { %v17018_v32 = vadd.f32 %v9029_v28, %v16684_v58  ;;  %v11142_v58 = vpop.f32.mrf.mxu1  ;;  %v19573_v28 = vld [vmem:[#allocation126_spill] sm:$0xff] }
 0x733   :  { %v8744_v26 = vpop.f32.mrf.mxu0  ;;  %8935 = vmatmul.mubr.bf16.gmra.mxu0 %v19571_v52  ;;  %v19574_v52 = vld [vmem:[#allocation129_spill] sm:$0xff] }
 0x734   :  { %v9034_v17 = vadd.f32 %v9033_v20, %v8744_v26  ;;  %8942 = vmatprep.mubr.bf16.mxu0 %v19572_v33  ;;  %v5079_v20 = vshrl.u32 %v16826_v7, 16  ;;  %v5082_v26 = vshll.u32 %v16826_v7, 16  ;;  %v9049_v33 = vpop.f32.mrf.mxu1 }
 0x735   :  { %v8746_v38 = vpop.f32.mrf.mxu0 }
 0x736   :  { %v17023_v25 = vadd.f32 %v9034_v17, %v16703_v34 }
 0x737   :  { %v8747_v60 = vpop.f32.mrf.mxu0 }
 0x738   :  { %v9037_v50 = vadd.f32 %v9036_v57, %v8747_v60  ;;  %v5084_v60 = vrot.slane %v5082_v26, 5 }
 0x739   :  { %v8749_v53 = vpop.f32.mrf.mxu0 }
 0x73a   :  { %v17026_v9 = vadd.f32 %v9037_v50, %v16713_v19  ;;  %v5081_v19 = vrot.slane %v5079_v20, 4 }
 0x73b   :  { %v8752_v15 = vpop.f32.mrf.mxu0  ;;  %8943 = vmatmul.mubr.bf16.gmra.mxu0 %v19573_v28  ;;  %v19575_v28 = vld [vmem:[#allocation132_spill] sm:$0xff] }
 0x73c   :  { %v9042_v51 = vadd.f32 %v11138_v43, %v8752_v15  ;;  %8950 = vmatprep.mubr.bf16.mxu0 %v19574_v52  ;;  %v11143_v43 = vpop.f32.mrf.mxu1  ;;  %v5085_v7 = vor.u32 %v5084_v60, %v5081_v19 }
 0x73d   :  { %v8754_v34 = vpop.f32.mrf.mxu0 }
 0x73e   :  { %v17033_v17 = vadd.f32 %v9042_v51, %v16697_v22  ;;  %v9052_v51 = vpop.f32.mrf.mxu1  ;;  %v8470_v26 = vshrl.u32 %v5085_v7, 16 }
 0x73f   :  { %v8755_v38 = vpop.f32.mrf.mxu0 }
 0x740   :  { %v9045_v57 = vadd.f32 %v11139_v48, %v8755_v38  ;;  %v8473_v38 = vshll.u32 %v5085_v7, 16  ;;  %v8472_v19 = vrot.slane %v8470_v26, 3 }
 0x741   :  { %v8757_v50 = vpop.f32.mrf.mxu0 }
 0x742   :  { %v17036_v53 = vadd.f32 %v9045_v57, %v16708_v36  ;;  %v11146_v57 = vpop.f32.mrf.mxu1  ;;  %v8475_v60 = vrot.slane %v8473_v38, 4 }
 0x743   :  { %v8760_v15 = vpop.f32.mrf.mxu0  ;;  %8951 = vmatmul.mubr.bf16.gmra.mxu0 %v19575_v28  ;;  %v19577_v28 = vld [vmem:[#allocation136_spill] sm:$0xff] }
 0x744   :  { %v9050_v52 = vadd.f32 %v9049_v33, %v8760_v15  ;;  %8958 = vmatprep.mubr.bf16.mxu0 %v19576_v37  ;;  %v19578_v37 = vld [vmem:[#allocation137_spill] sm:$0xff] }
 0x745   :  { %v8762_v34 = vpop.f32.mrf.mxu0 }
 0x746   :  { %v17041_v22 = vadd.f32 %v9050_v52, %v16727_v21  ;;  %v9065_v52 = vpop.f32.mrf.mxu1 }
 0x747   :  { %v8763_v48 = vpop.f32.mrf.mxu0 }
 0x748   :  { %v9053_v20 = vadd.f32 %v9052_v51, %v8763_v48  ;;  %v8476_v51 = vor.u32 %v8475_v60, %v8472_v19 }
 0x749   :  { %v8765_v50 = vpop.f32.mrf.mxu0 }
 0x74a   :  { %v17044_v36 = vadd.f32 %v9053_v20, %v16737_v42  ;;  %v11147_v20 = vpop.f32.mrf.mxu1 }
 0x74b   :  { %v8768_v12 = vpop.f32.mrf.mxu0  ;;  %8959 = vmatmul.mubr.bf16.gmra.mxu0 %v19577_v28  ;;  %v19579_v28 = vld [vmem:[#allocation141_spill] sm:$0xff] }
 0x74c   :  { %v9058_v33 = vadd.f32 %v11142_v58, %v8768_v12  ;;  %8966 = vmatprep.mubr.bf16.mxu0 %v19578_v37 }
 0x74d   :  { %v8770_v21 = vpop.f32.mrf.mxu0 }
 0x74e   :  { %v17049_v15 = vadd.f32 %v9058_v33, %v16721_v2  ;;  %v9068_v2 = vpop.f32.mrf.mxu1 }
 0x74f   :  { %v8771_v34 = vpop.f32.mrf.mxu0 }
 0x750   :  { %v9061_v7 = vadd.f32 %v11143_v43, %v8771_v34  ;;  %v11150_v19 = vpop.f32.mrf.mxu1 }
 0x751   :  { %v8773_v48 = vpop.f32.mrf.mxu0 }
 0x752   :  { %v17052_v42 = vadd.f32 %v9061_v7, %v16732_v40  ;;  %v9081_v34 = vpop.f32.mrf.mxu1  ;;  %v19580_v48 = vld [vmem:[#allocation47_spill] sm:$0xff] }
 0x753   :  { %v8776_v50 = vpop.f32.mrf.mxu0  ;;  %8967 = vmatmul.mubr.bf16.gmra.mxu0 %v19579_v28 }
 0x754   :  { %v9066_v12 = vadd.f32 %v9065_v52, %v8776_v50  ;;  %8974 = vmatprep.mubr.bf16.mxu0 %v8476_v51  ;;  %v11151_v28 = vpop.f32.mrf.mxu1 }
 0x755   :  { %v8778_v58 = vpop.f32.mrf.mxu0 }
 0x756   :  { %v17056_v26 = vadd.f32 %v9066_v12, %v16753_v6 }
 0x757   :  { %v8779_v38 = vpop.f32.mrf.mxu0 }
 0x758   :  { %v9069_v33 = vadd.f32 %v9068_v2, %v8779_v38  ;;  %v19581_v2 = vld [vmem:[#allocation44_spill] sm:$0xff] }
 0x759   :  { %v8781_v37 = vpop.f32.mrf.mxu0 }
 0x75a   :  { %v17059_v43 = vadd.f32 %v9069_v33, %v16763_v41 }
 0x75b   :  { %v8784_v40 = vpop.f32.mrf.mxu0  ;;  %8975 = vmatmul.mubr.bf16.gmra.mxu0 %v16889_v29  ;;  %v9084_v29 = vpop.f32.mrf.mxu1 }
 0x75c   :  { %v9074_v60 = vadd.f32 %v11146_v57, %v8784_v40 }
 0x75d   :  { %v8786_v21 = vpop.f32.mrf.mxu0 }
 0x75e   :  { %v17063_v52 = vadd.f32 %v9074_v60, %v16745_v24  ;;  %v19582_v24 = vld [vmem:[#allocation73_spill] sm:$0xff]  ;;  %v11154_v60 = vpop.f32.mrf.mxu1 }
 0x75f   :  { %v8787_v7 = vpop.f32.mrf.mxu0 }
 0x760   :  { %v9077_v6 = vadd.f32 %v11147_v20, %v8787_v7 }
 0x761   :  { %v8789_v51 = vpop.f32.mrf.mxu0 }
 0x762   :  { %v17066_v50 = vadd.f32 %v9077_v6, %v19580_v48  ;;  %v19583_v6 = vld [vmem:[#allocation75_spill] sm:$0xff]  ;;  %v9097_v48 = vpop.f32.mrf.mxu1 }
 0x763   :  { %v8792_v12 = vpop.f32.mrf.mxu0 }
 0x764   :  { %v9082_v41 = vadd.f32 %v9081_v34, %v8792_v12  ;;  %v11155_v5 = vpop.f32.mrf.mxu1 }
 0x765   :  { %v8794_v58 = vpop.f32.mrf.mxu0 }
 0x766   :  { %v17069_v38 = vadd.f32 %v9082_v41, %v19581_v2  ;;  %v19584_v41 = vld [vmem:[#allocation93_spill] sm:$0xff] }
 0x767   :  { %v8795_v57 = vpop.f32.mrf.mxu0 }
 0x768   :  { %v9085_v33 = vadd.f32 %v9084_v29, %v8795_v57 }
 0x769   :  { %v8797_v37 = vpop.f32.mrf.mxu0 }
 0x76a   :  { %v17072_v40 = vadd.f32 %v9085_v33, %v19582_v24  ;;  %v9100_v24 = vpop.f32.mrf.mxu1 }
 0x76b   :  { %v8800_v20 = vpop.f32.mrf.mxu0 }
 0x76c   :  { %v9090_v21 = vadd.f32 %v11150_v19, %v8800_v20  ;;  %v11158_v39 = vpop.f32.mrf.mxu1 }
 0x76d   :  { %v8802_v7 = vpop.f32.mrf.mxu0 }
 0x76e   :  { %v17075_v51 = vadd.f32 %v9090_v21, %v19583_v6  ;;  %v19585_v21 = vld [vmem:[#allocation16_spill] sm:$0xff]  ;;  %v9113_v63 = vpop.f32.mrf.mxu1 }
 0x76f   :  { %v8803_v34 = vpop.f32.mrf.mxu0 }
 0x770   :  { %v9093_v12 = vadd.f32 %v11151_v28, %v8803_v34  ;;  %v11159_v46 = vpop.f32.mrf.mxu1 }
 0x771   :  { %v8805_v58 = vpop.f32.mrf.mxu0 }
 0x772   :  { %v17078_v2 = vadd.f32 %v9093_v12, %v19584_v41  ;;  %v19586_v12 = vld [vmem:[#allocation108_spill] sm:$0xff]  ;;  %v9116_v0 = vpop.f32.mrf.mxu1 }
 0x773   :  { %v8808_v29 = vpop.f32.mrf.mxu0 }
 0x774   :  { %v9098_v57 = vadd.f32 %v9097_v48, %v8808_v29  ;;  %v11162_v35 = vpop.f32.mrf.mxu1 }
 0x775   :  { %v8810_v37 = vpop.f32.mrf.mxu0 }
 0x776   :  { %v17081_v33 = vadd.f32 %v9098_v57, %v16804_v16  ;;  %v19587_v16 = vld [vmem:[#allocation62_spill] sm:$0xff]  ;;  %v9129_v47 = vpop.f32.mrf.mxu1 }
 0x777   :  { %v8811_v19 = vpop.f32.mrf.mxu0 }
 0x778   :  { %v9101_v20 = vadd.f32 %v9100_v24, %v8811_v19  ;;  %v11163_v3 = vpop.f32.mrf.mxu1 }
 0x779   :  { %v8813_v7 = vpop.f32.mrf.mxu0 }
 0x77a   :  { %v17084_v6 = vadd.f32 %v9101_v20, %v19585_v21  ;;  %v19589_v20 = vld [vmem:[#allocation36_spill] sm:$0xff] }
 0x77b   :  { %v8816_v28 = vpop.f32.mrf.mxu0 }
 0x77c   :  { %v9106_v34 = vadd.f32 %v11154_v60, %v8816_v28 }
 0x77d   :  { %v8818_v58 = vpop.f32.mrf.mxu0 }
 0x77e   :  { %v17087_v41 = vadd.f32 %v9106_v34, %v19586_v12  ;;  %v19590_v34 = vld [vmem:[#allocation49_spill] sm:$0xff] }
 0x77f   :  { %v8819_v48 = vpop.f32.mrf.mxu0 }
 0x780   :  { %v9109_v29 = vadd.f32 %v11155_v5, %v8819_v48 }
 0x781   :  { %v8821_v37 = vpop.f32.mrf.mxu0 }
 0x782   :  { %v17090_v57 = vadd.f32 %v9109_v29, %v19587_v16  ;;  %v19592_v29 = vld [vmem:[#allocation91_spill] sm:$0xff] }
 0x783   :  { %v8824_v24 = vpop.f32.mrf.mxu0 }
 0x784   :  { %19588 = vst [vmem:[#allocation124_spill] sm:$0xff] %v17090_v57  ;;  %v9114_v19 = vadd.f32 %v9113_v63, %v8824_v24 }
 0x785   :  { %v8826_v7 = vpop.f32.mrf.mxu0 }
 0x786   :  { %v17093_v21 = vadd.f32 %v9114_v19, %v19589_v20  ;;  %v19593_v19 = vld [vmem:[#allocation58_spill] sm:$0xff] }
 0x787   :  { %v8827_v60 = vpop.f32.mrf.mxu0 }
 0x788   :  { %v9117_v28 = vadd.f32 %v9116_v0, %v8827_v60 }
 0x789   :  { %v8829_v58 = vpop.f32.mrf.mxu0 }
 0x78a   :  { %v17096_v12 = vadd.f32 %v9117_v28, %v19590_v34  ;;  %v9132_v34 = vpop.f32.mrf.mxu1 }
 0x78b   :  { %v8832_v5 = vpop.f32.mrf.mxu0 }
 0x78c   :  { %19591 = vst [vmem:[#allocation23_spill] sm:$0xff] %v17096_v12  ;;  %v9122_v48 = vadd.f32 %v11158_v39, %v8832_v5 }
 0x78d   :  { %v8834_v37 = vpop.f32.mrf.mxu0 }
 0x78e   :  { %v17099_v16 = vadd.f32 %v9122_v48, %v19592_v29  ;;  %v9338_v48 = vadd.f32 %v17010_v61, %v17007_v13  ;;  %v11166_v29 = vpop.f32.mrf.mxu1 }
 0x78f   :  { %v8835_v63 = vpop.f32.mrf.mxu0 }
 0x790   :  { %v9125_v24 = vadd.f32 %v11159_v46, %v8835_v63 }
 0x791   :  { %v8837_v7 = vpop.f32.mrf.mxu0 }
 0x792   :  { %v17102_v20 = vadd.f32 %v9125_v24, %v19593_v19  ;;  %v9339_v24 = vadd.f32 %v9338_v48, %v17015_v55 }
 0x793   :  { %v8840_v0 = vpop.f32.mrf.mxu0 }
 0x794   :  { %v9130_v60 = vadd.f32 %v9129_v47, %v8840_v0  ;;  %v9340_v19 = vadd.f32 %v9339_v24, %v17018_v32  ;;  %v9145_v0 = vpop.f32.mrf.mxu1 }
 0x795   :  { %v8842_v58 = vpop.f32.mrf.mxu0 }
 0x796   :  { %v17105_v28 = vadd.f32 %v9130_v60, %v16853_v45  ;;  %v9341_v58 = vadd.f32 %v9340_v19, %v17023_v25 }
 0x797   :  { %v8843_v39 = vpop.f32.mrf.mxu0 }
 0x798   :  { %v9133_v5 = vadd.f32 %v9132_v34, %v8843_v39 }
 0x799   :  { %v8845_v37 = vpop.f32.mrf.mxu0 }
 0x79a   :  { %v17110_v46 = vadd.f32 %v9133_v5, %v16864_v11  ;;  %v9342_v11 = vadd.f32 %v9341_v58, %v17026_v9  ;;  %v11167_v37 = vpop.f32.mrf.mxu1 }
 0x79b   :  { %v8848_v63 = vpop.f32.mrf.mxu0 }
 0x79c   :  { %19594 = vst [vmem:[#allocation50_spill] sm:$0xff] %v17110_v46  ;;  %v9138_v7 = vadd.f32 %v11162_v35, %v8848_v63  ;;  %v9343_v35 = vadd.f32 %v9342_v11, %v17033_v17 }
 0x79d   :  { %v8850_v47 = vpop.f32.mrf.mxu0 }
 0x79e   :  { %v17115_v45 = vadd.f32 %v9138_v7, %v16847_v30  ;;  %v9344_v30 = vadd.f32 %v9343_v35, %v17036_v53  ;;  %v9148_v47 = vpop.f32.mrf.mxu1 }
 0x79f   :  { %v8851_v60 = vpop.f32.mrf.mxu0 }
 0x7a0   :  { %v9141_v34 = vadd.f32 %v11163_v3, %v8851_v60  ;;  %v9345_v3 = vadd.f32 %v9344_v30, %v17041_v22 }
 0x7a1   :  { %v8853_v39 = vpop.f32.mrf.mxu0 }
 0x7a2   :  { %v17120_v5 = vadd.f32 %v9141_v34, %v16858_v8  ;;  %v9346_v8 = vadd.f32 %v9345_v3, %v17044_v36  ;;  %v11170_v39 = vpop.f32.mrf.mxu1 }
 0x7a3   :  { %v8856_v48 = vpop.f32.mrf.mxu0 }
 0x7a4   :  { %19595 = vst [vmem:[#allocation128_spill] sm:$0xff] %v17120_v5  ;;  %v9146_v63 = vadd.f32 %v9145_v0, %v8856_v48  ;;  %v9347_v0 = vadd.f32 %v9346_v8, %v17049_v15 }
 0x7a5   :  { %v8858_v24 = vpop.f32.mrf.mxu0 }
 0x7a6   :  { %v17125_v7 = vadd.f32 %v9146_v63, %v16876_v14  ;;  %v9348_v14 = vadd.f32 %v9347_v0, %v17052_v42  ;;  %v9161_v24 = vpop.f32.mrf.mxu1 }
 0x7a7   :  { %v8859_v19 = vpop.f32.mrf.mxu0 }
 0x7a8   :  { %v9149_v60 = vadd.f32 %v9148_v47, %v8859_v19  ;;  %v9349_v47 = vadd.f32 %v9348_v14, %v17056_v26 }
 0x7a9   :  { %v8861_v58 = vpop.f32.mrf.mxu0 }
 0x7aa   :  { %v17130_v34 = vadd.f32 %v9149_v60, %v16886_v31  ;;  %v9350_v31 = vadd.f32 %v9349_v47, %v17059_v43  ;;  %v11171_v58 = vpop.f32.mrf.mxu1 }
 0x7ab   :  { %v8864_v11 = vpop.f32.mrf.mxu0 }
 0x7ac   :  { %19596 = vst [vmem:[#allocation121_spill] sm:$0xff] %v17130_v34  ;;  %v9154_v48 = vadd.f32 %v11166_v29, %v8864_v11  ;;  %v9351_v29 = vadd.f32 %v9350_v31, %v17063_v52 }
 0x7ad   :  { %v8866_v35 = vpop.f32.mrf.mxu0 }
 0x7ae   :  { %v17135_v63 = vadd.f32 %v9154_v48, %v16870_v54  ;;  %v9352_v54 = vadd.f32 %v9351_v29, %v17066_v50  ;;  %v9164_v35 = vpop.f32.mrf.mxu1 }
 0x7af   :  { %v8867_v30 = vpop.f32.mrf.mxu0 }
 0x7b0   :  { %19597 = vst [vmem:[#allocation34_spill] sm:$0xff] %v17135_v63  ;;  %v9157_v19 = vadd.f32 %v11167_v37, %v8867_v30  ;;  %v9353_v37 = vadd.f32 %v9352_v54, %v17069_v38 }
 0x7b1   :  { %v8869_v3 = vpop.f32.mrf.mxu0 }
 0x7b2   :  { %v17140_v60 = vadd.f32 %v9157_v19, %v16881_v56  ;;  %v9354_v56 = vadd.f32 %v9353_v37, %v17072_v40  ;;  %v11174_v3 = vpop.f32.mrf.mxu1 }
 0x7b3   :  { %v8872_v8 = vpop.f32.mrf.mxu0 }
 0x7b4   :  { %19598 = vst [vmem:[#allocation15_spill] sm:$0xff] %v17140_v60  ;;  %v9162_v11 = vadd.f32 %v9161_v24, %v8872_v8  ;;  %v9355_v24 = vadd.f32 %v9354_v56, %v17075_v51 }
 0x7b5   :  { %v8874_v0 = vpop.f32.mrf.mxu0 }
 0x7b6   :  { %v17145_v48 = vadd.f32 %v9162_v11, %v16899_v1  ;;  %v9356_v1 = vadd.f32 %v9355_v24, %v17078_v2  ;;  %v9177_v0 = vpop.f32.mrf.mxu1 }
 0x7b7   :  { %v8875_v14 = vpop.f32.mrf.mxu0 }
 0x7b8   :  { %19599 = vst [vmem:[#allocation41_spill] sm:$0xff] %v17145_v48  ;;  %v9165_v30 = vadd.f32 %v9164_v35, %v8875_v14  ;;  %v9357_v35 = vadd.f32 %v9356_v1, %v17081_v33 }
 0x7b9   :  { %v8877_v47 = vpop.f32.mrf.mxu0 }
 0x7ba   :  { %v17150_v19 = vadd.f32 %v9165_v30, %v16907_v49  ;;  %v9358_v49 = vadd.f32 %v9357_v35, %v17084_v6  ;;  %v11175_v47 = vpop.f32.mrf.mxu1 }
 0x7bb   :  { %v8880_v31 = vpop.f32.mrf.mxu0 }
 0x7bc   :  { %19600 = vst [vmem:[#allocation59_spill] sm:$0xff] %v17150_v19  ;;  %v9170_v8 = vadd.f32 %v11170_v39, %v8880_v31  ;;  %v9359_v39 = vadd.f32 %v9358_v49, %v17087_v41 }
 0x7bd   :  { %v8882_v29 = vpop.f32.mrf.mxu0 }
 0x7be   :  { %v17155_v11 = vadd.f32 %v9170_v8, %v16893_v62  ;;  %v9360_v62 = vadd.f32 %v9359_v39, %v17090_v57  ;;  %v9180_v29 = vpop.f32.mrf.mxu1 }
 0x7bf   :  { %v8883_v54 = vpop.f32.mrf.mxu0 }
 0x7c0   :  { %19601 = vst [vmem:[#allocation125_spill] sm:$0xff] %v17155_v11  ;;  %v9173_v14 = vadd.f32 %v11171_v58, %v8883_v54  ;;  %v9361_v58 = vadd.f32 %v9360_v62, %v17093_v21 }
 0x7c1   :  { %v8885_v37 = vpop.f32.mrf.mxu0 }
 0x7c2   :  { %v17160_v30 = vadd.f32 %v9173_v14, %v16902_v23  ;;  %v9362_v23 = vadd.f32 %v9361_v58, %v17096_v12  ;;  %v11178_v37 = vpop.f32.mrf.mxu1 }
 0x7c3   :  { %v8888_v56 = vpop.f32.mrf.mxu0 }
 0x7c4   :  { %19602 = vst [vmem:[#allocation76_spill] sm:$0xff] %v17160_v30  ;;  %v9178_v31 = vadd.f32 %v9177_v0, %v8888_v56  ;;  %v9363_v0 = vadd.f32 %v9362_v23, %v17099_v16  ;;  %v9193_v57 = vpop.f32.mrf.mxu1 }
 0x7c5   :  { %v8890_v24 = vpop.f32.mrf.mxu0 }
 0x7c6   :  { %v17165_v8 = vadd.f32 %v9178_v31, %v16919_v4  ;;  %v9364_v4 = vadd.f32 %v9363_v0, %v17102_v20  ;;  %v19605_v31 = vld [vmem:[#allocation92_spill] sm:$0xff]  ;;  %v11179_v12 = vpop.f32.mrf.mxu1 }
 0x7c7   :  { %v8891_v1 = vpop.f32.mrf.mxu0 }
 0x7c8   :  { %19603 = vst [vmem:[#allocation29_spill] sm:$0xff] %v17165_v8  ;;  %v9181_v54 = vadd.f32 %v9180_v29, %v8891_v1  ;;  %v9365_v29 = vadd.f32 %v9364_v4, %v17105_v28 }
 0x7c9   :  { %v8893_v35 = vpop.f32.mrf.mxu0 }
 0x7ca   :  { %v17170_v14 = vadd.f32 %v9181_v54, %v16927_v59  ;;  %v9366_v59 = vadd.f32 %v9365_v29, %v17110_v46  ;;  %v19606_v54 = vld [vmem:[#allocation42_spill] sm:$0xff] }
 0x7cb   :  { %v8896_v49 = vpop.f32.mrf.mxu0 }
 0x7cc   :  { %19604 = vst [vmem:[#allocation99_spill] sm:$0xff] %v17170_v14  ;;  %v9186_v56 = vadd.f32 %v11174_v3, %v8896_v49  ;;  %v9367_v3 = vadd.f32 %v9366_v59, %v17115_v45 }
 0x7cd   :  { %v8898_v39 = vpop.f32.mrf.mxu0 }
 0x7ce   :  { %v17175_v24 = vadd.f32 %v9186_v56, %v19605_v31  ;;  %v9368_v56 = vadd.f32 %v9367_v3, %v17120_v5  ;;  %v9196_v31 = vpop.f32.mrf.mxu1 }
 0x7cf   :  { %v8899_v62 = vpop.f32.mrf.mxu0 }
 0x7d0   :  { %v9189_v1 = vadd.f32 %v11175_v47, %v8899_v62  ;;  %v9369_v47 = vadd.f32 %v9368_v56, %v17125_v7  ;;  %v11182_v46 = vpop.f32.mrf.mxu1 }
 0x7d1   :  { %v8901_v58 = vpop.f32.mrf.mxu0 }
 0x7d2   :  { %v17180_v35 = vadd.f32 %v9189_v1, %v19606_v54  ;;  %v9370_v1 = vadd.f32 %v9369_v47, %v17130_v34  ;;  %v19607_v58 = vld [vmem:[#allocation10_spill] sm:$0xff] }
 0x7d3   :  { %v8904_v23 = vpop.f32.mrf.mxu0 }
 0x7d4   :  { %v9194_v49 = vadd.f32 %v9193_v57, %v8904_v23  ;;  %v9371_v57 = vadd.f32 %v9370_v1, %v17135_v63 }
 0x7d5   :  { %v8906_v0 = vpop.f32.mrf.mxu0 }
 0x7d6   :  { %v17185_v39 = vadd.f32 %v9194_v49, %v16937_v44  ;;  %v9372_v3 = vadd.f32 %v9371_v57, %v17140_v60  ;;  %v9209_v44 = vpop.f32.mrf.mxu1 }
 0x7d7   :  { %v8907_v4 = vpop.f32.mrf.mxu0 }
 0x7d8   :  { %v9197_v62 = vadd.f32 %v9196_v31, %v8907_v4  ;;  %v9373_v0 = vadd.f32 %v9372_v3, %v17145_v48  ;;  %v11183_v31 = vpop.f32.mrf.mxu1 }
 0x7d9   :  { %v8909_v29 = vpop.f32.mrf.mxu0 }
 0x7da   :  { %v17190_v54 = vadd.f32 %v9197_v62, %v19607_v58  ;;  %v9374_v56 = vadd.f32 %v9373_v0, %v17150_v19  ;;  %v9212_v58 = vpop.f32.mrf.mxu1 }
 0x7db   :  { %v8912_v59 = vpop.f32.mrf.mxu0 }
 0x7dc   :  { %v9375_v47 = vadd.f32 %v9374_v56, %v17155_v11  ;;  %v11186_v60 = vpop.f32.mrf.mxu1  ;;  %v9202_v3 = vadd.f32 %v11178_v37, %v8912_v59 }
 0x7dd   :  { %v8914_v23 = vpop.f32.mrf.mxu0 }
 0x7de   :  { %v9376_v29 = vadd.f32 %v9375_v47, %v17160_v30  ;;  %v9225_v56 = vpop.f32.mrf.mxu1  ;;  %v19608_v30 = vld [vmem:[#allocation60_spill] sm:$0xff] }
 0x7df   :  { %v8915_v49 = vpop.f32.mrf.mxu0  ;;  %v17204_v11 = vadd.f32 %v9202_v3, %v19608_v30 }
 0x7e0   :  { %v9377_v1 = vadd.f32 %v9376_v29, %v17165_v8  ;;  %v9205_v48 = vadd.f32 %v11179_v12, %v8915_v49  ;;  %v11187_v37 = vpop.f32.mrf.mxu1 }
 0x7e1   :  { %v8917_v5 = vpop.f32.mrf.mxu0  ;;  %19609 = vst [vmem:[#allocation52_spill] sm:$0xff] %v17204_v11 }
 0x7e2   :  { %v9378_v57 = vadd.f32 %v9377_v1, %v17170_v14  ;;  %v19610_v14 = vld [vmem:[#allocation145_spill] sm:$0xff]  ;;  %v9228_v3 = vpop.f32.mrf.mxu1 }
 0x7e3   :  { %v8920_v4 = vpop.f32.mrf.mxu0  ;;  %v17208_v8 = vadd.f32 %v9205_v48, %v19610_v14 }
 0x7e4   :  { %v9379_v5 = vadd.f32 %v9378_v57, %v17175_v24  ;;  %v9210_v29 = vadd.f32 %v9209_v44, %v8920_v4 }
 0x7e5   :  { %v8922_v62 = vpop.f32.mrf.mxu0  ;;  %19611 = vst [vmem:[#allocation100_spill] sm:$0xff] %v17208_v8 }
 0x7e6   :  { %v9380_v19 = vadd.f32 %v9379_v5, %v17180_v35  ;;  %v17212_v12 = vadd.f32 %v9210_v29, %v16954_v10  ;;  %v11190_v29 = vpop.f32.mrf.mxu1 }
 0x7e7   :  { %v8923_v34 = vpop.f32.mrf.mxu0 }
 0x7e8   :  { %v9381_v47 = vadd.f32 %v9380_v19, %v17185_v39  ;;  %v9213_v57 = vadd.f32 %v9212_v58, %v8923_v34  ;;  %19612 = vst [vmem:[#allocation135_spill] sm:$0xff] %v17212_v12  ;;  %v19614_v34 = vld [vmem:[#allocation32_spill] sm:$0xff] }
 0x7e9   :  { %v8925_v23 = vpop.f32.mrf.mxu0 }
 0x7ea   :  { %v9382_v1 = vadd.f32 %v9381_v47, %v17190_v54  ;;  %v17216_v44 = vadd.f32 %v9213_v57, %v16961_v18 }
 0x7eb   :  { %v8928_v63 = vpop.f32.mrf.mxu0 }
 0x7ec   :  { %v9383_v5 = vadd.f32 %v9382_v1, %v17204_v11  ;;  %v9218_v49 = vadd.f32 %v11182_v46, %v8928_v63  ;;  %19613 = vst [vmem:[#allocation37_spill] sm:$0xff] %v17216_v44 }
 0x7ed   :  { %v8930_v0 = vpop.f32.mrf.mxu0 }
 0x7ee   :  { %v9384_v30 = vadd.f32 %v9383_v5, %v17208_v8  ;;  %v17220_v14 = vadd.f32 %v9218_v49, %v19614_v34  ;;  %v19619_v49 = vld [vmem:[#allocation114_spill] sm:$0xff]  ;;  %v19623_v34 = vld [vmem:[#allocation9_spill] sm:$0xff] }
 0x7ef   :  { %v8931_v62 = vpop.f32.mrf.mxu0 }
 0x7f0   :  { %v9221_v4 = vadd.f32 %v11183_v31, %v8931_v62  ;;  %v9385_v48 = vadd.f32 %v9384_v30, %v17212_v12  ;;  %19615 = vst [vmem:[#allocation71_spill] sm:$0xff] %v17220_v14  ;;  %v19617_v31 = vld [vmem:[#allocation48_spill] sm:$0xff]  ;;  %v19621_v30 = vld [vmem:[#allocation95_spill] sm:$0xff] }
 0x7f1   :  { %v8933_v23 = vpop.f32.mrf.mxu0 }
 0x7f2   :  { %v9386_v10 = vadd.f32 %v9385_v48, %v17216_v44  ;;  %v17224_v46 = vadd.f32 %v9221_v4, %v16956_v27 }
 0x7f3   :  { %v8936_v59 = vpop.f32.mrf.mxu0 }
 0x7f4   :  { %v9226_v58 = vadd.f32 %v9225_v56, %v8936_v59  ;;  %19616 = vst [vmem:[#allocation131_spill] sm:$0xff] %v17224_v46  ;;  %v9387_v18 = vadd.f32 %v9386_v10, %v17220_v14  ;;  %v9241_v59 = vpop.f32.mrf.mxu1 }
 0x7f5   :  { %v8938_v19 = vpop.f32.mrf.mxu0 }
 0x7f6   :  { %v17228_v62 = vadd.f32 %v9226_v58, %v19617_v31  ;;  %v9388_v5 = vadd.f32 %v9387_v18, %v17224_v46  ;;  %v19624_v31 = vld [vmem:[#allocation67_spill] sm:$0xff]  ;;  %v19626_v46 = vld [vmem:[#allocation20_spill] sm:$0xff] }
 0x7f7   :  { %v8939_v0 = vpop.f32.mrf.mxu0 }
 0x7f8   :  { %v9229_v63 = vadd.f32 %v9228_v3, %v8939_v0  ;;  %19618 = vst [vmem:[#allocation53_spill] sm:$0xff] %v17228_v62  ;;  %v9389_v27 = vadd.f32 %v9388_v5, %v17228_v62 }
 0x7f9   :  { %v8941_v47 = vpop.f32.mrf.mxu0 }
 0x7fa   :  { %v17232_v56 = vadd.f32 %v9229_v63, %v19619_v49 }
 0x7fb   :  { %v8944_v23 = vpop.f32.mrf.mxu0 }
 0x7fc   :  { %v9234_v1 = vadd.f32 %v11186_v60, %v8944_v23  ;;  %19620 = vst [vmem:[#allocation105_spill] sm:$0xff] %v17232_v56  ;;  %v9390_v48 = vadd.f32 %v9389_v27, %v17232_v56  ;;  %v11191_v60 = vpop.f32.mrf.mxu1 }
 0x7fd   :  { %v8946_v57 = vpop.f32.mrf.mxu0 }
 0x7fe   :  { %v17236_v4 = vadd.f32 %v9234_v1, %v19621_v30  ;;  %v9244_v49 = vpop.f32.mrf.mxu1 }
 0x7ff   :  { %v8947_v19 = vpop.f32.mrf.mxu0 }
 0x800   :  { %19622 = vst [vmem:[#allocation26_spill] sm:$0xff] %v17236_v4  ;;  %v9237_v3 = vadd.f32 %v11187_v37, %v8947_v19  ;;  %v9391_v10 = vadd.f32 %v9390_v48, %v17236_v4  ;;  %v19625_v37 = vld [vmem:[#allocation119_spill] sm:$0xff]  ;;  %v11194_v27 = vpop.f32.mrf.mxu1 }
 0x801   :  { %v8949_v0 = vpop.f32.mrf.mxu0 }
 0x802   :  { %v9327_v58 = vadd.f32 %v9237_v3, %v19623_v34 }
 0x803   :  { %v8952_v47 = vpop.f32.mrf.mxu0 }
 0x804   :  { %v9242_v23 = vadd.f32 %v9241_v59, %v8952_v47  ;;  %v9392_v18 = vadd.f32 %v9391_v10, %v9327_v58  ;;  %v9257_v59 = vpop.f32.mrf.mxu1 }
 0x805   :  { %v8954_v63 = vpop.f32.mrf.mxu0 }
 0x806   :  { %v9328_v57 = vadd.f32 %v9242_v23, %v19624_v31  ;;  %v19627_v23 = vld [vmem:[#allocation97_spill] sm:$0xff] }
 0x807   :  { %v8955_v5 = vpop.f32.mrf.mxu0 }
 0x808   :  { %v9393_v62 = vadd.f32 %v9392_v18, %v9328_v57  ;;  %v9245_v1 = vadd.f32 %v9244_v49, %v8955_v5  ;;  %v11195_v18 = vpop.f32.mrf.mxu1 }
 0x809   :  { %v8957_v30 = vpop.f32.mrf.mxu0 }
 0x80a   :  { %v9329_v19 = vadd.f32 %v9245_v1, %v19625_v37  ;;  %v19628_v1 = vld [vmem:[#allocation35_spill] sm:$0xff]  ;;  %v9260_v44 = vpop.f32.mrf.mxu1 }
 0x80b   :  { %v8960_v0 = vpop.f32.mrf.mxu0 }
 0x80c   :  { %v9394_v56 = vadd.f32 %v9393_v62, %v9329_v19  ;;  %v9250_v3 = vadd.f32 %v11190_v29, %v8960_v0 }
 0x80d   :  { %v8962_v34 = vpop.f32.mrf.mxu0 }
 0x80e   :  { %v9330_v14 = vadd.f32 %v9250_v3, %v19626_v46  ;;  %v19629_v46 = vld [vmem:[#allocation116_spill] sm:$0xff] }
 0x80f   :  { %v8963_v48 = vpop.f32.mrf.mxu0 }
 0x810   :  { %v9395_v47 = vadd.f32 %v9394_v56, %v9330_v14  ;;  %v9253_v10 = vadd.f32 %v11191_v60, %v8963_v48 }
 0x811   :  { %v8965_v63 = vpop.f32.mrf.mxu0 }
 0x812   :  { %v9331_v31 = vadd.f32 %v9253_v10, %v19627_v23  ;;  %v19630_v63 = vld [vmem:[#allocation112_spill] sm:$0xff] }
 0x813   :  { %v8968_v4 = vpop.f32.mrf.mxu0 }
 0x814   :  { %v9396_v49 = vadd.f32 %v9395_v47, %v9331_v31  ;;  %v9258_v5 = vadd.f32 %v9257_v59, %v8968_v4  ;;  %v19631_v59 = vld [vmem:[#allocation94_spill] sm:$0xff] }
 0x815   :  { %v8970_v30 = vpop.f32.mrf.mxu0 }
 0x816   :  { %v9332_v37 = vadd.f32 %v9258_v5, %v19628_v1 }
 0x817   :  { %v8971_v62 = vpop.f32.mrf.mxu0 }
 0x818   :  { %v9397_v29 = vadd.f32 %v9396_v49, %v9332_v37  ;;  %v9261_v0 = vadd.f32 %v9260_v44, %v8971_v62 }
 0x819   :  { %v8973_v34 = vpop.f32.mrf.mxu0 }
 0x81a   :  { %v9333_v3 = vadd.f32 %v9261_v0, %v19629_v46 }
 0x81b   :  { %v8976_v12 = vpop.f32.mrf.mxu0 }
 0x81c   :  { %v9398_v56 = vadd.f32 %v9397_v29, %v9333_v3  ;;  %v9266_v60 = vadd.f32 %v11194_v27, %v8976_v12 }
 0x81d   :  { %v8978_v48 = vpop.f32.mrf.mxu0 }
 0x81e   :  { %v9334_v10 = vadd.f32 %v9266_v60, %v19630_v63 }
 0x81f   :  { %v8979_v23 = vpop.f32.mrf.mxu0 }
 0x820   :  { %v9399_v8 = vadd.f32 %v9398_v56, %v9334_v10  ;;  %v9269_v47 = vadd.f32 %v11195_v18, %v8979_v23 }
 0x821   :  { %v8981_v4 = vpop.f32.mrf.mxu0 }
 0x822   :  { %v9335_v30 = vadd.f32 %v9269_v47, %v19631_v59 }
 0x824   :  { %v9400_v5 = vadd.f32 %v9399_v8, %v9335_v30 }
 0x826   :  { %v9401_v1 = vrot.slane %v9400_v5, 4 }
 0x828   :  { %v9402_v11 = vadd.f32 %v9401_v1, %v9400_v5 }
 0x82a   :  { %v9403_v49 = vrot.slane %v9402_v11, 2 }
 0x82c   :  { %v9404_v44 = vadd.f32 %v9403_v49, %v9402_v11 }
 0x82e   :  { %v9405_v62 = vrot.slane %v9404_v44, 1 }
 0x830   :  { %v9406_v34 = vadd.f32 %v9405_v62, %v9404_v44 }
 0x832   :  { %v17249_v0 = vmul.f32 0.001953125, %v9406_v34 }
 0x834   :  { %v17252_v12 = vsub.f32 %v9327_v58, %v17249_v0  ;;  %v17255_v27 = vsub.f32 %v9328_v57, %v17249_v0  ;;  %v17258_v18 = vsub.f32 %v9329_v19, %v17249_v0  ;;  %v17261_v29 = vsub.f32 %v9330_v14, %v17249_v0 }
 0x835   :  { %v17264_v8 = vsub.f32 %v9331_v31, %v17249_v0  ;;  %v17267_v11 = vsub.f32 %v9332_v37, %v17249_v0  ;;  %v17270_v46 = vsub.f32 %v9333_v3, %v17249_v0  ;;  %v17273_v58 = vsub.f32 %v9334_v10, %v17249_v0 }
 0x836   :  { %19632 = vst [vmem:[#allocation134_spill] sm:$0xff] %v17258_v18  ;;  %19633 = vst [vmem:[#allocation96_spill] sm:$0xff] %v17261_v29  ;;  %v17276_v57 = vsub.f32 %v9335_v30, %v17249_v0  ;;  %v17280_v19 = vsub.f32 %v17007_v13, %v17249_v0  ;;  %v17284_v14 = vsub.f32 %v17010_v61, %v17249_v0 }
 0x837   :  { %19634 = vst [vmem:[#allocation139_spill] sm:$0xff] %v17264_v8  ;;  %19635 = vst [vmem:[#allocation46_spill] sm:$0xff] %v17267_v11  ;;  %v17288_v31 = vsub.f32 %v17015_v55, %v17249_v0  ;;  %v17296_v56 = vsub.f32 %v17018_v32, %v17249_v0  ;;  %v17300_v13 = vsub.f32 %v17023_v25, %v17249_v0 }
 0x838   :  { %19636 = vst [vmem:[#allocation102_spill] sm:$0xff] %v17270_v46  ;;  %19637 = vst [vmem:[#allocation104_spill] sm:$0xff] %v17273_v58  ;;  %v9472_v37 = vmul.f32 %v17280_v19, %v17280_v19  ;;  %v9473_v3 = vmul.f32 %v17284_v14, %v17284_v14  ;;  %v17306_v55 = vsub.f32 %v17026_v9, %v17249_v0 }
 0x839   :  { %v9474_v61 = vmul.f32 %v17288_v31, %v17288_v31  ;;  %v9475_v48 = vmul.f32 %v17296_v56, %v17296_v56  ;;  %v17312_v32 = vsub.f32 %v17033_v17, %v17249_v0  ;;  %v9476_v25 = vmul.f32 %v17300_v13, %v17300_v13 }
 0x83a   :  { %v9536_v60 = vadd.f32 %v9473_v3, %v9472_v37  ;;  %v17318_v23 = vsub.f32 %v17036_v53, %v17249_v0  ;;  %v9477_v9 = vmul.f32 %v17306_v55, %v17306_v55  ;;  %v17324_v4 = vsub.f32 %v17041_v22, %v17249_v0 }
 0x83b   :  { %v9478_v17 = vmul.f32 %v17312_v32, %v17312_v32  ;;  %v17330_v30 = vsub.f32 %v17044_v36, %v17249_v0  ;;  %v17336_v1 = vsub.f32 %v17049_v15, %v17249_v0  ;;  %v17342_v44 = vsub.f32 %v17052_v42, %v17249_v0 }
 0x83c   :  { %v9537_v63 = vadd.f32 %v9536_v60, %v9474_v61  ;;  %v9479_v53 = vmul.f32 %v17318_v23, %v17318_v23  ;;  %v9480_v22 = vmul.f32 %v17324_v4, %v17324_v4  ;;  %v17348_v34 = vsub.f32 %v17056_v26, %v17249_v0 }
 0x83d   :  { %v9481_v36 = vmul.f32 %v17330_v30, %v17330_v30  ;;  %v9482_v15 = vmul.f32 %v17336_v1, %v17336_v1  ;;  %v17354_v3 = vsub.f32 %v17059_v43, %v17249_v0  ;;  %v9483_v42 = vmul.f32 %v17342_v44, %v17342_v44 }
 0x83e   :  { %v9538_v10 = vadd.f32 %v9537_v63, %v9475_v48  ;;  %v17360_v60 = vsub.f32 %v17063_v52, %v17249_v0  ;;  %v9484_v26 = vmul.f32 %v17348_v34, %v17348_v34  ;;  %v17366_v63 = vsub.f32 %v17066_v50, %v17249_v0 }
 0x83f   :  { %v9485_v43 = vmul.f32 %v17354_v3, %v17354_v3 }
 0x840   :  { %v9539_v47 = vadd.f32 %v9538_v10, %v9476_v25  ;;  %v17372_v10 = vsub.f32 %v17069_v38, %v17249_v0  ;;  %v9486_v52 = vmul.f32 %v17360_v60, %v17360_v60  ;;  %v9487_v50 = vmul.f32 %v17366_v63, %v17366_v63 }
 0x842   :  { %v9540_v59 = vadd.f32 %v9539_v47, %v9477_v9  ;;  %v17378_v47 = vsub.f32 %v17072_v40, %v17249_v0  ;;  %v9488_v38 = vmul.f32 %v17372_v10, %v17372_v10 }
 0x844   :  { %v9541_v5 = vadd.f32 %v9540_v59, %v9478_v17  ;;  %v17384_v59 = vsub.f32 %v17075_v51, %v17249_v0  ;;  %v9489_v40 = vmul.f32 %v17378_v47, %v17378_v47 }
 0x846   :  { %v9542_v49 = vadd.f32 %v9541_v5, %v9479_v53  ;;  %v17390_v5 = vsub.f32 %v17078_v2, %v17249_v0  ;;  %v9490_v51 = vmul.f32 %v17384_v59, %v17384_v59 }
 0x848   :  { %v9543_v62 = vadd.f32 %v9542_v49, %v9480_v22  ;;  %v17396_v49 = vsub.f32 %v17081_v33, %v17249_v0  ;;  %v9491_v2 = vmul.f32 %v17390_v5, %v17390_v5 }
 0x84a   :  { %v9544_v37 = vadd.f32 %v9543_v62, %v9481_v36  ;;  %v17402_v62 = vsub.f32 %v17084_v6, %v17249_v0  ;;  %v9492_v33 = vmul.f32 %v17396_v49, %v17396_v49 }
 0x84c   :  { %v9545_v61 = vadd.f32 %v9544_v37, %v9482_v15  ;;  %v17408_v37 = vsub.f32 %v17087_v41, %v17249_v0  ;;  %v9493_v6 = vmul.f32 %v17402_v62, %v17402_v62 }
 0x84e   :  { %v9546_v48 = vadd.f32 %v9545_v61, %v9483_v42  ;;  %v19638_v61 = vld [vmem:[#allocation124_spill] sm:$0xff]  ;;  %v9494_v41 = vmul.f32 %v17408_v37, %v17408_v37 }
 0x850   :  { %v9547_v25 = vadd.f32 %v9546_v48, %v9484_v26  ;;  %v17414_v26 = vsub.f32 %v19638_v61, %v17249_v0  ;;  %v17456_v61 = vsub.f32 %v17115_v45, %v17249_v0 }
 0x852   :  { %v9548_v9 = vadd.f32 %v9547_v25, %v9485_v43  ;;  %v17420_v43 = vsub.f32 %v17093_v21, %v17249_v0  ;;  %v9502_v45 = vmul.f32 %v17456_v61, %v17456_v61 }
 0x854   :  { %v9549_v17 = vadd.f32 %v9548_v9, %v9486_v52  ;;  %v19639_v52 = vld [vmem:[#allocation23_spill] sm:$0xff]  ;;  %v9496_v21 = vmul.f32 %v17420_v43, %v17420_v43 }
 0x855   :  { %v17426_v9 = vsub.f32 %v19639_v52, %v17249_v0 }
 0x856   :  { %v9550_v53 = vadd.f32 %v9549_v17, %v9487_v50  ;;  %v9495_v50 = vmul.f32 %v17414_v26, %v17414_v26 }
 0x858   :  { %v9551_v22 = vadd.f32 %v9550_v53, %v9488_v38  ;;  %v17432_v38 = vsub.f32 %v17099_v16, %v17249_v0 }
 0x85a   :  { %v9552_v36 = vadd.f32 %v9551_v22, %v9489_v40  ;;  %v17438_v40 = vsub.f32 %v17102_v20, %v17249_v0  ;;  %v9497_v22 = vmul.f32 %v17426_v9, %v17426_v9  ;;  %v9498_v16 = vmul.f32 %v17432_v38, %v17432_v38 }
 0x85c   :  { %v9553_v15 = vadd.f32 %v9552_v36, %v9490_v51  ;;  %v17444_v36 = vsub.f32 %v17105_v28, %v17249_v0  ;;  %v9499_v20 = vmul.f32 %v17438_v40, %v17438_v40 }
 0x85e   :  { %v9554_v42 = vadd.f32 %v9553_v15, %v9491_v2  ;;  %v19640_v15 = vld [vmem:[#allocation50_spill] sm:$0xff]  ;;  %v9500_v28 = vmul.f32 %v17444_v36, %v17444_v36 }
 0x860   :  { %v9555_v48 = vadd.f32 %v9554_v42, %v9492_v33  ;;  %v17450_v33 = vsub.f32 %v19640_v15, %v17249_v0 }
 0x862   :  { %v9556_v25 = vadd.f32 %v9555_v48, %v9493_v6  ;;  %v19641_v48 = vld [vmem:[#allocation128_spill] sm:$0xff] }
 0x864   :  { %v9557_v17 = vadd.f32 %v9556_v25, %v9494_v41  ;;  %v17462_v41 = vsub.f32 %v19641_v48, %v17249_v0  ;;  %v9501_v25 = vmul.f32 %v17450_v33, %v17450_v33  ;;  %v19647_v48 = vld [vmem:[#allocation41_spill] sm:$0xff] }
 0x866   :  { %v9558_v53 = vadd.f32 %v9557_v17, %v9495_v50  ;;  %v17468_v50 = vsub.f32 %v17125_v7, %v17249_v0 }
 0x868   :  { %v9559_v51 = vadd.f32 %v9558_v53, %v9496_v21  ;;  %v19642_v21 = vld [vmem:[#allocation121_spill] sm:$0xff]  ;;  %v9504_v7 = vmul.f32 %v17468_v50, %v17468_v50 }
 0x869   :  { %v17474_v53 = vsub.f32 %v19642_v21, %v17249_v0 }
 0x86a   :  { %v9560_v2 = vadd.f32 %v9559_v51, %v9497_v22  ;;  %v9503_v22 = vmul.f32 %v17462_v41, %v17462_v41 }
 0x86c   :  { %v9561_v42 = vadd.f32 %v9560_v2, %v9498_v16  ;;  %v19643_v16 = vld [vmem:[#allocation34_spill] sm:$0xff] }
 0x86d   :  { %v17480_v2 = vsub.f32 %v19643_v16, %v17249_v0  ;;  %v19650_v16 = vld [vmem:[#allocation125_spill] sm:$0xff] }
 0x86e   :  { %v9562_v6 = vadd.f32 %v9561_v42, %v9499_v20  ;;  %v19645_v20 = vld [vmem:[#allocation15_spill] sm:$0xff] }
 0x86f   :  { %19644 = vst [vmem:[#allocation107_spill] sm:$0xff] %v17480_v2  ;;  %v17486_v42 = vsub.f32 %v19645_v20, %v17249_v0  ;;  %v17504_v20 = vsub.f32 %v19650_v16, %v17249_v0  ;;  %v19653_v16 = vld [vmem:[#allocation99_spill] sm:$0xff] }
 0x870   :  { %v9563_v52 = vadd.f32 %v9562_v6, %v9500_v28  ;;  %v9505_v28 = vmul.f32 %v17474_v53, %v17474_v53 }
 0x871   :  { %19646 = vst [vmem:[#allocation30_spill] sm:$0xff] %v17486_v42 }
 0x872   :  { %v9564_v17 = vadd.f32 %v9563_v52, %v9501_v25  ;;  %v17492_v25 = vsub.f32 %v19647_v48, %v17249_v0  ;;  %v9506_v52 = vmul.f32 %v17480_v2, %v17480_v2  ;;  %v19651_v48 = vld [vmem:[#allocation76_spill] sm:$0xff] }
 0x873   :  { %v17510_v2 = vsub.f32 %v19651_v48, %v17249_v0  ;;  %v17528_v48 = vsub.f32 %v17175_v24, %v17249_v0 }
 0x874   :  { %v9565_v51 = vadd.f32 %v9564_v17, %v9502_v45  ;;  %19648 = vst [vmem:[#allocation142_spill] sm:$0xff] %v17492_v25  ;;  %v19649_v17 = vld [vmem:[#allocation59_spill] sm:$0xff] }
 0x875   :  { %v17498_v21 = vsub.f32 %v19649_v17, %v17249_v0  ;;  %v19652_v17 = vld [vmem:[#allocation29_spill] sm:$0xff]  ;;  %19655 = vst [vmem:[#allocation138_spill] sm:$0xff] %v17528_v48  ;;  %v9514_v24 = vmul.f32 %v17528_v48, %v17528_v48 }
 0x876   :  { %v9566_v15 = vadd.f32 %v9565_v51, %v9503_v22  ;;  %v9507_v22 = vmul.f32 %v17486_v42, %v17486_v42  ;;  %v17516_v42 = vsub.f32 %v19652_v17, %v17249_v0  ;;  %v17534_v17 = vsub.f32 %v17180_v35, %v17249_v0 }
 0x878   :  { %v9567_v6 = vadd.f32 %v9566_v15, %v9504_v7  ;;  %v9508_v7 = vmul.f32 %v17492_v25, %v17492_v25  ;;  %v17522_v25 = vsub.f32 %v19653_v16, %v17249_v0  ;;  %19656 = vst [vmem:[#allocation54_spill] sm:$0xff] %v17534_v17  ;;  %v17540_v16 = vsub.f32 %v17185_v39, %v17249_v0 }
 0x879   :  { %v9515_v35 = vmul.f32 %v17534_v17, %v17534_v17 }
 0x87a   :  { %v9568_v45 = vadd.f32 %v9567_v6, %v9505_v28  ;;  %v9509_v28 = vmul.f32 %v17498_v21, %v17498_v21  ;;  %19654 = vst [vmem:[#allocation87_spill] sm:$0xff] %v17522_v25  ;;  %19657 = vst [vmem:[#allocation55_spill] sm:$0xff] %v17540_v16  ;;  %v9516_v39 = vmul.f32 %v17540_v16, %v17540_v16 }
 0x87c   :  { %v9569_v51 = vadd.f32 %v9568_v45, %v9506_v52  ;;  %v9510_v52 = vmul.f32 %v17504_v20, %v17504_v20 }
 0x87e   :  { %v9570_v15 = vadd.f32 %v9569_v51, %v9507_v22  ;;  %v9511_v22 = vmul.f32 %v17510_v2, %v17510_v2 }
 0x880   :  { %v9571_v6 = vadd.f32 %v9570_v15, %v9508_v7  ;;  %v9512_v7 = vmul.f32 %v17516_v42, %v17516_v42 }
 0x882   :  { %v9572_v45 = vadd.f32 %v9571_v6, %v9509_v28  ;;  %v9513_v28 = vmul.f32 %v17522_v25, %v17522_v25 }
 0x884   :  { %v9573_v51 = vadd.f32 %v9572_v45, %v9510_v52  ;;  %v17546_v45 = vsub.f32 %v17190_v54, %v17249_v0 }
 0x886   :  { %v9574_v15 = vadd.f32 %v9573_v51, %v9511_v22  ;;  %19658 = vst [vmem:[#allocation25_spill] sm:$0xff] %v17546_v45  ;;  %v19659_v51 = vld [vmem:[#allocation52_spill] sm:$0xff]  ;;  %v9517_v54 = vmul.f32 %v17546_v45, %v17546_v45 }
 0x887   :  { %v17552_v25 = vsub.f32 %v19659_v51, %v17249_v0  ;;  %v19665_v51 = vld [vmem:[#allocation37_spill] sm:$0xff] }
 0x888   :  { %v9575_v6 = vadd.f32 %v9574_v15, %v9512_v7  ;;  %v19661_v15 = vld [vmem:[#allocation100_spill] sm:$0xff]  ;;  %v17570_v16 = vsub.f32 %v19665_v51, %v17249_v0  ;;  %v19670_v51 = vld [vmem:[#allocation53_spill] sm:$0xff] }
 0x889   :  { %19660 = vst [vmem:[#allocation38_spill] sm:$0xff] %v17552_v25  ;;  %v17558_v48 = vsub.f32 %v19661_v15, %v17249_v0  ;;  %v19667_v15 = vld [vmem:[#allocation71_spill] sm:$0xff] }
 0x88a   :  { %v9576_v52 = vadd.f32 %v9575_v6, %v9513_v28  ;;  %v19663_v6 = vld [vmem:[#allocation135_spill] sm:$0xff]  ;;  %19666 = vst [vmem:[#allocation98_spill] sm:$0xff] %v17570_v16  ;;  %v17576_v45 = vsub.f32 %v19667_v15, %v17249_v0  ;;  %v19671_v15 = vld [vmem:[#allocation105_spill] sm:$0xff] }
 0x88b   :  { %19662 = vst [vmem:[#allocation101_spill] sm:$0xff] %v17558_v48  ;;  %v17564_v17 = vsub.f32 %v19663_v6, %v17249_v0  ;;  %v19668_v6 = vld [vmem:[#allocation131_spill] sm:$0xff] }
 0x88c   :  { %v9577_v22 = vadd.f32 %v9576_v52, %v9514_v24  ;;  %v9518_v24 = vmul.f32 %v17552_v25, %v17552_v25  ;;  %v17582_v25 = vsub.f32 %v19668_v6, %v17249_v0  ;;  %v19672_v6 = vld [vmem:[#allocation26_spill] sm:$0xff] }
 0x88d   :  { %19664 = vst [vmem:[#allocation140_spill] sm:$0xff] %v17564_v17 }
 0x88e   :  { %v9578_v7 = vadd.f32 %v9577_v22, %v9515_v35  ;;  %v9519_v35 = vmul.f32 %v17558_v48, %v17558_v48  ;;  %19669 = vst [vmem:[#allocation144_spill] sm:$0xff] %v17582_v25  ;;  %v17588_v48 = vsub.f32 %v19670_v51, %v17249_v0 }
 0x890   :  { %v9579_v28 = vadd.f32 %v9578_v7, %v9516_v39  ;;  %v9520_v39 = vmul.f32 %v17564_v17, %v17564_v17  ;;  %v17594_v17 = vsub.f32 %v19671_v15, %v17249_v0 }
 0x892   :  { %v9580_v52 = vadd.f32 %v9579_v28, %v9517_v54  ;;  %v9521_v54 = vmul.f32 %v17570_v16, %v17570_v16  ;;  %v17600_v16 = vsub.f32 %v19672_v6, %v17249_v0  ;;  %v9525_v51 = vmul.f32 %v17594_v17, %v17594_v17 }
 0x893   :  { %v9528_v0 = vmul.f32 %v17255_v27, %v17255_v27  ;;  %v9529_v6 = vmul.f32 %v17258_v18, %v17258_v18 }
 0x894   :  { %v9581_v22 = vadd.f32 %v9580_v52, %v9518_v24  ;;  %v9522_v24 = vmul.f32 %v17576_v45, %v17576_v45 }
 0x896   :  { %v9582_v7 = vadd.f32 %v9581_v22, %v9519_v35  ;;  %v9523_v35 = vmul.f32 %v17582_v25, %v17582_v25  ;;  %v9527_v25 = vmul.f32 %v17252_v12, %v17252_v12 }
 0x898   :  { %v9583_v28 = vadd.f32 %v9582_v7, %v9520_v39  ;;  %v9524_v39 = vmul.f32 %v17588_v48, %v17588_v48 }
 0x89a   :  { %v9584_v52 = vadd.f32 %v9583_v28, %v9521_v54  ;;  %v9526_v28 = vmul.f32 %v17600_v16, %v17600_v16 }
 0x89c   :  { %v9585_v22 = vadd.f32 %v9584_v52, %v9522_v24 }
 0x89e   :  { %v9586_v7 = vadd.f32 %v9585_v22, %v9523_v35  ;;  %v9530_v22 = vmul.f32 %v17261_v29, %v17261_v29 }
 0x8a0   :  { %v9587_v54 = vadd.f32 %v9586_v7, %v9524_v39  ;;  %v9531_v7 = vmul.f32 %v17264_v8, %v17264_v8 }
 0x8a2   :  { %v9588_v15 = vadd.f32 %v9587_v54, %v9525_v51  ;;  %v9532_v54 = vmul.f32 %v17267_v11, %v17267_v11 }
 0x8a4   :  { %v9589_v24 = vadd.f32 %v9588_v15, %v9526_v28  ;;  %v9533_v15 = vmul.f32 %v17270_v46, %v17270_v46 }
 0x8a6   :  { %v9590_v52 = vadd.f32 %v9589_v24, %v9527_v25  ;;  %v9534_v24 = vmul.f32 %v17273_v58, %v17273_v58 }
 0x8a8   :  { %v9591_v35 = vadd.f32 %v9590_v52, %v9528_v0  ;;  %v9535_v52 = vmul.f32 %v17276_v57, %v17276_v57 }
 0x8aa   :  { %v9592_v39 = vadd.f32 %v9591_v35, %v9529_v6 }
 0x8ac   :  { %v9593_v51 = vadd.f32 %v9592_v39, %v9530_v22 }
 0x8ae   :  { %v9594_v28 = vadd.f32 %v9593_v51, %v9531_v7 }
 0x8b0   :  { %v9595_v25 = vadd.f32 %v9594_v28, %v9532_v54  ;;  %v9336_v54 = vld [vmem:[%s18214_s3 + $0x2] sm:$0x1] }
 0x8b2   :  { %v9596_v0 = vadd.f32 %v9595_v25, %v9533_v15  ;;  %v19673_v25 = vld [vmem:[#allocation106_spill] sm:$0xff] }
 0x8b3   :  { %v19674_v58 = vsub.s32 0, %v19673_v25  ;;  %v19681_v25 = vld [vmem:[#allocation55_spill] sm:$0xff] }
 0x8b4   :  { %v9597_v6 = vadd.f32 %v9596_v0, %v9534_v24 }
 0x8b6   :  { %v9598_v35 = vadd.f32 %v9597_v6, %v9535_v52  ;;  %v19675_v6 = vld [vmem:[#allocation107_spill] sm:$0xff] }
 0x8b8   :  { %v9599_v29 = vrot.slane %v9598_v35, 4 }
 0x8ba   :  { %v9600_v8 = vadd.f32 %v9599_v29, %v9598_v35  ;;  %v17636_v29 = vld [vmem:[%s18214_s3 + $0x3] ss:$0 sm:$0xff]  ;;  %v19676_v35 = vld [vmem:[#allocation30_spill] sm:$0xff]  ;;  %s11721_s3 = smov [#allocation6]  }
 0x8bb   :  { %s9878_s2 = sshll.u32 %s11721_s3, 4  ;;  %s9879_s2 = int_to_ptr.vmem [resolvable:$true] %s9878_s2 }
 0x8bc   :  { %v9601_v22 = vrot.slane %v9600_v8, 2  ;;  %s11693_s22 = scalar_lea.vmem %s9879_s2, 8192  ;;  %p11698_p6 = scmp.lt.s32.totalorder %s9879_s2, %s9879_s2 }
 0x8bd   :  { %p11694_p5 = scmp.ne.s32.totalorder %s9879_s2, %s11693_s22  ;;  %p11699_p7 = scmp.lt.s32.totalorder %s11693_s22, %s11693_s22 }
 0x8be   :  { %v9602_v39 = vadd.f32 %v9601_v22, %v9600_v8  ;;  %v19677_v22 = vld [vmem:[#allocation142_spill] sm:$0xff] }
 0x8bf   :  { %p11700_p8 = por %p11699_p7, %p11698_p6 }
 0x8c0   :  { %v9603_v18 = vrot.slane %v9602_v39, 1 }
 0x8c1   :  { %p11701_p9 = pnand %p11700_p8, %p11694_p5 }
 0x8c2   :  { %v9604_v11 = vadd.f32 %v9603_v18, %v9602_v39 }
 0x8c4   :  { %v9605_v7 = vmul.f32 0.001953125, %v9604_v11 }
 0x8c6   :  { %v9606_v51 = vadd.f32 1e-05, %v9605_v7 }
 0x8c8   :  { %11565 = vrsqrt.f32 %v9606_v51  ;;  %v19678_v51 = vld [vmem:[#allocation87_spill] sm:$0xff] }
 0x8d5   :  { %v11566_v28 = vpop.eup %11565 }
 0x8d6   :  { %v9608_v15 = vmul.f32 %v11566_v28, %v9336_v54  ;;  %v19679_v28 = vld [vmem:[#allocation138_spill] sm:$0xff] }
 0x8d8   :  { %v17631_v46 = vrot.slane %v9608_v15, %v19674_v58  ;;  %v19680_v15 = vld [vmem:[#allocation54_spill] sm:$0xff] }
 0x8da   :  { %v9676_v18 = vmul.f32 %v17631_v46, %v17276_v57  ;;  %v17642_v8 = vmul.f32 %v17631_v46, %v17280_v19  ;;  %v17646_v11 = vmul.f32 %v17631_v46, %v17284_v14  ;;  %v17650_v58 = vmul.f32 %v17631_v46, %v17288_v31 }
 0x8db   :  { %v17654_v24 = vmul.f32 %v17631_v46, %v17296_v56  ;;  %v17658_v0 = vmul.f32 %v17631_v46, %v17300_v13  ;;  %v17662_v57 = vmul.f32 %v17631_v46, %v17306_v55  ;;  %v17666_v19 = vmul.f32 %v17631_v46, %v17312_v32 }
 0x8dc   :  { %v9744_v14 = vadd.f32 %v17636_v29, %v9676_v18  ;;  %v17671_v31 = vmul.f32 %v17631_v46, %v17318_v23  ;;  %v17675_v56 = vmul.f32 %v17631_v46, %v17324_v4  ;;  %v17679_v13 = vmul.f32 %v17631_v46, %v17330_v30  ;;  %v19682_v18 = vld [vmem:[#allocation25_spill] sm:$0xff] }
 0x8dd   :  { %v17683_v55 = vmul.f32 %v17631_v46, %v17336_v1  ;;  %v17687_v32 = vmul.f32 %v17631_v46, %v17342_v44  ;;  %v17691_v23 = vmul.f32 %v17631_v46, %v17348_v34  ;;  %v17695_v4 = vmul.f32 %v17631_v46, %v17354_v3 }
 0x8de   :  { %v9808_v52 = vmax.f32 %v9744_v14, 0.0  ;;  %v17699_v30 = vmul.f32 %v17631_v46, %v17360_v60  ;;  %v17703_v1 = vmul.f32 %v17631_v46, %v17366_v63  ;;  %v17707_v44 = vmul.f32 %v17631_v46, %v17372_v10  ;;  %v19683_v14 = vld [vmem:[#allocation38_spill] sm:$0xff] }
 0x8df   :  { %v17711_v34 = vmul.f32 %v17631_v46, %v17378_v47  ;;  %v17715_v3 = vmul.f32 %v17631_v46, %v17384_v59  ;;  %v17719_v60 = vmul.f32 %v17631_v46, %v17390_v5  ;;  %v17723_v63 = vmul.f32 %v17631_v46, %v17396_v49 }
 0x8e0   :  { %9872 = vst [vmem:[#allocation6 + $0x1f8] sm:$0xff] %v9808_v52  ;;  %v17727_v10 = vmul.f32 %v17631_v46, %v17402_v62  ;;  %v17731_v47 = vmul.f32 %v17631_v46, %v17408_v37  ;;  %v17735_v59 = vmul.f32 %v17631_v46, %v17414_v26  ;;  %v17739_v5 = vmul.f32 %v17631_v46, %v17420_v43 }
 0x8e1   :  { %v17743_v49 = vmul.f32 %v17631_v46, %v17426_v9  ;;  %v17747_v62 = vmul.f32 %v17631_v46, %v17432_v38  ;;  %v17751_v37 = vmul.f32 %v17631_v46, %v17438_v40  ;;  %v17755_v26 = vmul.f32 %v17631_v46, %v17444_v36 }
 0x8e2   :  { %v17759_v43 = vmul.f32 %v17631_v46, %v17450_v33  ;;  %v17763_v9 = vmul.f32 %v17631_v46, %v17456_v61  ;;  %v17767_v38 = vmul.f32 %v17631_v46, %v17462_v41  ;;  %v17771_v40 = vmul.f32 %v17631_v46, %v17468_v50 }
 0x8e3   :  { %v17775_v36 = vmul.f32 %v17631_v46, %v17474_v53  ;;  %v17779_v33 = vmul.f32 %v17631_v46, %v19675_v6  ;;  %v17783_v61 = vmul.f32 %v17631_v46, %v19676_v35  ;;  %v17787_v41 = vmul.f32 %v17631_v46, %v19677_v22  ;;  %v19684_v6 = vld [vmem:[#allocation101_spill] sm:$0xff]  ;;  %v19685_v22 = vld [vmem:[#allocation140_spill] sm:$0xff] }
 0x8e4   :  { %v17791_v50 = vmul.f32 %v17631_v46, %v17498_v21  ;;  %v17795_v53 = vmul.f32 %v17631_v46, %v17504_v20  ;;  %v17799_v39 = vmul.f32 %v17631_v46, %v17510_v2  ;;  %v17803_v7 = vmul.f32 %v17631_v46, %v17516_v42 }
 0x8e5   :  { %v17807_v54 = vmul.f32 %v17631_v46, %v19678_v51  ;;  %v17811_v21 = vmul.f32 %v17631_v46, %v19679_v28  ;;  %v17815_v20 = vmul.f32 %v17631_v46, %v19680_v15  ;;  %v17819_v2 = vmul.f32 %v17631_v46, %v19681_v25  ;;  %v19686_v28 = vld [vmem:[#allocation98_spill] sm:$0xff] }
 0x8e6   :  { %v17823_v42 = vmul.f32 %v17631_v46, %v19682_v18  ;;  %v17827_v52 = vmul.f32 %v17631_v46, %v19683_v14  ;;  %v17831_v35 = vmul.f32 %v17631_v46, %v19684_v6  ;;  %v17835_v51 = vmul.f32 %v17631_v46, %v19685_v22  ;;  %v19687_v18 = vld [vmem:[#allocation144_spill] sm:$0xff] }
 0x8e7   :  { %v17839_v15 = vmul.f32 %v17631_v46, %v19686_v28  ;;  %v17843_v25 = vmul.f32 %v17631_v46, %v17576_v45  ;;  %v17847_v14 = vmul.f32 %v17631_v46, %v19687_v18  ;;  %v17851_v6 = vmul.f32 %v17631_v46, %v17588_v48 }
 0x8e8   :  { %v17855_v22 = vmul.f32 %v17631_v46, %v17594_v17  ;;  %v17859_v28 = vmul.f32 %v17631_v46, %v17600_v16  ;;  %v17863_v45 = vmul.f32 %v17631_v46, %v17252_v12  ;;  %v17867_v18 = vmul.f32 %v17631_v46, %v17255_v27 }
 0x8e9   :  { %19688 = vst [vmem:[#allocation28_spill] sm:$0xff] %v17847_v14  ;;  %19689 = vst [vmem:[#allocation12_spill] sm:$0xff] %v17851_v6  ;;  %v19694_v14 = vld [vmem:[#allocation134_spill] sm:$0xff]  ;;  %v19695_v6 = vld [vmem:[#allocation96_spill] sm:$0xff] }
 0x8ea   :  { %19690 = vst [vmem:[#allocation40_spill] sm:$0xff] %v17855_v22  ;;  %19691 = vst [vmem:[#allocation43_spill] sm:$0xff] %v17859_v28  ;;  %v17871_v48 = vmul.f32 %v17631_v46, %v19694_v14  ;;  %v17875_v17 = vmul.f32 %v17631_v46, %v19695_v6  ;;  %v19696_v22 = vld [vmem:[#allocation139_spill] sm:$0xff]  ;;  %v19697_v28 = vld [vmem:[#allocation46_spill] sm:$0xff]  ;;  %v17895_v6 = vadd.f32 %v17636_v29, %v17642_v8 }
 0x8eb   :  { %19692 = vst [vmem:[#allocation88_spill] sm:$0xff] %v17863_v45  ;;  %19693 = vst [vmem:[#allocation65_spill] sm:$0xff] %v17867_v18  ;;  %v17879_v16 = vmul.f32 %v17631_v46, %v19696_v22  ;;  %v17883_v12 = vmul.f32 %v17631_v46, %v19697_v28  ;;  %v19698_v45 = vld [vmem:[#allocation102_spill] sm:$0xff]  ;;  %v19699_v18 = vld [vmem:[#allocation104_spill] sm:$0xff]  ;;  %v17899_v22 = vadd.f32 %v17636_v29, %v17646_v11 }
 0x8ec   :  { %v17887_v27 = vmul.f32 %v17631_v46, %v19698_v45  ;;  %v17891_v14 = vmul.f32 %v17631_v46, %v19699_v18  ;;  %v17903_v28 = vadd.f32 %v17636_v29, %v17650_v58  ;;  %v17907_v45 = vadd.f32 %v17636_v29, %v17654_v24 }
 0x8ed   :  { %v17911_v46 = vadd.f32 %v17636_v29, %v17658_v0  ;;  %v17915_v8 = vadd.f32 %v17636_v29, %v17662_v57  ;;  %v17919_v11 = vadd.f32 %v17636_v29, %v17666_v19  ;;  %v17923_v58 = vadd.f32 %v17636_v29, %v17671_v31 }
 0x8ee   :  { %v17927_v24 = vadd.f32 %v17636_v29, %v17675_v56  ;;  %v17931_v0 = vadd.f32 %v17636_v29, %v17679_v13  ;;  %v17935_v57 = vadd.f32 %v17636_v29, %v17683_v55  ;;  %v17939_v19 = vadd.f32 %v17636_v29, %v17687_v32 }
 0x8ef   :  { %v17943_v31 = vadd.f32 %v17636_v29, %v17691_v23  ;;  %v17947_v56 = vadd.f32 %v17636_v29, %v17695_v4  ;;  %v17951_v13 = vadd.f32 %v17636_v29, %v17699_v30  ;;  %v17955_v55 = vadd.f32 %v17636_v29, %v17703_v1 }
 0x8f0   :  { %v17959_v32 = vadd.f32 %v17636_v29, %v17707_v44  ;;  %v17963_v23 = vadd.f32 %v17636_v29, %v17711_v34  ;;  %v17967_v4 = vadd.f32 %v17636_v29, %v17715_v3  ;;  %v17971_v30 = vadd.f32 %v17636_v29, %v17719_v60  ;;  %v19705_v18 = vld [vmem:[#allocation28_spill] sm:$0xff] }
 0x8f1   :  { %v17975_v1 = vadd.f32 %v17636_v29, %v17723_v63  ;;  %v17979_v44 = vadd.f32 %v17636_v29, %v17727_v10  ;;  %v17983_v34 = vadd.f32 %v17636_v29, %v17731_v47  ;;  %v17987_v3 = vadd.f32 %v17636_v29, %v17735_v59 }
 0x8f2   :  { %v17991_v60 = vadd.f32 %v17636_v29, %v17739_v5  ;;  %v17995_v63 = vadd.f32 %v17636_v29, %v17743_v49  ;;  %v17999_v10 = vadd.f32 %v17636_v29, %v17747_v62  ;;  %v18003_v47 = vadd.f32 %v17636_v29, %v17751_v37 }
 0x8f3   :  { %v18007_v59 = vadd.f32 %v17636_v29, %v17755_v26  ;;  %v18011_v5 = vadd.f32 %v17636_v29, %v17759_v43  ;;  %v18015_v49 = vadd.f32 %v17636_v29, %v17763_v9  ;;  %v18019_v62 = vadd.f32 %v17636_v29, %v17767_v38 }
 0x8f4   :  { %v18023_v37 = vadd.f32 %v17636_v29, %v17771_v40  ;;  %v18027_v26 = vadd.f32 %v17636_v29, %v17775_v36  ;;  %v18031_v43 = vadd.f32 %v17636_v29, %v17779_v33  ;;  %v18035_v9 = vadd.f32 %v17636_v29, %v17783_v61 }
 0x8f5   :  { %v18039_v38 = vadd.f32 %v17636_v29, %v17787_v41  ;;  %v18043_v40 = vadd.f32 %v17636_v29, %v17791_v50  ;;  %v18047_v36 = vadd.f32 %v17636_v29, %v17795_v53  ;;  %v18051_v33 = vadd.f32 %v17636_v29, %v17799_v39 }
 0x8f6   :  { %v18055_v61 = vadd.f32 %v17636_v29, %v17803_v7  ;;  %v18059_v41 = vadd.f32 %v17636_v29, %v17807_v54  ;;  %v18063_v50 = vadd.f32 %v17636_v29, %v17811_v21  ;;  %v18067_v53 = vadd.f32 %v17636_v29, %v17815_v20 }
 0x8f7   :  { %v18071_v39 = vadd.f32 %v17636_v29, %v17819_v2  ;;  %v18075_v7 = vadd.f32 %v17636_v29, %v17823_v42  ;;  %v18079_v54 = vadd.f32 %v17636_v29, %v17827_v52  ;;  %v18083_v21 = vadd.f32 %v17636_v29, %v17831_v35 }
 0x8f8   :  { %v18087_v20 = vadd.f32 %v17636_v29, %v17835_v51  ;;  %v18091_v2 = vadd.f32 %v17636_v29, %v17839_v15  ;;  %v18095_v42 = vadd.f32 %v17636_v29, %v17843_v25  ;;  %v18099_v52 = vadd.f32 %v17636_v29, %v19705_v18 }
 0x8f9   :  { %19700 = vst [vmem:[#allocation103_spill] sm:$0xff] %v18079_v54  ;;  %19701 = vst [vmem:[#allocation143_spill] sm:$0xff] %v18083_v21  ;;  %v19706_v54 = vld [vmem:[#allocation12_spill] sm:$0xff] }
 0x8fa   :  { %19702 = vst [vmem:[#allocation33_spill] sm:$0xff] %v18087_v20  ;;  %19703 = vst [vmem:[#allocation90_spill] sm:$0xff] %v18091_v2  ;;  %v18103_v35 = vadd.f32 %v17636_v29, %v19706_v54  ;;  %v19707_v21 = vld [vmem:[#allocation40_spill] sm:$0xff]  ;;  %v19708_v20 = vld [vmem:[#allocation43_spill] sm:$0xff]  ;;  %v18123_v54 = vadd.f32 %v17636_v29, %v17871_v48  ;;  %v18143_v48 = vadd.f32 %v17636_v29, %v17891_v14  ;;  %v9755_v14 = vmax.f32 %v17935_v57, 0.0 }
 0x8fb   :  { %19704 = vst [vmem:[#allocation39_spill] sm:$0xff] %v18095_v42  ;;  %v18107_v51 = vadd.f32 %v17636_v29, %v19707_v21  ;;  %v18111_v15 = vadd.f32 %v17636_v29, %v19708_v20  ;;  %v19709_v2 = vld [vmem:[#allocation88_spill] sm:$0xff]  ;;  %v19710_v42 = vld [vmem:[#allocation65_spill] sm:$0xff]  ;;  %v18127_v21 = vadd.f32 %v17636_v29, %v17875_v17  ;;  %v18131_v20 = vadd.f32 %v17636_v29, %v17879_v16 }
 0x8fc   :  { %v18115_v25 = vadd.f32 %v17636_v29, %v19709_v2  ;;  %v18119_v18 = vadd.f32 %v17636_v29, %v19710_v42  ;;  %19711 = vst [vmem:[#allocation51_spill] sm:$0xff] %v18123_v54  ;;  %v18135_v2 = vadd.f32 %v17636_v29, %v17883_v12  ;;  %v18139_v42 = vadd.f32 %v17636_v29, %v17887_v27 }
 0x8fd   :  { %19712 = vst [vmem:[#allocation113_spill] sm:$0xff] %v18127_v21  ;;  %19713 = vst [vmem:[#allocation82_spill] sm:$0xff] %v18131_v20  ;;  %v9745_v54 = vmax.f32 %v17895_v6, 0.0  ;;  %v9746_v17 = vmax.f32 %v17899_v22, 0.0  ;;  %v9747_v21 = vmax.f32 %v17903_v28, 0.0  ;;  %v9748_v16 = vmax.f32 %v17907_v45, 0.0 }
 0x8fe   :  { %19714 = vst [vmem:[#allocation64_spill] sm:$0xff] %v18135_v2  ;;  %19715 = vst [vmem:[#allocation24_spill] sm:$0xff] %v18139_v42  ;;  %v9749_v20 = vmax.f32 %v17911_v46, 0.0  ;;  %v9750_v12 = vmax.f32 %v17915_v8, 0.0  ;;  %v9751_v2 = vmax.f32 %v17919_v11, 0.0  ;;  %v9752_v27 = vmax.f32 %v17923_v58, 0.0 }
 0x8ff   :  { %v9753_v42 = vmax.f32 %v17927_v24, 0.0  ;;  %v9754_v29 = vmax.f32 %v17931_v0, 0.0  ;;  %9809 = vst [vmem:[#allocation6] sm:$0xff] %v9745_v54  ;;  %9810 = vst [vmem:[#allocation6 + $0x8] sm:$0xff] %v9746_v17  ;;  %v9756_v6 = vmax.f32 %v17939_v19, 0.0  ;;  %v9757_v22 = vmax.f32 %v17943_v31, 0.0 }
 0x900   :  { %9811 = vst [vmem:[#allocation6 + $0x10] sm:$0xff] %v9747_v21  ;;  %v9758_v28 = vmax.f32 %v17947_v56, 0.0  ;;  %v9759_v45 = vmax.f32 %v17951_v13, 0.0  ;;  %9812 = vst [vmem:[#allocation6 + $0x18] sm:$0xff] %v9748_v16  ;;  %v9760_v46 = vmax.f32 %v17955_v55, 0.0  ;;  %v9761_v8 = vmax.f32 %v17959_v32, 0.0 }
 0x901   :  { %9813 = vst [vmem:[#allocation6 + $0x20] sm:$0xff] %v9749_v20  ;;  %9814 = vst [vmem:[#allocation6 + $0x28] sm:$0xff] %v9750_v12  ;;  %v9762_v11 = vmax.f32 %v17963_v23, 0.0  ;;  %v9763_v58 = vmax.f32 %v17967_v4, 0.0  ;;  %v9764_v24 = vmax.f32 %v17971_v30, 0.0  ;;  %v9765_v0 = vmax.f32 %v17975_v1, 0.0 }
 0x902   :  { %9815 = vst [vmem:[#allocation6 + $0x30] sm:$0xff] %v9751_v2  ;;  %9816 = vst [vmem:[#allocation6 + $0x38] sm:$0xff] %v9752_v27  ;;  %v9766_v57 = vmax.f32 %v17979_v44, 0.0  ;;  %v9767_v19 = vmax.f32 %v17983_v34, 0.0  ;;  %v9768_v31 = vmax.f32 %v17987_v3, 0.0  ;;  %v9769_v56 = vmax.f32 %v17991_v60, 0.0 }
 0x903   :  { %9817 = vst [vmem:[#allocation6 + $0x40] sm:$0xff] %v9753_v42  ;;  %9818 = vst [vmem:[#allocation6 + $0x48] sm:$0xff] %v9754_v29  ;;  %v9770_v13 = vmax.f32 %v17995_v63, 0.0  ;;  %v9771_v55 = vmax.f32 %v17999_v10, 0.0  ;;  %v9772_v32 = vmax.f32 %v18003_v47, 0.0  ;;  %v9773_v23 = vmax.f32 %v18007_v59, 0.0 }
 0x904   :  { %9819 = vst [vmem:[#allocation6 + $0x50] sm:$0xff] %v9755_v14  ;;  %9820 = vst [vmem:[#allocation6 + $0x58] sm:$0xff] %v9756_v6  ;;  %v9774_v4 = vmax.f32 %v18011_v5, 0.0  ;;  %v9775_v30 = vmax.f32 %v18015_v49, 0.0  ;;  %v9776_v1 = vmax.f32 %v18019_v62, 0.0  ;;  %v9777_v44 = vmax.f32 %v18023_v37, 0.0 }
 0x905   :  { %9821 = vst [vmem:[#allocation6 + $0x60] sm:$0xff] %v9757_v22  ;;  %9822 = vst [vmem:[#allocation6 + $0x68] sm:$0xff] %v9758_v28  ;;  %v9778_v34 = vmax.f32 %v18027_v26, 0.0  ;;  %v9779_v3 = vmax.f32 %v18031_v43, 0.0  ;;  %v9780_v60 = vmax.f32 %v18035_v9, 0.0  ;;  %v9781_v63 = vmax.f32 %v18039_v38, 0.0 }
 0x906   :  { %9823 = vst [vmem:[#allocation6 + $0x70] sm:$0xff] %v9759_v45  ;;  %9824 = vst [vmem:[#allocation6 + $0x78] sm:$0xff] %v9760_v46  ;;  %v9782_v10 = vmax.f32 %v18043_v40, 0.0  ;;  %v9783_v47 = vmax.f32 %v18047_v36, 0.0  ;;  %v9784_v59 = vmax.f32 %v18051_v33, 0.0  ;;  %v9785_v5 = vmax.f32 %v18055_v61, 0.0 }
 0x907   :  { %9825 = vst [vmem:[#allocation6 + $0x80] sm:$0xff] %v9761_v8  ;;  %9826 = vst [vmem:[#allocation6 + $0x88] sm:$0xff] %v9762_v11  ;;  %v9786_v49 = vmax.f32 %v18059_v41, 0.0  ;;  %v9787_v62 = vmax.f32 %v18063_v50, 0.0  ;;  %v9788_v37 = vmax.f32 %v18067_v53, 0.0  ;;  %v9789_v26 = vmax.f32 %v18071_v39, 0.0 }
 0x908   :  { %9827 = vst [vmem:[#allocation6 + $0x90] sm:$0xff] %v9763_v58  ;;  %9828 = vst [vmem:[#allocation6 + $0x98] sm:$0xff] %v9764_v24  ;;  %v9790_v43 = vmax.f32 %v18075_v7, 0.0  ;;  %v19716_v9 = vld [vmem:[#allocation103_spill] sm:$0xff]  ;;  %v19718_v33 = vld [vmem:[#allocation33_spill] sm:$0xff]  ;;  %v9796_v53 = vmax.f32 %v18099_v52, 0.0 }
 0x909   :  { %9829 = vst [vmem:[#allocation6 + $0xa0] sm:$0xff] %v9765_v0  ;;  %9830 = vst [vmem:[#allocation6 + $0xa8] sm:$0xff] %v9766_v57  ;;  %v9791_v38 = vmax.f32 %v19716_v9, 0.0  ;;  %v19717_v40 = vld [vmem:[#allocation143_spill] sm:$0xff]  ;;  %v9793_v61 = vmax.f32 %v19718_v33, 0.0  ;;  %v19719_v41 = vld [vmem:[#allocation90_spill] sm:$0xff] }
 0x90a   :  { %9831 = vst [vmem:[#allocation6 + $0xb0] sm:$0xff] %v9767_v19  ;;  %9832 = vst [vmem:[#allocation6 + $0xb8] sm:$0xff] %v9768_v31  ;;  %v9792_v36 = vmax.f32 %v19717_v40, 0.0  ;;  %v9794_v50 = vmax.f32 %v19719_v41, 0.0  ;;  %v19720_v54 = vld [vmem:[#allocation39_spill] sm:$0xff]  ;;  %v9797_v39 = vmax.f32 %v18103_v35, 0.0 }
 0x90b   :  { %9833 = vst [vmem:[#allocation6 + $0xc0] sm:$0xff] %v9769_v56  ;;  %9834 = vst [vmem:[#allocation6 + $0xc8] sm:$0xff] %v9770_v13  ;;  %v9795_v21 = vmax.f32 %v19720_v54, 0.0  ;;  %v9798_v7 = vmax.f32 %v18107_v51, 0.0  ;;  %v9799_v20 = vmax.f32 %v18111_v15, 0.0  ;;  %v9800_v2 = vmax.f32 %v18115_v25, 0.0 }
 0x90c   :  { %9835 = vst [vmem:[#allocation6 + $0xd0] sm:$0xff] %v9771_v55  ;;  %9836 = vst [vmem:[#allocation6 + $0xd8] sm:$0xff] %v9772_v32  ;;  %v9801_v42 = vmax.f32 %v18119_v18, 0.0  ;;  %v19721_v17 = vld [vmem:[#allocation51_spill] sm:$0xff]  ;;  %v19722_v12 = vld [vmem:[#allocation113_spill] sm:$0xff]  ;;  %v9807_v6 = vmax.f32 %v18143_v48, 0.0 }
 0x90d   :  { %9837 = vst [vmem:[#allocation6 + $0xe0] sm:$0xff] %v9773_v23  ;;  %9838 = vst [vmem:[#allocation6 + $0xe8] sm:$0xff] %v9774_v4  ;;  %v9802_v16 = vmax.f32 %v19721_v17, 0.0  ;;  %v9803_v27 = vmax.f32 %v19722_v12, 0.0  ;;  %v19723_v52 = vld [vmem:[#allocation82_spill] sm:$0xff]  ;;  %v19724_v51 = vld [vmem:[#allocation64_spill] sm:$0xff] }
 0x90e   :  { %9839 = vst [vmem:[#allocation6 + $0xf0] sm:$0xff] %v9775_v30  ;;  %9840 = vst [vmem:[#allocation6 + $0xf8] sm:$0xff] %v9776_v1  ;;  %v9804_v35 = vmax.f32 %v19723_v52, 0.0  ;;  %v9805_v15 = vmax.f32 %v19724_v51, 0.0  ;;  %v19725_v29 = vld [vmem:[#allocation24_spill] sm:$0xff] }
 0x90f   :  { %9841 = vst [vmem:[#allocation6 + $0x100] sm:$0xff] %v9777_v44  ;;  %9842 = vst [vmem:[#allocation6 + $0x108] sm:$0xff] %v9778_v34  ;;  %v9806_v14 = vmax.f32 %v19725_v29, 0.0 }
 0x910   :  { %9843 = vst [vmem:[#allocation6 + $0x110] sm:$0xff] %v9779_v3  ;;  %9844 = vst [vmem:[#allocation6 + $0x118] sm:$0xff] %v9780_v60 }
 0x911   :  { %9845 = vst [vmem:[#allocation6 + $0x120] sm:$0xff] %v9781_v63  ;;  %9846 = vst [vmem:[#allocation6 + $0x128] sm:$0xff] %v9782_v10 }
 0x912   :  { %9847 = vst [vmem:[#allocation6 + $0x130] sm:$0xff] %v9783_v47  ;;  %9848 = vst [vmem:[#allocation6 + $0x138] sm:$0xff] %v9784_v59 }
 0x913   :  { %9849 = vst [vmem:[#allocation6 + $0x140] sm:$0xff] %v9785_v5  ;;  %9850 = vst [vmem:[#allocation6 + $0x148] sm:$0xff] %v9786_v49 }
 0x914   :  { %9851 = vst [vmem:[#allocation6 + $0x150] sm:$0xff] %v9787_v62  ;;  %9852 = vst [vmem:[#allocation6 + $0x158] sm:$0xff] %v9788_v37 }
 0x915   :  { %9853 = vst [vmem:[#allocation6 + $0x160] sm:$0xff] %v9789_v26  ;;  %9854 = vst [vmem:[#allocation6 + $0x168] sm:$0xff] %v9790_v43 }
 0x916   :  { %9855 = vst [vmem:[#allocation6 + $0x170] sm:$0xff] %v9791_v38  ;;  %9856 = vst [vmem:[#allocation6 + $0x178] sm:$0xff] %v9792_v36 }
 0x917   :  { %9857 = vst [vmem:[#allocation6 + $0x180] sm:$0xff] %v9793_v61  ;;  %9858 = vst [vmem:[#allocation6 + $0x188] sm:$0xff] %v9794_v50 }
 0x918   :  { %9859 = vst [vmem:[#allocation6 + $0x190] sm:$0xff] %v9795_v21  ;;  %9860 = vst [vmem:[#allocation6 + $0x198] sm:$0xff] %v9796_v53 }
 0x919   :  { %9861 = vst [vmem:[#allocation6 + $0x1a0] sm:$0xff] %v9797_v39  ;;  %9862 = vst [vmem:[#allocation6 + $0x1a8] sm:$0xff] %v9798_v7 }
 0x91a   :  { %9863 = vst [vmem:[#allocation6 + $0x1b0] sm:$0xff] %v9799_v20  ;;  %9864 = vst [vmem:[#allocation6 + $0x1b8] sm:$0xff] %v9800_v2 }
 0x91b   :  { %9865 = vst [vmem:[#allocation6 + $0x1c0] sm:$0xff] %v9801_v42  ;;  %9866 = vst [vmem:[#allocation6 + $0x1c8] sm:$0xff] %v9802_v16 }
 0x91c   :  { %9867 = vst [vmem:[#allocation6 + $0x1d0] sm:$0xff] %v9803_v27  ;;  %9868 = vst [vmem:[#allocation6 + $0x1d8] sm:$0xff] %v9804_v35 }
 0x91d   :  { %9869 = vst [vmem:[#allocation6 + $0x1e0] sm:$0xff] %v9805_v15  ;;  %9870 = vst [vmem:[#allocation6 + $0x1e8] sm:$0xff] %v9806_v14 }
 0x91e   :  { %9871 = vst [vmem:[#allocation6 + $0x1f0] sm:$0xff] %v9807_v6 }
 0x91f   :  { %11704 = shalt.err (!%p11701_p9)
}
 0x920   :  { %s11722_s23 = smov 128   ;;  %s11723_s24 = smov 8  }
 0x921   :  { %9884 = dma.vmem_to_hbm [thread:$0]  %s9879_s2, 8192, %s18215_s4, [#allocation5], %s11722_s23, %s11722_s23, %s11723_s24  }
 0x922   :  { %11715 = dma.done.wait [#allocation5], 8192  }
 0x923   :  { %11716 = vsyncadd [#allocation5], 4294959104 }
 0x924   :  { %9888 = vsyncpa [#allocation4], 1 }
 0x925   :  { %9889 = vsyncpa [#allocation5], 1 }

</bundles_post_ra>
